<compile_context>
chip_gen: v7x
topology: tpu7x:2x2x1
jax: 0.10.0
libtpu: 0.0.40
codegen_flags: <defaults>
</compile_context>

<pallas_src>
import functools

import jax
import jax.numpy as jnp
from jax.experimental import pallas as pl
from jax.experimental.pallas import tpu as pltpu


CONV_K, CONV_S, CONV_P = 6, 2, 1
CONV_OUT = 16
POOL_K, POOL_S = 3, 2
OH = OW = 15          # conv output spatial (32 + 2*1 - 6)//2 + 1
PH = PW = 7           # pool output spatial (15 - 3)//2 + 1
CPAD = 128            # conv output channels zero-padded to a full lane group
FLAT = CONV_OUT * PH * PW  # 784


# ----------------------------------------------------------------------------
# Fused Pallas kernel: conv (as im2col matmul) + ReLU + maxpool + fc1 + fc2
# ----------------------------------------------------------------------------
def _fused_cnn_kernel(xq_ref, wc_ref, bc_ref, w1_ref, b1_ref, w2_ref, b2_ref,
                      out_ref, p_ref, conv_ref, pool_ref, flat_ref, *,
                      batch, in_ch):
    B = batch
    C4 = 4 * in_ch                 # columns per parity group (ph, pw, c)
    R = conv_ref.shape[0]          # 17*17*B "padded geometry" rows
    PR = pool_ref.shape[0]

    # (1) im2col in VMEM: the 9 (dh, dw) kernel-offset groups are just
    #     row-shifted slabs of the parity-packed input; each becomes one
    #     12-wide column block of the (R, 36*C) patch matrix.
    for dh in range(3):
        for dw in range(3):
            shift = (dh * 17 + dw) * B
            col = (dh * 3 + dw) * C4
            p_ref[:, pl.ds(col, C4)] = xq_ref[pl.ds(shift, R), :]

    # (2) conv = ONE MXU matmul over K = 36*C, output channels padded to 128
    #     lanes (unmasked stores); fused bias + ReLU.  Row r = (oh*17+ow)*B + b;
    #     rows with oh/ow >= 15 are junk and never read downstream.
    conv = jnp.dot(p_ref[...], wc_ref[...], preferred_element_type=jnp.float32)
    conv_ref[...] = jnp.maximum(conv + bc_ref[...], 0.0)

    # (3) fused 3x3 / stride-2 max-pool: running max over 9 row-shifted views
    #     of the VMEM-resident conv output (stride handled by row indexing).
    m = conv_ref[pl.ds(0, PR), :]
    for dh in range(3):
        for dw in range(3):
            if dh == 0 and dw == 0:
                continue
            shift = (dh * 17 + dw) * B
            m = jnp.maximum(m, conv_ref[pl.ds(shift, PR), :])
    pool_ref[...] = m

    # (4) flatten the 7x7x16 pooled features in HWC order (fc1 weight rows were
    #     pre-permuted to match), dropping the 112 zero-padded channels.
    for ph in range(PH):
        for pw in range(PW):
            row = (34 * ph + 2 * pw) * B            # conv row of (2ph, 2pw)
            colf = (ph * PW + pw) * CONV_OUT
            flat_ref[:, pl.ds(colf, CONV_OUT)] = pool_ref[pl.ds(row, B),
                                                          pl.ds(0, CONV_OUT)]

    # (5) fc1 (+ReLU) and fc2, still inside the same kernel.
    h = jnp.maximum(
        jnp.dot(flat_ref[...], w1_ref[...], preferred_element_type=jnp.float32)
        + b1_ref[...],
        0.0,
    )
    out_ref[...] = (
        jnp.dot(h, w2_ref[...], preferred_element_type=jnp.float32)
        + b2_ref[...]
    ).astype(out_ref.dtype)


def fused_cnn_forward(xq, wc, bc, w1, b1, w2, b2, *, batch, in_ch, num_classes):
    R = 17 * 17 * batch                      # padded conv-row geometry
    PR = ((217 * batch + 7) // 8) * 8        # pool slab rows (covers all 7x7)
    assert PR + 36 * batch <= R              # pool shifts stay inside conv_ref

    kernel = functools.partial(_fused_cnn_kernel, batch=batch, in_ch=in_ch)
    # No grid at this size: one program, whole arrays resident in VMEM.
    # At large batch, add a "parallel" grid over rows (v7x megacore) and
    # tile/bf16-cast the fc1 matmul.
    return pl.pallas_call(
        kernel,
        out_shape=jax.ShapeDtypeStruct((batch, num_classes), jnp.float32),
        in_specs=[
            pl.BlockSpec(xq.shape, lambda: (0, 0)),
            pl.BlockSpec(wc.shape, lambda: (0, 0)),
            pl.BlockSpec(bc.shape, lambda: (0, 0)),
            pl.BlockSpec(w1.shape, lambda: (0, 0)),
            pl.BlockSpec(b1.shape, lambda: (0, 0)),
            pl.BlockSpec(w2.shape, lambda: (0, 0)),
            pl.BlockSpec(b2.shape, lambda: (0, 0)),
        ],
        out_specs=pl.BlockSpec((batch, num_classes), lambda: (0, 0)),
        scratch_shapes=[
            pltpu.VMEM((R, 36 * in_ch), jnp.float32),       # im2col patches
            pltpu.VMEM((R, CPAD), jnp.float32),             # conv + ReLU output
            pltpu.VMEM((PR, CPAD), jnp.float32),            # pooled slab
            pltpu.VMEM((batch, FLAT), jnp.float32),         # flattened features
        ],
    )(xq, wc, bc, w1, b1, w2, b2)


# ----------------------------------------------------------------------------
# Forward wrapper: only cheap layout glue outside the kernel
# ----------------------------------------------------------------------------
def model_forward(x, kp):
    """x: (B, C, 32, 32) float32 NCHW.  Returns (B, num_classes)."""
    B, C, H, W = x.shape
    assert H == 32 and W == 32, "fc1 expects 16*7*7 features -> 32x32 input"

    # NCHW -> NHWC + zero-pad spatial by 1 (pure layout plumbing, ~28 KB).
    xh = jnp.transpose(x, (0, 2, 3, 1))
    xh = jnp.pad(xh, ((0, 0), (1, 1), (1, 1), (0, 0)))          # (B, 34, 34, C)

    # Parity-pack: row (i*17 + j)*B + b, column (ph*2+pw)*C + c holds pixel
    # (2i+ph, 2j+pw, c).  Stride-2 conv / pool then become constant row shifts.
    xq = xh.reshape(B, 17, 2, 17, 2, C)
    xq = jnp.transpose(xq, (1, 3, 0, 2, 4, 5))                  # (17,17,B,2,2,C)
    xq = xq.reshape(17 * 17 * B, 4 * C)
    rows_needed = 17 * 17 * B + 36 * B                          # max shift 36*B
    xq_rows = ((rows_needed + 7) // 8) * 8
    xq = jnp.pad(xq, ((0, xq_rows - 17 * 17 * B), (0, 0)))

    return fused_cnn_forward(xq, kp["wc"], kp["bc"], kp["w1"], kp["b1"],
                             kp["w2"], kp["b2"], batch=B, in_ch=C,
                             num_classes=kp["w2"].shape[1])


# ----------------------------------------------------------------------------
# Parameters: PyTorch-shaped init + one-time (outside jit) kernel-layout prep
# ----------------------------------------------------------------------------
def init_params(key, num_channels, num_classes):
    """Deterministic synthetic parameters with PyTorch-module shapes."""
    ks = jax.random.split(key, 6)
    fan_conv = num_channels * CONV_K * CONV_K
    fan_fc1 = CONV_OUT * PH * PW
    fan_fc2 = 512
    return {
        "conv1_w": jax.random.normal(ks[0], (CONV_OUT, num_channels, CONV_K, CONV_K),
                                     jnp.float32) * (1.0 / fan_conv) ** 0.5,
        "conv1_b": jax.random.normal(ks[1], (CONV_OUT,), jnp.float32) * 0.01,
        "fc1_w": jax.random.normal(ks[2], (512, fan_fc1), jnp.float32) * (1.0 / fan_fc1) ** 0.5,
        "fc1_b": jax.random.normal(ks[3], (512,), jnp.float32) * 0.01,
        "fc2_w": jax.random.normal(ks[4], (num_classes, fan_fc2), jnp.float32) * (1.0 / fan_fc2) ** 0.5,
        "fc2_b": jax.random.normal(ks[5], (num_classes,), jnp.float32) * 0.01,
    }


def prepare_params(params, num_channels, num_classes):
    """One-time weight re-layout (outside jit) for the fused kernel."""
    C = num_channels
    # conv weight (16, C, 6, 6) -> rows ordered (dh, dw, ph, pw, c) with
    # kh = 2*dh + ph, kw = 2*dw + pw; output channels zero-padded to 128 lanes.
    wc = jnp.transpose(params["conv1_w"], (2, 3, 1, 0))   # (kh, kw, C, 16)
    wc = wc.reshape(3, 2, 3, 2, C, CONV_OUT)              # (dh, ph, dw, pw, C, O)
    wc = jnp.transpose(wc, (0, 2, 1, 3, 4, 5))            # (dh, dw, ph, pw, C, O)
    wc = wc.reshape(36 * C, CONV_OUT)
    wc = jnp.pad(wc, ((0, 0), (0, CPAD - CONV_OUT)))
    bc = jnp.pad(params["conv1_b"], (0, CPAD - CONV_OUT)).reshape(1, CPAD)

    # fc1: transpose + permute input-feature rows from CHW to HWC flatten order.
    w1 = params["fc1_w"].reshape(512, CONV_OUT, PH, PW)    # (n, c, ph, pw)
    w1 = jnp.transpose(w1, (2, 3, 1, 0))                   # (ph, pw, c, n)
    w1 = w1.reshape(FLAT, 512)
    b1 = params["fc1_b"].reshape(1, 512)

    w2 = params["fc2_w"].T                                 # (512, num_classes)
    b2 = params["fc2_b"].reshape(1, num_classes)
    return {"wc": wc, "bc": bc, "w1": w1, "b1": b1, "w2": w2, "b2": b2}


# ----------------------------------------------------------------------------
# Pure-JAX reference (matches the PyTorch module) for validation
# ----------------------------------------------------------------------------
def reference_forward(x, params):
    conv = jax.lax.conv_general_dilated(
        x, params["conv1_w"], window_strides=(CONV_S, CONV_S),
        padding=((CONV_P, CONV_P), (CONV_P, CONV_P)),
        dimension_numbers=("NCHW", "OIHW", "NCHW"))
    conv = jnp.maximum(conv + params["conv1_b"][None, :, None, None], 0.0)
    wins = jnp.stack([conv[:, :, i:i + 13:2, j:j + 13:2]
                      for i in range(POOL_K) for j in range(POOL_K)], axis=0)
    pooled = jnp.max(wins, axis=0)                         # (B, 16, 7, 7)
    flat = pooled.reshape(x.shape[0], -1)
    h = jnp.maximum(flat @ params["fc1_w"].T + params["fc1_b"], 0.0)
    return h @ params["fc2_w"].T + params["fc2_b"]


if __name__ == "__main__":
    B, C, HW, NUM_CLASSES = 2, 3, 32, 10

    key = jax.random.PRNGKey(0)
    k_x, k_p = jax.random.split(key)
    x = jax.random.normal(k_x, (B, C, HW, HW), jnp.float32)
    params = init_params(k_p, C, NUM_CLASSES)
    kparams = prepare_params(params, C, NUM_CLASSES)       # one-time re-layout

    out = jax.jit(model_forward)(x, kparams)
    out = jax.block_until_ready(out)
    assert out.shape == (B, NUM_CLASSES)
    assert bool(jnp.all(jnp.isfinite(out)))

    ref = reference_forward(x, params)
    err = float(jnp.max(jnp.abs(out - ref)))
    assert jnp.allclose(out, ref, rtol=2e-3, atol=2e-3), f"max abs err {err}"

    print("KERNEL_OK")
</pallas_src>

<mosaic_0001>
module attributes {stable_mosaic.version = 11 : i64} {
  func.func @_fused_cnn_kernel(%arg0: memref<656x12xf32, #tpu.memory_space<vmem>>, %arg1: memref<108x128xf32, #tpu.memory_space<vmem>>, %arg2: memref<1x128xf32, #tpu.memory_space<vmem>>, %arg3: memref<784x512xf32, #tpu.memory_space<vmem>>, %arg4: memref<1x512xf32, #tpu.memory_space<vmem>>, %arg5: memref<512x10xf32, #tpu.memory_space<vmem>>, %arg6: memref<1x10xf32, #tpu.memory_space<vmem>>, %arg7: memref<2x10xf32, #tpu.memory_space<vmem>>, %arg8: memref<578x108xf32, #tpu.memory_space<vmem>>, %arg9: memref<578x128xf32, #tpu.memory_space<vmem>>, %arg10: memref<440x128xf32, #tpu.memory_space<vmem>>, %arg11: memref<2x784xf32, #tpu.memory_space<vmem>>) attributes {dimension_semantics = [], scalar_prefetch = 0 : i64, scratch_operands = 4 : i64, tpu.core_type = #tpu.core_type<tc>} {
    %c0 = arith.constant 0 : index
    %c0_0 = arith.constant 0 : index
    %0 = vector.load %arg0[%c0, %c0_0] : memref<656x12xf32, #tpu.memory_space<vmem>>, vector<578x12xf32>
    %c0_1 = arith.constant 0 : index
    %c0_2 = arith.constant 0 : index
    %1 = vector.load %arg8[%c0_1, %c0_2] : memref<578x108xf32, #tpu.memory_space<vmem>>, vector<578x12xf32>
    tpu.vector_store %arg8[%c0_1, %c0_2], %0 {strides = array<i32>} : memref<578x108xf32, #tpu.memory_space<vmem>>, vector<578x12xf32>,
    %c2 = arith.constant 2 : index
    %c0_3 = arith.constant 0 : index
    %2 = vector.load %arg0[%c2, %c0_3] : memref<656x12xf32, #tpu.memory_space<vmem>>, vector<578x12xf32>
    %c0_4 = arith.constant 0 : index
    %c12 = arith.constant 12 : index
    %3 = vector.load %arg8[%c0_4, %c12] : memref<578x108xf32, #tpu.memory_space<vmem>>, vector<578x12xf32>
    tpu.vector_store %arg8[%c0_4, %c12], %2 {strides = array<i32>} : memref<578x108xf32, #tpu.memory_space<vmem>>, vector<578x12xf32>,
    %c4 = arith.constant 4 : index
    %c0_5 = arith.constant 0 : index
    %4 = vector.load %arg0[%c4, %c0_5] : memref<656x12xf32, #tpu.memory_space<vmem>>, vector<578x12xf32>
    %c0_6 = arith.constant 0 : index
    %c24 = arith.constant 24 : index
    %5 = vector.load %arg8[%c0_6, %c24] : memref<578x108xf32, #tpu.memory_space<vmem>>, vector<578x12xf32>
    tpu.vector_store %arg8[%c0_6, %c24], %4 {strides = array<i32>} : memref<578x108xf32, #tpu.memory_space<vmem>>, vector<578x12xf32>,
    %c34 = arith.constant 34 : index
    %c0_7 = arith.constant 0 : index
    %6 = vector.load %arg0[%c34, %c0_7] : memref<656x12xf32, #tpu.memory_space<vmem>>, vector<578x12xf32>
    %c0_8 = arith.constant 0 : index
    %c36 = arith.constant 36 : index
    %7 = vector.load %arg8[%c0_8, %c36] : memref<578x108xf32, #tpu.memory_space<vmem>>, vector<578x12xf32>
    tpu.vector_store %arg8[%c0_8, %c36], %6 {strides = array<i32>} : memref<578x108xf32, #tpu.memory_space<vmem>>, vector<578x12xf32>,
    %c36_9 = arith.constant 36 : index
    %c0_10 = arith.constant 0 : index
    %8 = vector.load %arg0[%c36_9, %c0_10] : memref<656x12xf32, #tpu.memory_space<vmem>>, vector<578x12xf32>
    %c0_11 = arith.constant 0 : index
    %c48 = arith.constant 48 : index
    %9 = vector.load %arg8[%c0_11, %c48] : memref<578x108xf32, #tpu.memory_space<vmem>>, vector<578x12xf32>
    tpu.vector_store %arg8[%c0_11, %c48], %8 {strides = array<i32>} : memref<578x108xf32, #tpu.memory_space<vmem>>, vector<578x12xf32>,
    %c38 = arith.constant 38 : index
    %c0_12 = arith.constant 0 : index
    %10 = vector.load %arg0[%c38, %c0_12] : memref<656x12xf32, #tpu.memory_space<vmem>>, vector<578x12xf32>
    %c0_13 = arith.constant 0 : index
    %c60 = arith.constant 60 : index
    %11 = vector.load %arg8[%c0_13, %c60] : memref<578x108xf32, #tpu.memory_space<vmem>>, vector<578x12xf32>
    tpu.vector_store %arg8[%c0_13, %c60], %10 {strides = array<i32>} : memref<578x108xf32, #tpu.memory_space<vmem>>, vector<578x12xf32>,
    %c68 = arith.constant 68 : index
    %c0_14 = arith.constant 0 : index
    %12 = vector.load %arg0[%c68, %c0_14] : memref<656x12xf32, #tpu.memory_space<vmem>>, vector<578x12xf32>
    %c0_15 = arith.constant 0 : index
    %c72 = arith.constant 72 : index
    %13 = vector.load %arg8[%c0_15, %c72] : memref<578x108xf32, #tpu.memory_space<vmem>>, vector<578x12xf32>
    tpu.vector_store %arg8[%c0_15, %c72], %12 {strides = array<i32>} : memref<578x108xf32, #tpu.memory_space<vmem>>, vector<578x12xf32>,
    %c70 = arith.constant 70 : index
    %c0_16 = arith.constant 0 : index
    %14 = vector.load %arg0[%c70, %c0_16] : memref<656x12xf32, #tpu.memory_space<vmem>>, vector<578x12xf32>
    %c0_17 = arith.constant 0 : index
    %c84 = arith.constant 84 : index
    %15 = vector.load %arg8[%c0_17, %c84] : memref<578x108xf32, #tpu.memory_space<vmem>>, vector<578x12xf32>
    tpu.vector_store %arg8[%c0_17, %c84], %14 {strides = array<i32>} : memref<578x108xf32, #tpu.memory_space<vmem>>, vector<578x12xf32>,
    %c72_18 = arith.constant 72 : index
    %c0_19 = arith.constant 0 : index
    %16 = vector.load %arg0[%c72_18, %c0_19] : memref<656x12xf32, #tpu.memory_space<vmem>>, vector<578x12xf32>
    %c0_20 = arith.constant 0 : index
    %c96 = arith.constant 96 : index
    %17 = vector.load %arg8[%c0_20, %c96] : memref<578x108xf32, #tpu.memory_space<vmem>>, vector<578x12xf32>
    tpu.vector_store %arg8[%c0_20, %c96], %16 {strides = array<i32>} : memref<578x108xf32, #tpu.memory_space<vmem>>, vector<578x12xf32>,
    %c0_21 = arith.constant 0 : index
    %c0_22 = arith.constant 0 : index
    %18 = vector.load %arg8[%c0_21, %c0_22] : memref<578x108xf32, #tpu.memory_space<vmem>>, vector<578x108xf32>
    %c0_23 = arith.constant 0 : index
    %c0_24 = arith.constant 0 : index
    %19 = vector.load %arg1[%c0_23, %c0_24] : memref<108x128xf32, #tpu.memory_space<vmem>>, vector<108x128xf32>
    %cst = arith.constant dense<0.000000e+00> : vector<578x128xf32>
    %20 = tpu.matmul %18, %19, %cst {dimension_numbers = #tpu.dot_dimension_numbers<[1], [0], [0], [1], [0, 0, 1, 1], [], []>} : vector<578x108xf32>, vector<108x128xf32>, vector<578x128xf32> -> vector<578x128xf32>
    %c0_25 = arith.constant 0 : index
    %c0_26 = arith.constant 0 : index
    %21 = vector.load %arg2[%c0_25, %c0_26] : memref<1x128xf32, #tpu.memory_space<vmem>>, vector<1x128xf32>
    %22 = vector.broadcast %21 : vector<1x128xf32> to vector<578x128xf32>
    %23 = arith.addf %20, %22 : vector<578x128xf32>
    %cst_27 = arith.constant 0.000000e+00 : f32
    %24 = vector.broadcast %cst_27 : f32 to vector<578x128xf32>
    %25 = arith.maximumf %23, %24 : vector<578x128xf32>
    %c0_28 = arith.constant 0 : index
    %c0_29 = arith.constant 0 : index
    %26 = vector.load %arg9[%c0_28, %c0_29] : memref<578x128xf32, #tpu.memory_space<vmem>>, vector<578x128xf32>
    tpu.vector_store %arg9[%c0_28, %c0_29], %25 {strides = array<i32>} : memref<578x128xf32, #tpu.memory_space<vmem>>, vector<578x128xf32>,
    %c0_30 = arith.constant 0 : index
    %c0_31 = arith.constant 0 : index
    %27 = vector.load %arg9[%c0_30, %c0_31] : memref<578x128xf32, #tpu.memory_space<vmem>>, vector<440x128xf32>
    %c2_32 = arith.constant 2 : index
    %c0_33 = arith.constant 0 : index
    %28 = vector.load %arg9[%c2_32, %c0_33] : memref<578x128xf32, #tpu.memory_space<vmem>>, vector<440x128xf32>
    %29 = arith.maximumf %27, %28 : vector<440x128xf32>
    %c4_34 = arith.constant 4 : index
    %c0_35 = arith.constant 0 : index
    %30 = vector.load %arg9[%c4_34, %c0_35] : memref<578x128xf32, #tpu.memory_space<vmem>>, vector<440x128xf32>
    %31 = arith.maximumf %29, %30 : vector<440x128xf32>
    %c34_36 = arith.constant 34 : index
    %c0_37 = arith.constant 0 : index
    %32 = vector.load %arg9[%c34_36, %c0_37] : memref<578x128xf32, #tpu.memory_space<vmem>>, vector<440x128xf32>
    %33 = arith.maximumf %31, %32 : vector<440x128xf32>
    %c36_38 = arith.constant 36 : index
    %c0_39 = arith.constant 0 : index
    %34 = vector.load %arg9[%c36_38, %c0_39] : memref<578x128xf32, #tpu.memory_space<vmem>>, vector<440x128xf32>
    %35 = arith.maximumf %33, %34 : vector<440x128xf32>
    %c38_40 = arith.constant 38 : index
    %c0_41 = arith.constant 0 : index
    %36 = vector.load %arg9[%c38_40, %c0_41] : memref<578x128xf32, #tpu.memory_space<vmem>>, vector<440x128xf32>
    %37 = arith.maximumf %35, %36 : vector<440x128xf32>
    %c68_42 = arith.constant 68 : index
    %c0_43 = arith.constant 0 : index
    %38 = vector.load %arg9[%c68_42, %c0_43] : memref<578x128xf32, #tpu.memory_space<vmem>>, vector<440x128xf32>
    %39 = arith.maximumf %37, %38 : vector<440x128xf32>
    %c70_44 = arith.constant 70 : index
    %c0_45 = arith.constant 0 : index
    %40 = vector.load %arg9[%c70_44, %c0_45] : memref<578x128xf32, #tpu.memory_space<vmem>>, vector<440x128xf32>
    %41 = arith.maximumf %39, %40 : vector<440x128xf32>
    %c72_46 = arith.constant 72 : index
    %c0_47 = arith.constant 0 : index
    %42 = vector.load %arg9[%c72_46, %c0_47] : memref<578x128xf32, #tpu.memory_space<vmem>>, vector<440x128xf32>
    %43 = arith.maximumf %41, %42 : vector<440x128xf32>
    %c0_48 = arith.constant 0 : index
    %c0_49 = arith.constant 0 : index
    %44 = vector.load %arg10[%c0_48, %c0_49] : memref<440x128xf32, #tpu.memory_space<vmem>>, vector<440x128xf32>
    tpu.vector_store %arg10[%c0_48, %c0_49], %43 {strides = array<i32>} : memref<440x128xf32, #tpu.memory_space<vmem>>, vector<440x128xf32>,
    %c0_50 = arith.constant 0 : index
    %c0_51 = arith.constant 0 : index
    %45 = vector.load %arg10[%c0_50, %c0_51] : memref<440x128xf32, #tpu.memory_space<vmem>>, vector<2x16xf32>
    %c0_52 = arith.constant 0 : index
    %c0_53 = arith.constant 0 : index
    %46 = vector.load %arg11[%c0_52, %c0_53] : memref<2x784xf32, #tpu.memory_space<vmem>>, vector<2x16xf32>
    tpu.vector_store %arg11[%c0_52, %c0_53], %45 {strides = array<i32>} : memref<2x784xf32, #tpu.memory_space<vmem>>, vector<2x16xf32>,
    %c4_54 = arith.constant 4 : index
    %c0_55 = arith.constant 0 : index
    %47 = vector.load %arg10[%c4_54, %c0_55] : memref<440x128xf32, #tpu.memory_space<vmem>>, vector<2x16xf32>
    %c0_56 = arith.constant 0 : index
    %c16 = arith.constant 16 : index
    %48 = vector.load %arg11[%c0_56, %c16] : memref<2x784xf32, #tpu.memory_space<vmem>>, vector<2x16xf32>
    tpu.vector_store %arg11[%c0_56, %c16], %47 {strides = array<i32>} : memref<2x784xf32, #tpu.memory_space<vmem>>, vector<2x16xf32>,
    %c8 = arith.constant 8 : index
    %c0_57 = arith.constant 0 : index
    %49 = vector.load %arg10[%c8, %c0_57] : memref<440x128xf32, #tpu.memory_space<vmem>>, vector<2x16xf32>
    %c0_58 = arith.constant 0 : index
    %c32 = arith.constant 32 : index
    %50 = vector.load %arg11[%c0_58, %c32] : memref<2x784xf32, #tpu.memory_space<vmem>>, vector<2x16xf32>
    tpu.vector_store %arg11[%c0_58, %c32], %49 {strides = array<i32>} : memref<2x784xf32, #tpu.memory_space<vmem>>, vector<2x16xf32>,
    %c12_59 = arith.constant 12 : index
    %c0_60 = arith.constant 0 : index
    %51 = vector.load %arg10[%c12_59, %c0_60] : memref<440x128xf32, #tpu.memory_space<vmem>>, vector<2x16xf32>
    %c0_61 = arith.constant 0 : index
    %c48_62 = arith.constant 48 : index
    %52 = vector.load %arg11[%c0_61, %c48_62] : memref<2x784xf32, #tpu.memory_space<vmem>>, vector<2x16xf32>
    tpu.vector_store %arg11[%c0_61, %c48_62], %51 {strides = array<i32>} : memref<2x784xf32, #tpu.memory_space<vmem>>, vector<2x16xf32>,
    %c16_63 = arith.constant 16 : index
    %c0_64 = arith.constant 0 : index
    %53 = vector.load %arg10[%c16_63, %c0_64] : memref<440x128xf32, #tpu.memory_space<vmem>>, vector<2x16xf32>
    %c0_65 = arith.constant 0 : index
    %c64 = arith.constant 64 : index
    %54 = vector.load %arg11[%c0_65, %c64] : memref<2x784xf32, #tpu.memory_space<vmem>>, vector<2x16xf32>
    tpu.vector_store %arg11[%c0_65, %c64], %53 {strides = array<i32>} : memref<2x784xf32, #tpu.memory_space<vmem>>, vector<2x16xf32>,
    %c20 = arith.constant 20 : index
    %c0_66 = arith.constant 0 : index
    %55 = vector.load %arg10[%c20, %c0_66] : memref<440x128xf32, #tpu.memory_space<vmem>>, vector<2x16xf32>
    %c0_67 = arith.constant 0 : index
    %c80 = arith.constant 80 : index
    %56 = vector.load %arg11[%c0_67, %c80] : memref<2x784xf32, #tpu.memory_space<vmem>>, vector<2x16xf32>
    tpu.vector_store %arg11[%c0_67, %c80], %55 {strides = array<i32>} : memref<2x784xf32, #tpu.memory_space<vmem>>, vector<2x16xf32>,
    %c24_68 = arith.constant 24 : index
    %c0_69 = arith.constant 0 : index
    %57 = vector.load %arg10[%c24_68, %c0_69] : memref<440x128xf32, #tpu.memory_space<vmem>>, vector<2x16xf32>
    %c0_70 = arith.constant 0 : index
    %c96_71 = arith.constant 96 : index
    %58 = vector.load %arg11[%c0_70, %c96_71] : memref<2x784xf32, #tpu.memory_space<vmem>>, vector<2x16xf32>
    tpu.vector_store %arg11[%c0_70, %c96_71], %57 {strides = array<i32>} : memref<2x784xf32, #tpu.memory_space<vmem>>, vector<2x16xf32>,
    %c68_72 = arith.constant 68 : index
    %c0_73 = arith.constant 0 : index
    %59 = vector.load %arg10[%c68_72, %c0_73] : memref<440x128xf32, #tpu.memory_space<vmem>>, vector<2x16xf32>
    %c0_74 = arith.constant 0 : index
    %c112 = arith.constant 112 : index
    %60 = vector.load %arg11[%c0_74, %c112] : memref<2x784xf32, #tpu.memory_space<vmem>>, vector<2x16xf32>
    tpu.vector_store %arg11[%c0_74, %c112], %59 {strides = array<i32>} : memref<2x784xf32, #tpu.memory_space<vmem>>, vector<2x16xf32>,
    %c72_75 = arith.constant 72 : index
    %c0_76 = arith.constant 0 : index
    %61 = vector.load %arg10[%c72_75, %c0_76] : memref<440x128xf32, #tpu.memory_space<vmem>>, vector<2x16xf32>
    %c0_77 = arith.constant 0 : index
    %c128 = arith.constant 128 : index
    %62 = vector.load %arg11[%c0_77, %c128] : memref<2x784xf32, #tpu.memory_space<vmem>>, vector<2x16xf32>
    tpu.vector_store %arg11[%c0_77, %c128], %61 {strides = array<i32>} : memref<2x784xf32, #tpu.memory_space<vmem>>, vector<2x16xf32>,
    %c76 = arith.constant 76 : index
    %c0_78 = arith.constant 0 : index
    %63 = vector.load %arg10[%c76, %c0_78] : memref<440x128xf32, #tpu.memory_space<vmem>>, vector<2x16xf32>
    %c0_79 = arith.constant 0 : index
    %c144 = arith.constant 144 : index
    %64 = vector.load %arg11[%c0_79, %c144] : memref<2x784xf32, #tpu.memory_space<vmem>>, vector<2x16xf32>
    tpu.vector_store %arg11[%c0_79, %c144], %63 {strides = array<i32>} : memref<2x784xf32, #tpu.memory_space<vmem>>, vector<2x16xf32>,
    %c80_80 = arith.constant 80 : index
    %c0_81 = arith.constant 0 : index
    %65 = vector.load %arg10[%c80_80, %c0_81] : memref<440x128xf32, #tpu.memory_space<vmem>>, vector<2x16xf32>
    %c0_82 = arith.constant 0 : index
    %c160 = arith.constant 160 : index
    %66 = vector.load %arg11[%c0_82, %c160] : memref<2x784xf32, #tpu.memory_space<vmem>>, vector<2x16xf32>
    tpu.vector_store %arg11[%c0_82, %c160], %65 {strides = array<i32>} : memref<2x784xf32, #tpu.memory_space<vmem>>, vector<2x16xf32>,
    %c84_83 = arith.constant 84 : index
    %c0_84 = arith.constant 0 : index
    %67 = vector.load %arg10[%c84_83, %c0_84] : memref<440x128xf32, #tpu.memory_space<vmem>>, vector<2x16xf32>
    %c0_85 = arith.constant 0 : index
    %c176 = arith.constant 176 : index
    %68 = vector.load %arg11[%c0_85, %c176] : memref<2x784xf32, #tpu.memory_space<vmem>>, vector<2x16xf32>
    tpu.vector_store %arg11[%c0_85, %c176], %67 {strides = array<i32>} : memref<2x784xf32, #tpu.memory_space<vmem>>, vector<2x16xf32>,
    %c88 = arith.constant 88 : index
    %c0_86 = arith.constant 0 : index
    %69 = vector.load %arg10[%c88, %c0_86] : memref<440x128xf32, #tpu.memory_space<vmem>>, vector<2x16xf32>
    %c0_87 = arith.constant 0 : index
    %c192 = arith.constant 192 : index
    %70 = vector.load %arg11[%c0_87, %c192] : memref<2x784xf32, #tpu.memory_space<vmem>>, vector<2x16xf32>
    tpu.vector_store %arg11[%c0_87, %c192], %69 {strides = array<i32>} : memref<2x784xf32, #tpu.memory_space<vmem>>, vector<2x16xf32>,
    %c92 = arith.constant 92 : index
    %c0_88 = arith.constant 0 : index
    %71 = vector.load %arg10[%c92, %c0_88] : memref<440x128xf32, #tpu.memory_space<vmem>>, vector<2x16xf32>
    %c0_89 = arith.constant 0 : index
    %c208 = arith.constant 208 : index
    %72 = vector.load %arg11[%c0_89, %c208] : memref<2x784xf32, #tpu.memory_space<vmem>>, vector<2x16xf32>
    tpu.vector_store %arg11[%c0_89, %c208], %71 {strides = array<i32>} : memref<2x784xf32, #tpu.memory_space<vmem>>, vector<2x16xf32>,
    %c136 = arith.constant 136 : index
    %c0_90 = arith.constant 0 : index
    %73 = vector.load %arg10[%c136, %c0_90] : memref<440x128xf32, #tpu.memory_space<vmem>>, vector<2x16xf32>
    %c0_91 = arith.constant 0 : index
    %c224 = arith.constant 224 : index
    %74 = vector.load %arg11[%c0_91, %c224] : memref<2x784xf32, #tpu.memory_space<vmem>>, vector<2x16xf32>
    tpu.vector_store %arg11[%c0_91, %c224], %73 {strides = array<i32>} : memref<2x784xf32, #tpu.memory_space<vmem>>, vector<2x16xf32>,
    %c140 = arith.constant 140 : index
    %c0_92 = arith.constant 0 : index
    %75 = vector.load %arg10[%c140, %c0_92] : memref<440x128xf32, #tpu.memory_space<vmem>>, vector<2x16xf32>
    %c0_93 = arith.constant 0 : index
    %c240 = arith.constant 240 : index
    %76 = vector.load %arg11[%c0_93, %c240] : memref<2x784xf32, #tpu.memory_space<vmem>>, vector<2x16xf32>
    tpu.vector_store %arg11[%c0_93, %c240], %75 {strides = array<i32>} : memref<2x784xf32, #tpu.memory_space<vmem>>, vector<2x16xf32>,
    %c144_94 = arith.constant 144 : index
    %c0_95 = arith.constant 0 : index
    %77 = vector.load %arg10[%c144_94, %c0_95] : memref<440x128xf32, #tpu.memory_space<vmem>>, vector<2x16xf32>
    %c0_96 = arith.constant 0 : index
    %c256 = arith.constant 256 : index
    %78 = vector.load %arg11[%c0_96, %c256] : memref<2x784xf32, #tpu.memory_space<vmem>>, vector<2x16xf32>
    tpu.vector_store %arg11[%c0_96, %c256], %77 {strides = array<i32>} : memref<2x784xf32, #tpu.memory_space<vmem>>, vector<2x16xf32>,
    %c148 = arith.constant 148 : index
    %c0_97 = arith.constant 0 : index
    %79 = vector.load %arg10[%c148, %c0_97] : memref<440x128xf32, #tpu.memory_space<vmem>>, vector<2x16xf32>
    %c0_98 = arith.constant 0 : index
    %c272 = arith.constant 272 : index
    %80 = vector.load %arg11[%c0_98, %c272] : memref<2x784xf32, #tpu.memory_space<vmem>>, vector<2x16xf32>
    tpu.vector_store %arg11[%c0_98, %c272], %79 {strides = array<i32>} : memref<2x784xf32, #tpu.memory_space<vmem>>, vector<2x16xf32>,
    %c152 = arith.constant 152 : index
    %c0_99 = arith.constant 0 : index
    %81 = vector.load %arg10[%c152, %c0_99] : memref<440x128xf32, #tpu.memory_space<vmem>>, vector<2x16xf32>
    %c0_100 = arith.constant 0 : index
    %c288 = arith.constant 288 : index
    %82 = vector.load %arg11[%c0_100, %c288] : memref<2x784xf32, #tpu.memory_space<vmem>>, vector<2x16xf32>
    tpu.vector_store %arg11[%c0_100, %c288], %81 {strides = array<i32>} : memref<2x784xf32, #tpu.memory_space<vmem>>, vector<2x16xf32>,
    %c156 = arith.constant 156 : index
    %c0_101 = arith.constant 0 : index
    %83 = vector.load %arg10[%c156, %c0_101] : memref<440x128xf32, #tpu.memory_space<vmem>>, vector<2x16xf32>
    %c0_102 = arith.constant 0 : index
    %c304 = arith.constant 304 : index
    %84 = vector.load %arg11[%c0_102, %c304] : memref<2x784xf32, #tpu.memory_space<vmem>>, vector<2x16xf32>
    tpu.vector_store %arg11[%c0_102, %c304], %83 {strides = array<i32>} : memref<2x784xf32, #tpu.memory_space<vmem>>, vector<2x16xf32>,
    %c160_103 = arith.constant 160 : index
    %c0_104 = arith.constant 0 : index
    %85 = vector.load %arg10[%c160_103, %c0_104] : memref<440x128xf32, #tpu.memory_space<vmem>>, vector<2x16xf32>
    %c0_105 = arith.constant 0 : index
    %c320 = arith.constant 320 : index
    %86 = vector.load %arg11[%c0_105, %c320] : memref<2x784xf32, #tpu.memory_space<vmem>>, vector<2x16xf32>
    tpu.vector_store %arg11[%c0_105, %c320], %85 {strides = array<i32>} : memref<2x784xf32, #tpu.memory_space<vmem>>, vector<2x16xf32>,
    %c204 = arith.constant 204 : index
    %c0_106 = arith.constant 0 : index
    %87 = vector.load %arg10[%c204, %c0_106] : memref<440x128xf32, #tpu.memory_space<vmem>>, vector<2x16xf32>
    %c0_107 = arith.constant 0 : index
    %c336 = arith.constant 336 : index
    %88 = vector.load %arg11[%c0_107, %c336] : memref<2x784xf32, #tpu.memory_space<vmem>>, vector<2x16xf32>
    tpu.vector_store %arg11[%c0_107, %c336], %87 {strides = array<i32>} : memref<2x784xf32, #tpu.memory_space<vmem>>, vector<2x16xf32>,
    %c208_108 = arith.constant 208 : index
    %c0_109 = arith.constant 0 : index
    %89 = vector.load %arg10[%c208_108, %c0_109] : memref<440x128xf32, #tpu.memory_space<vmem>>, vector<2x16xf32>
    %c0_110 = arith.constant 0 : index
    %c352 = arith.constant 352 : index
    %90 = vector.load %arg11[%c0_110, %c352] : memref<2x784xf32, #tpu.memory_space<vmem>>, vector<2x16xf32>
    tpu.vector_store %arg11[%c0_110, %c352], %89 {strides = array<i32>} : memref<2x784xf32, #tpu.memory_space<vmem>>, vector<2x16xf32>,
    %c212 = arith.constant 212 : index
    %c0_111 = arith.constant 0 : index
    %91 = vector.load %arg10[%c212, %c0_111] : memref<440x128xf32, #tpu.memory_space<vmem>>, vector<2x16xf32>
    %c0_112 = arith.constant 0 : index
    %c368 = arith.constant 368 : index
    %92 = vector.load %arg11[%c0_112, %c368] : memref<2x784xf32, #tpu.memory_space<vmem>>, vector<2x16xf32>
    tpu.vector_store %arg11[%c0_112, %c368], %91 {strides = array<i32>} : memref<2x784xf32, #tpu.memory_space<vmem>>, vector<2x16xf32>,
    %c216 = arith.constant 216 : index
    %c0_113 = arith.constant 0 : index
    %93 = vector.load %arg10[%c216, %c0_113] : memref<440x128xf32, #tpu.memory_space<vmem>>, vector<2x16xf32>
    %c0_114 = arith.constant 0 : index
    %c384 = arith.constant 384 : index
    %94 = vector.load %arg11[%c0_114, %c384] : memref<2x784xf32, #tpu.memory_space<vmem>>, vector<2x16xf32>
    tpu.vector_store %arg11[%c0_114, %c384], %93 {strides = array<i32>} : memref<2x784xf32, #tpu.memory_space<vmem>>, vector<2x16xf32>,
    %c220 = arith.constant 220 : index
    %c0_115 = arith.constant 0 : index
    %95 = vector.load %arg10[%c220, %c0_115] : memref<440x128xf32, #tpu.memory_space<vmem>>, vector<2x16xf32>
    %c0_116 = arith.constant 0 : index
    %c400 = arith.constant 400 : index
    %96 = vector.load %arg11[%c0_116, %c400] : memref<2x784xf32, #tpu.memory_space<vmem>>, vector<2x16xf32>
    tpu.vector_store %arg11[%c0_116, %c400], %95 {strides = array<i32>} : memref<2x784xf32, #tpu.memory_space<vmem>>, vector<2x16xf32>,
    %c224_117 = arith.constant 224 : index
    %c0_118 = arith.constant 0 : index
    %97 = vector.load %arg10[%c224_117, %c0_118] : memref<440x128xf32, #tpu.memory_space<vmem>>, vector<2x16xf32>
    %c0_119 = arith.constant 0 : index
    %c416 = arith.constant 416 : index
    %98 = vector.load %arg11[%c0_119, %c416] : memref<2x784xf32, #tpu.memory_space<vmem>>, vector<2x16xf32>
    tpu.vector_store %arg11[%c0_119, %c416], %97 {strides = array<i32>} : memref<2x784xf32, #tpu.memory_space<vmem>>, vector<2x16xf32>,
    %c228 = arith.constant 228 : index
    %c0_120 = arith.constant 0 : index
    %99 = vector.load %arg10[%c228, %c0_120] : memref<440x128xf32, #tpu.memory_space<vmem>>, vector<2x16xf32>
    %c0_121 = arith.constant 0 : index
    %c432 = arith.constant 432 : index
    %100 = vector.load %arg11[%c0_121, %c432] : memref<2x784xf32, #tpu.memory_space<vmem>>, vector<2x16xf32>
    tpu.vector_store %arg11[%c0_121, %c432], %99 {strides = array<i32>} : memref<2x784xf32, #tpu.memory_space<vmem>>, vector<2x16xf32>,
    %c272_122 = arith.constant 272 : index
    %c0_123 = arith.constant 0 : index
    %101 = vector.load %arg10[%c272_122, %c0_123] : memref<440x128xf32, #tpu.memory_space<vmem>>, vector<2x16xf32>
    %c0_124 = arith.constant 0 : index
    %c448 = arith.constant 448 : index
    %102 = vector.load %arg11[%c0_124, %c448] : memref<2x784xf32, #tpu.memory_space<vmem>>, vector<2x16xf32>
    tpu.vector_store %arg11[%c0_124, %c448], %101 {strides = array<i32>} : memref<2x784xf32, #tpu.memory_space<vmem>>, vector<2x16xf32>,
    %c276 = arith.constant 276 : index
    %c0_125 = arith.constant 0 : index
    %103 = vector.load %arg10[%c276, %c0_125] : memref<440x128xf32, #tpu.memory_space<vmem>>, vector<2x16xf32>
    %c0_126 = arith.constant 0 : index
    %c464 = arith.constant 464 : index
    %104 = vector.load %arg11[%c0_126, %c464] : memref<2x784xf32, #tpu.memory_space<vmem>>, vector<2x16xf32>
    tpu.vector_store %arg11[%c0_126, %c464], %103 {strides = array<i32>} : memref<2x784xf32, #tpu.memory_space<vmem>>, vector<2x16xf32>,
    %c280 = arith.constant 280 : index
    %c0_127 = arith.constant 0 : index
    %105 = vector.load %arg10[%c280, %c0_127] : memref<440x128xf32, #tpu.memory_space<vmem>>, vector<2x16xf32>
    %c0_128 = arith.constant 0 : index
    %c480 = arith.constant 480 : index
    %106 = vector.load %arg11[%c0_128, %c480] : memref<2x784xf32, #tpu.memory_space<vmem>>, vector<2x16xf32>
    tpu.vector_store %arg11[%c0_128, %c480], %105 {strides = array<i32>} : memref<2x784xf32, #tpu.memory_space<vmem>>, vector<2x16xf32>,
    %c284 = arith.constant 284 : index
    %c0_129 = arith.constant 0 : index
    %107 = vector.load %arg10[%c284, %c0_129] : memref<440x128xf32, #tpu.memory_space<vmem>>, vector<2x16xf32>
    %c0_130 = arith.constant 0 : index
    %c496 = arith.constant 496 : index
    %108 = vector.load %arg11[%c0_130, %c496] : memref<2x784xf32, #tpu.memory_space<vmem>>, vector<2x16xf32>
    tpu.vector_store %arg11[%c0_130, %c496], %107 {strides = array<i32>} : memref<2x784xf32, #tpu.memory_space<vmem>>, vector<2x16xf32>,
    %c288_131 = arith.constant 288 : index
    %c0_132 = arith.constant 0 : index
    %109 = vector.load %arg10[%c288_131, %c0_132] : memref<440x128xf32, #tpu.memory_space<vmem>>, vector<2x16xf32>
    %c0_133 = arith.constant 0 : index
    %c512 = arith.constant 512 : index
    %110 = vector.load %arg11[%c0_133, %c512] : memref<2x784xf32, #tpu.memory_space<vmem>>, vector<2x16xf32>
    tpu.vector_store %arg11[%c0_133, %c512], %109 {strides = array<i32>} : memref<2x784xf32, #tpu.memory_space<vmem>>, vector<2x16xf32>,
    %c292 = arith.constant 292 : index
    %c0_134 = arith.constant 0 : index
    %111 = vector.load %arg10[%c292, %c0_134] : memref<440x128xf32, #tpu.memory_space<vmem>>, vector<2x16xf32>
    %c0_135 = arith.constant 0 : index
    %c528 = arith.constant 528 : index
    %112 = vector.load %arg11[%c0_135, %c528] : memref<2x784xf32, #tpu.memory_space<vmem>>, vector<2x16xf32>
    tpu.vector_store %arg11[%c0_135, %c528], %111 {strides = array<i32>} : memref<2x784xf32, #tpu.memory_space<vmem>>, vector<2x16xf32>,
    %c296 = arith.constant 296 : index
    %c0_136 = arith.constant 0 : index
    %113 = vector.load %arg10[%c296, %c0_136] : memref<440x128xf32, #tpu.memory_space<vmem>>, vector<2x16xf32>
    %c0_137 = arith.constant 0 : index
    %c544 = arith.constant 544 : index
    %114 = vector.load %arg11[%c0_137, %c544] : memref<2x784xf32, #tpu.memory_space<vmem>>, vector<2x16xf32>
    tpu.vector_store %arg11[%c0_137, %c544], %113 {strides = array<i32>} : memref<2x784xf32, #tpu.memory_space<vmem>>, vector<2x16xf32>,
    %c340 = arith.constant 340 : index
    %c0_138 = arith.constant 0 : index
    %115 = vector.load %arg10[%c340, %c0_138] : memref<440x128xf32, #tpu.memory_space<vmem>>, vector<2x16xf32>
    %c0_139 = arith.constant 0 : index
    %c560 = arith.constant 560 : index
    %116 = vector.load %arg11[%c0_139, %c560] : memref<2x784xf32, #tpu.memory_space<vmem>>, vector<2x16xf32>
    tpu.vector_store %arg11[%c0_139, %c560], %115 {strides = array<i32>} : memref<2x784xf32, #tpu.memory_space<vmem>>, vector<2x16xf32>,
    %c344 = arith.constant 344 : index
    %c0_140 = arith.constant 0 : index
    %117 = vector.load %arg10[%c344, %c0_140] : memref<440x128xf32, #tpu.memory_space<vmem>>, vector<2x16xf32>
    %c0_141 = arith.constant 0 : index
    %c576 = arith.constant 576 : index
    %118 = vector.load %arg11[%c0_141, %c576] : memref<2x784xf32, #tpu.memory_space<vmem>>, vector<2x16xf32>
    tpu.vector_store %arg11[%c0_141, %c576], %117 {strides = array<i32>} : memref<2x784xf32, #tpu.memory_space<vmem>>, vector<2x16xf32>,
    %c348 = arith.constant 348 : index
    %c0_142 = arith.constant 0 : index
    %119 = vector.load %arg10[%c348, %c0_142] : memref<440x128xf32, #tpu.memory_space<vmem>>, vector<2x16xf32>
    %c0_143 = arith.constant 0 : index
    %c592 = arith.constant 592 : index
    %120 = vector.load %arg11[%c0_143, %c592] : memref<2x784xf32, #tpu.memory_space<vmem>>, vector<2x16xf32>
    tpu.vector_store %arg11[%c0_143, %c592], %119 {strides = array<i32>} : memref<2x784xf32, #tpu.memory_space<vmem>>, vector<2x16xf32>,
    %c352_144 = arith.constant 352 : index
    %c0_145 = arith.constant 0 : index
    %121 = vector.load %arg10[%c352_144, %c0_145] : memref<440x128xf32, #tpu.memory_space<vmem>>, vector<2x16xf32>
    %c0_146 = arith.constant 0 : index
    %c608 = arith.constant 608 : index
    %122 = vector.load %arg11[%c0_146, %c608] : memref<2x784xf32, #tpu.memory_space<vmem>>, vector<2x16xf32>
    tpu.vector_store %arg11[%c0_146, %c608], %121 {strides = array<i32>} : memref<2x784xf32, #tpu.memory_space<vmem>>, vector<2x16xf32>,
    %c356 = arith.constant 356 : index
    %c0_147 = arith.constant 0 : index
    %123 = vector.load %arg10[%c356, %c0_147] : memref<440x128xf32, #tpu.memory_space<vmem>>, vector<2x16xf32>
    %c0_148 = arith.constant 0 : index
    %c624 = arith.constant 624 : index
    %124 = vector.load %arg11[%c0_148, %c624] : memref<2x784xf32, #tpu.memory_space<vmem>>, vector<2x16xf32>
    tpu.vector_store %arg11[%c0_148, %c624], %123 {strides = array<i32>} : memref<2x784xf32, #tpu.memory_space<vmem>>, vector<2x16xf32>,
    %c360 = arith.constant 360 : index
    %c0_149 = arith.constant 0 : index
    %125 = vector.load %arg10[%c360, %c0_149] : memref<440x128xf32, #tpu.memory_space<vmem>>, vector<2x16xf32>
    %c0_150 = arith.constant 0 : index
    %c640 = arith.constant 640 : index
    %126 = vector.load %arg11[%c0_150, %c640] : memref<2x784xf32, #tpu.memory_space<vmem>>, vector<2x16xf32>
    tpu.vector_store %arg11[%c0_150, %c640], %125 {strides = array<i32>} : memref<2x784xf32, #tpu.memory_space<vmem>>, vector<2x16xf32>,
    %c364 = arith.constant 364 : index
    %c0_151 = arith.constant 0 : index
    %127 = vector.load %arg10[%c364, %c0_151] : memref<440x128xf32, #tpu.memory_space<vmem>>, vector<2x16xf32>
    %c0_152 = arith.constant 0 : index
    %c656 = arith.constant 656 : index
    %128 = vector.load %arg11[%c0_152, %c656] : memref<2x784xf32, #tpu.memory_space<vmem>>, vector<2x16xf32>
    tpu.vector_store %arg11[%c0_152, %c656], %127 {strides = array<i32>} : memref<2x784xf32, #tpu.memory_space<vmem>>, vector<2x16xf32>,
    %c408 = arith.constant 408 : index
    %c0_153 = arith.constant 0 : index
    %129 = vector.load %arg10[%c408, %c0_153] : memref<440x128xf32, #tpu.memory_space<vmem>>, vector<2x16xf32>
    %c0_154 = arith.constant 0 : index
    %c672 = arith.constant 672 : index
    %130 = vector.load %arg11[%c0_154, %c672] : memref<2x784xf32, #tpu.memory_space<vmem>>, vector<2x16xf32>
    tpu.vector_store %arg11[%c0_154, %c672], %129 {strides = array<i32>} : memref<2x784xf32, #tpu.memory_space<vmem>>, vector<2x16xf32>,
    %c412 = arith.constant 412 : index
    %c0_155 = arith.constant 0 : index
    %131 = vector.load %arg10[%c412, %c0_155] : memref<440x128xf32, #tpu.memory_space<vmem>>, vector<2x16xf32>
    %c0_156 = arith.constant 0 : index
    %c688 = arith.constant 688 : index
    %132 = vector.load %arg11[%c0_156, %c688] : memref<2x784xf32, #tpu.memory_space<vmem>>, vector<2x16xf32>
    tpu.vector_store %arg11[%c0_156, %c688], %131 {strides = array<i32>} : memref<2x784xf32, #tpu.memory_space<vmem>>, vector<2x16xf32>,
    %c416_157 = arith.constant 416 : index
    %c0_158 = arith.constant 0 : index
    %133 = vector.load %arg10[%c416_157, %c0_158] : memref<440x128xf32, #tpu.memory_space<vmem>>, vector<2x16xf32>
    %c0_159 = arith.constant 0 : index
    %c704 = arith.constant 704 : index
    %134 = vector.load %arg11[%c0_159, %c704] : memref<2x784xf32, #tpu.memory_space<vmem>>, vector<2x16xf32>
    tpu.vector_store %arg11[%c0_159, %c704], %133 {strides = array<i32>} : memref<2x784xf32, #tpu.memory_space<vmem>>, vector<2x16xf32>,
    %c420 = arith.constant 420 : index
    %c0_160 = arith.constant 0 : index
    %135 = vector.load %arg10[%c420, %c0_160] : memref<440x128xf32, #tpu.memory_space<vmem>>, vector<2x16xf32>
    %c0_161 = arith.constant 0 : index
    %c720 = arith.constant 720 : index
    %136 = vector.load %arg11[%c0_161, %c720] : memref<2x784xf32, #tpu.memory_space<vmem>>, vector<2x16xf32>
    tpu.vector_store %arg11[%c0_161, %c720], %135 {strides = array<i32>} : memref<2x784xf32, #tpu.memory_space<vmem>>, vector<2x16xf32>,
    %c424 = arith.constant 424 : index
    %c0_162 = arith.constant 0 : index
    %137 = vector.load %arg10[%c424, %c0_162] : memref<440x128xf32, #tpu.memory_space<vmem>>, vector<2x16xf32>
    %c0_163 = arith.constant 0 : index
    %c736 = arith.constant 736 : index
    %138 = vector.load %arg11[%c0_163, %c736] : memref<2x784xf32, #tpu.memory_space<vmem>>, vector<2x16xf32>
    tpu.vector_store %arg11[%c0_163, %c736], %137 {strides = array<i32>} : memref<2x784xf32, #tpu.memory_space<vmem>>, vector<2x16xf32>,
    %c428 = arith.constant 428 : index
    %c0_164 = arith.constant 0 : index
    %139 = vector.load %arg10[%c428, %c0_164] : memref<440x128xf32, #tpu.memory_space<vmem>>, vector<2x16xf32>
    %c0_165 = arith.constant 0 : index
    %c752 = arith.constant 752 : index
    %140 = vector.load %arg11[%c0_165, %c752] : memref<2x784xf32, #tpu.memory_space<vmem>>, vector<2x16xf32>
    tpu.vector_store %arg11[%c0_165, %c752], %139 {strides = array<i32>} : memref<2x784xf32, #tpu.memory_space<vmem>>, vector<2x16xf32>,
    %c432_166 = arith.constant 432 : index
    %c0_167 = arith.constant 0 : index
    %141 = vector.load %arg10[%c432_166, %c0_167] : memref<440x128xf32, #tpu.memory_space<vmem>>, vector<2x16xf32>
    %c0_168 = arith.constant 0 : index
    %c768 = arith.constant 768 : index
    %142 = vector.load %arg11[%c0_168, %c768] : memref<2x784xf32, #tpu.memory_space<vmem>>, vector<2x16xf32>
    tpu.vector_store %arg11[%c0_168, %c768], %141 {strides = array<i32>} : memref<2x784xf32, #tpu.memory_space<vmem>>, vector<2x16xf32>,
    %c0_169 = arith.constant 0 : index
    %c0_170 = arith.constant 0 : index
    %143 = vector.load %arg11[%c0_169, %c0_170] : memref<2x784xf32, #tpu.memory_space<vmem>>, vector<2x784xf32>
    %c0_171 = arith.constant 0 : index
    %c0_172 = arith.constant 0 : index
    %144 = vector.load %arg3[%c0_171, %c0_172] : memref<784x512xf32, #tpu.memory_space<vmem>>, vector<784x512xf32>
    %cst_173 = arith.constant dense<0.000000e+00> : vector<2x512xf32>
    %145 = tpu.matmul %143, %144, %cst_173 {dimension_numbers = #tpu.dot_dimension_numbers<[1], [0], [0], [1], [0, 0, 1, 1], [], []>} : vector<2x784xf32>, vector<784x512xf32>, vector<2x512xf32> -> vector<2x512xf32>
    %c0_174 = arith.constant 0 : index
    %c0_175 = arith.constant 0 : index
    %146 = vector.load %arg4[%c0_174, %c0_175] : memref<1x512xf32, #tpu.memory_space<vmem>>, vector<1x512xf32>
    %147 = vector.broadcast %146 : vector<1x512xf32> to vector<2x512xf32>
    %148 = arith.addf %145, %147 : vector<2x512xf32>
    %cst_176 = arith.constant 0.000000e+00 : f32
    %149 = vector.broadcast %cst_176 : f32 to vector<2x512xf32>
    %150 = arith.maximumf %148, %149 : vector<2x512xf32>
    %c0_177 = arith.constant 0 : index
    %c0_178 = arith.constant 0 : index
    %151 = vector.load %arg5[%c0_177, %c0_178] : memref<512x10xf32, #tpu.memory_space<vmem>>, vector<512x10xf32>
    %cst_179 = arith.constant dense<0.000000e+00> : vector<2x10xf32>
    %152 = tpu.matmul %150, %151, %cst_179 {dimension_numbers = #tpu.dot_dimension_numbers<[1], [0], [0], [1], [0, 0, 1, 1], [], []>} : vector<2x512xf32>, vector<512x10xf32>, vector<2x10xf32> -> vector<2x10xf32>
    %c0_180 = arith.constant 0 : index
    %c0_181 = arith.constant 0 : index
    %153 = vector.load %arg6[%c0_180, %c0_181] : memref<1x10xf32, #tpu.memory_space<vmem>>, vector<1x10xf32>
    %154 = vector.broadcast %153 : vector<1x10xf32> to vector<2x10xf32>
    %155 = arith.addf %152, %154 : vector<2x10xf32>
    %c0_182 = arith.constant 0 : index
    %c0_183 = arith.constant 0 : index
    %156 = vector.load %arg7[%c0_182, %c0_183] : memref<2x10xf32, #tpu.memory_space<vmem>>, vector<2x10xf32>
    tpu.vector_store %arg7[%c0_182, %c0_183], %155 {strides = array<i32>} : memref<2x10xf32, #tpu.memory_space<vmem>>, vector<2x10xf32>,
    return
  }
}

</mosaic_0001>

<bundles_post_ra>
// kernel: model_forward.1
= control target key start
LH: loop header
LB: loop body
LE: loop exit
PB: predicated region body
PF: predicated region fallthrough
CT: control target
= control target key end

     0   :  { %s8227_s28 = smov 36   ;;  %s8228_s29 = smov 12   ;;  %v8229_v4 = vmov 0.0|0.0   ;;  %vm100_vm0 = vcmask 97280   ;;  %vm13911_vm1 = vmmov 0   ;;  %v8235_v14 = vmov 0.0   ;;  %s13903_s0 = inlined_call_operand.vmem [shape: f32[656,12], index: 0, kind: input, shape index: {}]   ;;  %s13904_s1 = inlined_call_operand.vmem [shape: f32[108,128], index: 1, kind: input, shape index: {}]   ;;  %s13905_s2 = inlined_call_operand.vmem [shape: f32[1,128], index: 2, kind: input, shape index: {}]   ;;  %s13906_s3 = inlined_call_operand.vmem [shape: f32[784,512], index: 3, kind: input, shape index: {}]   ;;  %s13907_s4 = inlined_call_operand.vmem [shape: f32[1,512], index: 4, kind: input, shape index: {}]   ;;  %s13908_s5 = inlined_call_operand.vmem [shape: f32[512,10], index: 5, kind: input, shape index: {}]   ;;  %s13909_s6 = inlined_call_operand.vmem [shape: f32[1,10], index: 6, kind: input, shape index: {}]   ;;  %s13910_s7 = inlined_call_operand.hbm [shape: f32[2,10], index: 7, kind: output, shape index: {}]  }
   0x1   :  { %v8289_v0 = vld [vmem:[%s13903_s0 + $0x22] sm:$0xff]  ;;  %7680 = vmatprep.subr.bf16.mxu0 %v8229_v4  ;;  %s8230_s13 = smov 48   ;;  %s8231_s14 = smov 24   ;;  %v176_v7 = vld [vmem:[%s13903_s0 + $0xa] sm:$0xff]  ;;  %v8331_v9 = vld [vmem:[%s13903_s0 + $0x58] sm:$0xff]  ;;  %7461 = vmatprep.mubr.msk.f32.mxu0 %vm13911_vm1, %v8235_v14 }
   0x2   :  { %v175_v1 = vld [vmem:[%s13903_s0 + $0x2] sm:$0xff]  ;;  %1201 = vrot.lane.b32.xlu1 %v8289_v0, %s8227_s28  ;;  %v8322_v8 = vld [vmem:[%s13903_s0 + $0x50] sm:$0xff]  ;;  %s8232_s21 = smov 60   ;;  %112 = vst.msk [vmem:[#allocation2 + $0x58] sm:$0xff] %vm100_vm0, %v8331_v9  ;;  %s8233_s30 = smov 72   ;;  %v3771_v21 = vld [vmem:[%s13904_s1 + $0x18] sm:$0xff] }
   0x3   :  { %321 = vrot.lane.b32.xlu0 %v175_v1, %s8228_s29  ;;  %v8300_v2 = vld [vmem:[%s13903_s0 + $0x24] sm:$0xff]  ;;  %111 = vst.msk [vmem:[#allocation2 + $0x50] sm:$0xff] %vm100_vm0, %v8322_v8  ;;  %v616_v11 = vld [vmem:[%s13903_s0 + $0xc] sm:$0xff]  ;;  %s8236_s20 = smov 84   ;;  %s8237_s16 = smov 96   ;;  %v3775_v31 = vld [vmem:[%s13904_s1 + $0x38] sm:$0xff] }
   0x4   :  { %v615_v3 = vld [vmem:[%s13903_s0 + $0x4] sm:$0xff]  ;;  %v3770_v19 = vld [vmem:[%s13904_s1 + $0x10] sm:$0xff] }
   0x5   :  { %v3255_v5 = vld [vmem:[%s13903_s0 + $0x48] sm:$0xff]  ;;  %v27_v15 = vld [vmem:[%s13903_s0] sm:$0xff]  ;;  %v7684_v23 = vpack.c.bf16 %v3771_v21, %v3770_v19  ;;  %v177_v27 = vld [vmem:[%s13903_s0 + $0x12] sm:$0xff] }
   0x6   :  { %110 = vst.msk [vmem:[#allocation2 + $0x48] sm:$0xff] %vm100_vm0, %v3255_v5  ;;  %1641 = vrot.lane.b32.xlu1 %v8300_v2, %s8230_s13  ;;  %v1935_v6 = vld [vmem:[%s13903_s0 + $0x26] sm:$0xff]  ;;  %101 = vst.msk [vmem:[#allocation2] sm:$0xff] %vm100_vm0, %v27_v15  ;;  %v1936_v26 = vld [vmem:[%s13903_s0 + $0x2e] sm:$0xff] }
   0x7   :  { %761 = vrot.lane.b32.xlu0 %v615_v3, %s8231_s14  ;;  %v8336_v10 = vld [vmem:[%s13903_s0 + $0x44] sm:$0xff]  ;;  %v8378_v20 = vld [vmem:[%s13903_s0 + $0x2c] sm:$0xff] }
   0x8   :  { %v8349_v12 = vld [vmem:[%s13903_s0 + $0x46] sm:$0xff]  ;;  %v29_v29 = vld [vmem:[%s13903_s0 + $0x10] sm:$0xff] }
   0x9   :  { %v8354_v13 = vld [vmem:[%s13903_s0 + $0x2a] sm:$0xff]  ;;  %v3768_v16 = vld [vmem:[%s13904_s1] sm:$0xff]  ;;  %103 = vst.msk [vmem:[#allocation2 + $0x10] sm:$0xff] %vm100_vm0, %v29_v29 }
   0xa   :  { %2081 = vrot.lane.b32.xlu1 %v1935_v6, %s8232_s21  ;;  %v3769_v17 = vld [vmem:[%s13904_s1 + $0x8] sm:$0xff]  ;;  %v3772_v24 = vld [vmem:[%s13904_s1 + $0x20] sm:$0xff]  ;;  %v3774_v30 = vld [vmem:[%s13904_s1 + $0x30] sm:$0xff] }
   0xb   :  { %323 = vrot.lane.b32.xlu0 %v176_v7, %s8228_s29  ;;  %v7681_v18 = vpack.c.bf16 %v3769_v17, %v3768_v16  ;;  %v28_v22 = vld [vmem:[%s13903_s0 + $0x8] sm:$0xff] }
   0xc   :  { %102 = vst.msk [vmem:[#allocation2 + $0x8] sm:$0xff] %vm100_vm0, %v28_v22  ;;  %v3773_v25 = vld [vmem:[%s13904_s1 + $0x28] sm:$0xff] }
   0xd   :  { %7682 = vmatpush3.bf16.msra.mxu0 %v7681_v18  ;;  %v7687_v28 = vpack.c.bf16 %v3773_v25, %v3772_v24 }
   0xe   :  { %2521 = vrot.lane.b32.xlu1 %v8336_v10, %s8233_s30  ;;  %7683 = vmatprep.subr.bf16.mxu0 %v8229_v4 }
   0xf   :  { %763 = vrot.lane.b32.xlu0 %v616_v11, %s8231_s14 }
  0x11   :  { %7685 = vmatpush3.bf16.msra.mxu0 %v7684_v23 }
  0x12   :  { %2961 = vrot.lane.b32.xlu1 %v8349_v12, %s8236_s20  ;;  %7686 = vmatprep.subr.bf16.mxu0 %v8229_v4 }
  0x13   :  { %1203 = vrot.lane.b32.xlu0 %v8354_v13, %s8227_s28 }
  0x16   :  { %3401 = vrot.lane.b32.xlu1 %v3255_v5, %s8237_s16 }
  0x17   :  { %1643 = vrot.lane.b32.xlu0 %v8378_v20, %s8230_s13 }
  0x1a   :  { %2083 = vrot.lane.b32.xlu1 %v1936_v26, %s8232_s21 }
  0x1b   :  { %325 = vrot.lane.b32.xlu0 %v177_v27, %s8228_s29 }
  0x1c   :  { %12 = vsyncpa [#allocation7], 0  ;;  %v8419_v32 = vld [vmem:[%s13903_s0 + $0x4c] sm:$0xff]  ;;  %v617_v33 = vld [vmem:[%s13903_s0 + $0x14] sm:$0xff]  ;;  %7688 = vmatpush3.bf16.msra.mxu0 %v7687_v28  ;;  %v7690_v35 = vpack.c.bf16 %v3775_v31, %v3774_v30  ;;  %vm4009_vm2 = vcmask 1043456   ;;  %vm8238_vm3 = vmmov 1  }
  0x1d   :  { %v30_v34 = vld [vmem:[%s13903_s0 + $0x18] sm:$0xff]  ;;  %7689 = vmatprep.subr.bf16.mxu0 %v8229_v4  ;;  %v3776_v36 = vld [vmem:[%s13904_s1 + $0x40] sm:$0xff]  ;;  %v3777_v37 = vld [vmem:[%s13904_s1 + $0x48] sm:$0xff]  ;;  %vm540_vm5 = vcmask 195680   ;;  %vm980_vm6 = vcmask 294080   ;;  %vm1420_vm7 = vcmask 392480  }
  0x1e   :  { %104 = vst.msk [vmem:[#allocation2 + $0x18] sm:$0xff] %vm100_vm0, %v30_v34  ;;  %2523 = vrot.lane.b32.xlu1 %v8419_v32, %s8233_s30  ;;  %v8441_v38 = vld [vmem:[%s13903_s0 + $0x4e] sm:$0xff]  ;;  %v7693_v40 = vpack.c.bf16 %v3777_v37, %v3776_v36  ;;  %v3779_v42 = vld [vmem:[%s13904_s1 + $0x58] sm:$0xff]  ;;  %v3780_v45 = vld [vmem:[%s13904_s1 + $0x60] sm:$0xff]  ;;  %vm1860_vm8 = vcmask 490880   ;;  %vm2300_vm9 = vcmask 589280  }
  0x1f   :  { %765 = vrot.lane.b32.xlu0 %v617_v33, %s8231_s14  ;;  %v8446_v39 = vld [vmem:[%s13903_s0 + $0x32] sm:$0xff]  ;;  %v3781_v46 = vld [vmem:[%s13904_s1 + $0x68] sm:$0xf]  ;;  %v178_v48 = vld [vmem:[%s13903_s0 + $0x1a] sm:$0xff]  ;;  %vm2740_vm10 = vcmask 687680   ;;  %vm3180_vm11 = vcmask 786080  }
  0x20   :  { %7691 = vmatpush3.bf16.msra.mxu0 %v7690_v35  ;;  %v3778_v41 = vld [vmem:[%s13904_s1 + $0x50] sm:$0xff]  ;;  %v7699_v49 = vpack.c.bf16 %v3781_v46, %v3780_v45  ;;  %vm7700_vm4 = vmpackc.low %vm4009_vm2, %vm8238_vm3  ;;  %v618_v51 = vld [vmem:[%s13903_s0 + $0x1c] sm:$0xff]  ;;  %vm13914_vm12 = vcmask 884480   ;;  %vm13913_vm13 = vcmask 883712   ;;  %vm5330_vm14 = vcmask 123904   ;;  %s8239_s23 = smov 16  }
  0x21   :  { %7692 = vmatprep.subr.bf16.mxu0 %v8229_v4  ;;  %v8462_v43 = vld [vmem:[%s13903_s0 + $0x34] sm:$0xff]  ;;  %v7696_v44 = vpack.c.bf16 %v3779_v42, %v3778_v41  ;;  %v31_v52 = vld [vmem:[%s13903_s0 + $0x20] sm:$0xff]  ;;  %v32_v58 = vld [vmem:[%s13903_s0 + $0x28] sm:$0xff]  ;;  %s8240_s11 = smov 32   ;;  %s8241_s24 = smov 64   ;;  %vm5344_vm15 = vcmask 255104  }
  0x22   :  { %2963 = vrot.lane.b32.xlu1 %v8441_v38, %s8236_s20  ;;  %v1937_v47 = vld [vmem:[%s13903_s0 + $0x36] sm:$0xff]  ;;  %105 = vst.msk [vmem:[#allocation2 + $0x20] sm:$0xff] %vm100_vm0, %v31_v52  ;;  %v1938_v56 = vld [vmem:[%s13903_s0 + $0x3e] sm:$0xff]  ;;  %106 = vst.msk [vmem:[#allocation2 + $0x28] sm:$0xff] %vm100_vm0, %v32_v58  ;;  %s8242_s22 = smov 80   ;;  %s8243_s10 = smov 112  }
  0x23   :  { %1205 = vrot.lane.b32.xlu0 %v8446_v39, %s8227_s28  ;;  %v8487_v50 = vld [vmem:[%s13903_s0 + $0x54] sm:$0xff]  ;;  %v1498_v55 = vld [vmem:[%s13903_s0 + $0x3c] sm:$0xff]  ;;  %v8553_v62 = vld [vmem:[%s13903_s0 + $0x64] sm:$0xff]  ;;  %vm5358_vm2 = vcmask 386304   ;;  %vm5372_vm3 = vcmask 517504   ;;  %s8245_s9 = smov [#allocation6]  }
  0x24   :  { %7694 = vmatpush3.bf16.msra.mxu0 %v7693_v40  ;;  %v2817_v53 = vld [vmem:[%s13903_s0 + $0x56] sm:$0xff]  ;;  %v2818_v59 = vld [vmem:[%s13903_s0 + $0x5e] sm:$0xff]  ;;  %v8571_v1 = vld [vmem:[%s13903_s0 + $0x4a] sm:$0xff] }
  0x25   :  { %7695 = vmatprep.subr.bf16.mxu0 %v8229_v4  ;;  %v1058_v54 = vld [vmem:[%s13903_s0 + $0x3a] sm:$0xff]  ;;  %v1059_v60 = vld [vmem:[%s13903_s0 + $0x42] sm:$0xff]  ;;  %v33_v63 = vld [vmem:[%s13903_s0 + $0x30] sm:$0xff] }
  0x26   :  { %3403 = vrot.lane.b32.xlu1 %v8322_v8, %s8237_s16  ;;  %v8522_v57 = vld [vmem:[%s13903_s0 + $0x5c] sm:$0xff]  ;;  %107 = vst.msk [vmem:[#allocation2 + $0x30] sm:$0xff] %vm100_vm0, %v33_v63  ;;  %v8590_v3 = vld [vmem:[%s13903_s0 + $0x6c] sm:$0xff]  ;;  %v8625_v8 = vld [vmem:[%s13903_s0 + $0x74] sm:$0xff] }
  0x27   :  { %1645 = vrot.lane.b32.xlu0 %v8462_v43, %s8230_s13  ;;  %v3258_v61 = vld [vmem:[%s13903_s0 + $0x60] sm:$0xff]  ;;  %v8603_v5 = vld [vmem:[%s13903_s0 + $0x6e] sm:$0xff]  ;;  %v8637_v11 = vld [vmem:[%s13903_s0 + $0x76] sm:$0xff] }
  0x28   :  { %7697 = vmatpush3.bf16.msra.mxu0 %v7696_v44  ;;  %v8608_v6 = vld [vmem:[%s13903_s0 + $0x52] sm:$0xff]  ;;  %v8663_v19 = vld [vmem:[%s13903_s0 + $0x7c] sm:$0xff]  ;;  %v8704_v30 = vld [vmem:[%s13903_s0 + $0x84] sm:$0xff] }
  0x29   :  { %7698 = vmatprep.subr.bf16.mxu0 %v8229_v4  ;;  %v34_v4 = vld [vmem:[%s13903_s0 + $0x38] sm:$0xff]  ;;  %v3260_v7 = vld [vmem:[%s13903_s0 + $0x70] sm:$0xff]  ;;  %v8679_v23 = vld [vmem:[%s13903_s0 + $0x62] sm:$0xff] }
  0x2a   :  { %2085 = vrot.lane.b32.xlu1 %v1937_v47, %s8232_s21  ;;  %108 = vst.msk [vmem:[#allocation2 + $0x38] sm:$0xff] %vm100_vm0, %v34_v4  ;;  %v8674_v22 = vld [vmem:[%s13903_s0 + $0x7e] sm:$0xff]  ;;  %v8715_v34 = vld [vmem:[%s13903_s0 + $0x86] sm:$0xff]  ;;  %v8759_v46 = vld [vmem:[%s13903_s0 + $0x8e] sm:$0xff] }
  0x2b   :  { %327 = vrot.lane.b32.xlu0 %v178_v48, %s8228_s29  ;;  %v8720_v35 = vld [vmem:[%s13903_s0 + $0x6a] sm:$0xff]  ;;  %v8764_v47 = vld [vmem:[%s13903_s0 + $0x72] sm:$0xff]  ;;  %v39_v58 = vld [vmem:[%s13903_s0 + $0x60] sm:$0xff] }
  0x2c   :  { %7701 = vmatpush3.bf16.msk.msra.mxu0 %vm7700_vm4, %v7699_v49  ;;  %113 = vst.msk [vmem:[#allocation2 + $0x60] sm:$0xff] %vm100_vm0, %v39_v58  ;;  %v8812_v63 = vld [vmem:[%s13903_s0 + $0x7a] sm:$0xff]  ;;  %vm5386_vm4 = vcmask 648704  }
  0x2d   :  { %v8999_v58 = vld [vmem:[%s13903_s0 + $0xb6] sm:$0xff] }
  0x2e   :  { %2525 = vrot.lane.b32.xlu1 %v8487_v50, %s8233_s30 }
  0x2f   :  { %767 = vrot.lane.b32.xlu0 %v618_v51, %s8231_s14 }
  0x32   :  { %2965 = vrot.lane.b32.xlu1 %v2817_v53, %s8236_s20 }
  0x33   :  { %1207 = vrot.lane.b32.xlu0 %v1058_v54, %s8227_s28 }
  0x36   :  { %3405 = vrot.lane.b32.xlu1 %v8331_v9, %s8237_s16  ;;  %v35_v9 = vld [vmem:[%s13903_s0 + $0x40] sm:$0xff] }
  0x37   :  { %1647 = vrot.lane.b32.xlu0 %v1498_v55, %s8230_s13  ;;  %109 = vst.msk [vmem:[#allocation2 + $0x40] sm:$0xff] %vm100_vm0, %v35_v9  ;;  %v8840_v9 = vld [vmem:[%s13903_s0 + $0x9c] sm:$0xff] }
  0x3a   :  { %2087 = vrot.lane.b32.xlu1 %v1938_v56, %s8232_s21  ;;  %v8792_v56 = vld [vmem:[%s13903_s0 + $0x94] sm:$0xff] }
  0x3b   :  { %329 = vrot.lane.b32.xlu0 %v8289_v0, %s8228_s29  ;;  %v8566_v0 = vld [vmem:[%s13903_s0 + $0x66] sm:$0xff] }
  0x3e   :  { %2527 = vrot.lane.b32.xlu1 %v8522_v57, %s8233_s30 }
  0x3f   :  { %769 = vrot.lane.b32.xlu0 %v8300_v2, %s8231_s14  ;;  %v3259_v2 = vld [vmem:[%s13903_s0 + $0x68] sm:$0xff] }
  0x42   :  { %2967 = vrot.lane.b32.xlu1 %v2818_v59, %s8236_s20 }
  0x43   :  { %1209 = vrot.lane.b32.xlu0 %v1059_v60, %s8227_s28 }
  0x46   :  { %3407 = vrot.lane.b32.xlu1 %v3258_v61, %s8237_s16  ;;  %v8807_v61 = vld [vmem:[%s13903_s0 + $0x96] sm:$0xff] }
  0x47   :  { %1649 = vrot.lane.b32.xlu0 %v8336_v10, %s8230_s13 }
  0x4a   :  { %2089 = vrot.lane.b32.xlu1 %v8349_v12, %s8232_s21  ;;  %v8642_v12 = vld [vmem:[%s13903_s0 + $0x5a] sm:$0xff] }
  0x4b   :  { %331 = vrot.lane.b32.xlu0 %v8354_v13, %s8228_s29  ;;  %v3261_v13 = vld [vmem:[%s13903_s0 + $0x78] sm:$0xff] }
  0x4e   :  { %2529 = vrot.lane.b32.xlu1 %v8553_v62, %s8233_s30 }
  0x4f   :  { %771 = vrot.lane.b32.xlu0 %v8378_v20, %s8231_s14 }
  0x52   :  { %2969 = vrot.lane.b32.xlu1 %v8566_v0, %s8236_s20 }
  0x53   :  { %1211 = vrot.lane.b32.xlu0 %v8571_v1, %s8227_s28 }
  0x56   :  { %3409 = vrot.lane.b32.xlu1 %v3259_v2, %s8237_s16 }
  0x57   :  { %1651 = vrot.lane.b32.xlu0 %v8419_v32, %s8230_s13 }
  0x5a   :  { %2091 = vrot.lane.b32.xlu1 %v8441_v38, %s8232_s21 }
  0x5b   :  { %333 = vrot.lane.b32.xlu0 %v8446_v39, %s8228_s29 }
  0x5e   :  { %2531 = vrot.lane.b32.xlu1 %v8590_v3, %s8233_s30 }
  0x5f   :  { %773 = vrot.lane.b32.xlu0 %v8462_v43, %s8231_s14  ;;  %v8748_v43 = vld [vmem:[%s13903_s0 + $0x8c] sm:$0xff] }
  0x62   :  { %2971 = vrot.lane.b32.xlu1 %v8603_v5, %s8236_s20 }
  0x63   :  { %1213 = vrot.lane.b32.xlu0 %v8608_v6, %s8227_s28 }
  0x66   :  { %3411 = vrot.lane.b32.xlu1 %v3260_v7, %s8237_s16 }
  0x67   :  { %1653 = vrot.lane.b32.xlu0 %v8487_v50, %s8230_s13 }
  0x6a   :  { %2093 = vrot.lane.b32.xlu1 %v2817_v53, %s8232_s21 }
  0x6b   :  { %335 = vrot.lane.b32.xlu0 %v1058_v54, %s8228_s29 }
  0x6e   :  { %2533 = vrot.lane.b32.xlu1 %v8625_v8, %s8233_s30 }
  0x6f   :  { %775 = vrot.lane.b32.xlu0 %v1498_v55, %s8231_s14 }
  0x72   :  { %2973 = vrot.lane.b32.xlu1 %v8637_v11, %s8236_s20 }
  0x73   :  { %1215 = vrot.lane.b32.xlu0 %v8642_v12, %s8227_s28 }
  0x74   :  { %v1202_v15 = vpop.permute.xlu1 %1201 }
  0x75   :  { %v322_v16 = vpop.permute.xlu0 %321 }
  0x76   :  { %541 = vst.msk [vmem:[#allocation2] sm:$0xff] %vm540_vm5, %v322_v16  ;;  %3413 = vrot.lane.b32.xlu1 %v3261_v13, %s8237_s16  ;;  %v8860_v16 = vld [vmem:[%s13903_s0 + $0x82] sm:$0xff] }
  0x77   :  { %1655 = vrot.lane.b32.xlu0 %v8522_v57, %s8230_s13 }
  0x78   :  { %v1642_v17 = vpop.permute.xlu1 %1641 }
  0x79   :  { %v762_v18 = vpop.permute.xlu0 %761 }
  0x7a   :  { %981 = vst.msk [vmem:[#allocation2] sm:$0xff] %vm980_vm6, %v762_v18  ;;  %2095 = vrot.lane.b32.xlu1 %v2818_v59, %s8232_s21 }
  0x7b   :  { %1421 = vst.msk [vmem:[#allocation2] sm:$0xff] %vm1420_vm7, %v1202_v15  ;;  %337 = vrot.lane.b32.xlu0 %v1059_v60, %s8228_s29  ;;  %v8855_v15 = vld [vmem:[%s13903_s0 + $0x9e] sm:$0xff] }
  0x7c   :  { %1861 = vst.msk [vmem:[#allocation2] sm:$0xff] %vm1860_vm8, %v1642_v17  ;;  %v2082_v20 = vpop.permute.xlu1 %2081 }
  0x7d   :  { %v324_v21 = vpop.permute.xlu0 %323  ;;  %2301 = vst.msk [vmem:[#allocation2] sm:$0xff] %vm2300_vm9, %v2082_v20 }
  0x7e   :  { %542 = vst.msk [vmem:[#allocation2 + $0x8] sm:$0xff] %vm540_vm5, %v324_v21  ;;  %2535 = vrot.lane.b32.xlu1 %v8663_v19, %s8233_s30 }
  0x7f   :  { %777 = vrot.lane.b32.xlu0 %v8336_v10, %s8231_s14  ;;  %v3262_v10 = vld [vmem:[%s13903_s0 + $0x80] sm:$0xff] }
  0x80   :  { %v2522_v24 = vpop.permute.xlu1 %2521 }
  0x81   :  { %v764_v25 = vpop.permute.xlu0 %763  ;;  %2741 = vst.msk [vmem:[#allocation2] sm:$0xff] %vm2740_vm10, %v2522_v24 }
  0x82   :  { %982 = vst.msk [vmem:[#allocation2 + $0x8] sm:$0xff] %vm980_vm6, %v764_v25  ;;  %2975 = vrot.lane.b32.xlu1 %v8674_v22, %s8236_s20  ;;  %v8888_v25 = vld [vmem:[%s13903_s0 + $0xa4] sm:$0xff] }
  0x83   :  { %1217 = vrot.lane.b32.xlu0 %v8679_v23, %s8227_s28 }
  0x84   :  { %v2962_v26 = vpop.permute.xlu1 %2961 }
  0x85   :  { %v1204_v27 = vpop.permute.xlu0 %1203  ;;  %3181 = vst.msk [vmem:[#allocation2] sm:$0xff] %vm3180_vm11, %v2962_v26 }
  0x86   :  { %1422 = vst.msk [vmem:[#allocation2 + $0x8] sm:$0xff] %vm1420_vm7, %v1204_v27  ;;  %3415 = vrot.lane.b32.xlu1 %v3262_v10, %s8237_s16  ;;  %v41_v10 = vld [vmem:[%s13903_s0 + $0x70] sm:$0xff] }
  0x87   :  { %1657 = vrot.lane.b32.xlu0 %v8553_v62, %s8230_s13  ;;  %115 = vst.msk [vmem:[#allocation2 + $0x70] sm:$0xff] %vm100_vm0, %v41_v10  ;;  %v9095_v10 = vld [vmem:[%s13903_s0 + $0xc6] sm:$0xff] }
  0x88   :  { %v3402_v28 = vpop.permute.xlu1 %3401 }
  0x89   :  { %v1644_v29 = vpop.permute.xlu0 %1643  ;;  %3621 = vst.msk [vmem:[#allocation2] sm:$0xff] %vm13914_vm12, %v3402_v28  ;;  %v8903_v28 = vld [vmem:[%s13903_s0 + $0xa6] sm:$0xff] }
  0x8a   :  { %1862 = vst.msk [vmem:[#allocation2 + $0x8] sm:$0xff] %vm1860_vm8, %v1644_v29  ;;  %2097 = vrot.lane.b32.xlu1 %v8566_v0, %s8232_s21  ;;  %v8908_v29 = vld [vmem:[%s13903_s0 + $0x8a] sm:$0xff] }
  0x8b   :  { %339 = vrot.lane.b32.xlu0 %v8571_v1, %s8228_s29 }
  0x8c   :  { %v2084_v31 = vpop.permute.xlu1 %2083 }
  0x8d   :  { %v326_v33 = vpop.permute.xlu0 %325  ;;  %2302 = vst.msk [vmem:[#allocation2 + $0x8] sm:$0xff] %vm2300_vm9, %v2084_v31 }
  0x8e   :  { %543 = vst.msk [vmem:[#allocation2 + $0x10] sm:$0xff] %vm540_vm5, %v326_v33  ;;  %2537 = vrot.lane.b32.xlu1 %v8704_v30, %s8233_s30 }
  0x8f   :  { %779 = vrot.lane.b32.xlu0 %v8419_v32, %s8231_s14  ;;  %v3263_v32 = vld [vmem:[%s13903_s0 + $0x88] sm:$0xff] }
  0x90   :  { %v2524_v36 = vpop.permute.xlu1 %2523  ;;  %v3695_v38 = vld [vmem:[#allocation2] sm:$0xff] }
  0x91   :  { %v766_v37 = vpop.permute.xlu0 %765  ;;  %2742 = vst.msk [vmem:[#allocation2 + $0x8] sm:$0xff] %vm2740_vm10, %v2524_v36  ;;  %7462 = vmatmul.mubr.msk.f32.vlgmr.msra.gmra.mrb[0].mxu0 %vm13913_vm13, %v3695_v38 }
  0x92   :  { %983 = vst.msk [vmem:[#allocation2 + $0x10] sm:$0xff] %vm980_vm6, %v766_v37  ;;  %2977 = vrot.lane.b32.xlu1 %v8715_v34, %s8236_s20  ;;  %7464 = vmatprep.mubr.msk.f32.mxu0 %vm13911_vm1, %v8235_v14 }
  0x93   :  { %1219 = vrot.lane.b32.xlu0 %v8720_v35, %s8227_s28 }
  0x94   :  { %v2964_v39 = vpop.permute.xlu1 %2963 }
  0x95   :  { %v1206_v40 = vpop.permute.xlu0 %1205  ;;  %3182 = vst.msk [vmem:[#allocation2 + $0x8] sm:$0xff] %vm3180_vm11, %v2964_v39  ;;  %v42_v39 = vld [vmem:[%s13903_s0 + $0x78] sm:$0xff] }
  0x96   :  { %1423 = vst.msk [vmem:[#allocation2 + $0x10] sm:$0xff] %vm1420_vm7, %v1206_v40  ;;  %3417 = vrot.lane.b32.xlu1 %v3263_v32, %s8237_s16  ;;  %v8936_v32 = vld [vmem:[%s13903_s0 + $0xac] sm:$0xff] }
  0x97   :  { %1659 = vrot.lane.b32.xlu0 %v8590_v3, %s8230_s13  ;;  %116 = vst.msk [vmem:[#allocation2 + $0x78] sm:$0xff] %vm100_vm0, %v42_v39  ;;  %v9143_v39 = vld [vmem:[%s13903_s0 + $0xce] sm:$0xff] }
  0x98   :  { %v3404_v41 = vpop.permute.xlu1 %3403 }
  0x99   :  { %v1646_v42 = vpop.permute.xlu0 %1645  ;;  %3622 = vst.msk [vmem:[#allocation2 + $0x8] sm:$0xff] %vm13914_vm12, %v3404_v41 }
  0x9a   :  { %1863 = vst.msk [vmem:[#allocation2 + $0x10] sm:$0xff] %vm1860_vm8, %v1646_v42  ;;  %2099 = vrot.lane.b32.xlu1 %v8603_v5, %s8232_s21  ;;  %v8951_v42 = vld [vmem:[%s13903_s0 + $0xae] sm:$0xff] }
  0x9b   :  { %341 = vrot.lane.b32.xlu0 %v8608_v6, %s8228_s29 }
  0x9c   :  { %v2086_v44 = vpop.permute.xlu1 %2085 }
  0x9d   :  { %v328_v45 = vpop.permute.xlu0 %327  ;;  %2303 = vst.msk [vmem:[#allocation2 + $0x10] sm:$0xff] %vm2300_vm9, %v2086_v44  ;;  %v8956_v44 = vld [vmem:[%s13903_s0 + $0x92] sm:$0xff] }
  0x9e   :  { %544 = vst.msk [vmem:[#allocation2 + $0x18] sm:$0xff] %vm540_vm5, %v328_v45  ;;  %2539 = vrot.lane.b32.xlu1 %v8748_v43, %s8233_s30 }
  0x9f   :  { %781 = vrot.lane.b32.xlu0 %v8487_v50, %s8231_s14  ;;  %v3264_v50 = vld [vmem:[%s13903_s0 + $0x90] sm:$0xff] }
  0xa0   :  { %v2526_v48 = vpop.permute.xlu1 %2525  ;;  %v3696_v51 = vld [vmem:[#allocation2 + $0x8] sm:$0xff] }
  0xa1   :  { %v768_v49 = vpop.permute.xlu0 %767  ;;  %2743 = vst.msk [vmem:[#allocation2 + $0x10] sm:$0xff] %vm2740_vm10, %v2526_v48  ;;  %7465 = vmatmul.mubr.msk.f32.gmra.mrb[2].mxu0 %vm13913_vm13, %v3696_v51 }
  0xa2   :  { %984 = vst.msk [vmem:[#allocation2 + $0x18] sm:$0xff] %vm980_vm6, %v768_v49  ;;  %2979 = vrot.lane.b32.xlu1 %v8759_v46, %s8236_s20  ;;  %7467 = vmatprep.mubr.msk.f32.mxu0 %vm13911_vm1, %v8235_v14 }
  0xa3   :  { %1221 = vrot.lane.b32.xlu0 %v8764_v47, %s8227_s28 }
  0xa4   :  { %v2966_v52 = vpop.permute.xlu1 %2965 }
  0xa5   :  { %v1208_v53 = vpop.permute.xlu0 %1207  ;;  %3183 = vst.msk [vmem:[#allocation2 + $0x10] sm:$0xff] %vm3180_vm11, %v2966_v52  ;;  %v8984_v52 = vld [vmem:[%s13903_s0 + $0xb4] sm:$0xff] }
  0xa6   :  { %1424 = vst.msk [vmem:[#allocation2 + $0x18] sm:$0xff] %vm1420_vm7, %v1208_v53  ;;  %3419 = vrot.lane.b32.xlu1 %v3264_v50, %s8237_s16 }
  0xa7   :  { %1661 = vrot.lane.b32.xlu0 %v8625_v8, %s8230_s13 }
  0xa8   :  { %v3406_v54 = vpop.permute.xlu1 %3405 }
  0xa9   :  { %v1648_v55 = vpop.permute.xlu0 %1647  ;;  %3623 = vst.msk [vmem:[#allocation2 + $0x10] sm:$0xff] %vm13914_vm12, %v3406_v54 }
  0xaa   :  { %1864 = vst.msk [vmem:[#allocation2 + $0x18] sm:$0xff] %vm1860_vm8, %v1648_v55  ;;  %2101 = vrot.lane.b32.xlu1 %v8637_v11, %s8232_s21  ;;  %v40_v11 = vld [vmem:[%s13903_s0 + $0x68] sm:$0xff]  ;;  %v43_v55 = vld [vmem:[%s13903_s0 + $0x80] sm:$0xff] }
  0xab   :  { %343 = vrot.lane.b32.xlu0 %v8642_v12, %s8228_s29  ;;  %114 = vst.msk [vmem:[#allocation2 + $0x68] sm:$0xff] %vm100_vm0, %v40_v11  ;;  %117 = vst.msk [vmem:[#allocation2 + $0x80] sm:$0xff] %vm100_vm0, %v43_v55  ;;  %v9047_v11 = vld [vmem:[%s13903_s0 + $0xbe] sm:$0xff] }
  0xac   :  { %v2088_v59 = vpop.permute.xlu1 %2087 }
  0xad   :  { %v330_v60 = vpop.permute.xlu0 %329  ;;  %2304 = vst.msk [vmem:[#allocation2 + $0x18] sm:$0xff] %vm2300_vm9, %v2088_v59  ;;  %v9004_v59 = vld [vmem:[%s13903_s0 + $0x9a] sm:$0xff] }
  0xae   :  { %545 = vst.msk [vmem:[#allocation2 + $0x20] sm:$0xff] %vm540_vm5, %v330_v60  ;;  %2541 = vrot.lane.b32.xlu1 %v8792_v56, %s8233_s30 }
  0xaf   :  { %783 = vrot.lane.b32.xlu0 %v8522_v57, %s8231_s14  ;;  %v3265_v57 = vld [vmem:[%s13903_s0 + $0x98] sm:$0xff] }
  0xb0   :  { %v2528_v0 = vpop.permute.xlu1 %2527  ;;  %v3697_v2 = vld [vmem:[#allocation2 + $0x10] sm:$0xff] }
  0xb1   :  { %v770_v1 = vpop.permute.xlu0 %769  ;;  %2744 = vst.msk [vmem:[#allocation2 + $0x18] sm:$0xff] %vm2740_vm10, %v2528_v0  ;;  %7468 = vmatmul.mubr.msk.f32.gmra.mrb[4].mxu0 %vm13913_vm13, %v3697_v2 }
  0xb2   :  { %985 = vst.msk [vmem:[#allocation2 + $0x20] sm:$0xff] %vm980_vm6, %v770_v1  ;;  %2981 = vrot.lane.b32.xlu1 %v8807_v61, %s8236_s20  ;;  %7470 = vmatprep.mubr.msk.f32.mxu0 %vm13911_vm1, %v8235_v14 }
  0xb3   :  { %1223 = vrot.lane.b32.xlu0 %v8812_v63, %s8227_s28 }
  0xb4   :  { %v2968_v4 = vpop.permute.xlu1 %2967 }
  0xb5   :  { %v1210_v5 = vpop.permute.xlu0 %1209  ;;  %3184 = vst.msk [vmem:[#allocation2 + $0x18] sm:$0xff] %vm3180_vm11, %v2968_v4  ;;  %v9032_v4 = vld [vmem:[%s13903_s0 + $0xbc] sm:$0xff] }
  0xb6   :  { %1425 = vst.msk [vmem:[#allocation2 + $0x20] sm:$0xff] %vm1420_vm7, %v1210_v5  ;;  %3421 = vrot.lane.b32.xlu1 %v3265_v57, %s8237_s16 }
  0xb7   :  { %1663 = vrot.lane.b32.xlu0 %v8663_v19, %s8230_s13 }
  0xb8   :  { %v3408_v6 = vpop.permute.xlu1 %3407 }
  0xb9   :  { %v1650_v7 = vpop.permute.xlu0 %1649  ;;  %3624 = vst.msk [vmem:[#allocation2 + $0x18] sm:$0xff] %vm13914_vm12, %v3408_v6 }
  0xba   :  { %1865 = vst.msk [vmem:[#allocation2 + $0x20] sm:$0xff] %vm1860_vm8, %v1650_v7  ;;  %2103 = vrot.lane.b32.xlu1 %v8674_v22, %s8232_s21  ;;  %v44_v7 = vld [vmem:[%s13903_s0 + $0x88] sm:$0xff] }
  0xbb   :  { %345 = vrot.lane.b32.xlu0 %v8679_v23, %s8228_s29  ;;  %118 = vst.msk [vmem:[#allocation2 + $0x88] sm:$0xff] %vm100_vm0, %v44_v7 }
  0xbc   :  { %v2090_v12 = vpop.permute.xlu1 %2089 }
  0xbd   :  { %v332_v13 = vpop.permute.xlu0 %331  ;;  %2305 = vst.msk [vmem:[#allocation2 + $0x20] sm:$0xff] %vm2300_vm9, %v2090_v12  ;;  %v9052_v12 = vld [vmem:[%s13903_s0 + $0xa2] sm:$0xff] }
  0xbe   :  { %546 = vst.msk [vmem:[#allocation2 + $0x28] sm:$0xff] %vm540_vm5, %v332_v13  ;;  %2543 = vrot.lane.b32.xlu1 %v8840_v9, %s8233_s30 }
  0xbf   :  { %785 = vrot.lane.b32.xlu0 %v8553_v62, %s8231_s14  ;;  %v3266_v62 = vld [vmem:[%s13903_s0 + $0xa0] sm:$0xff] }
  0xc0   :  { %v2530_v17 = vpop.permute.xlu1 %2529  ;;  %v3698_v20 = vld [vmem:[#allocation2 + $0x18] sm:$0xff] }
  0xc1   :  { %v772_v18 = vpop.permute.xlu0 %771  ;;  %2745 = vst.msk [vmem:[#allocation2 + $0x20] sm:$0xff] %vm2740_vm10, %v2530_v17  ;;  %7471 = vmatmul.mubr.msk.f32.gmra.mrb[6].mxu0 %vm13913_vm13, %v3698_v20 }
  0xc2   :  { %986 = vst.msk [vmem:[#allocation2 + $0x28] sm:$0xff] %vm980_vm6, %v772_v18  ;;  %2983 = vrot.lane.b32.xlu1 %v8855_v15, %s8236_s20  ;;  %7473 = vmatprep.mubr.msk.f32.mxu0 %vm13911_vm1, %v8235_v14 }
  0xc3   :  { %1225 = vrot.lane.b32.xlu0 %v8860_v16, %s8227_s28 }
  0xc4   :  { %v2970_v21 = vpop.permute.xlu1 %2969 }
  0xc5   :  { %v1212_v22 = vpop.permute.xlu0 %1211  ;;  %3185 = vst.msk [vmem:[#allocation2 + $0x20] sm:$0xff] %vm3180_vm11, %v2970_v21  ;;  %v9080_v21 = vld [vmem:[%s13903_s0 + $0xc4] sm:$0xff] }
  0xc6   :  { %1426 = vst.msk [vmem:[#allocation2 + $0x28] sm:$0xff] %vm1420_vm7, %v1212_v22  ;;  %3423 = vrot.lane.b32.xlu1 %v3266_v62, %s8237_s16 }
  0xc7   :  { %1665 = vrot.lane.b32.xlu0 %v8704_v30, %s8230_s13 }
  0xc8   :  { %v3410_v23 = vpop.permute.xlu1 %3409 }
  0xc9   :  { %v1652_v24 = vpop.permute.xlu0 %1651  ;;  %3625 = vst.msk [vmem:[#allocation2 + $0x20] sm:$0xff] %vm13914_vm12, %v3410_v23 }
  0xca   :  { %1866 = vst.msk [vmem:[#allocation2 + $0x28] sm:$0xff] %vm1860_vm8, %v1652_v24  ;;  %2105 = vrot.lane.b32.xlu1 %v8715_v34, %s8232_s21  ;;  %v45_v24 = vld [vmem:[%s13903_s0 + $0x90] sm:$0xff] }
  0xcb   :  { %347 = vrot.lane.b32.xlu0 %v8720_v35, %s8228_s29  ;;  %119 = vst.msk [vmem:[#allocation2 + $0x90] sm:$0xff] %vm100_vm0, %v45_v24 }
  0xcc   :  { %v2092_v26 = vpop.permute.xlu1 %2091 }
  0xcd   :  { %v334_v27 = vpop.permute.xlu0 %333  ;;  %2306 = vst.msk [vmem:[#allocation2 + $0x28] sm:$0xff] %vm2300_vm9, %v2092_v26  ;;  %v9100_v26 = vld [vmem:[%s13903_s0 + $0xaa] sm:$0xff] }
  0xce   :  { %547 = vst.msk [vmem:[#allocation2 + $0x30] sm:$0xff] %vm540_vm5, %v334_v27  ;;  %2545 = vrot.lane.b32.xlu1 %v8888_v25, %s8233_s30 }
  0xcf   :  { %787 = vrot.lane.b32.xlu0 %v8590_v3, %s8231_s14  ;;  %v3267_v3 = vld [vmem:[%s13903_s0 + $0xa8] sm:$0xff] }
  0xd0   :  { %v2532_v31 = vpop.permute.xlu1 %2531  ;;  %v3699_v34 = vld [vmem:[#allocation2 + $0x20] sm:$0xff] }
  0xd1   :  { %v774_v33 = vpop.permute.xlu0 %773  ;;  %2746 = vst.msk [vmem:[#allocation2 + $0x28] sm:$0xff] %vm2740_vm10, %v2532_v31  ;;  %7474 = vmatmul.mubr.msk.f32.gmra.mrb[8].mxu0 %vm13913_vm13, %v3699_v34 }
  0xd2   :  { %987 = vst.msk [vmem:[#allocation2 + $0x30] sm:$0xff] %vm980_vm6, %v774_v33  ;;  %2985 = vrot.lane.b32.xlu1 %v8903_v28, %s8236_s20  ;;  %7476 = vmatprep.mubr.msk.f32.mxu0 %vm13911_vm1, %v8235_v14 }
  0xd3   :  { %1227 = vrot.lane.b32.xlu0 %v8908_v29, %s8227_s28 }
  0xd4   :  { %v2972_v35 = vpop.permute.xlu1 %2971 }
  0xd5   :  { %v1214_v36 = vpop.permute.xlu0 %1213  ;;  %3186 = vst.msk [vmem:[#allocation2 + $0x28] sm:$0xff] %vm3180_vm11, %v2972_v35  ;;  %v9128_v35 = vld [vmem:[%s13903_s0 + $0xcc] sm:$0xff] }
  0xd6   :  { %1427 = vst.msk [vmem:[#allocation2 + $0x30] sm:$0xff] %vm1420_vm7, %v1214_v36  ;;  %3425 = vrot.lane.b32.xlu1 %v3267_v3, %s8237_s16 }
  0xd7   :  { %1667 = vrot.lane.b32.xlu0 %v8748_v43, %s8230_s13 }
  0xd8   :  { %v3412_v37 = vpop.permute.xlu1 %3411 }
  0xd9   :  { %v1654_v38 = vpop.permute.xlu0 %1653  ;;  %3626 = vst.msk [vmem:[#allocation2 + $0x28] sm:$0xff] %vm13914_vm12, %v3412_v37 }
  0xda   :  { %1867 = vst.msk [vmem:[#allocation2 + $0x30] sm:$0xff] %vm1860_vm8, %v1654_v38  ;;  %2107 = vrot.lane.b32.xlu1 %v8759_v46, %s8232_s21  ;;  %v46_v38 = vld [vmem:[%s13903_s0 + $0x98] sm:$0xff] }
  0xdb   :  { %349 = vrot.lane.b32.xlu0 %v8764_v47, %s8228_s29  ;;  %120 = vst.msk [vmem:[#allocation2 + $0x98] sm:$0xff] %vm100_vm0, %v46_v38 }
  0xdc   :  { %v2094_v40 = vpop.permute.xlu1 %2093 }
  0xdd   :  { %v336_v41 = vpop.permute.xlu0 %335  ;;  %2307 = vst.msk [vmem:[#allocation2 + $0x30] sm:$0xff] %vm2300_vm9, %v2094_v40  ;;  %v9148_v40 = vld [vmem:[%s13903_s0 + $0xb2] sm:$0xff] }
  0xde   :  { %548 = vst.msk [vmem:[#allocation2 + $0x38] sm:$0xff] %vm540_vm5, %v336_v41  ;;  %2547 = vrot.lane.b32.xlu1 %v8936_v32, %s8233_s30 }
  0xdf   :  { %789 = vrot.lane.b32.xlu0 %v8625_v8, %s8231_s14  ;;  %v3268_v8 = vld [vmem:[%s13903_s0 + $0xb0] sm:$0xff] }
  0xe0   :  { %v2534_v45 = vpop.permute.xlu1 %2533  ;;  %v3700_v47 = vld [vmem:[#allocation2 + $0x28] sm:$0xff] }
  0xe1   :  { %v776_v46 = vpop.permute.xlu0 %775  ;;  %2747 = vst.msk [vmem:[#allocation2 + $0x30] sm:$0xff] %vm2740_vm10, %v2534_v45  ;;  %7477 = vmatmul.mubr.msk.f32.gmra.mrb[10].mxu0 %vm13913_vm13, %v3700_v47 }
  0xe2   :  { %988 = vst.msk [vmem:[#allocation2 + $0x38] sm:$0xff] %vm980_vm6, %v776_v46  ;;  %2987 = vrot.lane.b32.xlu1 %v8951_v42, %s8236_s20  ;;  %7479 = vmatprep.mubr.msk.f32.mxu0 %vm13911_vm1, %v8235_v14 }
  0xe3   :  { %1229 = vrot.lane.b32.xlu0 %v8956_v44, %s8227_s28 }
  0xe4   :  { %v2974_v48 = vpop.permute.xlu1 %2973 }
  0xe5   :  { %v1216_v49 = vpop.permute.xlu0 %1215  ;;  %3187 = vst.msk [vmem:[#allocation2 + $0x30] sm:$0xff] %vm3180_vm11, %v2974_v48  ;;  %v9176_v48 = vld [vmem:[%s13903_s0 + $0xd4] sm:$0xff] }
  0xe6   :  { %1428 = vst.msk [vmem:[#allocation2 + $0x38] sm:$0xff] %vm1420_vm7, %v1216_v49  ;;  %3427 = vrot.lane.b32.xlu1 %v3268_v8, %s8237_s16 }
  0xe7   :  { %1669 = vrot.lane.b32.xlu0 %v8792_v56, %s8230_s13 }
  0xe8   :  { %v3414_v51 = vpop.permute.xlu1 %3413 }
  0xe9   :  { %v1656_v50 = vpop.permute.xlu0 %1655  ;;  %3627 = vst.msk [vmem:[#allocation2 + $0x30] sm:$0xff] %vm13914_vm12, %v3414_v51 }
  0xea   :  { %1868 = vst.msk [vmem:[#allocation2 + $0x38] sm:$0xff] %vm1860_vm8, %v1656_v50  ;;  %2109 = vrot.lane.b32.xlu1 %v8807_v61, %s8232_s21  ;;  %v47_v50 = vld [vmem:[%s13903_s0 + $0xa0] sm:$0xff] }
  0xeb   :  { %351 = vrot.lane.b32.xlu0 %v8812_v63, %s8228_s29  ;;  %121 = vst.msk [vmem:[#allocation2 + $0xa0] sm:$0xff] %vm100_vm0, %v47_v50 }
  0xec   :  { %v2096_v53 = vpop.permute.xlu1 %2095 }
  0xed   :  { %v338_v54 = vpop.permute.xlu0 %337  ;;  %2308 = vst.msk [vmem:[#allocation2 + $0x38] sm:$0xff] %vm2300_vm9, %v2096_v53  ;;  %v9191_v53 = vld [vmem:[%s13903_s0 + $0xd6] sm:$0xff] }
  0xee   :  { %549 = vst.msk [vmem:[#allocation2 + $0x40] sm:$0xff] %vm540_vm5, %v338_v54  ;;  %2549 = vrot.lane.b32.xlu1 %v8984_v52, %s8233_s30  ;;  %v9196_v54 = vld [vmem:[%s13903_s0 + $0xba] sm:$0xff] }
  0xef   :  { %791 = vrot.lane.b32.xlu0 %v8663_v19, %s8231_s14  ;;  %v3269_v19 = vld [vmem:[%s13903_s0 + $0xb8] sm:$0xff] }
  0xf0   :  { %v2536_v60 = vpop.permute.xlu1 %2535  ;;  %v3701_v63 = vld [vmem:[#allocation2 + $0x30] sm:$0xff] }
  0xf1   :  { %v778_v61 = vpop.permute.xlu0 %777  ;;  %2748 = vst.msk [vmem:[#allocation2 + $0x38] sm:$0xff] %vm2740_vm10, %v2536_v60  ;;  %7480 = vmatmul.mubr.msk.f32.gmra.mrb[12].mxu0 %vm13913_vm13, %v3701_v63 }
  0xf2   :  { %989 = vst.msk [vmem:[#allocation2 + $0x40] sm:$0xff] %vm980_vm6, %v778_v61  ;;  %2989 = vrot.lane.b32.xlu1 %v8999_v58, %s8236_s20  ;;  %7482 = vmatprep.mubr.msk.f32.mxu0 %vm13911_vm1, %v8235_v14 }
  0xf3   :  { %1231 = vrot.lane.b32.xlu0 %v9004_v59, %s8227_s28 }
  0xf4   :  { %v2976_v0 = vpop.permute.xlu1 %2975 }
  0xf5   :  { %v1218_v1 = vpop.permute.xlu0 %1217  ;;  %3188 = vst.msk [vmem:[#allocation2 + $0x38] sm:$0xff] %vm3180_vm11, %v2976_v0  ;;  %v9224_v0 = vld [vmem:[%s13903_s0 + $0xdc] sm:$0xff] }
  0xf6   :  { %1429 = vst.msk [vmem:[#allocation2 + $0x40] sm:$0xff] %vm1420_vm7, %v1218_v1  ;;  %3429 = vrot.lane.b32.xlu1 %v3269_v19, %s8237_s16 }
  0xf7   :  { %1671 = vrot.lane.b32.xlu0 %v8840_v9, %s8230_s13 }
  0xf8   :  { %v3416_v2 = vpop.permute.xlu1 %3415 }
  0xf9   :  { %v1658_v57 = vpop.permute.xlu0 %1657  ;;  %3628 = vst.msk [vmem:[#allocation2 + $0x38] sm:$0xff] %vm13914_vm12, %v3416_v2 }
  0xfa   :  { %1869 = vst.msk [vmem:[#allocation2 + $0x40] sm:$0xff] %vm1860_vm8, %v1658_v57  ;;  %2111 = vrot.lane.b32.xlu1 %v8855_v15, %s8232_s21  ;;  %v48_v57 = vld [vmem:[%s13903_s0 + $0xa8] sm:$0xff] }
  0xfb   :  { %353 = vrot.lane.b32.xlu0 %v8860_v16, %s8228_s29  ;;  %122 = vst.msk [vmem:[#allocation2 + $0xa8] sm:$0xff] %vm100_vm0, %v48_v57 }
  0xfc   :  { %v2098_v5 = vpop.permute.xlu1 %2097 }
  0xfd   :  { %v340_v6 = vpop.permute.xlu0 %339  ;;  %2309 = vst.msk [vmem:[#allocation2 + $0x40] sm:$0xff] %vm2300_vm9, %v2098_v5  ;;  %v9239_v5 = vld [vmem:[%s13903_s0 + $0xde] sm:$0xff] }
  0xfe   :  { %550 = vst.msk [vmem:[#allocation2 + $0x48] sm:$0xff] %vm540_vm5, %v340_v6  ;;  %2551 = vrot.lane.b32.xlu1 %v9032_v4, %s8233_s30  ;;  %v9244_v6 = vld [vmem:[%s13903_s0 + $0xc2] sm:$0xff] }
  0xff   :  { %793 = vrot.lane.b32.xlu0 %v8704_v30, %s8231_s14  ;;  %v3270_v30 = vld [vmem:[%s13903_s0 + $0xc0] sm:$0xff] }
 0x100   :  { %v2538_v13 = vpop.permute.xlu1 %2537  ;;  %v3702_v16 = vld [vmem:[#allocation2 + $0x38] sm:$0xff] }
 0x101   :  { %v780_v15 = vpop.permute.xlu0 %779  ;;  %2749 = vst.msk [vmem:[#allocation2 + $0x40] sm:$0xff] %vm2740_vm10, %v2538_v13  ;;  %7483 = vmatmul.mubr.msk.f32.gmra.mrb[14].mxu0 %vm13913_vm13, %v3702_v16 }
 0x102   :  { %990 = vst.msk [vmem:[#allocation2 + $0x48] sm:$0xff] %vm980_vm6, %v780_v15  ;;  %2991 = vrot.lane.b32.xlu1 %v9047_v11, %s8236_s20  ;;  %7485 = vmatprep.mubr.msk.f32.mxu0 %vm13911_vm1, %v8235_v14 }
 0x103   :  { %1233 = vrot.lane.b32.xlu0 %v9052_v12, %s8227_s28 }
 0x104   :  { %v2978_v17 = vpop.permute.xlu1 %2977 }
 0x105   :  { %v1220_v18 = vpop.permute.xlu0 %1219  ;;  %3189 = vst.msk [vmem:[#allocation2 + $0x40] sm:$0xff] %vm3180_vm11, %v2978_v17  ;;  %v9272_v17 = vld [vmem:[%s13903_s0 + $0xe4] sm:$0xff] }
 0x106   :  { %1430 = vst.msk [vmem:[#allocation2 + $0x48] sm:$0xff] %vm1420_vm7, %v1220_v18  ;;  %3431 = vrot.lane.b32.xlu1 %v3270_v30, %s8237_s16 }
 0x107   :  { %1673 = vrot.lane.b32.xlu0 %v8888_v25, %s8230_s13 }
 0x108   :  { %v3418_v20 = vpop.permute.xlu1 %3417 }
 0x109   :  { %v1660_v62 = vpop.permute.xlu0 %1659  ;;  %3629 = vst.msk [vmem:[#allocation2 + $0x40] sm:$0xff] %vm13914_vm12, %v3418_v20 }
 0x10a   :  { %1870 = vst.msk [vmem:[#allocation2 + $0x48] sm:$0xff] %vm1860_vm8, %v1660_v62  ;;  %2113 = vrot.lane.b32.xlu1 %v8903_v28, %s8232_s21  ;;  %v49_v62 = vld [vmem:[%s13903_s0 + $0xb0] sm:$0xff] }
 0x10b   :  { %355 = vrot.lane.b32.xlu0 %v8908_v29, %s8228_s29  ;;  %123 = vst.msk [vmem:[#allocation2 + $0xb0] sm:$0xff] %vm100_vm0, %v49_v62 }
 0x10c   :  { %v2100_v22 = vpop.permute.xlu1 %2099 }
 0x10d   :  { %v342_v23 = vpop.permute.xlu0 %341  ;;  %2310 = vst.msk [vmem:[#allocation2 + $0x48] sm:$0xff] %vm2300_vm9, %v2100_v22  ;;  %v9287_v22 = vld [vmem:[%s13903_s0 + $0xe6] sm:$0xff] }
 0x10e   :  { %551 = vst.msk [vmem:[#allocation2 + $0x50] sm:$0xff] %vm540_vm5, %v342_v23  ;;  %2553 = vrot.lane.b32.xlu1 %v9080_v21, %s8233_s30  ;;  %v9292_v23 = vld [vmem:[%s13903_s0 + $0xca] sm:$0xff] }
 0x10f   :  { %795 = vrot.lane.b32.xlu0 %v8748_v43, %s8231_s14  ;;  %v3271_v43 = vld [vmem:[%s13903_s0 + $0xc8] sm:$0xff] }
 0x110   :  { %v2540_v27 = vpop.permute.xlu1 %2539  ;;  %v3703_v29 = vld [vmem:[#allocation2 + $0x40] sm:$0xff] }
 0x111   :  { %v782_v28 = vpop.permute.xlu0 %781  ;;  %2750 = vst.msk [vmem:[#allocation2 + $0x48] sm:$0xff] %vm2740_vm10, %v2540_v27  ;;  %7486 = vmatmul.mubr.msk.f32.gmra.mrb[16].mxu0 %vm13913_vm13, %v3703_v29 }
 0x112   :  { %991 = vst.msk [vmem:[#allocation2 + $0x50] sm:$0xff] %vm980_vm6, %v782_v28  ;;  %2993 = vrot.lane.b32.xlu1 %v9095_v10, %s8236_s20  ;;  %7488 = vmatprep.mubr.msk.f32.mxu0 %vm13911_vm1, %v8235_v14 }
 0x113   :  { %1235 = vrot.lane.b32.xlu0 %v9100_v26, %s8227_s28 }
 0x114   :  { %v2980_v31 = vpop.permute.xlu1 %2979 }
 0x115   :  { %v1222_v33 = vpop.permute.xlu0 %1221  ;;  %3190 = vst.msk [vmem:[#allocation2 + $0x48] sm:$0xff] %vm3180_vm11, %v2980_v31  ;;  %v9320_v31 = vld [vmem:[%s13903_s0 + $0xec] sm:$0xff] }
 0x116   :  { %1431 = vst.msk [vmem:[#allocation2 + $0x50] sm:$0xff] %vm1420_vm7, %v1222_v33  ;;  %3433 = vrot.lane.b32.xlu1 %v3271_v43, %s8237_s16 }
 0x117   :  { %1675 = vrot.lane.b32.xlu0 %v8936_v32, %s8230_s13 }
 0x118   :  { %v3420_v34 = vpop.permute.xlu1 %3419 }
 0x119   :  { %v1662_v3 = vpop.permute.xlu0 %1661  ;;  %3630 = vst.msk [vmem:[#allocation2 + $0x48] sm:$0xff] %vm13914_vm12, %v3420_v34 }
 0x11a   :  { %1871 = vst.msk [vmem:[#allocation2 + $0x50] sm:$0xff] %vm1860_vm8, %v1662_v3  ;;  %2115 = vrot.lane.b32.xlu1 %v8951_v42, %s8232_s21  ;;  %v50_v3 = vld [vmem:[%s13903_s0 + $0xb8] sm:$0xff] }
 0x11b   :  { %357 = vrot.lane.b32.xlu0 %v8956_v44, %s8228_s29  ;;  %124 = vst.msk [vmem:[#allocation2 + $0xb8] sm:$0xff] %vm100_vm0, %v50_v3 }
 0x11c   :  { %v2102_v36 = vpop.permute.xlu1 %2101 }
 0x11d   :  { %v344_v37 = vpop.permute.xlu0 %343  ;;  %2311 = vst.msk [vmem:[#allocation2 + $0x50] sm:$0xff] %vm2300_vm9, %v2102_v36  ;;  %v9335_v36 = vld [vmem:[%s13903_s0 + $0xee] sm:$0xff] }
 0x11e   :  { %552 = vst.msk [vmem:[#allocation2 + $0x58] sm:$0xff] %vm540_vm5, %v344_v37  ;;  %2555 = vrot.lane.b32.xlu1 %v9128_v35, %s8233_s30  ;;  %v9340_v37 = vld [vmem:[%s13903_s0 + $0xd2] sm:$0xff] }
 0x11f   :  { %797 = vrot.lane.b32.xlu0 %v8792_v56, %s8231_s14  ;;  %v3272_v56 = vld [vmem:[%s13903_s0 + $0xd0] sm:$0xff] }
 0x120   :  { %v2542_v41 = vpop.permute.xlu1 %2541  ;;  %v3704_v44 = vld [vmem:[#allocation2 + $0x48] sm:$0xff] }
 0x121   :  { %v784_v42 = vpop.permute.xlu0 %783  ;;  %2751 = vst.msk [vmem:[#allocation2 + $0x50] sm:$0xff] %vm2740_vm10, %v2542_v41  ;;  %7489 = vmatmul.mubr.msk.f32.gmra.mrb[18].mxu0 %vm13913_vm13, %v3704_v44  ;;  %v3276_v41 = vld [vmem:[%s13903_s0 + $0xf0] sm:$0xff] }
 0x122   :  { %992 = vst.msk [vmem:[#allocation2 + $0x58] sm:$0xff] %vm980_vm6, %v784_v42  ;;  %2995 = vrot.lane.b32.xlu1 %v9143_v39, %s8236_s20  ;;  %7491 = vmatprep.mubr.msk.f32.mxu0 %vm13911_vm1, %v8235_v14 }
 0x123   :  { %1237 = vrot.lane.b32.xlu0 %v9148_v40, %s8227_s28 }
 0x124   :  { %v2982_v45 = vpop.permute.xlu1 %2981 }
 0x125   :  { %v1224_v46 = vpop.permute.xlu0 %1223  ;;  %3191 = vst.msk [vmem:[#allocation2 + $0x50] sm:$0xff] %vm3180_vm11, %v2982_v45 }
 0x126   :  { %1432 = vst.msk [vmem:[#allocation2 + $0x58] sm:$0xff] %vm1420_vm7, %v1224_v46  ;;  %3435 = vrot.lane.b32.xlu1 %v3272_v56, %s8237_s16 }
 0x127   :  { %1677 = vrot.lane.b32.xlu0 %v8984_v52, %s8230_s13 }
 0x128   :  { %v3422_v47 = vpop.permute.xlu1 %3421 }
 0x129   :  { %v1664_v8 = vpop.permute.xlu0 %1663  ;;  %3631 = vst.msk [vmem:[#allocation2 + $0x50] sm:$0xff] %vm13914_vm12, %v3422_v47 }
 0x12a   :  { %1872 = vst.msk [vmem:[#allocation2 + $0x58] sm:$0xff] %vm1860_vm8, %v1664_v8  ;;  %2117 = vrot.lane.b32.xlu1 %v8999_v58, %s8232_s21 }
 0x12b   :  { %359 = vrot.lane.b32.xlu0 %v9004_v59, %s8228_s29 }
 0x12c   :  { %v2104_v49 = vpop.permute.xlu1 %2103 }
 0x12d   :  { %v346_v51 = vpop.permute.xlu0 %345  ;;  %2312 = vst.msk [vmem:[#allocation2 + $0x58] sm:$0xff] %vm2300_vm9, %v2104_v49 }
 0x12e   :  { %553 = vst.msk [vmem:[#allocation2 + $0x60] sm:$0xff] %vm540_vm5, %v346_v51  ;;  %2557 = vrot.lane.b32.xlu1 %v9176_v48, %s8233_s30  ;;  %v9379_v51 = vld [vmem:[%s13903_s0 + $0xf4] sm:$0xff] }
 0x12f   :  { %799 = vrot.lane.b32.xlu0 %v8840_v9, %s8231_s14  ;;  %v3273_v9 = vld [vmem:[%s13903_s0 + $0xd8] sm:$0xff] }
 0x130   :  { %v2544_v55 = vpop.permute.xlu1 %2543  ;;  %v3705_v59 = vld [vmem:[#allocation2 + $0x50] sm:$0xff] }
 0x131   :  { %v786_v58 = vpop.permute.xlu0 %785  ;;  %2752 = vst.msk [vmem:[#allocation2 + $0x58] sm:$0xff] %vm2740_vm10, %v2544_v55  ;;  %7492 = vmatmul.mubr.msk.f32.gmra.mrb[20].mxu0 %vm13913_vm13, %v3705_v59 }
 0x132   :  { %993 = vst.msk [vmem:[#allocation2 + $0x60] sm:$0xff] %vm980_vm6, %v786_v58  ;;  %2997 = vrot.lane.b32.xlu1 %v9191_v53, %s8236_s20  ;;  %7494 = vmatprep.mubr.msk.f32.mxu0 %vm13911_vm1, %v8235_v14  ;;  %v51_v58 = vld [vmem:[%s13903_s0 + $0xc0] sm:$0xff] }
 0x133   :  { %1239 = vrot.lane.b32.xlu0 %v9196_v54, %s8227_s28  ;;  %125 = vst.msk [vmem:[#allocation2 + $0xc0] sm:$0xff] %vm100_vm0, %v51_v58 }
 0x134   :  { %v2984_v60 = vpop.permute.xlu1 %2983 }
 0x135   :  { %v1226_v61 = vpop.permute.xlu0 %1225  ;;  %3192 = vst.msk [vmem:[#allocation2 + $0x58] sm:$0xff] %vm3180_vm11, %v2984_v60 }
 0x136   :  { %1433 = vst.msk [vmem:[#allocation2 + $0x60] sm:$0xff] %vm1420_vm7, %v1226_v61  ;;  %3437 = vrot.lane.b32.xlu1 %v3273_v9, %s8237_s16 }
 0x137   :  { %1679 = vrot.lane.b32.xlu0 %v9032_v4, %s8230_s13 }
 0x138   :  { %v3424_v63 = vpop.permute.xlu1 %3423 }
 0x139   :  { %v1666_v19 = vpop.permute.xlu0 %1665  ;;  %3632 = vst.msk [vmem:[#allocation2 + $0x58] sm:$0xff] %vm13914_vm12, %v3424_v63 }
 0x13a   :  { %1873 = vst.msk [vmem:[#allocation2 + $0x60] sm:$0xff] %vm1860_vm8, %v1666_v19  ;;  %2119 = vrot.lane.b32.xlu1 %v9047_v11, %s8232_s21 }
 0x13b   :  { %361 = vrot.lane.b32.xlu0 %v9052_v12, %s8228_s29 }
 0x13c   :  { %v2106_v1 = vpop.permute.xlu1 %2105 }
 0x13d   :  { %v348_v2 = vpop.permute.xlu0 %347  ;;  %2313 = vst.msk [vmem:[#allocation2 + $0x60] sm:$0xff] %vm2300_vm9, %v2106_v1 }
 0x13e   :  { %554 = vst.msk [vmem:[#allocation2 + $0x68] sm:$0xff] %vm540_vm5, %v348_v2  ;;  %2559 = vrot.lane.b32.xlu1 %v9224_v0, %s8233_s30 }
 0x13f   :  { %801 = vrot.lane.b32.xlu0 %v8888_v25, %s8231_s14  ;;  %v3274_v25 = vld [vmem:[%s13903_s0 + $0xe0] sm:$0xff] }
 0x140   :  { %v2546_v7 = vpop.permute.xlu1 %2545  ;;  %v3706_v12 = vld [vmem:[#allocation2 + $0x58] sm:$0xff] }
 0x141   :  { %v788_v11 = vpop.permute.xlu0 %787  ;;  %2753 = vst.msk [vmem:[#allocation2 + $0x60] sm:$0xff] %vm2740_vm10, %v2546_v7  ;;  %7495 = vmatmul.mubr.msk.f32.gmra.mrb[22].mxu0 %vm13913_vm13, %v3706_v12  ;;  %v9433_v12 = vld [vmem:[%s13903_s0 + $0xfc] sm:$0xff] }
 0x142   :  { %994 = vst.msk [vmem:[#allocation2 + $0x68] sm:$0xff] %vm980_vm6, %v788_v11  ;;  %2999 = vrot.lane.b32.xlu1 %v9239_v5, %s8236_s20  ;;  %7497 = vmatprep.mubr.msk.f32.mxu0 %vm13911_vm1, %v8235_v14 }
 0x143   :  { %1241 = vrot.lane.b32.xlu0 %v9244_v6, %s8227_s28 }
 0x144   :  { %v2986_v13 = vpop.permute.xlu1 %2985 }
 0x145   :  { %v1228_v15 = vpop.permute.xlu0 %1227  ;;  %3193 = vst.msk [vmem:[#allocation2 + $0x60] sm:$0xff] %vm3180_vm11, %v2986_v13 }
 0x146   :  { %1434 = vst.msk [vmem:[#allocation2 + $0x68] sm:$0xff] %vm1420_vm7, %v1228_v15  ;;  %3439 = vrot.lane.b32.xlu1 %v3274_v25, %s8237_s16  ;;  %v52_v15 = vld [vmem:[%s13903_s0 + $0xc8] sm:$0xff] }
 0x147   :  { %1681 = vrot.lane.b32.xlu0 %v9080_v21, %s8230_s13  ;;  %126 = vst.msk [vmem:[#allocation2 + $0xc8] sm:$0xff] %vm100_vm0, %v52_v15  ;;  %v9590_v15 = vld [vmem:[%s13903_s0 + $0x114] sm:$0xff] }
 0x148   :  { %v3426_v16 = vpop.permute.xlu1 %3425 }
 0x149   :  { %v1668_v30 = vpop.permute.xlu0 %1667  ;;  %3633 = vst.msk [vmem:[#allocation2 + $0x60] sm:$0xff] %vm13914_vm12, %v3426_v16 }
 0x14a   :  { %1874 = vst.msk [vmem:[#allocation2 + $0x68] sm:$0xff] %vm1860_vm8, %v1668_v30  ;;  %2121 = vrot.lane.b32.xlu1 %v9095_v10, %s8232_s21 }
 0x14b   :  { %363 = vrot.lane.b32.xlu0 %v9100_v26, %s8228_s29 }
 0x14c   :  { %v2108_v18 = vpop.permute.xlu1 %2107 }
 0x14d   :  { %v350_v20 = vpop.permute.xlu0 %349  ;;  %2314 = vst.msk [vmem:[#allocation2 + $0x68] sm:$0xff] %vm2300_vm9, %v2108_v18 }
 0x14e   :  { %555 = vst.msk [vmem:[#allocation2 + $0x70] sm:$0xff] %vm540_vm5, %v350_v20  ;;  %2561 = vrot.lane.b32.xlu1 %v9272_v17, %s8233_s30 }
 0x14f   :  { %803 = vrot.lane.b32.xlu0 %v8936_v32, %s8231_s14  ;;  %v3275_v32 = vld [vmem:[%s13903_s0 + $0xe8] sm:$0xff] }
 0x150   :  { %v2548_v24 = vpop.permute.xlu1 %2547  ;;  %v3707_v26 = vld [vmem:[#allocation2 + $0x60] sm:$0xff] }
 0x151   :  { %v790_v10 = vpop.permute.xlu0 %789  ;;  %2754 = vst.msk [vmem:[#allocation2 + $0x68] sm:$0xff] %vm2740_vm10, %v2548_v24  ;;  %7498 = vmatmul.mubr.msk.f32.gmra.mrb[24].mxu0 %vm13913_vm13, %v3707_v26 }
 0x152   :  { %995 = vst.msk [vmem:[#allocation2 + $0x70] sm:$0xff] %vm980_vm6, %v790_v10  ;;  %3001 = vrot.lane.b32.xlu1 %v9287_v22, %s8236_s20  ;;  %7500 = vmatprep.mubr.msk.f32.mxu0 %vm13911_vm1, %v8235_v14 }
 0x153   :  { %1243 = vrot.lane.b32.xlu0 %v9292_v23, %s8227_s28 }
 0x154   :  { %v2988_v27 = vpop.permute.xlu1 %2987 }
 0x155   :  { %v1230_v28 = vpop.permute.xlu0 %1229  ;;  %3194 = vst.msk [vmem:[#allocation2 + $0x68] sm:$0xff] %vm3180_vm11, %v2988_v27 }
 0x156   :  { %1435 = vst.msk [vmem:[#allocation2 + $0x70] sm:$0xff] %vm1420_vm7, %v1230_v28  ;;  %3441 = vrot.lane.b32.xlu1 %v3275_v32, %s8237_s16 }
 0x157   :  { %1683 = vrot.lane.b32.xlu0 %v9128_v35, %s8230_s13 }
 0x158   :  { %v3428_v29 = vpop.permute.xlu1 %3427 }
 0x159   :  { %v1670_v43 = vpop.permute.xlu0 %1669  ;;  %3634 = vst.msk [vmem:[#allocation2 + $0x68] sm:$0xff] %vm13914_vm12, %v3428_v29  ;;  %v9487_v29 = vld [vmem:[%s13903_s0 + $0x104] sm:$0xff] }
 0x15a   :  { %1875 = vst.msk [vmem:[#allocation2 + $0x70] sm:$0xff] %vm1860_vm8, %v1670_v43  ;;  %2123 = vrot.lane.b32.xlu1 %v9143_v39, %s8232_s21 }
 0x15b   :  { %365 = vrot.lane.b32.xlu0 %v9148_v40, %s8228_s29 }
 0x15c   :  { %v2110_v33 = vpop.permute.xlu1 %2109 }
 0x15d   :  { %v352_v34 = vpop.permute.xlu0 %351  ;;  %2315 = vst.msk [vmem:[#allocation2 + $0x70] sm:$0xff] %vm2300_vm9, %v2110_v33 }
 0x15e   :  { %556 = vst.msk [vmem:[#allocation2 + $0x78] sm:$0xff] %vm540_vm5, %v352_v34  ;;  %2563 = vrot.lane.b32.xlu1 %v9320_v31, %s8233_s30  ;;  %v53_v34 = vld [vmem:[%s13903_s0 + $0xd0] sm:$0xff] }
 0x15f   :  { %805 = vrot.lane.b32.xlu0 %v8984_v52, %s8231_s14  ;;  %v9352_v52 = vld [vmem:[%s13905_s2] ss:$0 sm:$0xff]  ;;  %127 = vst.msk [vmem:[#allocation2 + $0xd0] sm:$0xff] %vm100_vm0, %v53_v34 }
 0x160   :  { %v2550_v38 = vpop.permute.xlu1 %2549  ;;  %v3708_v40 = vld [vmem:[#allocation2 + $0x68] sm:$0xff] }
 0x161   :  { %v792_v39 = vpop.permute.xlu0 %791  ;;  %2755 = vst.msk [vmem:[#allocation2 + $0x70] sm:$0xff] %vm2740_vm10, %v2550_v38  ;;  %7501 = vmatmul.mubr.msk.f32.gmra.mrb[26].mxu0 %vm13913_vm13, %v3708_v40 }
 0x162   :  { %996 = vst.msk [vmem:[#allocation2 + $0x78] sm:$0xff] %vm980_vm6, %v792_v39  ;;  %3003 = vrot.lane.b32.xlu1 %v9335_v36, %s8236_s20  ;;  %7503 = vmatprep.mubr.msk.f32.mxu0 %vm13911_vm1, %v8235_v14 }
 0x163   :  { %1245 = vrot.lane.b32.xlu0 %v9340_v37, %s8227_s28 }
 0x164   :  { %v2990_v42 = vpop.permute.xlu1 %2989  ;;  %v4079_v56 = vpop.f32.mrb[0].mxu0 }
 0x165   :  { %v1232_v44 = vpop.permute.xlu0 %1231  ;;  %3195 = vst.msk [vmem:[#allocation2 + $0x70] sm:$0xff] %vm3180_vm11, %v2990_v42  ;;  %v9362_v45 = vadd.f32 %v9352_v52, %v4079_v56  ;;  %v7463_v46 = vpop.f32.mrb[1].mxu0 }
 0x166   :  { %1436 = vst.msk [vmem:[#allocation2 + $0x78] sm:$0xff] %vm1420_vm7, %v1232_v44  ;;  %3443 = vrot.lane.b32.xlu1 %v3276_v41, %s8237_s16 }
 0x167   :  { %1685 = vrot.lane.b32.xlu0 %v9176_v48, %s8230_s13  ;;  %v4443_v47 = vmax.f32 %v9362_v45, 0.0 }
 0x168   :  { %v3430_v8 = vpop.permute.xlu1 %3429 }
 0x169   :  { %v1672_v49 = vpop.permute.xlu0 %1671  ;;  %3635 = vst.msk [vmem:[#allocation2 + $0x70] sm:$0xff] %vm13914_vm12, %v3430_v8  ;;  %4516 = vst [vmem:[#allocation3] sm:$0xff] %v4443_v47 }
 0x16a   :  { %1876 = vst.msk [vmem:[#allocation2 + $0x78] sm:$0xff] %vm1860_vm8, %v1672_v49  ;;  %2125 = vrot.lane.b32.xlu1 %v9191_v53, %s8232_s21  ;;  %v9394_v53 = vld [vmem:[%s13903_s0 + $0xf6] sm:$0xff] }
 0x16b   :  { %367 = vrot.lane.b32.xlu0 %v9196_v54, %s8228_s29  ;;  %v9399_v54 = vld [vmem:[%s13903_s0 + $0xda] sm:$0xff] }
 0x16c   :  { %v2112_v50 = vpop.permute.xlu1 %2111 }
 0x16d   :  { %v354_v55 = vpop.permute.xlu0 %353  ;;  %2316 = vst.msk [vmem:[#allocation2 + $0x78] sm:$0xff] %vm2300_vm9, %v2112_v50  ;;  %v9541_v50 = vld [vmem:[%s13903_s0 + $0x10c] sm:$0xff] }
 0x16e   :  { %557 = vst.msk [vmem:[#allocation2 + $0x80] sm:$0xff] %vm540_vm5, %v354_v55  ;;  %2565 = vrot.lane.b32.xlu1 %v9379_v51, %s8233_s30 }
 0x16f   :  { %807 = vrot.lane.b32.xlu0 %v9032_v4, %s8231_s14  ;;  %v3277_v4 = vld [vmem:[%s13903_s0 + $0xf8] sm:$0xff] }
 0x170   :  { %v2552_v59 = vpop.permute.xlu1 %2551  ;;  %v3709_v60 = vld [vmem:[#allocation2 + $0x70] sm:$0xff] }
 0x171   :  { %v794_v9 = vpop.permute.xlu0 %793  ;;  %2756 = vst.msk [vmem:[#allocation2 + $0x78] sm:$0xff] %vm2740_vm10, %v2552_v59  ;;  %7504 = vmatmul.mubr.msk.f32.gmra.mrb[28].mxu0 %vm13913_vm13, %v3709_v60  ;;  %v54_v59 = vld [vmem:[%s13903_s0 + $0xd8] sm:$0xff] }
 0x172   :  { %997 = vst.msk [vmem:[#allocation2 + $0x80] sm:$0xff] %vm980_vm6, %v794_v9  ;;  %3005 = vrot.lane.b32.xlu1 %v9394_v53, %s8236_s20  ;;  %7506 = vmatprep.mubr.msk.f32.mxu0 %vm13911_vm1, %v8235_v14 }
 0x173   :  { %1247 = vrot.lane.b32.xlu0 %v9399_v54, %s8227_s28  ;;  %128 = vst.msk [vmem:[#allocation2 + $0xd8] sm:$0xff] %vm100_vm0, %v54_v59 }
 0x174   :  { %v2992_v61 = vpop.permute.xlu1 %2991  ;;  %v4084_v19 = vpop.f32.mrb[2].mxu0 }
 0x175   :  { %v1234_v63 = vpop.permute.xlu0 %1233  ;;  %3196 = vst.msk [vmem:[#allocation2 + $0x78] sm:$0xff] %vm3180_vm11, %v2992_v61  ;;  %v9416_v1 = vadd.f32 %v9352_v52, %v4084_v19  ;;  %v7466_v2 = vpop.f32.mrb[3].mxu0 }
 0x176   :  { %1437 = vst.msk [vmem:[#allocation2 + $0x80] sm:$0xff] %vm1420_vm7, %v1234_v63  ;;  %3445 = vrot.lane.b32.xlu1 %v3277_v4, %s8237_s16 }
 0x177   :  { %1687 = vrot.lane.b32.xlu0 %v9224_v0, %s8230_s13  ;;  %v4444_v57 = vmax.f32 %v9416_v1, 0.0 }
 0x178   :  { %v3432_v7 = vpop.permute.xlu1 %3431 }
 0x179   :  { %v1674_v11 = vpop.permute.xlu0 %1673  ;;  %3636 = vst.msk [vmem:[#allocation2 + $0x78] sm:$0xff] %vm13914_vm12, %v3432_v7  ;;  %4517 = vst [vmem:[#allocation3 + $0x8] sm:$0xff] %v4444_v57 }
 0x17a   :  { %1877 = vst.msk [vmem:[#allocation2 + $0x80] sm:$0xff] %vm1860_vm8, %v1674_v11  ;;  %2127 = vrot.lane.b32.xlu1 %v9239_v5, %s8232_s21  ;;  %v9448_v5 = vld [vmem:[%s13903_s0 + $0xfe] sm:$0xff] }
 0x17b   :  { %369 = vrot.lane.b32.xlu0 %v9244_v6, %s8228_s29  ;;  %v9453_v6 = vld [vmem:[%s13903_s0 + $0xe2] sm:$0xff] }
 0x17c   :  { %v2114_v25 = vpop.permute.xlu1 %2113 }
 0x17d   :  { %v356_v13 = vpop.permute.xlu0 %355  ;;  %2317 = vst.msk [vmem:[#allocation2 + $0x80] sm:$0xff] %vm2300_vm9, %v2114_v25 }
 0x17e   :  { %558 = vst.msk [vmem:[#allocation2 + $0x88] sm:$0xff] %vm540_vm5, %v356_v13  ;;  %2567 = vrot.lane.b32.xlu1 %v9433_v12, %s8233_s30 }
 0x17f   :  { %809 = vrot.lane.b32.xlu0 %v9080_v21, %s8231_s14  ;;  %v3278_v21 = vld [vmem:[%s13903_s0 + $0x100] sm:$0xff] }
 0x180   :  { %v2554_v16 = vpop.permute.xlu1 %2553  ;;  %v3710_v18 = vld [vmem:[#allocation2 + $0x78] sm:$0xff] }
 0x181   :  { %v796_v30 = vpop.permute.xlu0 %795  ;;  %2757 = vst.msk [vmem:[#allocation2 + $0x80] sm:$0xff] %vm2740_vm10, %v2554_v16  ;;  %7507 = vmatmul.mubr.msk.f32.gmra.mrb[30].mxu0 %vm13913_vm13, %v3710_v18  ;;  %v55_v18 = vld [vmem:[%s13903_s0 + $0xe0] sm:$0xff] }
 0x182   :  { %998 = vst.msk [vmem:[#allocation2 + $0x88] sm:$0xff] %vm980_vm6, %v796_v30  ;;  %3007 = vrot.lane.b32.xlu1 %v9448_v5, %s8236_s20  ;;  %7509 = vmatprep.mubr.msk.f32.mxu0 %vm13911_vm1, %v8235_v14 }
 0x183   :  { %1249 = vrot.lane.b32.xlu0 %v9453_v6, %s8227_s28  ;;  %129 = vst.msk [vmem:[#allocation2 + $0xe0] sm:$0xff] %vm100_vm0, %v55_v18 }
 0x184   :  { %v2994_v20 = vpop.permute.xlu1 %2993  ;;  %v4089_v24 = vpop.f32.mrb[4].mxu0 }
 0x185   :  { %v1236_v62 = vpop.permute.xlu0 %1235  ;;  %3197 = vst.msk [vmem:[#allocation2 + $0x80] sm:$0xff] %vm3180_vm11, %v2994_v20  ;;  %v9470_v10 = vadd.f32 %v9352_v52, %v4089_v24  ;;  %v7469_v26 = vpop.f32.mrb[5].mxu0 }
 0x186   :  { %1438 = vst.msk [vmem:[#allocation2 + $0x88] sm:$0xff] %vm1420_vm7, %v1236_v62  ;;  %3447 = vrot.lane.b32.xlu1 %v3278_v21, %s8237_s16 }
 0x187   :  { %1689 = vrot.lane.b32.xlu0 %v9272_v17, %s8230_s13  ;;  %v4445_v32 = vmax.f32 %v9470_v10, 0.0 }
 0x188   :  { %v3434_v27 = vpop.permute.xlu1 %3433 }
 0x189   :  { %v1676_v28 = vpop.permute.xlu0 %1675  ;;  %3637 = vst.msk [vmem:[#allocation2 + $0x80] sm:$0xff] %vm13914_vm12, %v3434_v27  ;;  %4518 = vst [vmem:[#allocation3 + $0x10] sm:$0xff] %v4445_v32 }
 0x18a   :  { %1878 = vst.msk [vmem:[#allocation2 + $0x88] sm:$0xff] %vm1860_vm8, %v1676_v28  ;;  %2129 = vrot.lane.b32.xlu1 %v9287_v22, %s8232_s21  ;;  %v9502_v22 = vld [vmem:[%s13903_s0 + $0x106] sm:$0xff] }
 0x18b   :  { %371 = vrot.lane.b32.xlu0 %v9292_v23, %s8228_s29  ;;  %v9507_v23 = vld [vmem:[%s13903_s0 + $0xea] sm:$0xff] }
 0x18c   :  { %v2116_v43 = vpop.permute.xlu1 %2115 }
 0x18d   :  { %v358_v33 = vpop.permute.xlu0 %357  ;;  %2318 = vst.msk [vmem:[#allocation2 + $0x88] sm:$0xff] %vm2300_vm9, %v2116_v43 }
 0x18e   :  { %559 = vst.msk [vmem:[#allocation2 + $0x90] sm:$0xff] %vm540_vm5, %v358_v33  ;;  %2569 = vrot.lane.b32.xlu1 %v9487_v29, %s8233_s30 }
 0x18f   :  { %811 = vrot.lane.b32.xlu0 %v9128_v35, %s8231_s14  ;;  %v3279_v35 = vld [vmem:[%s13903_s0 + $0x108] sm:$0xff] }
 0x190   :  { %v2556_v3 = vpop.permute.xlu1 %2555  ;;  %v3711_v39 = vld [vmem:[#allocation2 + $0x80] sm:$0xff] }
 0x191   :  { %v798_v38 = vpop.permute.xlu0 %797  ;;  %2758 = vst.msk [vmem:[#allocation2 + $0x88] sm:$0xff] %vm2740_vm10, %v2556_v3  ;;  %7510 = vmatmul.mubr.msk.f32.gmra.mrb[32].mxu0 %vm13913_vm13, %v3711_v39 }
 0x192   :  { %999 = vst.msk [vmem:[#allocation2 + $0x90] sm:$0xff] %vm980_vm6, %v798_v38  ;;  %3009 = vrot.lane.b32.xlu1 %v9502_v22, %s8236_s20  ;;  %7512 = vmatprep.mubr.msk.f32.mxu0 %vm13911_vm1, %v8235_v14  ;;  %v9639_v38 = vld [vmem:[%s13903_s0 + $0x11c] sm:$0xff] }
 0x193   :  { %1251 = vrot.lane.b32.xlu0 %v9507_v23, %s8227_s28 }
 0x194   :  { %v2996_v40 = vpop.permute.xlu1 %2995  ;;  %v4094_v42 = vpop.f32.mrb[6].mxu0 }
 0x195   :  { %v1238_v41 = vpop.permute.xlu0 %1237  ;;  %3198 = vst.msk [vmem:[#allocation2 + $0x88] sm:$0xff] %vm3180_vm11, %v2996_v40  ;;  %v9524_v44 = vadd.f32 %v9352_v52, %v4094_v42  ;;  %v7472_v56 = vpop.f32.mrb[7].mxu0  ;;  %v56_v40 = vld [vmem:[%s13903_s0 + $0xe8] sm:$0xff] }
 0x196   :  { %1439 = vst.msk [vmem:[#allocation2 + $0x90] sm:$0xff] %vm1420_vm7, %v1238_v41  ;;  %3449 = vrot.lane.b32.xlu1 %v3279_v35, %s8237_s16 }
 0x197   :  { %1691 = vrot.lane.b32.xlu0 %v9320_v31, %s8230_s13  ;;  %v4446_v46 = vmax.f32 %v9524_v44, 0.0  ;;  %130 = vst.msk [vmem:[#allocation2 + $0xe8] sm:$0xff] %vm100_vm0, %v56_v40 }
 0x198   :  { %v3436_v8 = vpop.permute.xlu1 %3435 }
 0x199   :  { %v1678_v49 = vpop.permute.xlu0 %1677  ;;  %3638 = vst.msk [vmem:[#allocation2 + $0x88] sm:$0xff] %vm13914_vm12, %v3436_v8  ;;  %4519 = vst [vmem:[#allocation3 + $0x18] sm:$0xff] %v4446_v46 }
 0x19a   :  { %1879 = vst.msk [vmem:[#allocation2 + $0x90] sm:$0xff] %vm1860_vm8, %v1678_v49  ;;  %2131 = vrot.lane.b32.xlu1 %v9335_v36, %s8232_s21  ;;  %v9556_v36 = vld [vmem:[%s13903_s0 + $0x10e] sm:$0xff] }
 0x19b   :  { %373 = vrot.lane.b32.xlu0 %v9340_v37, %s8228_s29  ;;  %v9561_v37 = vld [vmem:[%s13903_s0 + $0xf2] sm:$0xff] }
 0x19c   :  { %v2118_v55 = vpop.permute.xlu1 %2117 }
 0x19d   :  { %v360_v58 = vpop.permute.xlu0 %359  ;;  %2319 = vst.msk [vmem:[#allocation2 + $0x90] sm:$0xff] %vm2300_vm9, %v2118_v55 }
 0x19e   :  { %560 = vst.msk [vmem:[#allocation2 + $0x98] sm:$0xff] %vm540_vm5, %v360_v58  ;;  %2571 = vrot.lane.b32.xlu1 %v9541_v50, %s8233_s30 }
 0x19f   :  { %813 = vrot.lane.b32.xlu0 %v9176_v48, %s8231_s14  ;;  %v3280_v48 = vld [vmem:[%s13903_s0 + $0x110] sm:$0xff] }
 0x1a0   :  { %v2558_v9 = vpop.permute.xlu1 %2557  ;;  %v3712_v4 = vld [vmem:[#allocation2 + $0x88] sm:$0xff] }
 0x1a1   :  { %v800_v60 = vpop.permute.xlu0 %799  ;;  %2759 = vst.msk [vmem:[#allocation2 + $0x90] sm:$0xff] %vm2740_vm10, %v2558_v9  ;;  %7513 = vmatmul.mubr.msk.f32.gmra.mrb[34].mxu0 %vm13913_vm13, %v3712_v4 }
 0x1a2   :  { %1000 = vst.msk [vmem:[#allocation2 + $0x98] sm:$0xff] %vm980_vm6, %v800_v60  ;;  %3011 = vrot.lane.b32.xlu1 %v9556_v36, %s8236_s20  ;;  %7515 = vmatprep.mubr.msk.f32.mxu0 %vm13911_vm1, %v8235_v14 }
 0x1a3   :  { %1253 = vrot.lane.b32.xlu0 %v9561_v37, %s8227_s28 }
 0x1a4   :  { %v2998_v61 = vpop.permute.xlu1 %2997  ;;  %v4099_v19 = vpop.f32.mrb[8].mxu0 }
 0x1a5   :  { %v1240_v63 = vpop.permute.xlu0 %1239  ;;  %3199 = vst.msk [vmem:[#allocation2 + $0x90] sm:$0xff] %vm3180_vm11, %v2998_v61  ;;  %v4100_v2 = vadd.f32 %v9352_v52, %v4099_v19  ;;  %v7475_v7 = vpop.f32.mrb[9].mxu0  ;;  %v57_v19 = vld [vmem:[%s13903_s0 + $0xf0] sm:$0xff] }
 0x1a6   :  { %1440 = vst.msk [vmem:[#allocation2 + $0x98] sm:$0xff] %vm1420_vm7, %v1240_v63  ;;  %3451 = vrot.lane.b32.xlu1 %v3280_v48, %s8237_s16  ;;  %v9688_v48 = vld [vmem:[%s13903_s0 + $0x124] sm:$0xff] }
 0x1a7   :  { %1693 = vrot.lane.b32.xlu0 %v9379_v51, %s8230_s13  ;;  %v4447_v11 = vmax.f32 %v4100_v2, 0.0  ;;  %131 = vst.msk [vmem:[#allocation2 + $0xf0] sm:$0xff] %vm100_vm0, %v57_v19  ;;  %v4754_v19 = vld [vmem:[#allocation3 + $0x4] sm:$0xff] }
 0x1a8   :  { %v3438_v25 = vpop.permute.xlu1 %3437 }
 0x1a9   :  { %v1680_v13 = vpop.permute.xlu0 %1679  ;;  %3639 = vst.msk [vmem:[#allocation2 + $0x90] sm:$0xff] %vm13914_vm12, %v3438_v25  ;;  %4520 = vst [vmem:[#allocation3 + $0x20] sm:$0xff] %v4447_v11 }
 0x1aa   :  { %1880 = vst.msk [vmem:[#allocation2 + $0x98] sm:$0xff] %vm1860_vm8, %v1680_v13  ;;  %2133 = vrot.lane.b32.xlu1 %v9394_v53, %s8232_s21  ;;  %v9605_v53 = vld [vmem:[%s13903_s0 + $0x116] sm:$0xff] }
 0x1ab   :  { %375 = vrot.lane.b32.xlu0 %v9399_v54, %s8228_s29  ;;  %v9610_v54 = vld [vmem:[%s13903_s0 + $0xfa] sm:$0xff] }
 0x1ac   :  { %v2120_v16 = vpop.permute.xlu1 %2119 }
 0x1ad   :  { %v362_v30 = vpop.permute.xlu0 %361  ;;  %2320 = vst.msk [vmem:[#allocation2 + $0x98] sm:$0xff] %vm2300_vm9, %v2120_v16 }
 0x1ae   :  { %561 = vst.msk [vmem:[#allocation2 + $0xa0] sm:$0xff] %vm540_vm5, %v362_v30  ;;  %2573 = vrot.lane.b32.xlu1 %v9590_v15, %s8233_s30 }
 0x1af   :  { %815 = vrot.lane.b32.xlu0 %v9224_v0, %s8231_s14  ;;  %v3281_v0 = vld [vmem:[%s13903_s0 + $0x118] sm:$0xff] }
 0x1b0   :  { %v2560_v21 = vpop.permute.xlu1 %2559  ;;  %v3713_v62 = vld [vmem:[#allocation2 + $0x90] sm:$0xff] }
 0x1b1   :  { %v802_v20 = vpop.permute.xlu0 %801  ;;  %2760 = vst.msk [vmem:[#allocation2 + $0x98] sm:$0xff] %vm2740_vm10, %v2560_v21  ;;  %7516 = vmatmul.mubr.msk.f32.gmra.mrb[36].mxu0 %vm13913_vm13, %v3713_v62 }
 0x1b2   :  { %1001 = vst.msk [vmem:[#allocation2 + $0xa0] sm:$0xff] %vm980_vm6, %v802_v20  ;;  %3013 = vrot.lane.b32.xlu1 %v9605_v53, %s8236_s20  ;;  %7518 = vmatprep.mubr.msk.f32.mxu0 %vm13911_vm1, %v8235_v14 }
 0x1b3   :  { %1255 = vrot.lane.b32.xlu0 %v9610_v54, %s8227_s28 }
 0x1b4   :  { %v3000_v24 = vpop.permute.xlu1 %2999  ;;  %v4104_v27 = vpop.f32.mrb[10].mxu0 }
 0x1b5   :  { %v1242_v26 = vpop.permute.xlu0 %1241  ;;  %3200 = vst.msk [vmem:[#allocation2 + $0x98] sm:$0xff] %vm3180_vm11, %v3000_v24  ;;  %v4105_v28 = vadd.f32 %v9352_v52, %v4104_v27  ;;  %v7478_v43 = vpop.f32.mrb[11].mxu0  ;;  %v58_v27 = vld [vmem:[%s13903_s0 + $0xf8] sm:$0xff] }
 0x1b6   :  { %1441 = vst.msk [vmem:[#allocation2 + $0xa0] sm:$0xff] %vm1420_vm7, %v1242_v26  ;;  %3453 = vrot.lane.b32.xlu1 %v3281_v0, %s8237_s16  ;;  %v9737_v0 = vld [vmem:[%s13903_s0 + $0x12c] sm:$0xff] }
 0x1b7   :  { %1695 = vrot.lane.b32.xlu0 %v9433_v12, %s8230_s13  ;;  %v4448_v33 = vmax.f32 %v4105_v28, 0.0  ;;  %132 = vst.msk [vmem:[#allocation2 + $0xf8] sm:$0xff] %vm100_vm0, %v58_v27  ;;  %v9865_v27 = vld [vmem:[%s13903_s0 + $0x122] sm:$0xff] }
 0x1b8   :  { %v3440_v34 = vpop.permute.xlu1 %3439 }
 0x1b9   :  { %v1682_v3 = vpop.permute.xlu0 %1681  ;;  %3640 = vst.msk [vmem:[#allocation2 + $0x98] sm:$0xff] %vm13914_vm12, %v3440_v34  ;;  %4521 = vst [vmem:[#allocation3 + $0x28] sm:$0xff] %v4448_v33 }
 0x1ba   :  { %1881 = vst.msk [vmem:[#allocation2 + $0xa0] sm:$0xff] %vm1860_vm8, %v1682_v3  ;;  %2135 = vrot.lane.b32.xlu1 %v9448_v5, %s8232_s21  ;;  %v9654_v5 = vld [vmem:[%s13903_s0 + $0x11e] sm:$0xff] }
 0x1bb   :  { %377 = vrot.lane.b32.xlu0 %v9453_v6, %s8228_s29  ;;  %v9659_v6 = vld [vmem:[%s13903_s0 + $0x102] sm:$0xff] }
 0x1bc   :  { %v2122_v39 = vpop.permute.xlu1 %2121 }
 0x1bd   :  { %v364_v35 = vpop.permute.xlu0 %363  ;;  %2321 = vst.msk [vmem:[#allocation2 + $0xa0] sm:$0xff] %vm2300_vm9, %v2122_v39 }
 0x1be   :  { %562 = vst.msk [vmem:[#allocation2 + $0xa8] sm:$0xff] %vm540_vm5, %v364_v35  ;;  %2575 = vrot.lane.b32.xlu1 %v9639_v38, %s8233_s30 }
 0x1bf   :  { %817 = vrot.lane.b32.xlu0 %v9272_v17, %s8231_s14  ;;  %v3282_v17 = vld [vmem:[%s13903_s0 + $0x120] sm:$0xff] }
 0x1c0   :  { %v2562_v41 = vpop.permute.xlu1 %2561  ;;  %v3714_v56 = vld [vmem:[#allocation2 + $0x98] sm:$0xff] }
 0x1c1   :  { %v804_v42 = vpop.permute.xlu0 %803  ;;  %2761 = vst.msk [vmem:[#allocation2 + $0xa0] sm:$0xff] %vm2740_vm10, %v2562_v41  ;;  %7519 = vmatmul.mubr.msk.f32.gmra.mrb[38].mxu0 %vm13913_vm13, %v3714_v56 }
 0x1c2   :  { %1002 = vst.msk [vmem:[#allocation2 + $0xa8] sm:$0xff] %vm980_vm6, %v804_v42  ;;  %3015 = vrot.lane.b32.xlu1 %v9654_v5, %s8236_s20  ;;  %7521 = vmatprep.mubr.msk.f32.mxu0 %vm13911_vm1, %v8235_v14 }
 0x1c3   :  { %1257 = vrot.lane.b32.xlu0 %v9659_v6, %s8227_s28 }
 0x1c4   :  { %v3002_v8 = vpop.permute.xlu1 %3001  ;;  %v4109_v55 = vpop.f32.mrb[12].mxu0 }
 0x1c5   :  { %v1244_v49 = vpop.permute.xlu0 %1243  ;;  %3201 = vst.msk [vmem:[#allocation2 + $0xa0] sm:$0xff] %vm3180_vm11, %v3002_v8  ;;  %v4110_v58 = vadd.f32 %v9352_v52, %v4109_v55  ;;  %v7481_v59 = vpop.f32.mrb[13].mxu0  ;;  %v59_v55 = vld [vmem:[%s13903_s0 + $0x100] sm:$0xff] }
 0x1c6   :  { %1442 = vst.msk [vmem:[#allocation2 + $0xa8] sm:$0xff] %vm1420_vm7, %v1244_v49  ;;  %3455 = vrot.lane.b32.xlu1 %v3282_v17, %s8237_s16  ;;  %v9791_v17 = vld [vmem:[%s13903_s0 + $0x134] sm:$0xff] }
 0x1c7   :  { %1697 = vrot.lane.b32.xlu0 %v9487_v29, %s8230_s13  ;;  %v4449_v9 = vmax.f32 %v4110_v58, 0.0  ;;  %133 = vst.msk [vmem:[#allocation2 + $0x100] sm:$0xff] %vm100_vm0, %v59_v55  ;;  %v9811_v58 = vld [vmem:[%s13903_s0 + $0x11a] sm:$0xff] }
 0x1c8   :  { %v3442_v60 = vpop.permute.xlu1 %3441 }
 0x1c9   :  { %v1684_v4 = vpop.permute.xlu0 %1683  ;;  %3641 = vst.msk [vmem:[#allocation2 + $0xa0] sm:$0xff] %vm13914_vm12, %v3442_v60  ;;  %4522 = vst [vmem:[#allocation3 + $0x30] sm:$0xff] %v4449_v9 }
 0x1ca   :  { %1882 = vst.msk [vmem:[#allocation2 + $0xa8] sm:$0xff] %vm1860_vm8, %v1684_v4  ;;  %2137 = vrot.lane.b32.xlu1 %v9502_v22, %s8232_s21  ;;  %v9703_v22 = vld [vmem:[%s13903_s0 + $0x126] sm:$0xff]  ;;  %v3285_v4 = vld [vmem:[%s13903_s0 + $0x138] sm:$0xff] }
 0x1cb   :  { %379 = vrot.lane.b32.xlu0 %v9507_v23, %s8228_s29  ;;  %v9708_v23 = vld [vmem:[%s13903_s0 + $0x10a] sm:$0xff] }
 0x1cc   :  { %v2124_v61 = vpop.permute.xlu1 %2123 }
 0x1cd   :  { %v366_v63 = vpop.permute.xlu0 %365  ;;  %2322 = vst.msk [vmem:[#allocation2 + $0xa8] sm:$0xff] %vm2300_vm9, %v2124_v61 }
 0x1ce   :  { %563 = vst.msk [vmem:[#allocation2 + $0xb0] sm:$0xff] %vm540_vm5, %v366_v63  ;;  %2577 = vrot.lane.b32.xlu1 %v9688_v48, %s8233_s30 }
 0x1cf   :  { %819 = vrot.lane.b32.xlu0 %v9320_v31, %s8231_s14  ;;  %v3283_v31 = vld [vmem:[%s13903_s0 + $0x128] sm:$0xff] }
 0x1d0   :  { %v2564_v2 = vpop.permute.xlu1 %2563  ;;  %v3715_v11 = vld [vmem:[#allocation2 + $0xa0] sm:$0xff] }
 0x1d1   :  { %v806_v7 = vpop.permute.xlu0 %805  ;;  %2762 = vst.msk [vmem:[#allocation2 + $0xa8] sm:$0xff] %vm2740_vm10, %v2564_v2  ;;  %7522 = vmatmul.mubr.msk.f32.gmra.mrb[40].mxu0 %vm13913_vm13, %v3715_v11  ;;  %v4648_v2 = vld [vmem:[#allocation3 + $0x22] sm:$0xff] }
 0x1d2   :  { %1003 = vst.msk [vmem:[#allocation2 + $0xb0] sm:$0xff] %vm980_vm6, %v806_v7  ;;  %3017 = vrot.lane.b32.xlu1 %v9703_v22, %s8236_s20  ;;  %7524 = vmatprep.mubr.msk.f32.mxu0 %vm13911_vm1, %v8235_v14 }
 0x1d3   :  { %1259 = vrot.lane.b32.xlu0 %v9708_v23, %s8227_s28 }
 0x1d4   :  { %v3004_v25 = vpop.permute.xlu1 %3003  ;;  %v4114_v16 = vpop.f32.mrb[14].mxu0 }
 0x1d5   :  { %v1246_v13 = vpop.permute.xlu0 %1245  ;;  %3202 = vst.msk [vmem:[#allocation2 + $0xa8] sm:$0xff] %vm3180_vm11, %v3004_v25  ;;  %v4115_v30 = vadd.f32 %v9352_v52, %v4114_v16  ;;  %v7484_v18 = vpop.f32.mrb[15].mxu0 }
 0x1d6   :  { %1443 = vst.msk [vmem:[#allocation2 + $0xb0] sm:$0xff] %vm1420_vm7, %v1246_v13  ;;  %3457 = vrot.lane.b32.xlu1 %v3283_v31, %s8237_s16  ;;  %v9845_v18 = vld [vmem:[%s13903_s0 + $0x13c] sm:$0xff] }
 0x1d7   :  { %1699 = vrot.lane.b32.xlu0 %v9541_v50, %s8230_s13  ;;  %v4450_v21 = vmax.f32 %v4115_v30, 0.0  ;;  %v4758_v30 = vld [vmem:[#allocation3 + $0x24] sm:$0xff] }
 0x1d8   :  { %v3444_v20 = vpop.permute.xlu1 %3443 }
 0x1d9   :  { %v1686_v62 = vpop.permute.xlu0 %1685  ;;  %3642 = vst.msk [vmem:[#allocation2 + $0xa8] sm:$0xff] %vm13914_vm12, %v3444_v20  ;;  %4523 = vst [vmem:[#allocation3 + $0x38] sm:$0xff] %v4450_v21 }
 0x1da   :  { %1883 = vst.msk [vmem:[#allocation2 + $0xb0] sm:$0xff] %vm1860_vm8, %v1686_v62  ;;  %2139 = vrot.lane.b32.xlu1 %v9556_v36, %s8232_s21  ;;  %v9752_v36 = vld [vmem:[%s13903_s0 + $0x12e] sm:$0xff] }
 0x1db   :  { %381 = vrot.lane.b32.xlu0 %v9561_v37, %s8228_s29  ;;  %v9757_v37 = vld [vmem:[%s13903_s0 + $0x112] sm:$0xff] }
 0x1dc   :  { %v2126_v24 = vpop.permute.xlu1 %2125 }
 0x1dd   :  { %v368_v26 = vpop.permute.xlu0 %367  ;;  %2323 = vst.msk [vmem:[#allocation2 + $0xb0] sm:$0xff] %vm2300_vm9, %v2126_v24  ;;  %v60_v24 = vld [vmem:[%s13903_s0 + $0x108] sm:$0xff] }
 0x1de   :  { %564 = vst.msk [vmem:[#allocation2 + $0xb8] sm:$0xff] %vm540_vm5, %v368_v26  ;;  %2579 = vrot.lane.b32.xlu1 %v9737_v0, %s8233_s30  ;;  %v4982_v26 = vld [vmem:[#allocation3 + $0x26] sm:$0xff] }
 0x1df   :  { %821 = vrot.lane.b32.xlu0 %v9379_v51, %s8231_s14  ;;  %v3284_v51 = vld [vmem:[%s13903_s0 + $0x130] sm:$0xff]  ;;  %134 = vst.msk [vmem:[#allocation2 + $0x108] sm:$0xff] %vm100_vm0, %v60_v24 }
 0x1e0   :  { %v2566_v28 = vpop.permute.xlu1 %2565  ;;  %v3716_v33 = vld [vmem:[#allocation2 + $0xa8] sm:$0xff] }
 0x1e1   :  { %v808_v43 = vpop.permute.xlu0 %807  ;;  %2763 = vst.msk [vmem:[#allocation2 + $0xb0] sm:$0xff] %vm2740_vm10, %v2566_v28  ;;  %7525 = vmatmul.mubr.msk.f32.gmra.mrb[42].mxu0 %vm13913_vm13, %v3716_v33 }
 0x1e2   :  { %1004 = vst.msk [vmem:[#allocation2 + $0xb8] sm:$0xff] %vm980_vm6, %v808_v43  ;;  %3019 = vrot.lane.b32.xlu1 %v9752_v36, %s8236_s20  ;;  %7527 = vmatprep.mubr.msk.f32.mxu0 %vm13911_vm1, %v8235_v14 }
 0x1e3   :  { %1261 = vrot.lane.b32.xlu0 %v9757_v37, %s8227_s28 }
 0x1e4   :  { %v3006_v34 = vpop.permute.xlu1 %3005  ;;  %v4119_v39 = vpop.f32.mrb[16].mxu0 }
 0x1e5   :  { %v1248_v3 = vpop.permute.xlu0 %1247  ;;  %3203 = vst.msk [vmem:[#allocation2 + $0xb0] sm:$0xff] %vm3180_vm11, %v3006_v34  ;;  %v9774_v35 = vadd.f32 %v9352_v52, %v4119_v39  ;;  %v7487_v40 = vpop.f32.mrb[17].mxu0 }
 0x1e6   :  { %1444 = vst.msk [vmem:[#allocation2 + $0xb8] sm:$0xff] %vm1420_vm7, %v1248_v3  ;;  %3459 = vrot.lane.b32.xlu1 %v3284_v51, %s8237_s16 }
 0x1e7   :  { %1701 = vrot.lane.b32.xlu0 %v9590_v15, %s8230_s13  ;;  %v4451_v41 = vmax.f32 %v9774_v35, 0.0 }
 0x1e8   :  { %v3446_v42 = vpop.permute.xlu1 %3445 }
 0x1e9   :  { %v1688_v56 = vpop.permute.xlu0 %1687  ;;  %3643 = vst.msk [vmem:[#allocation2 + $0xb0] sm:$0xff] %vm13914_vm12, %v3446_v42  ;;  %4524 = vst [vmem:[#allocation3 + $0x40] sm:$0xff] %v4451_v41 }
 0x1ea   :  { %1884 = vst.msk [vmem:[#allocation2 + $0xb8] sm:$0xff] %vm1860_vm8, %v1688_v56  ;;  %2141 = vrot.lane.b32.xlu1 %v9605_v53, %s8232_s21  ;;  %v4644_v53 = vld [vmem:[#allocation3 + $0x2] sm:$0xff]  ;;  %v3286_v56 = vld [vmem:[%s13903_s0 + $0x140] sm:$0xff] }
 0x1eb   :  { %383 = vrot.lane.b32.xlu0 %v9610_v54, %s8228_s29  ;;  %v9806_v54 = vld [vmem:[%s13903_s0 + $0x136] sm:$0xff] }
 0x1ec   :  { %v2128_v8 = vpop.permute.xlu1 %2127 }
 0x1ed   :  { %v370_v49 = vpop.permute.xlu0 %369  ;;  %2324 = vst.msk [vmem:[#allocation2 + $0xb8] sm:$0xff] %vm2300_vm9, %v2128_v8  ;;  %v4755_v8 = vld [vmem:[#allocation3 + $0xc] sm:$0xff] }
 0x1ee   :  { %565 = vst.msk [vmem:[#allocation2 + $0xc0] sm:$0xff] %vm540_vm5, %v370_v49  ;;  %2581 = vrot.lane.b32.xlu1 %v9791_v17, %s8233_s30  ;;  %v4649_v49 = vld [vmem:[#allocation3 + $0x2a] sm:$0xff] }
 0x1ef   :  { %823 = vrot.lane.b32.xlu0 %v9433_v12, %s8231_s14  ;;  %v4699_v12 = vmax.f32 %v4443_v47, %v4644_v53 }
 0x1f0   :  { %v2568_v59 = vpop.permute.xlu1 %2567  ;;  %v3717_v60 = vld [vmem:[#allocation2 + $0xb0] sm:$0xff] }
 0x1f1   :  { %v810_v9 = vpop.permute.xlu0 %809  ;;  %2764 = vst.msk [vmem:[#allocation2 + $0xb8] sm:$0xff] %vm2740_vm10, %v2568_v59  ;;  %7528 = vmatmul.mubr.msk.f32.gmra.mrb[44].mxu0 %vm13913_vm13, %v3717_v60  ;;  %v4809_v47 = vmax.f32 %v4699_v12, %v4754_v19  ;;  %v4759_v19 = vld [vmem:[#allocation3 + $0x2c] sm:$0xff] }
 0x1f2   :  { %1005 = vst.msk [vmem:[#allocation2 + $0xc0] sm:$0xff] %vm980_vm6, %v810_v9  ;;  %3021 = vrot.lane.b32.xlu1 %v9806_v54, %s8236_s20  ;;  %7530 = vmatprep.mubr.msk.f32.mxu0 %vm13911_vm1, %v8235_v14 }
 0x1f3   :  { %1263 = vrot.lane.b32.xlu0 %v9811_v58, %s8227_s28  ;;  %v4868_v31 = vmax.f32 %v4809_v47, %v4648_v2  ;;  %v9909_v2 = vld [vmem:[%s13903_s0 + $0x144] sm:$0xff] }
 0x1f4   :  { %v3008_v61 = vpop.permute.xlu1 %3007  ;;  %v4124_v45 = vpop.f32.mrb[18].mxu0 }
 0x1f5   :  { %v1250_v63 = vpop.permute.xlu0 %1249  ;;  %3204 = vst.msk [vmem:[#allocation2 + $0xb8] sm:$0xff] %vm3180_vm11, %v3008_v61  ;;  %v4125_v7 = vadd.f32 %v9352_v52, %v4124_v45  ;;  %v7490_v11 = vpop.f32.mrb[19].mxu0  ;;  %v4927_v21 = vmax.f32 %v4868_v31, %v4758_v30  ;;  %v4646_v31 = vld [vmem:[#allocation3 + $0x12] sm:$0xff] }
 0x1f6   :  { %1445 = vst.msk [vmem:[#allocation2 + $0xc0] sm:$0xff] %vm1420_vm7, %v1250_v63  ;;  %3461 = vrot.lane.b32.xlu1 %v3285_v4, %s8237_s16  ;;  %v61_v11 = vld [vmem:[%s13903_s0 + $0x110] sm:$0xff] }
 0x1f7   :  { %1703 = vrot.lane.b32.xlu0 %v9639_v38, %s8230_s13  ;;  %v9833_v25 = vmax.f32 %v4125_v7, 0.0  ;;  %v5037_v28 = vmax.f32 %v4927_v21, %v4982_v26  ;;  %135 = vst.msk [vmem:[#allocation2 + $0x110] sm:$0xff] %vm100_vm0, %v61_v11 }
 0x1f8   :  { %v3448_v13 = vpop.permute.xlu1 %3447 }
 0x1f9   :  { %v1690_v16 = vpop.permute.xlu0 %1689  ;;  %3644 = vst.msk [vmem:[#allocation2 + $0xb8] sm:$0xff] %vm13914_vm12, %v3448_v13  ;;  %4525 = vst [vmem:[#allocation3 + $0x48] sm:$0xff] %v9833_v25  ;;  %v4983_v13 = vld [vmem:[#allocation3 + $0x2e] sm:$0xff] }
 0x1fa   :  { %1885 = vst.msk [vmem:[#allocation2 + $0xc0] sm:$0xff] %vm1860_vm8, %v1690_v16  ;;  %2143 = vrot.lane.b32.xlu1 %v9654_v5, %s8232_s21  ;;  %v9860_v5 = vld [vmem:[%s13903_s0 + $0x13e] sm:$0xff] }
 0x1fb   :  { %385 = vrot.lane.b32.xlu0 %v9659_v6, %s8228_s29  ;;  %v4645_v6 = vld [vmem:[#allocation3 + $0xa] sm:$0xff] }
 0x1fc   :  { %v2130_v20 = vpop.permute.xlu1 %2129 }
 0x1fd   :  { %v372_v62 = vpop.permute.xlu0 %371  ;;  %2325 = vst.msk [vmem:[#allocation2 + $0xc0] sm:$0xff] %vm2300_vm9, %v2130_v20 }
 0x1fe   :  { %566 = vst.msk [vmem:[#allocation2 + $0xc8] sm:$0xff] %vm540_vm5, %v372_v62  ;;  %2583 = vrot.lane.b32.xlu1 %v9845_v18, %s8233_s30 }
 0x1ff   :  { %825 = vrot.lane.b32.xlu0 %v9487_v29, %s8231_s14  ;;  %v4700_v29 = vmax.f32 %v4444_v57, %v4645_v6  ;;  %v4701_v6 = vmax.f32 %v4445_v32, %v4646_v31 }
 0x200   :  { %v2570_v43 = vpop.permute.xlu1 %2569  ;;  %v3718_v51 = vld [vmem:[#allocation2 + $0xb8] sm:$0xff]  ;;  %v4652_v34 = vld [vmem:[#allocation3 + $0x42] sm:$0xff] }
 0x201   :  { %v812_v33 = vpop.permute.xlu0 %811  ;;  %v9867_v3 = vld [vmem:[#allocation3 + $0x44] sm:$0xff]  ;;  %2765 = vst.msk [vmem:[#allocation2 + $0xc0] sm:$0xff] %vm2740_vm10, %v2570_v43  ;;  %7531 = vmatmul.mubr.msk.f32.gmra.mrb[46].mxu0 %vm13913_vm13, %v3718_v51  ;;  %v9876_v39 = vmax.f32 %v4451_v41, %v4652_v34  ;;  %v4810_v53 = vmax.f32 %v4700_v29, %v4755_v8  ;;  %v4756_v34 = vld [vmem:[#allocation3 + $0x14] sm:$0xff] }
 0x202   :  { %1006 = vst.msk [vmem:[#allocation2 + $0xc8] sm:$0xff] %vm980_vm6, %v812_v33  ;;  %v5096_v40 = vmax.f32 %v5037_v28, %v9867_v3  ;;  %3023 = vrot.lane.b32.xlu1 %v9860_v5, %s8236_s20  ;;  %v4986_v42 = vld [vmem:[#allocation3 + $0x46] sm:$0xff]  ;;  %7533 = vmatprep.mubr.msk.f32.mxu0 %vm13911_vm1, %v8235_v14  ;;  %v4650_v29 = vld [vmem:[#allocation3 + $0x32] sm:$0xff] }
 0x203   :  { %1265 = vrot.lane.b32.xlu0 %v9865_v27, %s8227_s28  ;;  %v4817_v1 = vmax.f32 %v9876_v39, %v9867_v3  ;;  %v4869_v12 = vmax.f32 %v4810_v53, %v4649_v49  ;;  %v3287_v33 = vld [vmem:[%s13903_s0 + $0x148] sm:$0xff]  ;;  %v10307_v3 = vld [vmem:[%s13903_s0 + $0x17c] sm:$0xff] }
 0x204   :  { %v5155_v57 = vmax.f32 %v5096_v40, %v4986_v42  ;;  %v3010_v35 = vpop.permute.xlu1 %3009  ;;  %v4129_v55 = vpop.f32.mrb[20].mxu0  ;;  %v4811_v42 = vmax.f32 %v4701_v6, %v4756_v34  ;;  %v9968_v53 = vld [vmem:[%s13903_s0 + $0x14c] sm:$0xff] }
 0x205   :  { %v1252_v41 = vpop.permute.xlu0 %1251  ;;  %3205 = vst.msk [vmem:[#allocation2 + $0xc0] sm:$0xff] %vm3180_vm11, %v3010_v35  ;;  %v4130_v9 = vadd.f32 %v9352_v52, %v4129_v55  ;;  %v7493_v60 = vpop.f32.mrb[21].mxu0  ;;  %v4928_v45 = vmax.f32 %v4869_v12, %v4759_v19  ;;  %v62_v12 = vld [vmem:[%s13903_s0 + $0x118] sm:$0xff] }
 0x206   :  { %1446 = vst.msk [vmem:[#allocation2 + $0xc8] sm:$0xff] %vm1420_vm7, %v1252_v41  ;;  %v5219_v59 = vmax.f32 %v5155_v57, %v9833_v25  ;;  %3463 = vrot.lane.b32.xlu1 %v3286_v56, %s8237_s16  ;;  %v4870_v41 = vmax.f32 %v4811_v42, %v4650_v29  ;;  %v4761_v29 = vld [vmem:[#allocation3 + $0x3c] sm:$0xff] }
 0x207   :  { %1705 = vrot.lane.b32.xlu0 %v9688_v48, %s8230_s13  ;;  %v9897_v4 = vmax.f32 %v4130_v9, 0.0  ;;  %v5038_v30 = vmax.f32 %v4928_v45, %v4983_v13  ;;  %136 = vst.msk [vmem:[#allocation2 + $0x118] sm:$0xff] %vm100_vm0, %v62_v12 }
 0x208   :  { %5274 = vst [vmem:[#allocation4] sm:$0xff] %v5219_v59  ;;  %v3450_v61 = vpop.permute.xlu1 %3449 }
 0x209   :  { %v1692_v63 = vpop.permute.xlu0 %1691  ;;  %3645 = vst.msk [vmem:[#allocation2 + $0xc0] sm:$0xff] %vm13914_vm12, %v3450_v61  ;;  %4526 = vst [vmem:[#allocation3 + $0x50] sm:$0xff] %v9897_v4  ;;  %v4984_v61 = vld [vmem:[#allocation3 + $0x36] sm:$0xff] }
 0x20a   :  { %1886 = vst.msk [vmem:[#allocation2 + $0xc8] sm:$0xff] %vm1860_vm8, %v1692_v63  ;;  %2145 = vrot.lane.b32.xlu1 %v9703_v22, %s8232_s21  ;;  %v9924_v22 = vld [vmem:[%s13903_s0 + $0x146] sm:$0xff]  ;;  %v9988_v63 = vld [vmem:[%s13903_s0 + $0x132] sm:$0xff] }
 0x20b   :  { %387 = vrot.lane.b32.xlu0 %v9708_v23, %s8228_s29  ;;  %v9929_v23 = vld [vmem:[%s13903_s0 + $0x12a] sm:$0xff] }
 0x20c   :  { %v2132_v47 = vpop.permute.xlu1 %2131 }
 0x20d   :  { %v374_v7 = vpop.permute.xlu0 %373  ;;  %2326 = vst.msk [vmem:[#allocation2 + $0xc8] sm:$0xff] %vm2300_vm9, %v2132_v47 }
 0x20e   :  { %567 = vst.msk [vmem:[#allocation2 + $0xd0] sm:$0xff] %vm540_vm5, %v374_v7  ;;  %2585 = vrot.lane.b32.xlu1 %v9909_v2, %s8233_s30 }
 0x20f   :  { %827 = vrot.lane.b32.xlu0 %v9541_v50, %s8231_s14  ;;  %v5329_v16 = vld [vmem:[#allocation4] sm:$0x3] }
 0x210   :  { %v2572_v21 = vpop.permute.xlu1 %2571  ;;  %v3719_v62 = vld [vmem:[#allocation2 + $0xc0] sm:$0xff]  ;;  %5331 = vst.msk [vmem:[#allocation5] sm:$0x3] %vm5330_vm14, %v5329_v16  ;;  %v4653_v50 = vld [vmem:[#allocation3 + $0x4a] sm:$0xff] }
 0x211   :  { %v814_v20 = vpop.permute.xlu0 %813  ;;  %v4763_v24 = vld [vmem:[#allocation3 + $0x4c] sm:$0xff]  ;;  %2766 = vst.msk [vmem:[#allocation2 + $0xc8] sm:$0xff] %vm2740_vm10, %v2572_v21  ;;  %7534 = vmatmul.mubr.msk.f32.gmra.mrb[48].mxu0 %vm13913_vm13, %v3719_v62  ;;  %v4708_v26 = vmax.f32 %v9833_v25, %v4653_v50  ;;  %v4757_v62 = vld [vmem:[#allocation3 + $0x1c] sm:$0xff] }
 0x212   :  { %1007 = vst.msk [vmem:[#allocation2 + $0xd0] sm:$0xff] %vm980_vm6, %v814_v20  ;;  %v5097_v28 = vmax.f32 %v5038_v30, %v4763_v24  ;;  %3025 = vrot.lane.b32.xlu1 %v9924_v22, %s8236_s20  ;;  %v4987_v43 = vld [vmem:[#allocation3 + $0x4e] sm:$0xff]  ;;  %7536 = vmatprep.mubr.msk.f32.mxu0 %vm13911_vm1, %v8235_v14  ;;  %v4651_v50 = vld [vmem:[#allocation3 + $0x3a] sm:$0xff] }
 0x213   :  { %1267 = vrot.lane.b32.xlu0 %v9929_v23, %s8227_s28  ;;  %v9947_v51 = vmax.f32 %v4708_v26, %v4763_v24  ;;  %v3288_v21 = vld [vmem:[%s13903_s0 + $0x150] sm:$0xff] }
 0x214   :  { %v5156_v10 = vmax.f32 %v5097_v28, %v4987_v43  ;;  %v3012_v32 = vpop.permute.xlu1 %3011  ;;  %v4134_v40 = vpop.f32.mrb[22].mxu0  ;;  %v10013_v28 = vld [vmem:[%s13905_s2] ss:$0 sm:$0xff] }
 0x215   :  { %v1254_v25 = vpop.permute.xlu0 %1253  ;;  %3206 = vst.msk [vmem:[#allocation2 + $0xc8] sm:$0xff] %vm3180_vm11, %v3012_v32  ;;  %v4135_v57 = vadd.f32 %v9352_v52, %v4134_v40  ;;  %v7496_v35 = vpop.f32.mrb[23].mxu0  ;;  %v4760_v52 = vld [vmem:[#allocation3 + $0x34] sm:$0xff]  ;;  %v10028_v40 = vld [vmem:[%s13903_s0 + $0x154] sm:$0xff] }
 0x216   :  { %1447 = vst.msk [vmem:[#allocation2 + $0xd0] sm:$0xff] %vm1420_vm7, %v1254_v25  ;;  %v5220_v56 = vmax.f32 %v5156_v10, %v9897_v4  ;;  %3465 = vrot.lane.b32.xlu1 %v3287_v33, %s8237_s16  ;;  %v4929_v59 = vmax.f32 %v4870_v41, %v4760_v52  ;;  %v63_v35 = vld [vmem:[%s13903_s0 + $0x120] sm:$0xff] }
 0x217   :  { %1707 = vrot.lane.b32.xlu0 %v9737_v0, %s8230_s13  ;;  %v9956_v8 = vmax.f32 %v4135_v57, 0.0  ;;  %137 = vst.msk [vmem:[#allocation2 + $0x120] sm:$0xff] %vm100_vm0, %v63_v35  ;;  %v10048_v41 = vld [vmem:[%s13903_s0 + $0x13a] sm:$0xff] }
 0x218   :  { %5275 = vst [vmem:[#allocation4 + $0x8] sm:$0xff] %v5220_v56  ;;  %v3452_v49 = vpop.permute.xlu1 %3451  ;;  %v5039_v19 = vmax.f32 %v4929_v59, %v4984_v61  ;;  %v3289_v61 = vld [vmem:[%s13903_s0 + $0x158] sm:$0xff] }
 0x219   :  { %v1694_v55 = vpop.permute.xlu0 %1693  ;;  %3646 = vst.msk [vmem:[#allocation2 + $0xc8] sm:$0xff] %vm13914_vm12, %v3452_v49  ;;  %4527 = vst [vmem:[#allocation3 + $0x58] sm:$0xff] %v9956_v8 }
 0x21a   :  { %1887 = vst.msk [vmem:[#allocation2 + $0xd0] sm:$0xff] %vm1860_vm8, %v1694_v55  ;;  %2147 = vrot.lane.b32.xlu1 %v9752_v36, %s8232_s21  ;;  %v9983_v36 = vld [vmem:[%s13903_s0 + $0x14e] sm:$0xff] }
 0x21b   :  { %389 = vrot.lane.b32.xlu0 %v9757_v37, %s8228_s29  ;;  %v4647_v37 = vld [vmem:[#allocation3 + $0x1a] sm:$0xff] }
 0x21c   :  { %v2134_v9 = vpop.permute.xlu1 %2133 }
 0x21d   :  { %v376_v60 = vpop.permute.xlu0 %375  ;;  %2327 = vst.msk [vmem:[#allocation2 + $0xd0] sm:$0xff] %vm2300_vm9, %v2134_v9 }
 0x21e   :  { %568 = vst.msk [vmem:[#allocation2 + $0xd8] sm:$0xff] %vm540_vm5, %v376_v60  ;;  %2587 = vrot.lane.b32.xlu1 %v9968_v53, %s8233_s30 }
 0x21f   :  { %829 = vrot.lane.b32.xlu0 %v9590_v15, %s8231_s14  ;;  %v4702_v15 = vmax.f32 %v4446_v46, %v4647_v37 }
 0x220   :  { %v2574_v45 = vpop.permute.xlu1 %2573  ;;  %v3720_v7 = vld [vmem:[#allocation2 + $0xc8] sm:$0xff]  ;;  %v4654_v11 = vld [vmem:[#allocation3 + $0x52] sm:$0xff] }
 0x221   :  { %v816_v47 = vpop.permute.xlu0 %815  ;;  %v4764_v31 = vld [vmem:[#allocation3 + $0x54] sm:$0xff]  ;;  %2767 = vst.msk [vmem:[#allocation2 + $0xd0] sm:$0xff] %vm2740_vm10, %v2574_v45  ;;  %7537 = vmatmul.mubr.msk.f32.gmra.mrb[50].mxu0 %vm13913_vm13, %v3720_v7  ;;  %v4709_v13 = vmax.f32 %v9897_v4, %v4654_v11  ;;  %v4812_v6 = vmax.f32 %v4702_v15, %v4757_v62 }
 0x222   :  { %1008 = vst.msk [vmem:[#allocation2 + $0xd8] sm:$0xff] %vm980_vm6, %v816_v47  ;;  %v5098_v16 = vmax.f32 %v5039_v19, %v4764_v31  ;;  %3027 = vrot.lane.b32.xlu1 %v9983_v36, %s8236_s20  ;;  %v4988_v30 = vld [vmem:[#allocation3 + $0x56] sm:$0xff]  ;;  %7539 = vmatprep.mubr.msk.f32.mxu0 %vm13911_vm1, %v8235_v14 }
 0x223   :  { %1269 = vrot.lane.b32.xlu0 %v9988_v63, %s8227_s28  ;;  %v10005_v20 = vmax.f32 %v4709_v13, %v4764_v31  ;;  %v4871_v10 = vmax.f32 %v4812_v6, %v4651_v50 }
 0x224   :  { %v5157_v44 = vmax.f32 %v5098_v16, %v4988_v30  ;;  %v3014_v46 = vpop.permute.xlu1 %3013  ;;  %v4139_v24 = vpop.f32.mrb[24].mxu0 }
 0x225   :  { %v1256_v4 = vpop.permute.xlu0 %1255  ;;  %3207 = vst.msk [vmem:[#allocation2 + $0xd0] sm:$0xff] %vm3180_vm11, %v3014_v46  ;;  %v4140_v43 = vadd.f32 %v10013_v28, %v4139_v24  ;;  %v7499_v33 = vpop.f32.mrb[25].mxu0  ;;  %v4930_v42 = vmax.f32 %v4871_v10, %v4761_v29 }
 0x226   :  { %1448 = vst.msk [vmem:[#allocation2 + $0xd8] sm:$0xff] %vm1420_vm7, %v1256_v4  ;;  %v5221_v26 = vmax.f32 %v5157_v44, %v9956_v8  ;;  %3467 = vrot.lane.b32.xlu1 %v3288_v21, %s8237_s16  ;;  %v10080_v21 = vld [vmem:[%s13903_s0 + $0x15c] sm:$0xff]  ;;  %v64_v4 = vld [vmem:[%s13903_s0 + $0x128] sm:$0xff] }
 0x227   :  { %1709 = vrot.lane.b32.xlu0 %v9791_v17, %s8230_s13  ;;  %v4455_v32 = vmax.f32 %v4140_v43, 0.0  ;;  %138 = vst.msk [vmem:[#allocation2 + $0x128] sm:$0xff] %vm100_vm0, %v64_v4  ;;  %v3290_v43 = vld [vmem:[%s13903_s0 + $0x160] sm:$0xff] }
 0x228   :  { %5276 = vst [vmem:[#allocation4 + $0x10] sm:$0xff] %v5221_v26  ;;  %v3454_v25 = vpop.permute.xlu1 %3453 }
 0x229   :  { %v1696_v34 = vpop.permute.xlu0 %1695  ;;  %3647 = vst.msk [vmem:[#allocation2 + $0xd0] sm:$0xff] %vm13914_vm12, %v3454_v25  ;;  %4528 = vst [vmem:[#allocation3 + $0x60] sm:$0xff] %v4455_v32 }
 0x22a   :  { %1888 = vst.msk [vmem:[#allocation2 + $0xd8] sm:$0xff] %vm1860_vm8, %v1696_v34  ;;  %2149 = vrot.lane.b32.xlu1 %v9806_v54, %s8232_s21  ;;  %v4985_v54 = vld [vmem:[#allocation3 + $0x3e] sm:$0xff] }
 0x22b   :  { %391 = vrot.lane.b32.xlu0 %v9811_v58, %s8228_s29  ;;  %v10043_v58 = vld [vmem:[%s13903_s0 + $0x156] sm:$0xff]  ;;  %v5040_v49 = vmax.f32 %v4930_v42, %v4985_v54 }
 0x22c   :  { %v2136_v56 = vpop.permute.xlu1 %2135 }
 0x22d   :  { %v378_v57 = vpop.permute.xlu0 %377  ;;  %2328 = vst.msk [vmem:[#allocation2 + $0xd8] sm:$0xff] %vm2300_vm9, %v2136_v56 }
 0x22e   :  { %569 = vst.msk [vmem:[#allocation2 + $0xe0] sm:$0xff] %vm540_vm5, %v378_v57  ;;  %2589 = vrot.lane.b32.xlu1 %v10028_v40, %s8233_s30  ;;  %v10135_v57 = vld [vmem:[%s13903_s0 + $0x164] sm:$0xff] }
 0x22f   :  { %831 = vrot.lane.b32.xlu0 %v9639_v38, %s8231_s14 }
 0x230   :  { %v2576_v55 = vpop.permute.xlu1 %2575  ;;  %v3721_v59 = vld [vmem:[#allocation2 + $0xd0] sm:$0xff]  ;;  %v4655_v9 = vld [vmem:[#allocation3 + $0x5a] sm:$0xff] }
 0x231   :  { %v818_v52 = vpop.permute.xlu0 %817  ;;  %v4765_v60 = vld [vmem:[#allocation3 + $0x5c] sm:$0xff]  ;;  %2768 = vst.msk [vmem:[#allocation2 + $0xd8] sm:$0xff] %vm2740_vm10, %v2576_v55  ;;  %7540 = vmatmul.mubr.msk.f32.gmra.mrb[52].mxu0 %vm13913_vm13, %v3721_v59  ;;  %v4710_v38 = vmax.f32 %v9956_v8, %v4655_v9 }
 0x232   :  { %1009 = vst.msk [vmem:[#allocation2 + $0xe0] sm:$0xff] %vm980_vm6, %v818_v52  ;;  %v5099_v12 = vmax.f32 %v5040_v49, %v4765_v60  ;;  %3029 = vrot.lane.b32.xlu1 %v10043_v58, %s8236_s20  ;;  %v4989_v37 = vld [vmem:[#allocation3 + $0x5e] sm:$0xff]  ;;  %7542 = vmatprep.mubr.msk.f32.mxu0 %vm13911_vm1, %v8235_v14  ;;  %v65_v49 = vld [vmem:[%s13903_s0 + $0x130] sm:$0xff] }
 0x233   :  { %1271 = vrot.lane.b32.xlu0 %v10048_v41, %s8227_s28  ;;  %v10063_v19 = vmax.f32 %v4710_v38, %v4765_v60  ;;  %139 = vst.msk [vmem:[#allocation2 + $0x130] sm:$0xff] %vm100_vm0, %v65_v49  ;;  %v3291_v38 = vld [vmem:[%s13903_s0 + $0x168] sm:$0xff] }
 0x234   :  { %v5158_v45 = vmax.f32 %v5099_v12, %v4989_v37  ;;  %v3016_v47 = vpop.permute.xlu1 %3015  ;;  %v4144_v7 = vpop.f32.mrb[26].mxu0 }
 0x235   :  { %v1258_v8 = vpop.permute.xlu0 %1257  ;;  %3208 = vst.msk [vmem:[#allocation2 + $0xd8] sm:$0xff] %vm3180_vm11, %v3016_v47  ;;  %v4145_v31 = vadd.f32 %v10013_v28, %v4144_v7  ;;  %v7502_v15 = vpop.f32.mrb[27].mxu0 }
 0x236   :  { %1449 = vst.msk [vmem:[#allocation2 + $0xe0] sm:$0xff] %vm1420_vm7, %v1258_v8  ;;  %v5222_v11 = vmax.f32 %v5158_v45, %v4455_v32  ;;  %3469 = vrot.lane.b32.xlu1 %v3289_v61, %s8237_s16 }
 0x237   :  { %1711 = vrot.lane.b32.xlu0 %v9845_v18, %s8230_s13  ;;  %v4456_v13 = vmax.f32 %v4145_v31, 0.0  ;;  %v10190_v31 = vld [vmem:[%s13903_s0 + $0x16c] sm:$0xff] }
 0x238   :  { %5277 = vst [vmem:[#allocation4 + $0x18] sm:$0xff] %v5222_v11  ;;  %v3456_v16 = vpop.permute.xlu1 %3455 }
 0x239   :  { %v1698_v30 = vpop.permute.xlu0 %1697  ;;  %3648 = vst.msk [vmem:[#allocation2 + $0xd8] sm:$0xff] %vm13914_vm12, %v3456_v16  ;;  %4529 = vst [vmem:[#allocation3 + $0x68] sm:$0xff] %v4456_v13  ;;  %v66_v16 = vld [vmem:[%s13903_s0 + $0x138] sm:$0xff] }
 0x23a   :  { %1889 = vst.msk [vmem:[#allocation2 + $0xe0] sm:$0xff] %vm1860_vm8, %v1698_v30  ;;  %2151 = vrot.lane.b32.xlu1 %v9860_v5, %s8232_s21  ;;  %v10095_v5 = vld [vmem:[%s13903_s0 + $0x15e] sm:$0xff] }
 0x23b   :  { %393 = vrot.lane.b32.xlu0 %v9865_v27, %s8228_s29  ;;  %v10100_v27 = vld [vmem:[%s13903_s0 + $0x142] sm:$0xff]  ;;  %140 = vst.msk [vmem:[#allocation2 + $0x138] sm:$0xff] %vm100_vm0, %v66_v16 }
 0x23c   :  { %v2138_v44 = vpop.permute.xlu1 %2137  ;;  %v68_v16 = vld [vmem:[%s13903_s0 + $0x148] sm:$0xff] }
 0x23d   :  { %v380_v46 = vpop.permute.xlu0 %379  ;;  %2329 = vst.msk [vmem:[#allocation2 + $0xe0] sm:$0xff] %vm2300_vm9, %v2138_v44 }
 0x23e   :  { %570 = vst.msk [vmem:[#allocation2 + $0xe8] sm:$0xff] %vm540_vm5, %v380_v46  ;;  %2591 = vrot.lane.b32.xlu1 %v10080_v21, %s8233_s30 }
 0x23f   :  { %833 = vrot.lane.b32.xlu0 %v9688_v48, %s8231_s14  ;;  %142 = vst.msk [vmem:[#allocation2 + $0x148] sm:$0xff] %vm100_vm0, %v68_v16 }
 0x240   :  { %v2578_v62 = vpop.permute.xlu1 %2577  ;;  %v3722_v24 = vld [vmem:[#allocation2 + $0xd8] sm:$0xff]  ;;  %v10102_v6 = vld [vmem:[#allocation3 + $0x62] sm:$0xff] }
 0x241   :  { %v820_v50 = vpop.permute.xlu0 %819  ;;  %v10104_v26 = vld [vmem:[#allocation3 + $0x64] sm:$0xff]  ;;  %2769 = vst.msk [vmem:[#allocation2 + $0xe0] sm:$0xff] %vm2740_vm10, %v2578_v62  ;;  %7543 = vmatmul.mubr.msk.f32.gmra.mrb[54].mxu0 %vm13913_vm13, %v3722_v24 }
 0x242   :  { %1010 = vst.msk [vmem:[#allocation2 + $0xe8] sm:$0xff] %vm980_vm6, %v820_v50  ;;  %3031 = vrot.lane.b32.xlu1 %v10095_v5, %s8236_s20  ;;  %v10113_v48 = vld [vmem:[#allocation3 + $0x66] sm:$0xff]  ;;  %7545 = vmatprep.mubr.msk.f32.mxu0 %vm13911_vm1, %v8235_v14 }
 0x243   :  { %1273 = vrot.lane.b32.xlu0 %v10100_v27, %s8227_s28  ;;  %v3292_v50 = vld [vmem:[%s13903_s0 + $0x170] sm:$0xff] }
 0x244   :  { %v3018_v33 = vpop.permute.xlu1 %3017  ;;  %v4149_v32 = vpop.f32.mrb[28].mxu0 }
 0x245   :  { %v1260_v10 = vpop.permute.xlu0 %1259  ;;  %3209 = vst.msk [vmem:[#allocation2 + $0xe0] sm:$0xff] %vm3180_vm11, %v3018_v33  ;;  %v4150_v25 = vadd.f32 %v10013_v28, %v4149_v32  ;;  %v7505_v34 = vpop.f32.mrb[29].mxu0 }
 0x246   :  { %1450 = vst.msk [vmem:[#allocation2 + $0xe8] sm:$0xff] %vm1420_vm7, %v1260_v10  ;;  %3471 = vrot.lane.b32.xlu1 %v3290_v43, %s8237_s16 }
 0x247   :  { %1713 = vrot.lane.b32.xlu0 %v9909_v2, %s8230_s13  ;;  %v4457_v29 = vmax.f32 %v4150_v25, 0.0 }
 0x248   :  { %v3458_v42 = vpop.permute.xlu1 %3457 }
 0x249   :  { %v1700_v56 = vpop.permute.xlu0 %1699  ;;  %3649 = vst.msk [vmem:[#allocation2 + $0xe0] sm:$0xff] %vm13914_vm12, %v3458_v42  ;;  %4530 = vst [vmem:[#allocation3 + $0x70] sm:$0xff] %v4457_v29  ;;  %v10245_v42 = vld [vmem:[%s13903_s0 + $0x174] sm:$0xff] }
 0x24a   :  { %1890 = vst.msk [vmem:[#allocation2 + $0xe8] sm:$0xff] %vm1860_vm8, %v1700_v56  ;;  %2153 = vrot.lane.b32.xlu1 %v9924_v22, %s8232_s21  ;;  %v10150_v22 = vld [vmem:[%s13903_s0 + $0x166] sm:$0xff] }
 0x24b   :  { %395 = vrot.lane.b32.xlu0 %v9929_v23, %s8228_s29  ;;  %v10155_v23 = vld [vmem:[%s13903_s0 + $0x14a] sm:$0xff] }
 0x24c   :  { %v2140_v35 = vpop.permute.xlu1 %2139 }
 0x24d   :  { %v382_v54 = vpop.permute.xlu0 %381  ;;  %2330 = vst.msk [vmem:[#allocation2 + $0xe8] sm:$0xff] %vm2300_vm9, %v2140_v35 }
 0x24e   :  { %571 = vst.msk [vmem:[#allocation2 + $0xf0] sm:$0xff] %vm540_vm5, %v382_v54  ;;  %2593 = vrot.lane.b32.xlu1 %v10135_v57, %s8233_s30  ;;  %v67_v54 = vld [vmem:[%s13903_s0 + $0x140] sm:$0xff] }
 0x24f   :  { %835 = vrot.lane.b32.xlu0 %v9737_v0, %s8231_s14  ;;  %141 = vst.msk [vmem:[#allocation2 + $0x140] sm:$0xff] %vm100_vm0, %v67_v54 }
 0x250   :  { %v2580_v55 = vpop.permute.xlu1 %2579  ;;  %v3723_v59 = vld [vmem:[#allocation2 + $0xe0] sm:$0xff]  ;;  %v10157_v9 = vld [vmem:[#allocation3 + $0x6a] sm:$0xff] }
 0x251   :  { %v822_v52 = vpop.permute.xlu0 %821  ;;  %v10159_v60 = vld [vmem:[#allocation3 + $0x6c] sm:$0xff]  ;;  %2770 = vst.msk [vmem:[#allocation2 + $0xe8] sm:$0xff] %vm2740_vm10, %v2580_v55  ;;  %7546 = vmatmul.mubr.msk.f32.gmra.mrb[56].mxu0 %vm13913_vm13, %v3723_v59 }
 0x252   :  { %1011 = vst.msk [vmem:[#allocation2 + $0xf0] sm:$0xff] %vm980_vm6, %v822_v52  ;;  %3033 = vrot.lane.b32.xlu1 %v10150_v22, %s8236_s20  ;;  %v10168_v0 = vld [vmem:[#allocation3 + $0x6e] sm:$0xff]  ;;  %7548 = vmatprep.mubr.msk.f32.mxu0 %vm13911_vm1, %v8235_v14 }
 0x253   :  { %1275 = vrot.lane.b32.xlu0 %v10155_v23, %s8227_s28 }
 0x254   :  { %v3020_v12 = vpop.permute.xlu1 %3019  ;;  %v4154_v61 = vpop.f32.mrb[30].mxu0 }
 0x255   :  { %v1262_v37 = vpop.permute.xlu0 %1261  ;;  %3210 = vst.msk [vmem:[#allocation2 + $0xe8] sm:$0xff] %vm3180_vm11, %v3020_v12  ;;  %v4155_v45 = vadd.f32 %v10013_v28, %v4154_v61  ;;  %v7508_v47 = vpop.f32.mrb[31].mxu0  ;;  %v3293_v12 = vld [vmem:[%s13903_s0 + $0x178] sm:$0xff] }
 0x256   :  { %1451 = vst.msk [vmem:[#allocation2 + $0xf0] sm:$0xff] %vm1420_vm7, %v1262_v37  ;;  %3473 = vrot.lane.b32.xlu1 %v3291_v38, %s8237_s16 }
 0x257   :  { %1715 = vrot.lane.b32.xlu0 %v9968_v53, %s8230_s13  ;;  %v4458_v8 = vmax.f32 %v4155_v45, 0.0 }
 0x258   :  { %v3460_v7 = vpop.permute.xlu1 %3459 }
 0x259   :  { %v1702_v11 = vpop.permute.xlu0 %1701  ;;  %3650 = vst.msk [vmem:[#allocation2 + $0xe8] sm:$0xff] %vm13914_vm12, %v3460_v7  ;;  %4531 = vst [vmem:[#allocation3 + $0x78] sm:$0xff] %v4458_v8  ;;  %v4876_v7 = vmax.f32 %v4817_v1, %v10102_v6 }
 0x25a   :  { %1891 = vst.msk [vmem:[#allocation2 + $0xf0] sm:$0xff] %vm1860_vm8, %v1702_v11  ;;  %2155 = vrot.lane.b32.xlu1 %v9983_v36, %s8232_s21  ;;  %v10205_v36 = vld [vmem:[%s13903_s0 + $0x16e] sm:$0xff] }
 0x25b   :  { %397 = vrot.lane.b32.xlu0 %v9988_v63, %s8228_s29  ;;  %v10210_v63 = vld [vmem:[%s13903_s0 + $0x152] sm:$0xff]  ;;  %v4935_v39 = vmax.f32 %v4876_v7, %v10104_v26 }
 0x25c   :  { %v2142_v15 = vpop.permute.xlu1 %2141 }
 0x25d   :  { %v384_v13 = vpop.permute.xlu0 %383  ;;  %2331 = vst.msk [vmem:[#allocation2 + $0xf0] sm:$0xff] %vm2300_vm9, %v2142_v15  ;;  %v5045_v26 = vmax.f32 %v4935_v39, %v10113_v48  ;;  %v3294_v48 = vld [vmem:[%s13903_s0 + $0x180] sm:$0xff] }
 0x25e   :  { %572 = vst.msk [vmem:[#allocation2 + $0xf8] sm:$0xff] %vm540_vm5, %v384_v13  ;;  %2595 = vrot.lane.b32.xlu1 %v10190_v31, %s8233_s30 }
 0x25f   :  { %837 = vrot.lane.b32.xlu0 %v9791_v17, %s8231_s14 }
 0x260   :  { %v2582_v30 = vpop.permute.xlu1 %2581  ;;  %v3724_v46 = vld [vmem:[#allocation2 + $0xe8] sm:$0xff]  ;;  %v10212_v4 = vld [vmem:[#allocation3 + $0x72] sm:$0xff] }
 0x261   :  { %v824_v44 = vpop.permute.xlu0 %823  ;;  %v10214_v62 = vld [vmem:[#allocation3 + $0x74] sm:$0xff]  ;;  %2771 = vst.msk [vmem:[#allocation2 + $0xf0] sm:$0xff] %vm2740_vm10, %v2582_v30  ;;  %7549 = vmatmul.mubr.msk.f32.gmra.mrb[58].mxu0 %vm13913_vm13, %v3724_v46 }
 0x262   :  { %1012 = vst.msk [vmem:[#allocation2 + $0xf8] sm:$0xff] %vm980_vm6, %v824_v44  ;;  %3035 = vrot.lane.b32.xlu1 %v10205_v36, %s8236_s20  ;;  %v10223_v17 = vld [vmem:[#allocation3 + $0x76] sm:$0xff]  ;;  %7551 = vmatprep.mubr.msk.f32.mxu0 %vm13911_vm1, %v8235_v14 }
 0x263   :  { %1277 = vrot.lane.b32.xlu0 %v10210_v63, %s8227_s28 }
 0x264   :  { %v3022_v24 = vpop.permute.xlu1 %3021  ;;  %v4159_v33 = vpop.f32.mrb[32].mxu0 }
 0x265   :  { %v1264_v43 = vpop.permute.xlu0 %1263  ;;  %3211 = vst.msk [vmem:[#allocation2 + $0xf0] sm:$0xff] %vm3180_vm11, %v3022_v24  ;;  %v4160_v10 = vadd.f32 %v10013_v28, %v4159_v33  ;;  %v7511_v32 = vpop.f32.mrb[33].mxu0 }
 0x266   :  { %1452 = vst.msk [vmem:[#allocation2 + $0xf8] sm:$0xff] %vm1420_vm7, %v1264_v43  ;;  %3475 = vrot.lane.b32.xlu1 %v3292_v50, %s8237_s16 }
 0x267   :  { %1717 = vrot.lane.b32.xlu0 %v10028_v40, %s8230_s13  ;;  %v4459_v25 = vmax.f32 %v4160_v10, 0.0 }
 0x268   :  { %v3462_v34 = vpop.permute.xlu1 %3461 }
 0x269   :  { %v1704_v29 = vpop.permute.xlu0 %1703  ;;  %3651 = vst.msk [vmem:[#allocation2 + $0xf0] sm:$0xff] %vm13914_vm12, %v3462_v34  ;;  %4532 = vst [vmem:[#allocation3 + $0x80] sm:$0xff] %v4459_v25 }
 0x26a   :  { %1892 = vst.msk [vmem:[#allocation2 + $0xf8] sm:$0xff] %vm1860_vm8, %v1704_v29  ;;  %2157 = vrot.lane.b32.xlu1 %v10043_v58, %s8232_s21  ;;  %v10260_v58 = vld [vmem:[%s13903_s0 + $0x176] sm:$0xff] }
 0x26b   :  { %399 = vrot.lane.b32.xlu0 %v10048_v41, %s8228_s29  ;;  %v10265_v41 = vld [vmem:[%s13903_s0 + $0x15a] sm:$0xff] }
 0x26c   :  { %v2144_v56 = vpop.permute.xlu1 %2143 }
 0x26d   :  { %v386_v35 = vpop.permute.xlu0 %385  ;;  %2332 = vst.msk [vmem:[#allocation2 + $0xf8] sm:$0xff] %vm2300_vm9, %v2144_v56  ;;  %v4877_v56 = vmax.f32 %v9947_v51, %v10157_v9  ;;  %v10364_v51 = vld [vmem:[%s13903_s0 + $0x184] sm:$0xff] }
 0x26e   :  { %573 = vst.msk [vmem:[#allocation2 + $0x100] sm:$0xff] %vm540_vm5, %v386_v35  ;;  %2597 = vrot.lane.b32.xlu1 %v10245_v42, %s8233_s30 }
 0x26f   :  { %839 = vrot.lane.b32.xlu0 %v9845_v18, %s8231_s14  ;;  %v4936_v9 = vmax.f32 %v4877_v56, %v10159_v60 }
 0x270   :  { %v2584_v49 = vpop.permute.xlu1 %2583  ;;  %v3725_v52 = vld [vmem:[#allocation2 + $0xf0] sm:$0xff]  ;;  %v10267_v59 = vld [vmem:[#allocation3 + $0x7a] sm:$0xff] }
 0x271   :  { %v826_v55 = vpop.permute.xlu0 %825  ;;  %v10269_v38 = vld [vmem:[#allocation3 + $0x7c] sm:$0xff]  ;;  %2772 = vst.msk [vmem:[#allocation2 + $0xf8] sm:$0xff] %vm2740_vm10, %v2584_v49  ;;  %7552 = vmatmul.mubr.msk.f32.gmra.mrb[60].mxu0 %vm13913_vm13, %v3725_v52  ;;  %v5046_v60 = vmax.f32 %v4936_v9, %v10168_v0 }
 0x272   :  { %1013 = vst.msk [vmem:[#allocation2 + $0x100] sm:$0xff] %vm980_vm6, %v826_v55  ;;  %3037 = vrot.lane.b32.xlu1 %v10260_v58, %s8236_s20  ;;  %v10278_v18 = vld [vmem:[#allocation3 + $0x7e] sm:$0xff]  ;;  %7554 = vmatprep.mubr.msk.f32.mxu0 %vm13911_vm1, %v8235_v14 }
 0x273   :  { %1279 = vrot.lane.b32.xlu0 %v10265_v41, %s8227_s28 }
 0x274   :  { %v3024_v37 = vpop.permute.xlu1 %3023  ;;  %v4164_v45 = vpop.f32.mrb[34].mxu0 }
 0x275   :  { %v1266_v61 = vpop.permute.xlu0 %1265  ;;  %3212 = vst.msk [vmem:[#allocation2 + $0xf8] sm:$0xff] %vm3180_vm11, %v3024_v37  ;;  %v4165_v47 = vadd.f32 %v10013_v28, %v4164_v45  ;;  %v7514_v8 = vpop.f32.mrb[35].mxu0 }
 0x276   :  { %1453 = vst.msk [vmem:[#allocation2 + $0x100] sm:$0xff] %vm1420_vm7, %v1266_v61  ;;  %3477 = vrot.lane.b32.xlu1 %v3293_v12, %s8237_s16  ;;  %v69_v12 = vld [vmem:[%s13903_s0 + $0x150] sm:$0xff] }
 0x277   :  { %1719 = vrot.lane.b32.xlu0 %v10080_v21, %s8230_s13  ;;  %v10295_v11 = vmax.f32 %v4165_v47, 0.0  ;;  %143 = vst.msk [vmem:[#allocation2 + $0x150] sm:$0xff] %vm100_vm0, %v69_v12 }
 0x278   :  { %v3464_v15 = vpop.permute.xlu1 %3463 }
 0x279   :  { %v1706_v13 = vpop.permute.xlu0 %1705  ;;  %3652 = vst.msk [vmem:[#allocation2 + $0xf8] sm:$0xff] %vm13914_vm12, %v3464_v15  ;;  %4533 = vst [vmem:[#allocation3 + $0x88] sm:$0xff] %v10295_v11  ;;  %v3295_v15 = vld [vmem:[%s13903_s0 + $0x188] sm:$0xff] }
 0x27a   :  { %1893 = vst.msk [vmem:[#allocation2 + $0x100] sm:$0xff] %vm1860_vm8, %v1706_v13  ;;  %2159 = vrot.lane.b32.xlu1 %v10095_v5, %s8232_s21  ;;  %v10323_v5 = vld [vmem:[%s13903_s0 + $0x17e] sm:$0xff] }
 0x27b   :  { %401 = vrot.lane.b32.xlu0 %v10100_v27, %s8228_s29  ;;  %v10328_v27 = vld [vmem:[%s13903_s0 + $0x162] sm:$0xff] }
 0x27c   :  { %v2146_v1 = vpop.permute.xlu1 %2145 }
 0x27d   :  { %v388_v6 = vpop.permute.xlu0 %387  ;;  %2333 = vst.msk [vmem:[#allocation2 + $0x100] sm:$0xff] %vm2300_vm9, %v2146_v1 }
 0x27e   :  { %574 = vst.msk [vmem:[#allocation2 + $0x108] sm:$0xff] %vm540_vm5, %v388_v6  ;;  %2599 = vrot.lane.b32.xlu1 %v10307_v3, %s8233_s30 }
 0x27f   :  { %841 = vrot.lane.b32.xlu0 %v9909_v2, %s8231_s14 }
 0x280   :  { %v2586_v30 = vpop.permute.xlu1 %2585  ;;  %v3726_v46 = vld [vmem:[#allocation2 + $0xf8] sm:$0xff]  ;;  %v4770_v50 = vld [vmem:[#allocation3 + $0x84] sm:$0xff] }
 0x281   :  { %v828_v44 = vpop.permute.xlu0 %827  ;;  %2773 = vst.msk [vmem:[#allocation2 + $0x100] sm:$0xff] %vm2740_vm10, %v2586_v30  ;;  %7555 = vmatmul.mubr.msk.f32.gmra.mrb[62].mxu0 %vm13913_vm13, %v3726_v46  ;;  %v5104_v2 = vmax.f32 %v5045_v26, %v4770_v50  ;;  %v4994_v24 = vld [vmem:[#allocation3 + $0x86] sm:$0xff] }
 0x282   :  { %1014 = vst.msk [vmem:[#allocation2 + $0x108] sm:$0xff] %vm980_vm6, %v828_v44  ;;  %3039 = vrot.lane.b32.xlu1 %v10323_v5, %s8236_s20  ;;  %7557 = vmatprep.mubr.msk.f32.mxu0 %vm13911_vm1, %v8235_v14  ;;  %v4878_v44 = vmax.f32 %v10005_v20, %v10212_v4  ;;  %v10424_v20 = vld [vmem:[%s13903_s0 + $0x18c] sm:$0xff] }
 0x283   :  { %1281 = vrot.lane.b32.xlu0 %v10328_v27, %s8227_s28  ;;  %v5163_v43 = vmax.f32 %v5104_v2, %v4994_v24 }
 0x284   :  { %v3026_v33 = vpop.permute.xlu1 %3025  ;;  %v4169_v32 = vpop.f32.mrb[36].mxu0  ;;  %v4937_v4 = vmax.f32 %v4878_v44, %v10214_v62 }
 0x285   :  { %v1268_v10 = vpop.permute.xlu0 %1267  ;;  %3213 = vst.msk [vmem:[#allocation2 + $0x100] sm:$0xff] %vm3180_vm11, %v3026_v33  ;;  %v5227_v25 = vmax.f32 %v5163_v43, %v10295_v11  ;;  %v4170_v34 = vadd.f32 %v10013_v28, %v4169_v32  ;;  %v7517_v29 = vpop.f32.mrb[37].mxu0  ;;  %v70_v43 = vld [vmem:[%s13903_s0 + $0x158] sm:$0xff] }
 0x286   :  { %1454 = vst.msk [vmem:[#allocation2 + $0x108] sm:$0xff] %vm1420_vm7, %v1268_v10  ;;  %3479 = vrot.lane.b32.xlu1 %v3294_v48, %s8237_s16  ;;  %v5047_v33 = vmax.f32 %v4937_v4, %v10223_v17 }
 0x287   :  { %1721 = vrot.lane.b32.xlu0 %v10135_v57, %s8230_s13  ;;  %5282 = vst [vmem:[#allocation4 + $0x40] sm:$0xff] %v5227_v25  ;;  %v10352_v35 = vmax.f32 %v4170_v34, 0.0  ;;  %144 = vst.msk [vmem:[#allocation2 + $0x158] sm:$0xff] %vm100_vm0, %v70_v43 }
 0x288   :  { %v3466_v54 = vpop.permute.xlu1 %3465 }
 0x289   :  { %v1708_v49 = vpop.permute.xlu0 %1707  ;;  %3653 = vst.msk [vmem:[#allocation2 + $0x100] sm:$0xff] %vm13914_vm12, %v3466_v54  ;;  %4534 = vst [vmem:[#allocation3 + $0x90] sm:$0xff] %v10352_v35  ;;  %v3296_v54 = vld [vmem:[%s13903_s0 + $0x190] sm:$0xff] }
 0x28a   :  { %1894 = vst.msk [vmem:[#allocation2 + $0x108] sm:$0xff] %vm1860_vm8, %v1708_v49  ;;  %2161 = vrot.lane.b32.xlu1 %v10150_v22, %s8232_s21  ;;  %v10380_v22 = vld [vmem:[%s13903_s0 + $0x186] sm:$0xff] }
 0x28b   :  { %403 = vrot.lane.b32.xlu0 %v10155_v23, %s8228_s29  ;;  %v10385_v23 = vld [vmem:[%s13903_s0 + $0x16a] sm:$0xff] }
 0x28c   :  { %v2148_v55 = vpop.permute.xlu1 %2147 }
 0x28d   :  { %v390_v52 = vpop.permute.xlu0 %389  ;;  %2334 = vst.msk [vmem:[#allocation2 + $0x108] sm:$0xff] %vm2300_vm9, %v2148_v55 }
 0x28e   :  { %575 = vst.msk [vmem:[#allocation2 + $0x110] sm:$0xff] %vm540_vm5, %v390_v52  ;;  %2601 = vrot.lane.b32.xlu1 %v10364_v51, %s8233_s30 }
 0x28f   :  { %843 = vrot.lane.b32.xlu0 %v9968_v53, %s8231_s14 }
 0x290   :  { %v2588_v37 = vpop.permute.xlu1 %2587  ;;  %v3727_v45 = vld [vmem:[#allocation2 + $0x100] sm:$0xff]  ;;  %v4661_v47 = vld [vmem:[#allocation3 + $0x8a] sm:$0xff] }
 0x291   :  { %v830_v61 = vpop.permute.xlu0 %829  ;;  %v4771_v8 = vld [vmem:[#allocation3 + $0x8c] sm:$0xff]  ;;  %2774 = vst.msk [vmem:[#allocation2 + $0x108] sm:$0xff] %vm2740_vm10, %v2588_v37  ;;  %7558 = vmatmul.mubr.msk.f32.gmra.mrb[64].mxu0 %vm13913_vm13, %v3727_v45  ;;  %v4716_v53 = vmax.f32 %v10295_v11, %v4661_v47 }
 0x292   :  { %1015 = vst.msk [vmem:[#allocation2 + $0x110] sm:$0xff] %vm980_vm6, %v830_v61  ;;  %v5105_v7 = vmax.f32 %v5046_v60, %v4771_v8  ;;  %3041 = vrot.lane.b32.xlu1 %v10380_v22, %s8236_s20  ;;  %v4995_v0 = vld [vmem:[#allocation3 + $0x8e] sm:$0xff]  ;;  %7560 = vmatprep.mubr.msk.f32.mxu0 %vm13911_vm1, %v8235_v14  ;;  %v4879_v61 = vmax.f32 %v10063_v19, %v10267_v59 }
 0x293   :  { %1283 = vrot.lane.b32.xlu0 %v10385_v23, %s8227_s28  ;;  %v10401_v13 = vmax.f32 %v4716_v53, %v4771_v8  ;;  %v10485_v19 = vld [vmem:[%s13903_s0 + $0x194] sm:$0xff] }
 0x294   :  { %v5164_v39 = vmax.f32 %v5105_v7, %v4995_v0  ;;  %v3028_v1 = vpop.permute.xlu1 %3027  ;;  %v4174_v6 = vpop.f32.mrb[38].mxu0  ;;  %v4938_v59 = vmax.f32 %v4879_v61, %v10269_v38  ;;  %v71_v0 = vld [vmem:[%s13903_s0 + $0x160] sm:$0xff] }
 0x295   :  { %v1270_v11 = vpop.permute.xlu0 %1269  ;;  %3214 = vst.msk [vmem:[#allocation2 + $0x108] sm:$0xff] %vm3180_vm11, %v3028_v1  ;;  %v4175_v26 = vadd.f32 %v10013_v28, %v4174_v6  ;;  %v7520_v30 = vpop.f32.mrb[39].mxu0 }
 0x296   :  { %1455 = vst.msk [vmem:[#allocation2 + $0x110] sm:$0xff] %vm1420_vm7, %v1270_v11  ;;  %v5228_v16 = vmax.f32 %v5164_v39, %v10352_v35  ;;  %3481 = vrot.lane.b32.xlu1 %v3295_v15, %s8237_s16  ;;  %v5048_v38 = vmax.f32 %v4938_v59, %v10278_v18 }
 0x297   :  { %1723 = vrot.lane.b32.xlu0 %v10190_v31, %s8230_s13  ;;  %v10412_v46 = vmax.f32 %v4175_v26, 0.0  ;;  %145 = vst.msk [vmem:[#allocation2 + $0x160] sm:$0xff] %vm100_vm0, %v71_v0  ;;  %v3297_v26 = vld [vmem:[%s13903_s0 + $0x198] sm:$0xff] }
 0x298   :  { %5283 = vst [vmem:[#allocation4 + $0x48] sm:$0xff] %v5228_v16  ;;  %v3468_v50 = vpop.permute.xlu1 %3467 }
 0x299   :  { %v1710_v2 = vpop.permute.xlu0 %1709  ;;  %3654 = vst.msk [vmem:[#allocation2 + $0x108] sm:$0xff] %vm13914_vm12, %v3468_v50  ;;  %4535 = vst [vmem:[#allocation3 + $0x98] sm:$0xff] %v10412_v46 }
 0x29a   :  { %1895 = vst.msk [vmem:[#allocation2 + $0x110] sm:$0xff] %vm1860_vm8, %v1710_v2  ;;  %2163 = vrot.lane.b32.xlu1 %v10205_v36, %s8232_s21  ;;  %v10440_v36 = vld [vmem:[%s13903_s0 + $0x18e] sm:$0xff] }
 0x29b   :  { %405 = vrot.lane.b32.xlu0 %v10210_v63, %s8228_s29  ;;  %v10445_v63 = vld [vmem:[%s13903_s0 + $0x172] sm:$0xff] }
 0x29c   :  { %v2150_v24 = vpop.permute.xlu1 %2149 }
 0x29d   :  { %v392_v48 = vpop.permute.xlu0 %391  ;;  %2335 = vst.msk [vmem:[#allocation2 + $0x110] sm:$0xff] %vm2300_vm9, %v2150_v24 }
 0x29e   :  { %576 = vst.msk [vmem:[#allocation2 + $0x118] sm:$0xff] %vm540_vm5, %v392_v48  ;;  %2603 = vrot.lane.b32.xlu1 %v10424_v20, %s8233_s30 }
 0x29f   :  { %845 = vrot.lane.b32.xlu0 %v10028_v40, %s8231_s14  ;;  %v5430_v62 = vld [vmem:[#allocation4 + $0x48] sm:$0x3] }
 0x2a0   :  { %v2590_v10 = vpop.permute.xlu1 %2589  ;;  %v3728_v25 = vld [vmem:[#allocation2 + $0x108] sm:$0xff]  ;;  %5431 = vst.msk [vmem:[#allocation5 + $0x2] sm:$0x3] %vm5330_vm14, %v5430_v62  ;;  %v4662_v34 = vld [vmem:[#allocation3 + $0x92] sm:$0xff] }
 0x2a1   :  { %v832_v32 = vpop.permute.xlu0 %831  ;;  %v4772_v40 = vld [vmem:[#allocation3 + $0x94] sm:$0xff]  ;;  %2775 = vst.msk [vmem:[#allocation2 + $0x110] sm:$0xff] %vm2740_vm10, %v2590_v10  ;;  %7561 = vmatmul.mubr.msk.f32.gmra.mrb[66].mxu0 %vm13913_vm13, %v3728_v25  ;;  %v4717_v29 = vmax.f32 %v10352_v35, %v4662_v34  ;;  %v72_v25 = vld [vmem:[%s13903_s0 + $0x168] sm:$0xff] }
 0x2a2   :  { %1016 = vst.msk [vmem:[#allocation2 + $0x118] sm:$0xff] %vm980_vm6, %v832_v32  ;;  %v5106_v56 = vmax.f32 %v5047_v33, %v4772_v40  ;;  %3043 = vrot.lane.b32.xlu1 %v10440_v36, %s8236_s20  ;;  %v4996_v17 = vld [vmem:[#allocation3 + $0x96] sm:$0xff]  ;;  %7563 = vmatprep.mubr.msk.f32.mxu0 %vm13911_vm1, %v8235_v14 }
 0x2a3   :  { %1285 = vrot.lane.b32.xlu0 %v10445_v63, %s8227_s28  ;;  %v10462_v49 = vmax.f32 %v4717_v29, %v4772_v40  ;;  %146 = vst.msk [vmem:[#allocation2 + $0x168] sm:$0xff] %vm100_vm0, %v72_v25  ;;  %v3300_v25 = vld [vmem:[%s13903_s0 + $0x1b0] sm:$0xff] }
 0x2a4   :  { %v5165_v9 = vmax.f32 %v5106_v56, %v4996_v17  ;;  %v3030_v55 = vpop.permute.xlu1 %3029  ;;  %v4179_v52 = vpop.f32.mrb[40].mxu0 }
 0x2a5   :  { %v1272_v35 = vpop.permute.xlu0 %1271  ;;  %3215 = vst.msk [vmem:[#allocation2 + $0x110] sm:$0xff] %vm3180_vm11, %v3030_v55  ;;  %v4180_v60 = vadd.f32 %v10013_v28, %v4179_v52  ;;  %v7523_v37 = vpop.f32.mrb[41].mxu0 }
 0x2a6   :  { %1456 = vst.msk [vmem:[#allocation2 + $0x118] sm:$0xff] %vm1420_vm7, %v1272_v35  ;;  %v5229_v12 = vmax.f32 %v5165_v9, %v10412_v46  ;;  %3483 = vrot.lane.b32.xlu1 %v3296_v54, %s8237_s16  ;;  %v3298_v54 = vld [vmem:[%s13903_s0 + $0x1a0] sm:$0xff] }
 0x2a7   :  { %1725 = vrot.lane.b32.xlu0 %v10245_v42, %s8230_s13  ;;  %v10473_v45 = vmax.f32 %v4180_v60, 0.0 }
 0x2a8   :  { %5284 = vst [vmem:[#allocation4 + $0x50] sm:$0xff] %v5229_v12  ;;  %v3470_v47 = vpop.permute.xlu1 %3469  ;;  %v10582_v12 = vld [vmem:[%s13905_s2] ss:$0 sm:$0xff] }
 0x2a9   :  { %v1712_v8 = vpop.permute.xlu0 %1711  ;;  %3655 = vst.msk [vmem:[#allocation2 + $0x110] sm:$0xff] %vm13914_vm12, %v3470_v47  ;;  %4536 = vst [vmem:[#allocation3 + $0xa0] sm:$0xff] %v10473_v45 }
 0x2aa   :  { %1896 = vst.msk [vmem:[#allocation2 + $0x118] sm:$0xff] %vm1860_vm8, %v1712_v8  ;;  %2165 = vrot.lane.b32.xlu1 %v10260_v58, %s8232_s21  ;;  %v10501_v58 = vld [vmem:[%s13903_s0 + $0x196] sm:$0xff]  ;;  %v10597_v8 = vld [vmem:[%s13903_s0 + $0x1a4] sm:$0xff] }
 0x2ab   :  { %407 = vrot.lane.b32.xlu0 %v10265_v41, %s8228_s29  ;;  %v10506_v41 = vld [vmem:[%s13903_s0 + $0x17a] sm:$0xff] }
 0x2ac   :  { %v2152_v53 = vpop.permute.xlu1 %2151 }
 0x2ad   :  { %v394_v7 = vpop.permute.xlu0 %393  ;;  %2336 = vst.msk [vmem:[#allocation2 + $0x118] sm:$0xff] %vm2300_vm9, %v2152_v53 }
 0x2ae   :  { %577 = vst.msk [vmem:[#allocation2 + $0x120] sm:$0xff] %vm540_vm5, %v394_v7  ;;  %2605 = vrot.lane.b32.xlu1 %v10485_v19, %s8233_s30  ;;  %v73_v7 = vld [vmem:[%s13903_s0 + $0x170] sm:$0xff] }
 0x2af   :  { %847 = vrot.lane.b32.xlu0 %v10080_v21, %s8231_s14  ;;  %147 = vst.msk [vmem:[#allocation2 + $0x170] sm:$0xff] %vm100_vm0, %v73_v7  ;;  %v3301_v7 = vld [vmem:[%s13903_s0 + $0x1b8] sm:$0xff] }
 0x2b0   :  { %v2592_v15 = vpop.permute.xlu1 %2591  ;;  %v3729_v1 = vld [vmem:[#allocation2 + $0x110] sm:$0xff]  ;;  %v4663_v11 = vld [vmem:[#allocation3 + $0x9a] sm:$0xff] }
 0x2b1   :  { %v834_v39 = vpop.permute.xlu0 %833  ;;  %v4773_v6 = vld [vmem:[#allocation3 + $0x9c] sm:$0xff]  ;;  %2776 = vst.msk [vmem:[#allocation2 + $0x118] sm:$0xff] %vm2740_vm10, %v2592_v15  ;;  %7564 = vmatmul.mubr.msk.f32.gmra.mrb[68].mxu0 %vm13913_vm13, %v3729_v1  ;;  %v4718_v21 = vmax.f32 %v10412_v46, %v4663_v11 }
 0x2b2   :  { %1017 = vst.msk [vmem:[#allocation2 + $0x120] sm:$0xff] %vm980_vm6, %v834_v39  ;;  %v5107_v16 = vmax.f32 %v5048_v38, %v4773_v6  ;;  %3045 = vrot.lane.b32.xlu1 %v10501_v58, %s8236_s20  ;;  %v4997_v18 = vld [vmem:[#allocation3 + $0x9e] sm:$0xff]  ;;  %7566 = vmatprep.mubr.msk.f32.mxu0 %vm13911_vm1, %v8235_v14 }
 0x2b3   :  { %1287 = vrot.lane.b32.xlu0 %v10506_v41, %s8227_s28  ;;  %v10522_v30 = vmax.f32 %v4718_v21, %v4773_v6  ;;  %v3299_v11 = vld [vmem:[%s13903_s0 + $0x1a8] sm:$0xff] }
 0x2b4   :  { %v5166_v44 = vmax.f32 %v5107_v16, %v4997_v18  ;;  %v3032_v50 = vpop.permute.xlu1 %3031  ;;  %v4184_v2 = vpop.f32.mrb[42].mxu0 }
 0x2b5   :  { %v1274_v46 = vpop.permute.xlu0 %1273  ;;  %3216 = vst.msk [vmem:[#allocation2 + $0x118] sm:$0xff] %vm3180_vm11, %v3032_v50  ;;  %v4185_v24 = vadd.f32 %v10013_v28, %v4184_v2  ;;  %v7526_v48 = vpop.f32.mrb[43].mxu0  ;;  %v10540_v28 = vld [vmem:[%s13903_s0 + $0x19c] sm:$0xff]  ;;  %v10652_v2 = vld [vmem:[%s13903_s0 + $0x1ac] sm:$0xff] }
 0x2b6   :  { %1457 = vst.msk [vmem:[#allocation2 + $0x120] sm:$0xff] %vm1420_vm7, %v1274_v46  ;;  %v5230_v4 = vmax.f32 %v5166_v44, %v10473_v45  ;;  %3485 = vrot.lane.b32.xlu1 %v3297_v26, %s8237_s16  ;;  %v74_v48 = vld [vmem:[%s13903_s0 + $0x178] sm:$0xff] }
 0x2b7   :  { %1727 = vrot.lane.b32.xlu0 %v10307_v3, %s8230_s13  ;;  %v4464_v43 = vmax.f32 %v4185_v24, 0.0  ;;  %148 = vst.msk [vmem:[#allocation2 + $0x178] sm:$0xff] %vm100_vm0, %v74_v48 }
 0x2b8   :  { %5285 = vst [vmem:[#allocation4 + $0x58] sm:$0xff] %v5230_v4  ;;  %v3472_v62 = vpop.permute.xlu1 %3471 }
 0x2b9   :  { %v1714_v33 = vpop.permute.xlu0 %1713  ;;  %3656 = vst.msk [vmem:[#allocation2 + $0x118] sm:$0xff] %vm13914_vm12, %v3472_v62  ;;  %4537 = vst [vmem:[#allocation3 + $0xa8] sm:$0xff] %v4464_v43 }
 0x2ba   :  { %1897 = vst.msk [vmem:[#allocation2 + $0x120] sm:$0xff] %vm1860_vm8, %v1714_v33  ;;  %2167 = vrot.lane.b32.xlu1 %v10323_v5, %s8232_s21  ;;  %v10555_v5 = vld [vmem:[%s13903_s0 + $0x19e] sm:$0xff] }
 0x2bb   :  { %409 = vrot.lane.b32.xlu0 %v10328_v27, %s8228_s29  ;;  %v10560_v27 = vld [vmem:[%s13903_s0 + $0x182] sm:$0xff] }
 0x2bc   :  { %v2154_v10 = vpop.permute.xlu1 %2153 }
 0x2bd   :  { %v396_v32 = vpop.permute.xlu0 %395  ;;  %2337 = vst.msk [vmem:[#allocation2 + $0x120] sm:$0xff] %vm2300_vm9, %v2154_v10 }
 0x2be   :  { %578 = vst.msk [vmem:[#allocation2 + $0x128] sm:$0xff] %vm540_vm5, %v396_v32  ;;  %2607 = vrot.lane.b32.xlu1 %v10540_v28, %s8233_s30 }
 0x2bf   :  { %849 = vrot.lane.b32.xlu0 %v10135_v57, %s8231_s14 }
 0x2c0   :  { %v2594_v34 = vpop.permute.xlu1 %2593  ;;  %v3730_v29 = vld [vmem:[#allocation2 + $0x118] sm:$0xff]  ;;  %v4664_v56 = vld [vmem:[#allocation3 + $0xa2] sm:$0xff] }
 0x2c1   :  { %v836_v40 = vpop.permute.xlu0 %835  ;;  %v4774_v17 = vld [vmem:[#allocation3 + $0xa4] sm:$0xff]  ;;  %2777 = vst.msk [vmem:[#allocation2 + $0x120] sm:$0xff] %vm2740_vm10, %v2594_v34  ;;  %7567 = vmatmul.mubr.msk.f32.gmra.mrb[70].mxu0 %vm13913_vm13, %v3730_v29  ;;  %v4719_v57 = vmax.f32 %v10473_v45, %v4664_v56 }
 0x2c2   :  { %1018 = vst.msk [vmem:[#allocation2 + $0x128] sm:$0xff] %vm980_vm6, %v836_v40  ;;  %3047 = vrot.lane.b32.xlu1 %v10555_v5, %s8236_s20  ;;  %7569 = vmatprep.mubr.msk.f32.mxu0 %vm13911_vm1, %v8235_v14 }
 0x2c3   :  { %1289 = vrot.lane.b32.xlu0 %v10560_v27, %s8227_s28  ;;  %v10575_v9 = vmax.f32 %v4719_v57, %v4774_v17 }
 0x2c4   :  { %v3034_v55 = vpop.permute.xlu1 %3033  ;;  %v4189_v52 = vpop.f32.mrb[44].mxu0 }
 0x2c5   :  { %v1276_v35 = vpop.permute.xlu0 %1275  ;;  %3217 = vst.msk [vmem:[#allocation2 + $0x120] sm:$0xff] %vm3180_vm11, %v3034_v55  ;;  %v4190_v60 = vadd.f32 %v10582_v12, %v4189_v52  ;;  %v7529_v37 = vpop.f32.mrb[45].mxu0 }
 0x2c6   :  { %1458 = vst.msk [vmem:[#allocation2 + $0x128] sm:$0xff] %vm1420_vm7, %v1276_v35  ;;  %3487 = vrot.lane.b32.xlu1 %v3298_v54, %s8237_s16  ;;  %v10707_v35 = vld [vmem:[%s13903_s0 + $0x1b4] sm:$0xff]  ;;  %v75_v37 = vld [vmem:[%s13903_s0 + $0x180] sm:$0xff] }
 0x2c7   :  { %1729 = vrot.lane.b32.xlu0 %v10364_v51, %s8230_s13  ;;  %v4465_v61 = vmax.f32 %v4190_v60, 0.0  ;;  %149 = vst.msk [vmem:[#allocation2 + $0x180] sm:$0xff] %vm100_vm0, %v75_v37  ;;  %v77_v37 = vld [vmem:[%s13903_s0 + $0x190] sm:$0xff] }
 0x2c8   :  { %v3474_v45 = vpop.permute.xlu1 %3473  ;;  %151 = vst.msk [vmem:[#allocation2 + $0x190] sm:$0xff] %vm100_vm0, %v77_v37 }
 0x2c9   :  { %v1716_v47 = vpop.permute.xlu0 %1715  ;;  %3657 = vst.msk [vmem:[#allocation2 + $0x120] sm:$0xff] %vm13914_vm12, %v3474_v45  ;;  %4538 = vst [vmem:[#allocation3 + $0xb0] sm:$0xff] %v4465_v61 }
 0x2ca   :  { %1898 = vst.msk [vmem:[#allocation2 + $0x128] sm:$0xff] %vm1860_vm8, %v1716_v47  ;;  %2169 = vrot.lane.b32.xlu1 %v10380_v22, %s8232_s21  ;;  %v10612_v22 = vld [vmem:[%s13903_s0 + $0x1a6] sm:$0xff] }
 0x2cb   :  { %411 = vrot.lane.b32.xlu0 %v10385_v23, %s8228_s29  ;;  %v10617_v23 = vld [vmem:[%s13903_s0 + $0x18a] sm:$0xff] }
 0x2cc   :  { %v2156_v59 = vpop.permute.xlu1 %2155 }
 0x2cd   :  { %v398_v53 = vpop.permute.xlu0 %397  ;;  %2338 = vst.msk [vmem:[#allocation2 + $0x128] sm:$0xff] %vm2300_vm9, %v2156_v59 }
 0x2ce   :  { %579 = vst.msk [vmem:[#allocation2 + $0x130] sm:$0xff] %vm540_vm5, %v398_v53  ;;  %2609 = vrot.lane.b32.xlu1 %v10597_v8, %s8233_s30 }
 0x2cf   :  { %851 = vrot.lane.b32.xlu0 %v10190_v31, %s8231_s14 }
 0x2d0   :  { %v2596_v0 = vpop.permute.xlu1 %2595  ;;  %v3731_v15 = vld [vmem:[#allocation2 + $0x120] sm:$0xff]  ;;  %v10619_v39 = vld [vmem:[#allocation3 + $0xaa] sm:$0xff] }
 0x2d1   :  { %v838_v38 = vpop.permute.xlu0 %837  ;;  %v10621_v1 = vld [vmem:[#allocation3 + $0xac] sm:$0xff]  ;;  %2778 = vst.msk [vmem:[#allocation2 + $0x128] sm:$0xff] %vm2740_vm10, %v2596_v0  ;;  %7570 = vmatmul.mubr.msk.f32.gmra.mrb[72].mxu0 %vm13913_vm13, %v3731_v15 }
 0x2d2   :  { %1019 = vst.msk [vmem:[#allocation2 + $0x130] sm:$0xff] %vm980_vm6, %v838_v38  ;;  %3049 = vrot.lane.b32.xlu1 %v10612_v22, %s8236_s20  ;;  %v10630_v31 = vld [vmem:[#allocation3 + $0xae] sm:$0xff]  ;;  %7572 = vmatprep.mubr.msk.f32.mxu0 %vm13911_vm1, %v8235_v14 }
 0x2d3   :  { %1291 = vrot.lane.b32.xlu0 %v10617_v23, %s8227_s28 }
 0x2d4   :  { %v3036_v6 = vpop.permute.xlu1 %3035  ;;  %v4194_v16 = vpop.f32.mrb[46].mxu0 }
 0x2d5   :  { %v1278_v21 = vpop.permute.xlu0 %1277  ;;  %3218 = vst.msk [vmem:[#allocation2 + $0x128] sm:$0xff] %vm3180_vm11, %v3036_v6  ;;  %v4195_v18 = vadd.f32 %v10582_v12, %v4194_v16  ;;  %v7532_v26 = vpop.f32.mrb[47].mxu0 }
 0x2d6   :  { %1459 = vst.msk [vmem:[#allocation2 + $0x130] sm:$0xff] %vm1420_vm7, %v1278_v21  ;;  %3489 = vrot.lane.b32.xlu1 %v3299_v11, %s8237_s16  ;;  %v10767_v26 = vld [vmem:[%s13903_s0 + $0x1bc] sm:$0xff] }
 0x2d7   :  { %1731 = vrot.lane.b32.xlu0 %v10424_v20, %s8230_s13  ;;  %v4466_v44 = vmax.f32 %v4195_v18, 0.0 }
 0x2d8   :  { %v3476_v50 = vpop.permute.xlu1 %3475 }
 0x2d9   :  { %v1718_v46 = vpop.permute.xlu0 %1717  ;;  %3658 = vst.msk [vmem:[#allocation2 + $0x128] sm:$0xff] %vm13914_vm12, %v3476_v50  ;;  %4539 = vst [vmem:[#allocation3 + $0xb8] sm:$0xff] %v4466_v44 }
 0x2da   :  { %1899 = vst.msk [vmem:[#allocation2 + $0x130] sm:$0xff] %vm1860_vm8, %v1718_v46  ;;  %2171 = vrot.lane.b32.xlu1 %v10440_v36, %s8232_s21  ;;  %v10667_v36 = vld [vmem:[%s13903_s0 + $0x1ae] sm:$0xff] }
 0x2db   :  { %413 = vrot.lane.b32.xlu0 %v10445_v63, %s8228_s29  ;;  %v10672_v63 = vld [vmem:[%s13903_s0 + $0x192] sm:$0xff]  ;;  %v76_v46 = vld [vmem:[%s13903_s0 + $0x188] sm:$0xff] }
 0x2dc   :  { %v2158_v4 = vpop.permute.xlu1 %2157  ;;  %150 = vst.msk [vmem:[#allocation2 + $0x188] sm:$0xff] %vm100_vm0, %v76_v46 }
 0x2dd   :  { %v400_v24 = vpop.permute.xlu0 %399  ;;  %2339 = vst.msk [vmem:[#allocation2 + $0x130] sm:$0xff] %vm2300_vm9, %v2158_v4 }
 0x2de   :  { %580 = vst.msk [vmem:[#allocation2 + $0x138] sm:$0xff] %vm540_vm5, %v400_v24  ;;  %2611 = vrot.lane.b32.xlu1 %v10652_v2, %s8233_s30 }
 0x2df   :  { %853 = vrot.lane.b32.xlu0 %v10245_v42, %s8231_s14 }
 0x2e0   :  { %v2598_v43 = vpop.permute.xlu1 %2597  ;;  %v3732_v33 = vld [vmem:[#allocation2 + $0x128] sm:$0xff]  ;;  %v10674_v10 = vld [vmem:[#allocation3 + $0xb2] sm:$0xff] }
 0x2e1   :  { %v840_v62 = vpop.permute.xlu0 %839  ;;  %v10676_v32 = vld [vmem:[#allocation3 + $0xb4] sm:$0xff]  ;;  %2779 = vst.msk [vmem:[#allocation2 + $0x130] sm:$0xff] %vm2740_vm10, %v2598_v43  ;;  %7573 = vmatmul.mubr.msk.f32.gmra.mrb[74].mxu0 %vm13913_vm13, %v3732_v33 }
 0x2e2   :  { %1020 = vst.msk [vmem:[#allocation2 + $0x138] sm:$0xff] %vm980_vm6, %v840_v62  ;;  %3051 = vrot.lane.b32.xlu1 %v10667_v36, %s8236_s20  ;;  %v10685_v42 = vld [vmem:[#allocation3 + $0xb6] sm:$0xff]  ;;  %7575 = vmatprep.mubr.msk.f32.mxu0 %vm13911_vm1, %v8235_v14 }
 0x2e3   :  { %1293 = vrot.lane.b32.xlu0 %v10672_v63, %s8227_s28  ;;  %v3302_v33 = vld [vmem:[%s13903_s0 + $0x1c0] sm:$0xff] }
 0x2e4   :  { %v3038_v34 = vpop.permute.xlu1 %3037  ;;  %v4199_v29 = vpop.f32.mrb[48].mxu0 }
 0x2e5   :  { %v1280_v40 = vpop.permute.xlu0 %1279  ;;  %3219 = vst.msk [vmem:[#allocation2 + $0x130] sm:$0xff] %vm3180_vm11, %v3038_v34  ;;  %v4200_v56 = vadd.f32 %v10582_v12, %v4199_v29  ;;  %v7535_v17 = vpop.f32.mrb[49].mxu0 }
 0x2e6   :  { %1460 = vst.msk [vmem:[#allocation2 + $0x138] sm:$0xff] %vm1420_vm7, %v1280_v40  ;;  %3491 = vrot.lane.b32.xlu1 %v3300_v25, %s8237_s16  ;;  %v4885_v17 = vmax.f32 %v10401_v13, %v10619_v39  ;;  %v10827_v13 = vld [vmem:[%s13903_s0 + $0x1c4] sm:$0xff] }
 0x2e7   :  { %1733 = vrot.lane.b32.xlu0 %v10485_v19, %s8230_s13  ;;  %v4467_v57 = vmax.f32 %v4200_v56, 0.0 }
 0x2e8   :  { %v3478_v54 = vpop.permute.xlu1 %3477  ;;  %v4944_v39 = vmax.f32 %v4885_v17, %v10621_v1 }
 0x2e9   :  { %v1720_v55 = vpop.permute.xlu0 %1719  ;;  %3659 = vst.msk [vmem:[#allocation2 + $0x130] sm:$0xff] %vm13914_vm12, %v3478_v54  ;;  %4540 = vst [vmem:[#allocation3 + $0xc0] sm:$0xff] %v4467_v57 }
 0x2ea   :  { %1900 = vst.msk [vmem:[#allocation2 + $0x138] sm:$0xff] %vm1860_vm8, %v1720_v55  ;;  %2173 = vrot.lane.b32.xlu1 %v10501_v58, %s8232_s21  ;;  %v10722_v58 = vld [vmem:[%s13903_s0 + $0x1b6] sm:$0xff]  ;;  %v5054_v1 = vmax.f32 %v4944_v39, %v10630_v31 }
 0x2eb   :  { %415 = vrot.lane.b32.xlu0 %v10506_v41, %s8228_s29  ;;  %v10727_v41 = vld [vmem:[%s13903_s0 + $0x19a] sm:$0xff] }
 0x2ec   :  { %v2160_v52 = vpop.permute.xlu1 %2159 }
 0x2ed   :  { %v402_v60 = vpop.permute.xlu0 %401  ;;  %2340 = vst.msk [vmem:[#allocation2 + $0x138] sm:$0xff] %vm2300_vm9, %v2160_v52 }
 0x2ee   :  { %581 = vst.msk [vmem:[#allocation2 + $0x140] sm:$0xff] %vm540_vm5, %v402_v60  ;;  %2613 = vrot.lane.b32.xlu1 %v10707_v35, %s8233_s30 }
 0x2ef   :  { %855 = vrot.lane.b32.xlu0 %v10307_v3, %s8231_s14 }
 0x2f0   :  { %v2600_v61 = vpop.permute.xlu1 %2599  ;;  %v3733_v47 = vld [vmem:[#allocation2 + $0x130] sm:$0xff]  ;;  %v10729_v59 = vld [vmem:[#allocation3 + $0xba] sm:$0xff] }
 0x2f1   :  { %v842_v45 = vpop.permute.xlu0 %841  ;;  %v10731_v53 = vld [vmem:[#allocation3 + $0xbc] sm:$0xff]  ;;  %2780 = vst.msk [vmem:[#allocation2 + $0x138] sm:$0xff] %vm2740_vm10, %v2600_v61  ;;  %7576 = vmatmul.mubr.msk.f32.gmra.mrb[76].mxu0 %vm13913_vm13, %v3733_v47 }
 0x2f2   :  { %1021 = vst.msk [vmem:[#allocation2 + $0x140] sm:$0xff] %vm980_vm6, %v842_v45  ;;  %3053 = vrot.lane.b32.xlu1 %v10722_v58, %s8236_s20  ;;  %v10740_v3 = vld [vmem:[#allocation3 + $0xbe] sm:$0xff]  ;;  %7578 = vmatprep.mubr.msk.f32.mxu0 %vm13911_vm1, %v8235_v14 }
 0x2f3   :  { %1295 = vrot.lane.b32.xlu0 %v10727_v41, %s8227_s28 }
 0x2f4   :  { %v3040_v0 = vpop.permute.xlu1 %3039  ;;  %v4204_v15 = vpop.f32.mrb[50].mxu0 }
 0x2f5   :  { %v1282_v38 = vpop.permute.xlu0 %1281  ;;  %3220 = vst.msk [vmem:[#allocation2 + $0x138] sm:$0xff] %vm3180_vm11, %v3040_v0  ;;  %v10750_v11 = vadd.f32 %v10582_v12, %v4204_v15  ;;  %v7538_v6 = vpop.f32.mrb[51].mxu0  ;;  %v3303_v15 = vld [vmem:[%s13903_s0 + $0x1c8] sm:$0xff] }
 0x2f6   :  { %1461 = vst.msk [vmem:[#allocation2 + $0x140] sm:$0xff] %vm1420_vm7, %v1282_v38  ;;  %3493 = vrot.lane.b32.xlu1 %v3301_v7, %s8237_s16 }
 0x2f7   :  { %1735 = vrot.lane.b32.xlu0 %v10540_v28, %s8230_s13  ;;  %v4468_v21 = vmax.f32 %v10750_v11, 0.0 }
 0x2f8   :  { %v3480_v16 = vpop.permute.xlu1 %3479 }
 0x2f9   :  { %v1722_v18 = vpop.permute.xlu0 %1721  ;;  %3660 = vst.msk [vmem:[#allocation2 + $0x138] sm:$0xff] %vm13914_vm12, %v3480_v16  ;;  %4541 = vst [vmem:[#allocation3 + $0xc8] sm:$0xff] %v4468_v21 }
 0x2fa   :  { %1901 = vst.msk [vmem:[#allocation2 + $0x140] sm:$0xff] %vm1860_vm8, %v1722_v18  ;;  %2175 = vrot.lane.b32.xlu1 %v10555_v5, %s8232_s21  ;;  %v10782_v5 = vld [vmem:[%s13903_s0 + $0x1be] sm:$0xff] }
 0x2fb   :  { %417 = vrot.lane.b32.xlu0 %v10560_v27, %s8228_s29  ;;  %v10787_v27 = vld [vmem:[%s13903_s0 + $0x1a2] sm:$0xff] }
 0x2fc   :  { %v2162_v44 = vpop.permute.xlu1 %2161 }
 0x2fd   :  { %v404_v50 = vpop.permute.xlu0 %403  ;;  %2341 = vst.msk [vmem:[#allocation2 + $0x140] sm:$0xff] %vm2300_vm9, %v2162_v44 }
 0x2fe   :  { %582 = vst.msk [vmem:[#allocation2 + $0x148] sm:$0xff] %vm540_vm5, %v404_v50  ;;  %2615 = vrot.lane.b32.xlu1 %v10767_v26, %s8233_s30 }
 0x2ff   :  { %857 = vrot.lane.b32.xlu0 %v10364_v51, %s8231_s14 }
 0x300   :  { %v2602_v4 = vpop.permute.xlu1 %2601  ;;  %v3734_v48 = vld [vmem:[#allocation2 + $0x138] sm:$0xff]  ;;  %v10789_v43 = vld [vmem:[#allocation3 + $0xc2] sm:$0xff] }
 0x301   :  { %v844_v24 = vpop.permute.xlu0 %843  ;;  %v10791_v62 = vld [vmem:[#allocation3 + $0xc4] sm:$0xff]  ;;  %2781 = vst.msk [vmem:[#allocation2 + $0x140] sm:$0xff] %vm2740_vm10, %v2602_v4  ;;  %7579 = vmatmul.mubr.msk.f32.gmra.mrb[78].mxu0 %vm13913_vm13, %v3734_v48  ;;  %v4886_v4 = vmax.f32 %v10462_v49, %v10674_v10 }
 0x302   :  { %1022 = vst.msk [vmem:[#allocation2 + $0x148] sm:$0xff] %vm980_vm6, %v844_v24  ;;  %3055 = vrot.lane.b32.xlu1 %v10782_v5, %s8236_s20  ;;  %v10800_v51 = vld [vmem:[#allocation3 + $0xc6] sm:$0xff]  ;;  %7581 = vmatprep.mubr.msk.f32.mxu0 %vm13911_vm1, %v8235_v14 }
 0x303   :  { %1297 = vrot.lane.b32.xlu0 %v10787_v27, %s8227_s28  ;;  %v10893_v49 = vld [vmem:[%s13903_s0 + $0x1cc] sm:$0xff]  ;;  %v4945_v10 = vmax.f32 %v4886_v4, %v10676_v32 }
 0x304   :  { %v3042_v25 = vpop.permute.xlu1 %3041  ;;  %v4209_v40 = vpop.f32.mrb[52].mxu0 }
 0x305   :  { %v1284_v34 = vpop.permute.xlu0 %1283  ;;  %3221 = vst.msk [vmem:[#allocation2 + $0x140] sm:$0xff] %vm3180_vm11, %v3042_v25  ;;  %v4210_v29 = vadd.f32 %v10582_v12, %v4209_v40  ;;  %v7541_v56 = vpop.f32.mrb[53].mxu0  ;;  %v78_v40 = vld [vmem:[%s13903_s0 + $0x198] sm:$0xff]  ;;  %v5055_v32 = vmax.f32 %v4945_v10, %v10685_v42 }
 0x306   :  { %1462 = vst.msk [vmem:[#allocation2 + $0x148] sm:$0xff] %vm1420_vm7, %v1284_v34  ;;  %3495 = vrot.lane.b32.xlu1 %v3302_v33, %s8237_s16 }
 0x307   :  { %1737 = vrot.lane.b32.xlu0 %v10597_v8, %s8230_s13  ;;  %v10815_v57 = vmax.f32 %v4210_v29, 0.0  ;;  %152 = vst.msk [vmem:[#allocation2 + $0x198] sm:$0xff] %vm100_vm0, %v78_v40 }
 0x308   :  { %v3482_v54 = vpop.permute.xlu1 %3481 }
 0x309   :  { %v1724_v55 = vpop.permute.xlu0 %1723  ;;  %3661 = vst.msk [vmem:[#allocation2 + $0x140] sm:$0xff] %vm13914_vm12, %v3482_v54  ;;  %4542 = vst [vmem:[#allocation3 + $0xd0] sm:$0xff] %v10815_v57 }
 0x30a   :  { %1902 = vst.msk [vmem:[#allocation2 + $0x148] sm:$0xff] %vm1860_vm8, %v1724_v55  ;;  %2177 = vrot.lane.b32.xlu1 %v10612_v22, %s8232_s21  ;;  %v10843_v22 = vld [vmem:[%s13903_s0 + $0x1c6] sm:$0xff] }
 0x30b   :  { %419 = vrot.lane.b32.xlu0 %v10617_v23, %s8228_s29  ;;  %v10848_v23 = vld [vmem:[%s13903_s0 + $0x1aa] sm:$0xff] }
 0x30c   :  { %v2164_v52 = vpop.permute.xlu1 %2163 }
 0x30d   :  { %v406_v60 = vpop.permute.xlu0 %405  ;;  %2342 = vst.msk [vmem:[#allocation2 + $0x148] sm:$0xff] %vm2300_vm9, %v2164_v52  ;;  %v3304_v52 = vld [vmem:[%s13903_s0 + $0x1d0] sm:$0xff] }
 0x30e   :  { %583 = vst.msk [vmem:[#allocation2 + $0x150] sm:$0xff] %vm540_vm5, %v406_v60  ;;  %2617 = vrot.lane.b32.xlu1 %v10827_v13, %s8233_s30 }
 0x30f   :  { %859 = vrot.lane.b32.xlu0 %v10424_v20, %s8231_s14 }
 0x310   :  { %v2604_v61 = vpop.permute.xlu1 %2603  ;;  %v3735_v47 = vld [vmem:[#allocation2 + $0x140] sm:$0xff]  ;;  %v4669_v7 = vld [vmem:[#allocation3 + $0xca] sm:$0xff] }
 0x311   :  { %v846_v45 = vpop.permute.xlu0 %845  ;;  %v10851_v0 = vld [vmem:[#allocation3 + $0xcc] sm:$0xff]  ;;  %2782 = vst.msk [vmem:[#allocation2 + $0x148] sm:$0xff] %vm2740_vm10, %v2604_v61  ;;  %7582 = vmatmul.mubr.msk.f32.gmra.mrb[80].mxu0 %vm13913_vm13, %v3735_v47  ;;  %v10858_v20 = vmax.f32 %v4468_v21, %v4669_v7 }
 0x312   :  { %1023 = vst.msk [vmem:[#allocation2 + $0x150] sm:$0xff] %vm980_vm6, %v846_v45  ;;  %v5113_v38 = vmax.f32 %v5054_v1, %v10851_v0  ;;  %3057 = vrot.lane.b32.xlu1 %v10843_v22, %s8236_s20  ;;  %v5003_v31 = vld [vmem:[#allocation3 + $0xce] sm:$0xff]  ;;  %7584 = vmatprep.mubr.msk.f32.mxu0 %vm13911_vm1, %v8235_v14 }
 0x313   :  { %1299 = vrot.lane.b32.xlu0 %v10848_v23, %s8227_s28  ;;  %v4834_v11 = vmax.f32 %v10858_v20, %v10851_v0  ;;  %v11297_v0 = vld [vmem:[%s13903_s0 + $0x204] sm:$0xff] }
 0x314   :  { %v5172_v6 = vmax.f32 %v5113_v38, %v5003_v31  ;;  %v3044_v21 = vpop.permute.xlu1 %3043  ;;  %v4214_v18 = vpop.f32.mrb[54].mxu0  ;;  %v4887_v38 = vmax.f32 %v10522_v30, %v10729_v59  ;;  %v10953_v30 = vld [vmem:[%s13903_s0 + $0x1d4] sm:$0xff] }
 0x315   :  { %v1286_v16 = vpop.permute.xlu0 %1285  ;;  %3222 = vst.msk [vmem:[#allocation2 + $0x148] sm:$0xff] %vm3180_vm11, %v3044_v21  ;;  %v4215_v50 = vadd.f32 %v10582_v12, %v4214_v18  ;;  %v7544_v46 = vpop.f32.mrb[55].mxu0  ;;  %v79_v18 = vld [vmem:[%s13903_s0 + $0x1a0] sm:$0xff] }
 0x316   :  { %1463 = vst.msk [vmem:[#allocation2 + $0x150] sm:$0xff] %vm1420_vm7, %v1286_v16  ;;  %v5236_v44 = vmax.f32 %v5172_v6, %v10815_v57  ;;  %3497 = vrot.lane.b32.xlu1 %v3303_v15, %s8237_s16  ;;  %v4946_v59 = vmax.f32 %v4887_v38, %v10731_v53 }
 0x317   :  { %1739 = vrot.lane.b32.xlu0 %v10652_v2, %s8230_s13  ;;  %v10881_v24 = vmax.f32 %v4215_v50, 0.0  ;;  %153 = vst.msk [vmem:[#allocation2 + $0x1a0] sm:$0xff] %vm100_vm0, %v79_v18 }
 0x318   :  { %5291 = vst [vmem:[#allocation4 + $0x88] sm:$0xff] %v5236_v44  ;;  %v3484_v48 = vpop.permute.xlu1 %3483  ;;  %v5056_v44 = vmax.f32 %v4946_v59, %v10740_v3 }
 0x319   :  { %v1726_v33 = vpop.permute.xlu0 %1725  ;;  %3662 = vst.msk [vmem:[#allocation2 + $0x148] sm:$0xff] %vm13914_vm12, %v3484_v48  ;;  %4543 = vst [vmem:[#allocation3 + $0xd8] sm:$0xff] %v10881_v24 }
 0x31a   :  { %1903 = vst.msk [vmem:[#allocation2 + $0x150] sm:$0xff] %vm1860_vm8, %v1726_v33  ;;  %2179 = vrot.lane.b32.xlu1 %v10667_v36, %s8232_s21  ;;  %v10909_v36 = vld [vmem:[%s13903_s0 + $0x1ce] sm:$0xff] }
 0x31b   :  { %421 = vrot.lane.b32.xlu0 %v10672_v63, %s8228_s29  ;;  %v10914_v63 = vld [vmem:[%s13903_s0 + $0x1b2] sm:$0xff] }
 0x31c   :  { %v2166_v25 = vpop.permute.xlu1 %2165 }
 0x31d   :  { %v408_v34 = vpop.permute.xlu0 %407  ;;  %2343 = vst.msk [vmem:[#allocation2 + $0x150] sm:$0xff] %vm2300_vm9, %v2166_v25  ;;  %v3305_v25 = vld [vmem:[%s13903_s0 + $0x1d8] sm:$0xff] }
 0x31e   :  { %584 = vst.msk [vmem:[#allocation2 + $0x158] sm:$0xff] %vm540_vm5, %v408_v34  ;;  %2619 = vrot.lane.b32.xlu1 %v10893_v49, %s8233_s30 }
 0x31f   :  { %861 = vrot.lane.b32.xlu0 %v10485_v19, %s8231_s14 }
 0x320   :  { %v2606_v29 = vpop.permute.xlu1 %2605  ;;  %v3736_v17 = vld [vmem:[#allocation2 + $0x148] sm:$0xff]  ;;  %v4670_v54 = vld [vmem:[#allocation3 + $0xd2] sm:$0xff] }
 0x321   :  { %v848_v56 = vpop.permute.xlu0 %847  ;;  %v4780_v55 = vld [vmem:[#allocation3 + $0xd4] sm:$0xff]  ;;  %2783 = vst.msk [vmem:[#allocation2 + $0x150] sm:$0xff] %vm2740_vm10, %v2606_v29  ;;  %7585 = vmatmul.mubr.msk.f32.gmra.mrb[82].mxu0 %vm13913_vm13, %v3736_v17  ;;  %v4725_v19 = vmax.f32 %v10815_v57, %v4670_v54 }
 0x322   :  { %1024 = vst.msk [vmem:[#allocation2 + $0x158] sm:$0xff] %vm980_vm6, %v848_v56  ;;  %v5114_v39 = vmax.f32 %v5055_v32, %v4780_v55  ;;  %3059 = vrot.lane.b32.xlu1 %v10909_v36, %s8236_s20  ;;  %v5004_v42 = vld [vmem:[#allocation3 + $0xd6] sm:$0xff]  ;;  %7587 = vmatprep.mubr.msk.f32.mxu0 %vm13911_vm1, %v8235_v14 }
 0x323   :  { %1301 = vrot.lane.b32.xlu0 %v10914_v63, %s8227_s28  ;;  %v10930_v60 = vmax.f32 %v4725_v19, %v4780_v55  ;;  %v4888_v55 = vmax.f32 %v10575_v9, %v10789_v43 }
 0x324   :  { %v5173_v37 = vmax.f32 %v5114_v39, %v5004_v42  ;;  %v3046_v1 = vpop.permute.xlu1 %3045  ;;  %v4219_v61 = vpop.f32.mrb[56].mxu0 }
 0x325   :  { %v1288_v57 = vpop.permute.xlu0 %1287  ;;  %3223 = vst.msk [vmem:[#allocation2 + $0x150] sm:$0xff] %vm3180_vm11, %v3046_v1  ;;  %v4220_v47 = vadd.f32 %v10582_v12, %v4219_v61  ;;  %v7547_v7 = vpop.f32.mrb[57].mxu0  ;;  %v4947_v9 = vmax.f32 %v4888_v55, %v10791_v62  ;;  %v80_v1 = vld [vmem:[%s13903_s0 + $0x1a8] sm:$0xff] }
 0x326   :  { %1464 = vst.msk [vmem:[#allocation2 + $0x158] sm:$0xff] %vm1420_vm7, %v1288_v57  ;;  %v5237_v45 = vmax.f32 %v5173_v37, %v10881_v24  ;;  %3499 = vrot.lane.b32.xlu1 %v3304_v52, %s8237_s16  ;;  %v11011_v52 = vld [vmem:[%s13903_s0 + $0x1dc] sm:$0xff] }
 0x327   :  { %1741 = vrot.lane.b32.xlu0 %v10707_v35, %s8230_s13  ;;  %v10941_v31 = vmax.f32 %v4220_v47, 0.0  ;;  %154 = vst.msk [vmem:[#allocation2 + $0x1a8] sm:$0xff] %vm100_vm0, %v80_v1  ;;  %v5057_v62 = vmax.f32 %v4947_v9, %v10800_v51 }
 0x328   :  { %5292 = vst [vmem:[#allocation4 + $0x90] sm:$0xff] %v5237_v45  ;;  %v3486_v15 = vpop.permute.xlu1 %3485 }
 0x329   :  { %v1728_v6 = vpop.permute.xlu0 %1727  ;;  %3663 = vst.msk [vmem:[#allocation2 + $0x150] sm:$0xff] %vm13914_vm12, %v3486_v15  ;;  %4544 = vst [vmem:[#allocation3 + $0xe0] sm:$0xff] %v10941_v31  ;;  %v3306_v15 = vld [vmem:[%s13903_s0 + $0x1e0] sm:$0xff] }
 0x32a   :  { %1904 = vst.msk [vmem:[#allocation2 + $0x158] sm:$0xff] %vm1860_vm8, %v1728_v6  ;;  %2181 = vrot.lane.b32.xlu1 %v10722_v58, %s8232_s21  ;;  %v10969_v58 = vld [vmem:[%s13903_s0 + $0x1d6] sm:$0xff] }
 0x32b   :  { %423 = vrot.lane.b32.xlu0 %v10727_v41, %s8228_s29  ;;  %v10974_v41 = vld [vmem:[%s13903_s0 + $0x1ba] sm:$0xff] }
 0x32c   :  { %v2168_v21 = vpop.permute.xlu1 %2167 }
 0x32d   :  { %v410_v16 = vpop.permute.xlu0 %409  ;;  %2344 = vst.msk [vmem:[#allocation2 + $0x158] sm:$0xff] %vm2300_vm9, %v2168_v21 }
 0x32e   :  { %585 = vst.msk [vmem:[#allocation2 + $0x160] sm:$0xff] %vm540_vm5, %v410_v16  ;;  %2621 = vrot.lane.b32.xlu1 %v10953_v30, %s8233_s30 }
 0x32f   :  { %863 = vrot.lane.b32.xlu0 %v10540_v28, %s8231_s14  ;;  %v5523_v53 = vld [vmem:[#allocation4 + $0x90] sm:$0x3] }
 0x330   :  { %v2608_v50 = vpop.permute.xlu1 %2607  ;;  %v3737_v4 = vld [vmem:[#allocation2 + $0x150] sm:$0xff]  ;;  %5524 = vst.msk [vmem:[#allocation5 + $0x4] sm:$0x3] %vm5330_vm14, %v5523_v53  ;;  %v4671_v48 = vld [vmem:[#allocation3 + $0xda] sm:$0xff] }
 0x331   :  { %v850_v46 = vpop.permute.xlu0 %849  ;;  %v4781_v28 = vld [vmem:[#allocation3 + $0xdc] sm:$0xff]  ;;  %2784 = vst.msk [vmem:[#allocation2 + $0x158] sm:$0xff] %vm2740_vm10, %v2608_v50  ;;  %7588 = vmatmul.mubr.msk.f32.gmra.mrb[84].mxu0 %vm13913_vm13, %v3737_v4  ;;  %v4726_v33 = vmax.f32 %v10881_v24, %v4671_v48 }
 0x332   :  { %1025 = vst.msk [vmem:[#allocation2 + $0x160] sm:$0xff] %vm980_vm6, %v850_v46  ;;  %v5115_v10 = vmax.f32 %v5056_v44, %v4781_v28  ;;  %3061 = vrot.lane.b32.xlu1 %v10969_v58, %s8236_s20  ;;  %v5005_v3 = vld [vmem:[#allocation3 + $0xde] sm:$0xff]  ;;  %7590 = vmatprep.mubr.msk.f32.mxu0 %vm13911_vm1, %v8235_v14 }
 0x333   :  { %1303 = vrot.lane.b32.xlu0 %v10974_v41, %s8227_s28  ;;  %v10991_v34 = vmax.f32 %v4726_v33, %v4781_v28  ;;  %v11065_v48 = vld [vmem:[%s13903_s0 + $0x1e4] sm:$0xff] }
 0x334   :  { %v5174_v40 = vmax.f32 %v5115_v10, %v5005_v3  ;;  %v3048_v32 = vpop.permute.xlu1 %3047  ;;  %v4224_v29 = vpop.f32.mrb[58].mxu0  ;;  %v81_v10 = vld [vmem:[%s13903_s0 + $0x1b0] sm:$0xff] }
 0x335   :  { %v1290_v24 = vpop.permute.xlu0 %1289  ;;  %3224 = vst.msk [vmem:[#allocation2 + $0x158] sm:$0xff] %vm3180_vm11, %v3048_v32  ;;  %v4225_v17 = vadd.f32 %v10582_v12, %v4224_v29  ;;  %v7550_v54 = vpop.f32.mrb[59].mxu0  ;;  %v3307_v29 = vld [vmem:[%s13903_s0 + $0x1e8] sm:$0xff] }
 0x336   :  { %1465 = vst.msk [vmem:[#allocation2 + $0x160] sm:$0xff] %vm1420_vm7, %v1290_v24  ;;  %v5238_v56 = vmax.f32 %v5174_v40, %v10941_v31  ;;  %3501 = vrot.lane.b32.xlu1 %v3305_v25, %s8237_s16 }
 0x337   :  { %1743 = vrot.lane.b32.xlu0 %v10767_v26, %s8230_s13  ;;  %v4472_v19 = vmax.f32 %v4225_v17, 0.0  ;;  %155 = vst.msk [vmem:[#allocation2 + $0x1b0] sm:$0xff] %vm100_vm0, %v81_v10 }
 0x338   :  { %5293 = vst [vmem:[#allocation4 + $0x98] sm:$0xff] %v5238_v56  ;;  %v3488_v39 = vpop.permute.xlu1 %3487 }
 0x339   :  { %v1730_v42 = vpop.permute.xlu0 %1729  ;;  %3664 = vst.msk [vmem:[#allocation2 + $0x158] sm:$0xff] %vm13914_vm12, %v3488_v39  ;;  %4545 = vst [vmem:[#allocation3 + $0xe8] sm:$0xff] %v4472_v19 }
 0x33a   :  { %1905 = vst.msk [vmem:[#allocation2 + $0x160] sm:$0xff] %vm1860_vm8, %v1730_v42  ;;  %2183 = vrot.lane.b32.xlu1 %v10782_v5, %s8232_s21  ;;  %v11027_v5 = vld [vmem:[%s13903_s0 + $0x1de] sm:$0xff] }
 0x33b   :  { %425 = vrot.lane.b32.xlu0 %v10787_v27, %s8228_s29  ;;  %v11032_v27 = vld [vmem:[%s13903_s0 + $0x1c2] sm:$0xff] }
 0x33c   :  { %v2170_v43 = vpop.permute.xlu1 %2169 }
 0x33d   :  { %v412_v37 = vpop.permute.xlu0 %411  ;;  %2345 = vst.msk [vmem:[#allocation2 + $0x160] sm:$0xff] %vm2300_vm9, %v2170_v43  ;;  %v11120_v43 = vld [vmem:[%s13903_s0 + $0x1ec] sm:$0xff] }
 0x33e   :  { %586 = vst.msk [vmem:[#allocation2 + $0x168] sm:$0xff] %vm540_vm5, %v412_v37  ;;  %2623 = vrot.lane.b32.xlu1 %v11011_v52, %s8233_s30 }
 0x33f   :  { %865 = vrot.lane.b32.xlu0 %v10597_v8, %s8231_s14 }
 0x340   :  { %v2610_v57 = vpop.permute.xlu1 %2609  ;;  %v3738_v45 = vld [vmem:[#allocation2 + $0x158] sm:$0xff]  ;;  %v4672_v47 = vld [vmem:[#allocation3 + $0xe2] sm:$0xff] }
 0x341   :  { %v852_v61 = vpop.permute.xlu0 %851  ;;  %v4782_v7 = vld [vmem:[#allocation3 + $0xe4] sm:$0xff]  ;;  %2785 = vst.msk [vmem:[#allocation2 + $0x160] sm:$0xff] %vm2740_vm10, %v2610_v57  ;;  %7591 = vmatmul.mubr.msk.f32.gmra.mrb[86].mxu0 %vm13913_vm13, %v3738_v45  ;;  %v4727_v8 = vmax.f32 %v10941_v31, %v4672_v47 }
 0x342   :  { %1026 = vst.msk [vmem:[#allocation2 + $0x168] sm:$0xff] %vm980_vm6, %v852_v61  ;;  %v5116_v38 = vmax.f32 %v5057_v62, %v4782_v7  ;;  %3063 = vrot.lane.b32.xlu1 %v11027_v5, %s8236_s20  ;;  %v5006_v51 = vld [vmem:[#allocation3 + $0xe6] sm:$0xff]  ;;  %7593 = vmatprep.mubr.msk.f32.mxu0 %vm13911_vm1, %v8235_v14  ;;  %v82_v62 = vld [vmem:[%s13903_s0 + $0x1b8] sm:$0xff] }
 0x343   :  { %1305 = vrot.lane.b32.xlu0 %v11032_v27, %s8227_s28  ;;  %v11048_v6 = vmax.f32 %v4727_v8, %v4782_v7  ;;  %156 = vst.msk [vmem:[#allocation2 + $0x1b8] sm:$0xff] %vm100_vm0, %v82_v62  ;;  %v3308_v8 = vld [vmem:[%s13903_s0 + $0x1f0] sm:$0xff] }
 0x344   :  { %v5175_v59 = vmax.f32 %v5116_v38, %v5006_v51  ;;  %v3050_v21 = vpop.permute.xlu1 %3049  ;;  %v4229_v16 = vpop.f32.mrb[60].mxu0 }
 0x345   :  { %v1292_v31 = vpop.permute.xlu0 %1291  ;;  %3225 = vst.msk [vmem:[#allocation2 + $0x160] sm:$0xff] %vm3180_vm11, %v3050_v21  ;;  %v4230_v53 = vadd.f32 %v10582_v12, %v4229_v16  ;;  %v7553_v44 = vpop.f32.mrb[61].mxu0 }
 0x346   :  { %1466 = vst.msk [vmem:[#allocation2 + $0x168] sm:$0xff] %vm1420_vm7, %v1292_v31  ;;  %v5239_v18 = vmax.f32 %v5175_v59, %v4472_v19  ;;  %3503 = vrot.lane.b32.xlu1 %v3306_v15, %s8237_s16 }
 0x347   :  { %1745 = vrot.lane.b32.xlu0 %v10827_v13, %s8230_s13  ;;  %v4473_v50 = vmax.f32 %v4230_v53, 0.0 }
 0x348   :  { %5294 = vst [vmem:[#allocation4 + $0xa0] sm:$0xff] %v5239_v18  ;;  %v3490_v46 = vpop.permute.xlu1 %3489 }
 0x349   :  { %v1732_v4 = vpop.permute.xlu0 %1731  ;;  %3665 = vst.msk [vmem:[#allocation2 + $0x160] sm:$0xff] %vm13914_vm12, %v3490_v46  ;;  %4546 = vst [vmem:[#allocation3 + $0xf0] sm:$0xff] %v4473_v50  ;;  %v83_v50 = vld [vmem:[%s13903_s0 + $0x1c0] sm:$0xff] }
 0x34a   :  { %1906 = vst.msk [vmem:[#allocation2 + $0x168] sm:$0xff] %vm1860_vm8, %v1732_v4  ;;  %2185 = vrot.lane.b32.xlu1 %v10843_v22, %s8232_s21  ;;  %v11080_v22 = vld [vmem:[%s13903_s0 + $0x1e6] sm:$0xff] }
 0x34b   :  { %427 = vrot.lane.b32.xlu0 %v10848_v23, %s8228_s29  ;;  %v11085_v23 = vld [vmem:[%s13903_s0 + $0x1ca] sm:$0xff]  ;;  %157 = vst.msk [vmem:[#allocation2 + $0x1c0] sm:$0xff] %vm100_vm0, %v83_v50 }
 0x34c   :  { %v2172_v28 = vpop.permute.xlu1 %2171  ;;  %v85_v50 = vld [vmem:[%s13903_s0 + $0x1d0] sm:$0xff] }
 0x34d   :  { %v414_v33 = vpop.permute.xlu0 %413  ;;  %2346 = vst.msk [vmem:[#allocation2 + $0x168] sm:$0xff] %vm2300_vm9, %v2172_v28 }
 0x34e   :  { %587 = vst.msk [vmem:[#allocation2 + $0x170] sm:$0xff] %vm540_vm5, %v414_v33  ;;  %2625 = vrot.lane.b32.xlu1 %v11065_v48, %s8233_s30 }
 0x34f   :  { %867 = vrot.lane.b32.xlu0 %v10652_v2, %s8231_s14  ;;  %159 = vst.msk [vmem:[#allocation2 + $0x1d0] sm:$0xff] %vm100_vm0, %v85_v50 }
 0x350   :  { %v2612_v3 = vpop.permute.xlu1 %2611  ;;  %v3739_v40 = vld [vmem:[#allocation2 + $0x160] sm:$0xff]  ;;  %v11087_v32 = vld [vmem:[#allocation3 + $0xea] sm:$0xff] }
 0x351   :  { %v854_v25 = vpop.permute.xlu0 %853  ;;  %v11089_v24 = vld [vmem:[#allocation3 + $0xec] sm:$0xff]  ;;  %2786 = vst.msk [vmem:[#allocation2 + $0x168] sm:$0xff] %vm2740_vm10, %v2612_v3  ;;  %7594 = vmatmul.mubr.msk.f32.gmra.mrb[88].mxu0 %vm13913_vm13, %v3739_v40 }
 0x352   :  { %1027 = vst.msk [vmem:[#allocation2 + $0x170] sm:$0xff] %vm980_vm6, %v854_v25  ;;  %3065 = vrot.lane.b32.xlu1 %v11080_v22, %s8236_s20  ;;  %v11098_v2 = vld [vmem:[#allocation3 + $0xee] sm:$0xff]  ;;  %7596 = vmatprep.mubr.msk.f32.mxu0 %vm13911_vm1, %v8235_v14 }
 0x353   :  { %1307 = vrot.lane.b32.xlu0 %v11085_v23, %s8227_s28  ;;  %v3309_v3 = vld [vmem:[%s13903_s0 + $0x1f8] sm:$0xff] }
 0x354   :  { %v3052_v56 = vpop.permute.xlu1 %3051  ;;  %v4234_v54 = vpop.f32.mrb[62].mxu0 }
 0x355   :  { %v1294_v17 = vpop.permute.xlu0 %1293  ;;  %3226 = vst.msk [vmem:[#allocation2 + $0x168] sm:$0xff] %vm3180_vm11, %v3052_v56  ;;  %v4235_v55 = vadd.f32 %v10582_v12, %v4234_v54  ;;  %v7556_v19 = vpop.f32.mrb[63].mxu0  ;;  %v11220_v56 = vld [vmem:[%s13905_s2] ss:$0 sm:$0xff] }
 0x356   :  { %1467 = vst.msk [vmem:[#allocation2 + $0x170] sm:$0xff] %vm1420_vm7, %v1294_v17  ;;  %3505 = vrot.lane.b32.xlu1 %v3307_v29, %s8237_s16 }
 0x357   :  { %1747 = vrot.lane.b32.xlu0 %v10893_v49, %s8230_s13  ;;  %v4474_v39 = vmax.f32 %v4235_v55, 0.0 }
 0x358   :  { %v3492_v42 = vpop.permute.xlu1 %3491 }
 0x359   :  { %v1734_v9 = vpop.permute.xlu0 %1733  ;;  %3666 = vst.msk [vmem:[#allocation2 + $0x168] sm:$0xff] %vm13914_vm12, %v3492_v42  ;;  %4547 = vst [vmem:[#allocation3 + $0xf8] sm:$0xff] %v4474_v39  ;;  %v11235_v42 = vld [vmem:[%s13903_s0 + $0x1fc] sm:$0xff] }
 0x35a   :  { %1907 = vst.msk [vmem:[#allocation2 + $0x170] sm:$0xff] %vm1860_vm8, %v1734_v9  ;;  %2187 = vrot.lane.b32.xlu1 %v10909_v36, %s8232_s21  ;;  %v11135_v36 = vld [vmem:[%s13903_s0 + $0x1ee] sm:$0xff] }
 0x35b   :  { %429 = vrot.lane.b32.xlu0 %v10914_v63, %s8228_s29  ;;  %v11140_v63 = vld [vmem:[%s13903_s0 + $0x1d2] sm:$0xff] }
 0x35c   :  { %v2174_v37 = vpop.permute.xlu1 %2173 }
 0x35d   :  { %v416_v1 = vpop.permute.xlu0 %415  ;;  %2347 = vst.msk [vmem:[#allocation2 + $0x170] sm:$0xff] %vm2300_vm9, %v2174_v37 }
 0x35e   :  { %588 = vst.msk [vmem:[#allocation2 + $0x178] sm:$0xff] %vm540_vm5, %v416_v1  ;;  %2627 = vrot.lane.b32.xlu1 %v11120_v43, %s8233_s30  ;;  %v84_v1 = vld [vmem:[%s13903_s0 + $0x1c8] sm:$0xff] }
 0x35f   :  { %869 = vrot.lane.b32.xlu0 %v10707_v35, %s8231_s14  ;;  %158 = vst.msk [vmem:[#allocation2 + $0x1c8] sm:$0xff] %vm100_vm0, %v84_v1 }
 0x360   :  { %v2614_v57 = vpop.permute.xlu1 %2613  ;;  %v3740_v45 = vld [vmem:[#allocation2 + $0x168] sm:$0xff]  ;;  %v11142_v47 = vld [vmem:[#allocation3 + $0xf2] sm:$0xff] }
 0x361   :  { %v856_v61 = vpop.permute.xlu0 %855  ;;  %v11144_v7 = vld [vmem:[#allocation3 + $0xf4] sm:$0xff]  ;;  %2787 = vst.msk [vmem:[#allocation2 + $0x170] sm:$0xff] %vm2740_vm10, %v2614_v57  ;;  %7597 = vmatmul.mubr.msk.f32.gmra.mrb[90].mxu0 %vm13913_vm13, %v3740_v45 }
 0x362   :  { %1028 = vst.msk [vmem:[#allocation2 + $0x178] sm:$0xff] %vm980_vm6, %v856_v61  ;;  %3067 = vrot.lane.b32.xlu1 %v11135_v36, %s8236_s20  ;;  %v11153_v35 = vld [vmem:[#allocation3 + $0xf6] sm:$0xff]  ;;  %7599 = vmatprep.mubr.msk.f32.mxu0 %vm13911_vm1, %v8235_v14 }
 0x363   :  { %1309 = vrot.lane.b32.xlu0 %v11140_v63, %s8227_s28 }
 0x364   :  { %v3054_v38 = vpop.permute.xlu1 %3053  ;;  %v4239_v15 = vpop.f32.mrb[64].mxu0 }
 0x365   :  { %v1296_v51 = vpop.permute.xlu0 %1295  ;;  %3227 = vst.msk [vmem:[#allocation2 + $0x170] sm:$0xff] %vm3180_vm11, %v3054_v38  ;;  %v4240_v59 = vadd.f32 %v10582_v12, %v4239_v15  ;;  %v7559_v21 = vpop.f32.mrb[65].mxu0  ;;  %v11175_v12 = vld [vmem:[%s13903_s0 + $0x1f4] sm:$0xff]  ;;  %v3310_v38 = vld [vmem:[%s13903_s0 + $0x200] sm:$0xff] }
 0x366   :  { %1468 = vst.msk [vmem:[#allocation2 + $0x178] sm:$0xff] %vm1420_vm7, %v1296_v51  ;;  %3507 = vrot.lane.b32.xlu1 %v3308_v8, %s8237_s16 }
 0x367   :  { %1749 = vrot.lane.b32.xlu0 %v10953_v30, %s8230_s13  ;;  %v4475_v31 = vmax.f32 %v4240_v59, 0.0 }
 0x368   :  { %v3494_v16 = vpop.permute.xlu1 %3493 }
 0x369   :  { %v1736_v18 = vpop.permute.xlu0 %1735  ;;  %3667 = vst.msk [vmem:[#allocation2 + $0x170] sm:$0xff] %vm13914_vm12, %v3494_v16  ;;  %4548 = vst [vmem:[#allocation3 + $0x100] sm:$0xff] %v4475_v31  ;;  %v4893_v16 = vmax.f32 %v4834_v11, %v11087_v32 }
 0x36a   :  { %1908 = vst.msk [vmem:[#allocation2 + $0x178] sm:$0xff] %vm1860_vm8, %v1736_v18  ;;  %2189 = vrot.lane.b32.xlu1 %v10969_v58, %s8232_s21  ;;  %v11190_v58 = vld [vmem:[%s13903_s0 + $0x1f6] sm:$0xff] }
 0x36b   :  { %431 = vrot.lane.b32.xlu0 %v10974_v41, %s8228_s29  ;;  %v11195_v41 = vld [vmem:[%s13903_s0 + $0x1da] sm:$0xff]  ;;  %v4952_v20 = vmax.f32 %v4893_v16, %v11089_v24 }
 0x36c   :  { %v2176_v53 = vpop.permute.xlu1 %2175 }
 0x36d   :  { %v418_v44 = vpop.permute.xlu0 %417  ;;  %2348 = vst.msk [vmem:[#allocation2 + $0x178] sm:$0xff] %vm2300_vm9, %v2176_v53  ;;  %v5062_v24 = vmax.f32 %v4952_v20, %v11098_v2  ;;  %v3311_v2 = vld [vmem:[%s13903_s0 + $0x208] sm:$0xff] }
 0x36e   :  { %589 = vst.msk [vmem:[#allocation2 + $0x180] sm:$0xff] %vm540_vm5, %v418_v44  ;;  %2629 = vrot.lane.b32.xlu1 %v11175_v12, %s8233_s30 }
 0x36f   :  { %871 = vrot.lane.b32.xlu0 %v10767_v26, %s8231_s14 }
 0x370   :  { %v2616_v46 = vpop.permute.xlu1 %2615  ;;  %v3741_v28 = vld [vmem:[#allocation2 + $0x170] sm:$0xff]  ;;  %v11197_v33 = vld [vmem:[#allocation3 + $0xfa] sm:$0xff] }
 0x371   :  { %v858_v4 = vpop.permute.xlu0 %857  ;;  %v11199_v10 = vld [vmem:[#allocation3 + $0xfc] sm:$0xff]  ;;  %2788 = vst.msk [vmem:[#allocation2 + $0x178] sm:$0xff] %vm2740_vm10, %v2616_v46  ;;  %7600 = vmatmul.mubr.msk.f32.gmra.mrb[92].mxu0 %vm13913_vm13, %v3741_v28 }
 0x372   :  { %1029 = vst.msk [vmem:[#allocation2 + $0x180] sm:$0xff] %vm980_vm6, %v858_v4  ;;  %3069 = vrot.lane.b32.xlu1 %v11190_v58, %s8236_s20  ;;  %v11208_v26 = vld [vmem:[#allocation3 + $0xfe] sm:$0xff]  ;;  %7602 = vmatprep.mubr.msk.f32.mxu0 %vm13911_vm1, %v8235_v14 }
 0x373   :  { %1311 = vrot.lane.b32.xlu0 %v11195_v41, %s8227_s28 }
 0x374   :  { %v3056_v25 = vpop.permute.xlu1 %3055  ;;  %v4244_v29 = vpop.f32.mrb[66].mxu0 }
 0x375   :  { %v1298_v40 = vpop.permute.xlu0 %1297  ;;  %3228 = vst.msk [vmem:[#allocation2 + $0x178] sm:$0xff] %vm3180_vm11, %v3056_v25  ;;  %v4245_v17 = vadd.f32 %v11220_v56, %v4244_v29  ;;  %v7562_v54 = vpop.f32.mrb[67].mxu0 }
 0x376   :  { %1469 = vst.msk [vmem:[#allocation2 + $0x180] sm:$0xff] %vm1420_vm7, %v1298_v40  ;;  %3509 = vrot.lane.b32.xlu1 %v3309_v3, %s8237_s16 }
 0x377   :  { %1751 = vrot.lane.b32.xlu0 %v11011_v52, %s8230_s13  ;;  %v4476_v55 = vmax.f32 %v4245_v17, 0.0 }
 0x378   :  { %v3496_v19 = vpop.permute.xlu1 %3495 }
 0x379   :  { %v1738_v39 = vpop.permute.xlu0 %1737  ;;  %3668 = vst.msk [vmem:[#allocation2 + $0x178] sm:$0xff] %vm13914_vm12, %v3496_v19  ;;  %4549 = vst [vmem:[#allocation3 + $0x108] sm:$0xff] %v4476_v55 }
 0x37a   :  { %1909 = vst.msk [vmem:[#allocation2 + $0x180] sm:$0xff] %vm1860_vm8, %v1738_v39  ;;  %2191 = vrot.lane.b32.xlu1 %v11027_v5, %s8232_s21  ;;  %v11250_v5 = vld [vmem:[%s13903_s0 + $0x1fe] sm:$0xff] }
 0x37b   :  { %433 = vrot.lane.b32.xlu0 %v11032_v27, %s8228_s29  ;;  %v11255_v27 = vld [vmem:[%s13903_s0 + $0x1e2] sm:$0xff] }
 0x37c   :  { %v2178_v9 = vpop.permute.xlu1 %2177 }
 0x37d   :  { %v420_v37 = vpop.permute.xlu0 %419  ;;  %2349 = vst.msk [vmem:[#allocation2 + $0x180] sm:$0xff] %vm2300_vm9, %v2178_v9  ;;  %v4894_v9 = vmax.f32 %v10930_v60, %v11142_v47  ;;  %v11354_v60 = vld [vmem:[%s13903_s0 + $0x20c] sm:$0xff] }
 0x37e   :  { %590 = vst.msk [vmem:[#allocation2 + $0x188] sm:$0xff] %vm540_vm5, %v420_v37  ;;  %2631 = vrot.lane.b32.xlu1 %v11235_v42, %s8233_s30 }
 0x37f   :  { %873 = vrot.lane.b32.xlu0 %v10827_v13, %s8231_s14  ;;  %v4953_v47 = vmax.f32 %v4894_v9, %v11144_v7  ;;  %v11375_v7 = vld [vmem:[%s13903_s0 + $0x1f2] sm:$0xff] }
 0x380   :  { %v2618_v62 = vpop.permute.xlu1 %2617  ;;  %v3742_v61 = vld [vmem:[#allocation2 + $0x178] sm:$0xff]  ;;  %v11257_v45 = vld [vmem:[#allocation3 + $0x102] sm:$0xff] }
 0x381   :  { %v860_v57 = vpop.permute.xlu0 %859  ;;  %v11259_v8 = vld [vmem:[#allocation3 + $0x104] sm:$0xff]  ;;  %2789 = vst.msk [vmem:[#allocation2 + $0x180] sm:$0xff] %vm2740_vm10, %v2618_v62  ;;  %7603 = vmatmul.mubr.msk.f32.gmra.mrb[94].mxu0 %vm13913_vm13, %v3742_v61  ;;  %v3313_v9 = vld [vmem:[%s13903_s0 + $0x218] sm:$0xff] }
 0x382   :  { %1030 = vst.msk [vmem:[#allocation2 + $0x188] sm:$0xff] %vm980_vm6, %v860_v57  ;;  %3071 = vrot.lane.b32.xlu1 %v11250_v5, %s8236_s20  ;;  %v11268_v13 = vld [vmem:[#allocation3 + $0x106] sm:$0xff]  ;;  %7605 = vmatprep.mubr.msk.f32.mxu0 %vm13911_vm1, %v8235_v14 }
 0x383   :  { %1313 = vrot.lane.b32.xlu0 %v11255_v27, %s8227_s28 }
 0x384   :  { %v3058_v51 = vpop.permute.xlu1 %3057  ;;  %v4249_v59 = vpop.f32.mrb[68].mxu0 }
 0x385   :  { %v1300_v15 = vpop.permute.xlu0 %1299  ;;  %3229 = vst.msk [vmem:[#allocation2 + $0x180] sm:$0xff] %vm3180_vm11, %v3058_v51  ;;  %v4250_v21 = vadd.f32 %v11220_v56, %v4249_v59  ;;  %v7565_v31 = vpop.f32.mrb[69].mxu0 }
 0x386   :  { %1470 = vst.msk [vmem:[#allocation2 + $0x188] sm:$0xff] %vm1420_vm7, %v1300_v15  ;;  %3511 = vrot.lane.b32.xlu1 %v3310_v38, %s8237_s16  ;;  %v5063_v38 = vmax.f32 %v4953_v47, %v11153_v35 }
 0x387   :  { %1753 = vrot.lane.b32.xlu0 %v11065_v48, %s8230_s13  ;;  %v11285_v18 = vmax.f32 %v4250_v21, 0.0 }
 0x388   :  { %v3498_v53 = vpop.permute.xlu1 %3497 }
 0x389   :  { %v1740_v44 = vpop.permute.xlu0 %1739  ;;  %3669 = vst.msk [vmem:[#allocation2 + $0x180] sm:$0xff] %vm13914_vm12, %v3498_v53  ;;  %4550 = vst [vmem:[#allocation3 + $0x110] sm:$0xff] %v11285_v18  ;;  %v3312_v53 = vld [vmem:[%s13903_s0 + $0x210] sm:$0xff] }
 0x38a   :  { %1910 = vst.msk [vmem:[#allocation2 + $0x188] sm:$0xff] %vm1860_vm8, %v1740_v44  ;;  %2193 = vrot.lane.b32.xlu1 %v11080_v22, %s8232_s21  ;;  %v11313_v22 = vld [vmem:[%s13903_s0 + $0x206] sm:$0xff] }
 0x38b   :  { %435 = vrot.lane.b32.xlu0 %v11085_v23, %s8228_s29  ;;  %v11318_v23 = vld [vmem:[%s13903_s0 + $0x1ea] sm:$0xff] }
 0x38c   :  { %v2180_v11 = vpop.permute.xlu1 %2179 }
 0x38d   :  { %v422_v32 = vpop.permute.xlu0 %421  ;;  %2350 = vst.msk [vmem:[#allocation2 + $0x188] sm:$0xff] %vm2300_vm9, %v2180_v11 }
 0x38e   :  { %591 = vst.msk [vmem:[#allocation2 + $0x190] sm:$0xff] %vm540_vm5, %v422_v32  ;;  %2633 = vrot.lane.b32.xlu1 %v11297_v0, %s8233_s30 }
 0x38f   :  { %875 = vrot.lane.b32.xlu0 %v10893_v49, %s8231_s14 }
 0x390   :  { %v2620_v46 = vpop.permute.xlu1 %2619  ;;  %v3743_v28 = vld [vmem:[#allocation2 + $0x180] sm:$0xff]  ;;  %v4787_v3 = vld [vmem:[#allocation3 + $0x10c] sm:$0xff] }
 0x391   :  { %v862_v4 = vpop.permute.xlu0 %861  ;;  %2790 = vst.msk [vmem:[#allocation2 + $0x188] sm:$0xff] %vm2740_vm10, %v2620_v46  ;;  %7606 = vmatmul.mubr.msk.f32.gmra.mrb[96].mxu0 %vm13913_vm13, %v3743_v28  ;;  %v5121_v49 = vmax.f32 %v5062_v24, %v4787_v3  ;;  %v5011_v25 = vld [vmem:[#allocation3 + $0x10e] sm:$0xff] }
 0x392   :  { %1031 = vst.msk [vmem:[#allocation2 + $0x190] sm:$0xff] %vm980_vm6, %v862_v4  ;;  %3073 = vrot.lane.b32.xlu1 %v11313_v22, %s8236_s20  ;;  %7608 = vmatprep.mubr.msk.f32.mxu0 %vm13911_vm1, %v8235_v14  ;;  %v4895_v4 = vmax.f32 %v10991_v34, %v11197_v33  ;;  %v11414_v34 = vld [vmem:[%s13903_s0 + $0x214] sm:$0xff] }
 0x393   :  { %1315 = vrot.lane.b32.xlu0 %v11318_v23, %s8227_s28  ;;  %v5180_v40 = vmax.f32 %v5121_v49, %v5011_v25 }
 0x394   :  { %v3060_v29 = vpop.permute.xlu1 %3059  ;;  %v4254_v54 = vpop.f32.mrb[70].mxu0  ;;  %v4954_v33 = vmax.f32 %v4895_v4, %v11199_v10  ;;  %v11435_v10 = vld [vmem:[%s13903_s0 + $0x1fa] sm:$0xff] }
 0x395   :  { %v1302_v17 = vpop.permute.xlu0 %1301  ;;  %3230 = vst.msk [vmem:[#allocation2 + $0x188] sm:$0xff] %vm3180_vm11, %v3060_v29  ;;  %v5244_v55 = vmax.f32 %v5180_v40, %v11285_v18  ;;  %v4255_v19 = vadd.f32 %v11220_v56, %v4254_v54  ;;  %v7568_v39 = vpop.f32.mrb[71].mxu0 }
 0x396   :  { %1471 = vst.msk [vmem:[#allocation2 + $0x190] sm:$0xff] %vm1420_vm7, %v1302_v17  ;;  %3513 = vrot.lane.b32.xlu1 %v3311_v2, %s8237_s16  ;;  %v5064_v40 = vmax.f32 %v4954_v33, %v11208_v26 }
 0x397   :  { %1755 = vrot.lane.b32.xlu0 %v11120_v43, %s8230_s13  ;;  %5299 = vst [vmem:[#allocation4 + $0xc8] sm:$0xff] %v5244_v55  ;;  %v11342_v37 = vmax.f32 %v4255_v19, 0.0 }
 0x398   :  { %v3500_v1 = vpop.permute.xlu1 %3499 }
 0x399   :  { %v1742_v62 = vpop.permute.xlu0 %1741  ;;  %3670 = vst.msk [vmem:[#allocation2 + $0x188] sm:$0xff] %vm13914_vm12, %v3500_v1  ;;  %4551 = vst [vmem:[#allocation3 + $0x118] sm:$0xff] %v11342_v37 }
 0x39a   :  { %1911 = vst.msk [vmem:[#allocation2 + $0x190] sm:$0xff] %vm1860_vm8, %v1742_v62  ;;  %2195 = vrot.lane.b32.xlu1 %v11135_v36, %s8232_s21  ;;  %v86_v36 = vld [vmem:[%s13903_s0 + $0x1d8] sm:$0xff] }
 0x39b   :  { %437 = vrot.lane.b32.xlu0 %v11140_v63, %s8228_s29  ;;  %160 = vst.msk [vmem:[#allocation2 + $0x1d8] sm:$0xff] %vm100_vm0, %v86_v36  ;;  %v11370_v63 = vld [vmem:[%s13903_s0 + $0x20e] sm:$0xff] }
 0x39c   :  { %v2182_v57 = vpop.permute.xlu1 %2181 }
 0x39d   :  { %v424_v61 = vpop.permute.xlu0 %423  ;;  %2351 = vst.msk [vmem:[#allocation2 + $0x190] sm:$0xff] %vm2300_vm9, %v2182_v57 }
 0x39e   :  { %592 = vst.msk [vmem:[#allocation2 + $0x198] sm:$0xff] %vm540_vm5, %v424_v61  ;;  %2635 = vrot.lane.b32.xlu1 %v11354_v60, %s8233_s30 }
 0x39f   :  { %877 = vrot.lane.b32.xlu0 %v10953_v30, %s8231_s14 }
 0x3a0   :  { %v2622_v51 = vpop.permute.xlu1 %2621  ;;  %v3744_v59 = vld [vmem:[#allocation2 + $0x188] sm:$0xff]  ;;  %v4678_v21 = vld [vmem:[#allocation3 + $0x112] sm:$0xff] }
 0x3a1   :  { %v864_v15 = vpop.permute.xlu0 %863  ;;  %v4788_v31 = vld [vmem:[#allocation3 + $0x114] sm:$0xff]  ;;  %2791 = vst.msk [vmem:[#allocation2 + $0x190] sm:$0xff] %vm2740_vm10, %v2622_v51  ;;  %7609 = vmatmul.mubr.msk.f32.gmra.mrb[98].mxu0 %vm13913_vm13, %v3744_v59  ;;  %v4733_v30 = vmax.f32 %v11285_v18, %v4678_v21  ;;  %v4896_v51 = vmax.f32 %v11048_v6, %v11257_v45 }
 0x3a2   :  { %1032 = vst.msk [vmem:[#allocation2 + $0x198] sm:$0xff] %vm980_vm6, %v864_v15  ;;  %v5122_v16 = vmax.f32 %v5063_v38, %v4788_v31  ;;  %3075 = vrot.lane.b32.xlu1 %v11370_v63, %s8236_s20  ;;  %v5012_v35 = vld [vmem:[#allocation3 + $0x116] sm:$0xff]  ;;  %7611 = vmatprep.mubr.msk.f32.mxu0 %vm13911_vm1, %v8235_v14 }
 0x3a3   :  { %1317 = vrot.lane.b32.xlu0 %v11375_v7, %s8227_s28  ;;  %v11391_v44 = vmax.f32 %v4733_v30, %v4788_v31  ;;  %v11474_v6 = vld [vmem:[%s13903_s0 + $0x21c] sm:$0xff]  ;;  %v4955_v45 = vmax.f32 %v4896_v51, %v11259_v8 }
 0x3a4   :  { %v5181_v20 = vmax.f32 %v5122_v16, %v5012_v35  ;;  %v3062_v11 = vpop.permute.xlu1 %3061  ;;  %v4259_v32 = vpop.f32.mrb[72].mxu0  ;;  %v1115_v8 = vld [vmem:[%s13903_s0 + $0x202] sm:$0xff] }
 0x3a5   :  { %v1304_v18 = vpop.permute.xlu0 %1303  ;;  %3231 = vst.msk [vmem:[#allocation2 + $0x190] sm:$0xff] %vm3180_vm11, %v3062_v11  ;;  %v4260_v24 = vadd.f32 %v11220_v56, %v4259_v32  ;;  %v7571_v46 = vpop.f32.mrb[73].mxu0  ;;  %v5065_v35 = vmax.f32 %v4955_v45, %v11268_v13 }
 0x3a6   :  { %1472 = vst.msk [vmem:[#allocation2 + $0x198] sm:$0xff] %vm1420_vm7, %v1304_v18  ;;  %v5245_v50 = vmax.f32 %v5181_v20, %v11342_v37  ;;  %3515 = vrot.lane.b32.xlu1 %v3312_v53, %s8237_s16 }
 0x3a7   :  { %1757 = vrot.lane.b32.xlu0 %v11175_v12, %s8230_s13  ;;  %v11402_v28 = vmax.f32 %v4260_v24, 0.0  ;;  %v3314_v24 = vld [vmem:[%s13903_s0 + $0x220] sm:$0xff] }
 0x3a8   :  { %5300 = vst [vmem:[#allocation4 + $0xd0] sm:$0xff] %v5245_v50  ;;  %v3502_v3 = vpop.permute.xlu1 %3501 }
 0x3a9   :  { %v1744_v49 = vpop.permute.xlu0 %1743  ;;  %3671 = vst.msk [vmem:[#allocation2 + $0x190] sm:$0xff] %vm13914_vm12, %v3502_v3  ;;  %4552 = vst [vmem:[#allocation3 + $0x120] sm:$0xff] %v11402_v28 }
 0x3aa   :  { %1912 = vst.msk [vmem:[#allocation2 + $0x198] sm:$0xff] %vm1860_vm8, %v1744_v49  ;;  %2197 = vrot.lane.b32.xlu1 %v11190_v58, %s8232_s21  ;;  %v87_v58 = vld [vmem:[%s13903_s0 + $0x1e0] sm:$0xff] }
 0x3ab   :  { %439 = vrot.lane.b32.xlu0 %v11195_v41, %s8228_s29  ;;  %161 = vst.msk [vmem:[#allocation2 + $0x1e0] sm:$0xff] %vm100_vm0, %v87_v58  ;;  %v11430_v41 = vld [vmem:[%s13903_s0 + $0x216] sm:$0xff] }
 0x3ac   :  { %v2184_v25 = vpop.permute.xlu1 %2183 }
 0x3ad   :  { %v426_v2 = vpop.permute.xlu0 %425  ;;  %2352 = vst.msk [vmem:[#allocation2 + $0x198] sm:$0xff] %vm2300_vm9, %v2184_v25 }
 0x3ae   :  { %593 = vst.msk [vmem:[#allocation2 + $0x1a0] sm:$0xff] %vm540_vm5, %v426_v2  ;;  %2637 = vrot.lane.b32.xlu1 %v11414_v34, %s8233_s30 }
 0x3af   :  { %879 = vrot.lane.b32.xlu0 %v11011_v52, %s8231_s14 }
 0x3b0   :  { %v2624_v29 = vpop.permute.xlu1 %2623  ;;  %v3745_v54 = vld [vmem:[#allocation2 + $0x190] sm:$0xff]  ;;  %v4679_v55 = vld [vmem:[#allocation3 + $0x11a] sm:$0xff] }
 0x3b1   :  { %v866_v17 = vpop.permute.xlu0 %865  ;;  %v4789_v19 = vld [vmem:[#allocation3 + $0x11c] sm:$0xff]  ;;  %2792 = vst.msk [vmem:[#allocation2 + $0x198] sm:$0xff] %vm2740_vm10, %v2624_v29  ;;  %7612 = vmatmul.mubr.msk.f32.gmra.mrb[100].mxu0 %vm13913_vm13, %v3745_v54  ;;  %v4734_v52 = vmax.f32 %v11342_v37, %v4679_v55  ;;  %v89_v55 = vld [vmem:[%s13903_s0 + $0x1f0] sm:$0xff] }
 0x3b2   :  { %1033 = vst.msk [vmem:[#allocation2 + $0x1a0] sm:$0xff] %vm980_vm6, %v866_v17  ;;  %v5123_v39 = vmax.f32 %v5064_v40, %v4789_v19  ;;  %3077 = vrot.lane.b32.xlu1 %v11430_v41, %s8236_s20  ;;  %v5013_v26 = vld [vmem:[#allocation3 + $0x11e] sm:$0xff]  ;;  %7614 = vmatprep.mubr.msk.f32.mxu0 %vm13911_vm1, %v8235_v14 }
 0x3b3   :  { %1319 = vrot.lane.b32.xlu0 %v11435_v10, %s8227_s28  ;;  %v11451_v1 = vmax.f32 %v4734_v52, %v4789_v19  ;;  %v2435_v17 = vld [vmem:[%s13903_s0 + $0x224] sm:$0xff]  ;;  %163 = vst.msk [vmem:[#allocation2 + $0x1f0] sm:$0xff] %vm100_vm0, %v89_v55 }
 0x3b4   :  { %v5182_v62 = vmax.f32 %v5123_v39, %v5013_v26  ;;  %v3064_v47 = vpop.permute.xlu1 %3063  ;;  %v4264_v57 = vpop.f32.mrb[74].mxu0 }
 0x3b5   :  { %v1306_v37 = vpop.permute.xlu0 %1305  ;;  %3232 = vst.msk [vmem:[#allocation2 + $0x198] sm:$0xff] %vm3180_vm11, %v3064_v47  ;;  %v4265_v36 = vadd.f32 %v11220_v56, %v4264_v57  ;;  %v7574_v38 = vpop.f32.mrb[75].mxu0 }
 0x3b6   :  { %1473 = vst.msk [vmem:[#allocation2 + $0x1a0] sm:$0xff] %vm1420_vm7, %v1306_v37  ;;  %v5246_v61 = vmax.f32 %v5182_v62, %v11402_v28  ;;  %3517 = vrot.lane.b32.xlu1 %v3313_v9, %s8237_s16  ;;  %v3315_v62 = vld [vmem:[%s13903_s0 + $0x228] sm:$0xff] }
 0x3b7   :  { %1759 = vrot.lane.b32.xlu0 %v11235_v42, %s8230_s13  ;;  %v11462_v15 = vmax.f32 %v4265_v36, 0.0 }
 0x3b8   :  { %5301 = vst [vmem:[#allocation4 + $0xd8] sm:$0xff] %v5246_v61  ;;  %v3504_v59 = vpop.permute.xlu1 %3503 }
 0x3b9   :  { %v1746_v21 = vpop.permute.xlu0 %1745  ;;  %3672 = vst.msk [vmem:[#allocation2 + $0x198] sm:$0xff] %vm13914_vm12, %v3504_v59  ;;  %4553 = vst [vmem:[#allocation3 + $0x128] sm:$0xff] %v11462_v15 }
 0x3ba   :  { %1913 = vst.msk [vmem:[#allocation2 + $0x1a0] sm:$0xff] %vm1860_vm8, %v1746_v21  ;;  %2199 = vrot.lane.b32.xlu1 %v11250_v5, %s8232_s21  ;;  %v88_v5 = vld [vmem:[%s13903_s0 + $0x1e8] sm:$0xff] }
 0x3bb   :  { %441 = vrot.lane.b32.xlu0 %v11255_v27, %s8228_s29  ;;  %162 = vst.msk [vmem:[#allocation2 + $0x1e8] sm:$0xff] %vm100_vm0, %v88_v5  ;;  %v11490_v27 = vld [vmem:[%s13903_s0 + $0x21e] sm:$0xff]  ;;  %v2436_v21 = vld [vmem:[%s13903_s0 + $0x22c] sm:$0xff] }
 0x3bc   :  { %v2186_v31 = vpop.permute.xlu1 %2185 }
 0x3bd   :  { %v428_v30 = vpop.permute.xlu0 %427  ;;  %2353 = vst.msk [vmem:[#allocation2 + $0x1a0] sm:$0xff] %vm2300_vm9, %v2186_v31 }
 0x3be   :  { %594 = vst.msk [vmem:[#allocation2 + $0x1a8] sm:$0xff] %vm540_vm5, %v428_v30  ;;  %2639 = vrot.lane.b32.xlu1 %v11474_v6, %s8233_s30 }
 0x3bf   :  { %881 = vrot.lane.b32.xlu0 %v11065_v48, %s8231_s14  ;;  %v5616_v16 = vld [vmem:[#allocation4 + $0xd8] sm:$0x3] }
 0x3c0   :  { %v2626_v53 = vpop.permute.xlu1 %2625  ;;  %v3746_v11 = vld [vmem:[#allocation2 + $0x198] sm:$0xff]  ;;  %5617 = vst.msk [vmem:[#allocation5 + $0x6] sm:$0x3] %vm5330_vm14, %v5616_v16  ;;  %v4680_v48 = vld [vmem:[#allocation3 + $0x122] sm:$0xff] }
 0x3c1   :  { %v868_v20 = vpop.permute.xlu0 %867  ;;  %v4790_v18 = vld [vmem:[#allocation3 + $0x124] sm:$0xff]  ;;  %2793 = vst.msk [vmem:[#allocation2 + $0x1a0] sm:$0xff] %vm2740_vm10, %v2626_v53  ;;  %7615 = vmatmul.mubr.msk.f32.gmra.mrb[102].mxu0 %vm13913_vm13, %v3746_v11  ;;  %v4735_v32 = vmax.f32 %v11402_v28, %v4680_v48 }
 0x3c2   :  { %1034 = vst.msk [vmem:[#allocation2 + $0x1a8] sm:$0xff] %vm980_vm6, %v868_v20  ;;  %v5124_v50 = vmax.f32 %v5065_v35, %v4790_v18  ;;  %3079 = vrot.lane.b32.xlu1 %v11490_v27, %s8236_s20  ;;  %v5014_v13 = vld [vmem:[#allocation3 + $0x126] sm:$0xff]  ;;  %7617 = vmatprep.mubr.msk.f32.mxu0 %vm13911_vm1, %v8235_v14 }
 0x3c3   :  { %1321 = vrot.lane.b32.xlu0 %v1115_v8, %s8227_s28  ;;  %v11509_v46 = vmax.f32 %v4735_v32, %v4790_v18  ;;  %v3316_v35 = vld [vmem:[%s13903_s0 + $0x230] sm:$0xff] }
 0x3c4   :  { %v5183_v4 = vmax.f32 %v5124_v50, %v5014_v13  ;;  %v3066_v3 = vpop.permute.xlu1 %3065  ;;  %v4269_v28 = vpop.f32.mrb[76].mxu0  ;;  %v2437_v32 = vld [vmem:[%s13903_s0 + $0x234] sm:$0xff] }
 0x3c5   :  { %v1308_v49 = vpop.permute.xlu0 %1307  ;;  %3233 = vst.msk [vmem:[#allocation2 + $0x1a0] sm:$0xff] %vm3180_vm11, %v3066_v3  ;;  %v4270_v25 = vadd.f32 %v11220_v56, %v4269_v28  ;;  %v7577_v2 = vpop.f32.mrb[77].mxu0  ;;  %v2877_v3 = vld [vmem:[%s13903_s0 + $0x236] sm:$0xff] }
 0x3c6   :  { %1474 = vst.msk [vmem:[#allocation2 + $0x1a8] sm:$0xff] %vm1420_vm7, %v1308_v49  ;;  %v5247_v33 = vmax.f32 %v5183_v4, %v11462_v15  ;;  %3519 = vrot.lane.b32.xlu1 %v3314_v24, %s8237_s16  ;;  %v90_v4 = vld [vmem:[%s13903_s0 + $0x1f8] sm:$0xff] }
 0x3c7   :  { %1761 = vrot.lane.b32.xlu0 %v11297_v0, %s8230_s13  ;;  %v4481_v58 = vmax.f32 %v4270_v25, 0.0  ;;  %164 = vst.msk [vmem:[#allocation2 + $0x1f8] sm:$0xff] %vm100_vm0, %v90_v4 }
 0x3c8   :  { %5302 = vst [vmem:[#allocation4 + $0xe0] sm:$0xff] %v5247_v33  ;;  %v3506_v40 = vpop.permute.xlu1 %3505 }
 0x3c9   :  { %v1748_v29 = vpop.permute.xlu0 %1747  ;;  %3673 = vst.msk [vmem:[#allocation2 + $0x1a0] sm:$0xff] %vm13914_vm12, %v3506_v40  ;;  %4554 = vst [vmem:[#allocation3 + $0x130] sm:$0xff] %v4481_v58 }
 0x3ca   :  { %1914 = vst.msk [vmem:[#allocation2 + $0x1a8] sm:$0xff] %vm1860_vm8, %v1748_v29  ;;  %2201 = vrot.lane.b32.xlu1 %v11313_v22, %s8232_s21  ;;  %v2875_v22 = vld [vmem:[%s13903_s0 + $0x226] sm:$0xff]  ;;  %v1118_v29 = vld [vmem:[%s13903_s0 + $0x21a] sm:$0xff] }
 0x3cb   :  { %443 = vrot.lane.b32.xlu0 %v11318_v23, %s8228_s29  ;;  %v1116_v23 = vld [vmem:[%s13903_s0 + $0x20a] sm:$0xff] }
 0x3cc   :  { %v2188_v0 = vpop.permute.xlu1 %2187 }
 0x3cd   :  { %v430_v54 = vpop.permute.xlu0 %429  ;;  %2354 = vst.msk [vmem:[#allocation2 + $0x1a8] sm:$0xff] %vm2300_vm9, %v2188_v0 }
 0x3ce   :  { %595 = vst.msk [vmem:[#allocation2 + $0x1b0] sm:$0xff] %vm540_vm5, %v430_v54  ;;  %2641 = vrot.lane.b32.xlu1 %v2435_v17, %s8233_s30 }
 0x3cf   :  { %883 = vrot.lane.b32.xlu0 %v11120_v43, %s8231_s14  ;;  %v7253_v4 = vld.sshfl [vmem:[#allocation4 + $0xe0] sm:$0x3 pattern:$0x76325410] }
 0x3d0   :  { %v2628_v19 = vpop.permute.xlu1 %2627  ;;  %v3747_v39 = vld [vmem:[#allocation2 + $0x1a0] sm:$0xff]  ;;  %v4681_v26 = vld [vmem:[#allocation3 + $0x12a] sm:$0xff] }
 0x3d1   :  { %v870_v52 = vpop.permute.xlu0 %869  ;;  %v4791_v9 = vld [vmem:[#allocation3 + $0x12c] sm:$0xff]  ;;  %2794 = vst.msk [vmem:[#allocation2 + $0x1a8] sm:$0xff] %vm2740_vm10, %v2628_v19  ;;  %7618 = vmatmul.mubr.msk.f32.gmra.mrb[104].mxu0 %vm13913_vm13, %v3747_v39  ;;  %v4736_v43 = vmax.f32 %v11462_v15, %v4681_v26 }
 0x3d2   :  { %1035 = vst.msk [vmem:[#allocation2 + $0x1b0] sm:$0xff] %vm980_vm6, %v870_v52  ;;  %3081 = vrot.lane.b32.xlu1 %v2875_v22, %s8236_s20  ;;  %7620 = vmatprep.mubr.msk.f32.mxu0 %vm13911_vm1, %v8235_v14  ;;  %v2878_v52 = vld [vmem:[%s13903_s0 + $0x23e] sm:$0xff] }
 0x3d3   :  { %1323 = vrot.lane.b32.xlu0 %v1116_v23, %s8227_s28  ;;  %v11553_v47 = vmax.f32 %v4736_v43, %v4791_v9 }
 0x3d4   :  { %v3068_v37 = vpop.permute.xlu1 %3067  ;;  %v4274_v61 = vpop.f32.mrb[78].mxu0 }
 0x3d5   :  { %v1310_v57 = vpop.permute.xlu0 %1309  ;;  %3234 = vst.msk [vmem:[#allocation2 + $0x1a8] sm:$0xff] %vm3180_vm11, %v3068_v37  ;;  %v4275_v36 = vadd.f32 %v11220_v56, %v4274_v61  ;;  %v7580_v38 = vpop.f32.mrb[79].mxu0  ;;  %v7238_v61 = vld.sshfl [vmem:[#allocation4 + $0x4c] sm:$0x3 pattern:$0x76325410] }
 0x3d6   :  { %1475 = vst.msk [vmem:[#allocation2 + $0x1b0] sm:$0xff] %vm1420_vm7, %v1310_v57  ;;  %3521 = vrot.lane.b32.xlu1 %v3315_v62, %s8237_s16  ;;  %v7231_v62 = vld.sshfl [vmem:[#allocation4 + $0x4] sm:$0x3 pattern:$0x76325410] }
 0x3d7   :  { %1763 = vrot.lane.b32.xlu0 %v11354_v60, %s8230_s13  ;;  %v4482_v51 = vmax.f32 %v4275_v36, 0.0 }
 0x3d8   :  { %v3508_v15 = vpop.permute.xlu1 %3507 }
 0x3d9   :  { %v1750_v59 = vpop.permute.xlu0 %1749  ;;  %3674 = vst.msk [vmem:[#allocation2 + $0x1a8] sm:$0xff] %vm13914_vm12, %v3508_v15  ;;  %4555 = vst [vmem:[#allocation3 + $0x138] sm:$0xff] %v4482_v51  ;;  %v7245_v15 = vld.sshfl [vmem:[#allocation4 + $0x94] sm:$0x3 pattern:$0x76325410] }
 0x3da   :  { %1915 = vst.msk [vmem:[#allocation2 + $0x1b0] sm:$0xff] %vm1860_vm8, %v1750_v59  ;;  %2203 = vrot.lane.b32.xlu1 %v11370_v63, %s8232_s21  ;;  %v2876_v63 = vld [vmem:[%s13903_s0 + $0x22e] sm:$0xff] }
 0x3db   :  { %445 = vrot.lane.b32.xlu0 %v11375_v7, %s8228_s29  ;;  %v1117_v7 = vld [vmem:[%s13903_s0 + $0x212] sm:$0xff] }
 0x3dc   :  { %v2190_v45 = vpop.permute.xlu1 %2189 }
 0x3dd   :  { %v432_v60 = vpop.permute.xlu0 %431  ;;  %2355 = vst.msk [vmem:[#allocation2 + $0x1b0] sm:$0xff] %vm2300_vm9, %v2190_v45 }
 0x3de   :  { %596 = vst.msk [vmem:[#allocation2 + $0x1b8] sm:$0xff] %vm540_vm5, %v432_v60  ;;  %2643 = vrot.lane.b32.xlu1 %v2436_v21, %s8233_s30  ;;  %v7252_v21 = vld.sshfl [vmem:[#allocation4 + $0xdc] sm:$0x3 pattern:$0x76325410] }
 0x3df   :  { %885 = vrot.lane.b32.xlu0 %v11175_v12, %s8231_s14 }
 0x3e0   :  { %v2630_v31 = vpop.permute.xlu1 %2629  ;;  %v3748_v5 = vld [vmem:[#allocation2 + $0x1a8] sm:$0xff]  ;;  %v11581_v8 = vld [vmem:[#allocation3 + $0x132] sm:$0xff] }
 0x3e1   :  { %v872_v30 = vpop.permute.xlu0 %871  ;;  %v11583_v16 = vld [vmem:[#allocation3 + $0x134] sm:$0xff]  ;;  %2795 = vst.msk [vmem:[#allocation2 + $0x1b0] sm:$0xff] %vm2740_vm10, %v2630_v31  ;;  %7621 = vmatmul.mubr.msk.f32.gmra.mrb[106].mxu0 %vm13913_vm13, %v3748_v5  ;;  %v6028_v5 = vld [vmem:[%s13906_s3 + $0x408] sm:$0xff] }
 0x3e2   :  { %1036 = vst.msk [vmem:[#allocation2 + $0x1b8] sm:$0xff] %vm980_vm6, %v872_v30  ;;  %3083 = vrot.lane.b32.xlu1 %v2876_v63, %s8236_s20  ;;  %v11590_v12 = vld [vmem:[#allocation3 + $0x136] sm:$0xff]  ;;  %7623 = vmatprep.mubr.msk.f32.mxu0 %vm13911_vm1, %v8235_v14  ;;  %v7232_v63 = vld.sshfl [vmem:[#allocation4 + $0x8] sm:$0x3 pattern:$0x76325410] }
 0x3e3   :  { %1325 = vrot.lane.b32.xlu0 %v1117_v7, %s8227_s28 }
 0x3e4   :  { %v3070_v53 = vpop.permute.xlu1 %3069  ;;  %v4279_v11 = vpop.f32.mrb[80].mxu0 }
 0x3e5   :  { %v1312_v20 = vpop.permute.xlu0 %1311  ;;  %3235 = vst.msk [vmem:[#allocation2 + $0x1b0] sm:$0xff] %vm3180_vm11, %v3070_v53  ;;  %v4280_v48 = vadd.f32 %v11220_v56, %v4279_v11  ;;  %v7583_v18 = vpop.f32.mrb[81].mxu0  ;;  %v6031_v11 = vld [vmem:[%s13906_s3 + $0x420] sm:$0xff] }
 0x3e6   :  { %1476 = vst.msk [vmem:[#allocation2 + $0x1b8] sm:$0xff] %vm1420_vm7, %v1312_v20  ;;  %3523 = vrot.lane.b32.xlu1 %v3316_v35, %s8237_s16  ;;  %v6032_v35 = vld [vmem:[%s13906_s3 + $0x428] sm:$0xff]  ;;  %v6027_v20 = vld [vmem:[%s13906_s3 + $0x400] sm:$0xff] }
 0x3e7   :  { %1765 = vrot.lane.b32.xlu0 %v11414_v34, %s8230_s13  ;;  %v4483_v50 = vmax.f32 %v4280_v48, 0.0  ;;  %v3317_v34 = vld [vmem:[%s13903_s0 + $0x238] sm:$0xff]  ;;  %v7766_v53 = vpack.c.bf16 %v6032_v35, %v6028_v5  ;;  %v7768_v48 = vpack.c.bf16 %v6031_v11, %v6027_v20  ;;  %v7241_v20 = vld.sshfl [vmem:[#allocation4 + $0x58] sm:$0x3 pattern:$0x76325410] }
 0x3e8   :  { %v3510_v13 = vpop.permute.xlu1 %3509 }
 0x3e9   :  { %v1752_v24 = vpop.permute.xlu0 %1751  ;;  %3675 = vst.msk [vmem:[#allocation2 + $0x1b0] sm:$0xff] %vm13914_vm12, %v3510_v13  ;;  %4556 = vst [vmem:[#allocation3 + $0x140] sm:$0xff] %v4483_v50  ;;  %7767 = vmatprep.subr.bf16.mxu1 %v7766_v53  ;;  %v7246_v50 = vld.sshfl [vmem:[#allocation4 + $0x98] sm:$0x3 pattern:$0x76325410] }
 0x3ea   :  { %1916 = vst.msk [vmem:[#allocation2 + $0x1b8] sm:$0xff] %vm1860_vm8, %v1752_v24  ;;  %2645 = vrot.lane.b32.xlu1 %v2437_v32, %s8233_s30  ;;  %7769 = vmatpush1.bf16.msra.mxu1 %v7768_v48  ;;  %v6036_v13 = vld [vmem:[%s13906_s3 + $0x448] sm:$0xff] }
 0x3eb   :  { %2205 = vrot.lane.b32.xlu0 %v11430_v41, %s8232_s21  ;;  %v6040_v24 = vld [vmem:[%s13906_s3 + $0x468] sm:$0xff] }
 0x3ec   :  { %v2192_v49 = vpop.permute.xlu1 %2191  ;;  %v6064_v53 = vld [vmem:[%s13906_s3 + $0x528] sm:$0xff] }
 0x3ed   :  { %v434_v28 = vpop.permute.xlu0 %433  ;;  %2356 = vst.msk [vmem:[#allocation2 + $0x1b8] sm:$0xff] %vm2300_vm9, %v2192_v49  ;;  %v6039_v49 = vld [vmem:[%s13906_s3 + $0x460] sm:$0xff] }
 0x3ee   :  { %597 = vst.msk [vmem:[#allocation2 + $0x1c0] sm:$0xff] %vm540_vm5, %v434_v28  ;;  %3525 = vrot.lane.b32.xlu1 %v3317_v34, %s8237_s16  ;;  %v7770_v34 = vpack.c.bf16 %v6040_v24, %v6036_v13  ;;  %v6068_v13 = vld [vmem:[%s13906_s3 + $0x548] sm:$0xff] }
 0x3ef   :  { %3085 = vrot.lane.b32.xlu0 %v2877_v3, %s8236_s20  ;;  %v6035_v3 = vld [vmem:[%s13906_s3 + $0x440] sm:$0xff]  ;;  %v6072_v24 = vld [vmem:[%s13906_s3 + $0x568] sm:$0xff] }
 0x3f0   :  { %v2632_v33 = vpop.permute.xlu1 %2631  ;;  %v3749_v25 = vld [vmem:[#allocation2 + $0x1b0] sm:$0xff]  ;;  %v11625_v2 = vld [vmem:[#allocation3 + $0x13a] sm:$0xff]  ;;  %v7772_v28 = vpack.c.bf16 %v6039_v49, %v6035_v3  ;;  %7771 = vmatprep.subr.bf16.mxu1 %v7770_v34  ;;  %v7786_v34 = vpack.c.bf16 %v6072_v24, %v6068_v13 }
 0x3f1   :  { %v874_v41 = vpop.permute.xlu0 %873  ;;  %v11627_v58 = vld [vmem:[#allocation3 + $0x13c] sm:$0xff]  ;;  %2796 = vst.msk [vmem:[#allocation2 + $0x1b8] sm:$0xff] %vm2740_vm10, %v2632_v33  ;;  %7624 = vmatmul.mubr.msk.f32.gmra.mrb[108].mxu0 %vm13913_vm13, %v3749_v25  ;;  %v7233_v33 = vld.sshfl [vmem:[#allocation4 + $0xc] sm:$0x3 pattern:$0x76325410] }
 0x3f2   :  { %1037 = vst.msk [vmem:[#allocation2 + $0x1c0] sm:$0xff] %vm980_vm6, %v874_v41  ;;  %887 = vrot.lane.b32.xlu1 %v11235_v42, %s8231_s14  ;;  %v11636_v40 = vld [vmem:[#allocation3 + $0x13e] sm:$0xff]  ;;  %7626 = vmatprep.mubr.msk.f32.mxu0 %vm13911_vm1, %v8235_v14 }
 0x3f3   :  { %447 = vrot.lane.b32.xlu0 %v11435_v10, %s8228_s29  ;;  %v2438_v10 = vld [vmem:[%s13903_s0 + $0x23c] sm:$0xff]  ;;  %7773 = vmatpush1.bf16.msra.mxu1 %v7772_v28  ;;  %v6100_v24 = vld [vmem:[%s13906_s3 + $0x648] sm:$0xff] }
 0x3f4   :  { %v3072_v17 = vpop.permute.xlu1 %3071  ;;  %v4284_v54 = vpop.f32.mrb[82].mxu0  ;;  %v6071_v3 = vld [vmem:[%s13906_s3 + $0x560] sm:$0xff] }
 0x3f5   :  { %v1314_v0 = vpop.permute.xlu0 %1313  ;;  %3236 = vst.msk [vmem:[#allocation2 + $0x1b8] sm:$0xff] %vm3180_vm11, %v3072_v17  ;;  %v4285_v42 = vadd.f32 %v11220_v56, %v4284_v54  ;;  %v7586_v55 = vpop.f32.mrb[83].mxu0  ;;  %v6044_v17 = vld [vmem:[%s13906_s3 + $0x488] sm:$0xff] }
 0x3f6   :  { %1477 = vst.msk [vmem:[#allocation2 + $0x1c0] sm:$0xff] %vm1420_vm7, %v1314_v0  ;;  %1767 = vrot.lane.b32.xlu1 %v11474_v6, %s8230_s13  ;;  %v3318_v6 = vld [vmem:[%s13903_s0 + $0x240] sm:$0xff]  ;;  %v6048_v0 = vld [vmem:[%s13906_s3 + $0x4a8] sm:$0xff] }
 0x3f7   :  { %1327 = vrot.lane.b32.xlu0 %v1118_v29, %s8227_s28  ;;  %v4484_v22 = vmax.f32 %v4285_v42, 0.0  ;;  %v7240_v55 = vld.sshfl [vmem:[#allocation4 + $0x54] sm:$0x3 pattern:$0x76325410] }
 0x3f8   :  { %v3512_v23 = vpop.permute.xlu1 %3511 }
 0x3f9   :  { %v1754_v19 = vpop.permute.xlu0 %1753  ;;  %3676 = vst.msk [vmem:[#allocation2 + $0x1b8] sm:$0xff] %vm13914_vm12, %v3512_v23  ;;  %4557 = vst [vmem:[#allocation3 + $0x148] sm:$0xff] %v4484_v22  ;;  %v6043_v22 = vld [vmem:[%s13906_s3 + $0x480] sm:$0xff] }
 0x3fa   :  { %1917 = vst.msk [vmem:[#allocation2 + $0x1c0] sm:$0xff] %vm1860_vm8, %v1754_v19  ;;  %2647 = vrot.lane.b32.xlu1 %v2438_v10, %s8233_s30  ;;  %v7774_v10 = vpack.c.bf16 %v6048_v0, %v6044_v17  ;;  %v6047_v23 = vld [vmem:[%s13906_s3 + $0x4a0] sm:$0xff]  ;;  %v6080_v17 = vld [vmem:[%s13906_s3 + $0x5a8] sm:$0xff] }
 0x3fb   :  { %2207 = vrot.lane.b32.xlu0 %v11490_v27, %s8232_s21 }
 0x3fc   :  { %v2194_v39 = vpop.permute.xlu1 %2193  ;;  %7775 = vmatprep.subr.bf16.mxu1 %v7774_v10 }
 0x3fd   :  { %v436_v26 = vpop.permute.xlu0 %435  ;;  %2357 = vst.msk [vmem:[#allocation2 + $0x1c0] sm:$0xff] %vm2300_vm9, %v2194_v39 }
 0x3fe   :  { %598 = vst.msk [vmem:[#allocation2 + $0x1c8] sm:$0xff] %vm540_vm5, %v436_v26  ;;  %3527 = vrot.lane.b32.xlu1 %v3318_v6, %s8237_s16  ;;  %v7247_v6 = vld.sshfl [vmem:[#allocation4 + $0x9c] sm:$0x3 pattern:$0x76325410] }
 0x3ff   :  { %3087 = vrot.lane.b32.xlu0 %v2878_v52, %s8236_s20  ;;  %v7776_v52 = vpack.c.bf16 %v6047_v23, %v6043_v22 }
 0x400   :  { %v2634_v9 = vpop.permute.xlu1 %2633  ;;  %v3750_v43 = vld [vmem:[#allocation2 + $0x1b8] sm:$0xff]  ;;  %v11667_v37 = vld [vmem:[#allocation3 + $0x142] sm:$0xff] }
 0x401   :  { %v876_v27 = vpop.permute.xlu0 %875  ;;  %v11669_v57 = vld [vmem:[#allocation3 + $0x144] sm:$0xff]  ;;  %2797 = vst.msk [vmem:[#allocation2 + $0x1c0] sm:$0xff] %vm2740_vm10, %v2634_v9  ;;  %7627 = vmatmul.mubr.msk.f32.gmra.mrb[110].mxu0 %vm13913_vm13, %v3750_v43  ;;  %v7254_v9 = vld.sshfl [vmem:[#allocation4 + $0xe4] sm:$0x3 pattern:$0x76325410]  ;;  %7777 = vmatpush1.bf16.msra.mxu1 %v7776_v52 }
 0x402   :  { %1038 = vst.msk [vmem:[#allocation2 + $0x1c8] sm:$0xff] %vm980_vm6, %v876_v27  ;;  %5441 = vrot.lane.b32.xlu1 %v7238_v61, %s8239_s23  ;;  %v11676_v36 = vld [vmem:[#allocation3 + $0x146] sm:$0xff]  ;;  %7629 = vmatprep.mubr.msk.f32.mxu0 %vm13911_vm1, %v8235_v14  ;;  %v6079_v52 = vld [vmem:[%s13906_s3 + $0x5a0] sm:$0xff] }
 0x403   :  { %5341 = vrot.lane.b32.xlu0 %v7231_v62, %s8239_s23  ;;  %v6052_v27 = vld [vmem:[%s13906_s3 + $0x4c8] sm:$0xff] }
 0x404   :  { %v3074_v38 = vpop.permute.xlu1 %3073  ;;  %v4289_v59 = vpop.f32.mrb[84].mxu0  ;;  %v6056_v43 = vld [vmem:[%s13906_s3 + $0x4e8] sm:$0xff] }
 0x405   :  { %v1316_v51 = vpop.permute.xlu0 %1315  ;;  %3237 = vst.msk [vmem:[#allocation2 + $0x1c0] sm:$0xff] %vm3180_vm11, %v3074_v38  ;;  %v11683_v45 = vadd.f32 %v11220_v56, %v4289_v59  ;;  %v7589_v60 = vpop.f32.mrb[85].mxu0  ;;  %v7239_v56 = vld.sshfl [vmem:[#allocation4 + $0x50] sm:$0x3 pattern:$0x76325410]  ;;  %v7778_v61 = vpack.c.bf16 %v6056_v43, %v6052_v27 }
 0x406   :  { %1478 = vst.msk [vmem:[#allocation2 + $0x1c8] sm:$0xff] %vm1420_vm7, %v1316_v51  ;;  %5627 = vrot.lane.b32.xlu1 %v7252_v21, %s8239_s23  ;;  %v6051_v38 = vld [vmem:[%s13906_s3 + $0x4c0] sm:$0xff]  ;;  %v7249_v43 = vld.sshfl [vmem:[#allocation4 + $0xcc] sm:$0x3 pattern:$0x76325410] }
 0x407   :  { %5534 = vrot.lane.b32.xlu0 %v7245_v15, %s8239_s23  ;;  %v4485_v7 = vmax.f32 %v11683_v45, 0.0  ;;  %v6055_v51 = vld [vmem:[%s13906_s3 + $0x4e0] sm:$0xff]  ;;  %7779 = vmatprep.subr.bf16.mxu1 %v7778_v61  ;;  %v6088_v61 = vld [vmem:[%s13906_s3 + $0x5e8] sm:$0xff] }
 0x408   :  { %v3514_v31 = vpop.permute.xlu1 %3513  ;;  %v11764_v15 = vld [vmem:[%s13905_s2] ss:$0 sm:$0xff] }
 0x409   :  { %v1756_v30 = vpop.permute.xlu0 %1755  ;;  %3677 = vst.msk [vmem:[#allocation2 + $0x1c0] sm:$0xff] %vm13914_vm12, %v3514_v31  ;;  %4558 = vst [vmem:[#allocation3 + $0x150] sm:$0xff] %v4485_v7  ;;  %v7234_v60 = vld.sshfl [vmem:[#allocation4 + $0x10] sm:$0x3 pattern:$0x76325410]  ;;  %v4902_v31 = vmax.f32 %v11391_v44, %v11581_v8 }
 0x40a   :  { %1918 = vst.msk [vmem:[#allocation2 + $0x1c8] sm:$0xff] %vm1860_vm8, %v1756_v30  ;;  %5454 = vrot.lane.b32.xlu1 %v7239_v56, %s8240_s11  ;;  %v6060_v56 = vld [vmem:[%s13906_s3 + $0x508] sm:$0xff]  ;;  %v6059_v44 = vld [vmem:[%s13906_s3 + $0x500] sm:$0xff] }
 0x40b   :  { %5355 = vrot.lane.b32.xlu0 %v7232_v63, %s8240_s11  ;;  %v7780_v63 = vpack.c.bf16 %v6055_v51, %v6051_v38  ;;  %v7782_v11 = vpack.c.bf16 %v6064_v53, %v6060_v56  ;;  %v6063_v8 = vld [vmem:[%s13906_s3 + $0x520] sm:$0xff] }
 0x40c   :  { %v2196_v18 = vpop.permute.xlu1 %2195  ;;  %v7784_v48 = vpack.c.bf16 %v6063_v8, %v6059_v44  ;;  %v6096_v44 = vld [vmem:[%s13906_s3 + $0x628] sm:$0xff] }
 0x40d   :  { %v438_v32 = vpop.permute.xlu0 %437  ;;  %2358 = vst.msk [vmem:[#allocation2 + $0x1c8] sm:$0xff] %vm2300_vm9, %v2196_v18  ;;  %7781 = vmatpush1.bf16.msra.mxu1 %v7780_v63  ;;  %v4961_v18 = vmax.f32 %v4902_v31, %v11583_v16  ;;  %v6067_v16 = vld [vmem:[%s13906_s3 + $0x540] sm:$0xff]  ;;  %v7236_v8 = vld.sshfl [vmem:[#allocation4 + $0x18] sm:$0x3 pattern:$0x76325410] }
 0x40e   :  { %599 = vst.msk [vmem:[#allocation2 + $0x1d0] sm:$0xff] %vm540_vm5, %v438_v32  ;;  %5640 = vrot.lane.b32.xlu1 %v7253_v4, %s8240_s11  ;;  %7783 = vmatprep.subr.bf16.mxu1 %v7782_v11  ;;  %v7248_v4 = vld.sshfl [vmem:[#allocation4 + $0xa0] sm:$0x3 pattern:$0x76325410]  ;;  %v7788_v49 = vpack.c.bf16 %v6071_v3, %v6067_v16  ;;  %v6092_v11 = vld [vmem:[%s13906_s3 + $0x608] sm:$0xff] }
 0x40f   :  { %5547 = vrot.lane.b32.xlu0 %v7246_v50, %s8240_s11  ;;  %v5071_v28 = vmax.f32 %v4961_v18, %v11590_v12  ;;  %v7235_v12 = vld.sshfl [vmem:[#allocation4 + $0x14] sm:$0x3 pattern:$0x76325410] }
 0x410   :  { %v2636_v41 = vpop.permute.xlu1 %2635  ;;  %v3751_v29 = vld [vmem:[#allocation2 + $0x1c0] sm:$0xff]  ;;  %v11728_v54 = vld [vmem:[#allocation3 + $0x14a] sm:$0xff] }
 0x411   :  { %v878_v25 = vpop.permute.xlu0 %877  ;;  %v11730_v42 = vld [vmem:[#allocation3 + $0x14c] sm:$0xff]  ;;  %2798 = vst.msk [vmem:[#allocation2 + $0x1c8] sm:$0xff] %vm2740_vm10, %v2636_v41  ;;  %7630 = vmatmul.mubr.msk.f32.gmra.mrb[112].mxu0 %vm13913_vm13, %v3751_v29  ;;  %7785 = vmatpush1.bf16.msra.mxu1 %v7784_v48  ;;  %v6076_v29 = vld [vmem:[%s13906_s3 + $0x588] sm:$0xff]  ;;  %v6095_v48 = vld [vmem:[%s13906_s3 + $0x620] sm:$0xff] }
 0x412   :  { %1039 = vst.msk [vmem:[#allocation2 + $0x1d0] sm:$0xff] %vm980_vm6, %v878_v25  ;;  %5467 = vrot.lane.b32.xlu1 %v7240_v55, %s8230_s13  ;;  %v11743_v19 = vld [vmem:[#allocation3 + $0x14e] sm:$0xff]  ;;  %7632 = vmatprep.mubr.msk.f32.mxu0 %vm13911_vm1, %v8235_v14  ;;  %v7790_v10 = vpack.c.bf16 %v6080_v17, %v6076_v29  ;;  %v6103_v3 = vld [vmem:[%s13906_s3 + $0x660] sm:$0xff]  ;;  %v6108_v17 = vld [vmem:[%s13906_s3 + $0x688] sm:$0xff] }
 0x413   :  { %5369 = vrot.lane.b32.xlu0 %v7233_v33, %s8230_s13  ;;  %7787 = vmatprep.subr.bf16.mxu1 %v7786_v34  ;;  %v7250_v34 = vld.sshfl [vmem:[#allocation4 + $0xd0] sm:$0x3 pattern:$0x76325410] }
 0x414   :  { %v3076_v39 = vpop.permute.xlu1 %3075  ;;  %v4294_v62 = vpop.f32.mrb[86].mxu0 }
 0x415   :  { %v1318_v26 = vpop.permute.xlu0 %1317  ;;  %3238 = vst.msk [vmem:[#allocation2 + $0x1c8] sm:$0xff] %vm3180_vm11, %v3076_v39  ;;  %v4295_v59 = vadd.f32 %v11764_v15, %v4294_v62  ;;  %v7592_v21 = vpop.f32.mrb[87].mxu0  ;;  %7789 = vmatpush1.bf16.msra.mxu1 %v7788_v49  ;;  %v6084_v62 = vld [vmem:[%s13906_s3 + $0x5c8] sm:$0xff] }
 0x416   :  { %1479 = vst.msk [vmem:[#allocation2 + $0x1d0] sm:$0xff] %vm1420_vm7, %v1318_v26  ;;  %5653 = vrot.lane.b32.xlu1 %v7254_v9, %s8230_s13  ;;  %7791 = vmatprep.subr.bf16.mxu1 %v7790_v10  ;;  %v7794_v51 = vpack.c.bf16 %v6088_v61, %v6084_v62  ;;  %v6087_v21 = vld [vmem:[%s13906_s3 + $0x5e0] sm:$0xff]  ;;  %v7237_v10 = vld.sshfl [vmem:[#allocation4 + $0x44] sm:$0x3 pattern:$0x76325410] }
 0x417   :  { %5560 = vrot.lane.b32.xlu0 %v7247_v6, %s8230_s13  ;;  %v11771_v30 = vmax.f32 %v4295_v59, 0.0  ;;  %v6075_v6 = vld [vmem:[%s13906_s3 + $0x580] sm:$0xff] }
 0x418   :  { %v3516_v5 = vpop.permute.xlu1 %3515  ;;  %v7792_v45 = vpack.c.bf16 %v6079_v52, %v6075_v6  ;;  %v6083_v59 = vld [vmem:[%s13906_s3 + $0x5c0] sm:$0xff]  ;;  %v6112_v6 = vld [vmem:[%s13906_s3 + $0x6a8] sm:$0xff] }
 0x419   :  { %v1758_v35 = vpop.permute.xlu0 %1757  ;;  %3678 = vst.msk [vmem:[#allocation2 + $0x1c8] sm:$0xff] %vm13914_vm12, %v3516_v5  ;;  %4559 = vst [vmem:[#allocation3 + $0x158] sm:$0xff] %v11771_v30  ;;  %v7796_v5 = vpack.c.bf16 %v6087_v21, %v6083_v59  ;;  %v6107_v52 = vld [vmem:[%s13906_s3 + $0x680] sm:$0xff]  ;;  %v6120_v59 = vld [vmem:[%s13906_s3 + $0x6e8] sm:$0xff] }
 0x41a   :  { %1919 = vst.msk [vmem:[#allocation2 + $0x1d0] sm:$0xff] %vm1860_vm8, %v1758_v35  ;;  %5480 = vrot.lane.b32.xlu1 %v7241_v20, %s8241_s24  ;;  %7793 = vmatpush1.bf16.msra.mxu1 %v7792_v45  ;;  %v4903_v35 = vmax.f32 %v11451_v1, %v11625_v2  ;;  %v7798_v1 = vpack.c.bf16 %v6096_v44, %v6092_v11  ;;  %v6091_v2 = vld [vmem:[%s13906_s3 + $0x600] sm:$0xff]  ;;  %v7242_v45 = vld.sshfl [vmem:[#allocation4 + $0x5c] sm:$0x3 pattern:$0x76325410] }
 0x41b   :  { %5383 = vrot.lane.b32.xlu0 %v7234_v60, %s8241_s24  ;;  %7795 = vmatprep.subr.bf16.mxu1 %v7794_v51  ;;  %v7800_v18 = vpack.c.bf16 %v6095_v48, %v6091_v2  ;;  %v6116_v51 = vld [vmem:[%s13906_s3 + $0x6c8] sm:$0xff]  ;;  %v4904_v44 = vmax.f32 %v11509_v46, %v11667_v37  ;;  %v6123_v37 = vld [vmem:[%s13906_s3 + $0x700] sm:$0xff] }
 0x41c   :  { %v2198_v32 = vpop.permute.xlu1 %2197  ;;  %v6124_v48 = vld [vmem:[%s13906_s3 + $0x708] sm:$0xff] }
 0x41d   :  { %v440_v50 = vpop.permute.xlu0 %439  ;;  %2359 = vst.msk [vmem:[#allocation2 + $0x1d0] sm:$0xff] %vm2300_vm9, %v2198_v32  ;;  %v4962_v32 = vmax.f32 %v4903_v35, %v11627_v58  ;;  %v6099_v58 = vld [vmem:[%s13906_s3 + $0x640] sm:$0xff] }
 0x41e   :  { %600 = vst.msk [vmem:[#allocation2 + $0x1d8] sm:$0xff] %vm540_vm5, %v440_v50  ;;  %7797 = vmatpush1.bf16.msra.mxu1 %v7796_v5  ;;  %v7804_v49 = vpack.c.bf16 %v6103_v3, %v6099_v58  ;;  %v6136_v58 = vld [vmem:[%s13906_s3 + $0x768] sm:$0xff] }
 0x41f   :  { %5573 = vrot.lane.b32.xlu0 %v7248_v4, %s8241_s24  ;;  %7799 = vmatprep.subr.bf16.mxu1 %v7798_v1  ;;  %v6104_v4 = vld [vmem:[%s13906_s3 + $0x668] sm:$0xff] }
 0x420   :  { %v2638_v33 = vpop.permute.xlu1 %2637  ;;  %v3752_v25 = vld [vmem:[#allocation2 + $0x1c8] sm:$0xff]  ;;  %v4686_v0 = vld [vmem:[#allocation3 + $0x152] sm:$0xff]  ;;  %v7802_v16 = vpack.c.bf16 %v6104_v4, %v6100_v24  ;;  %v4963_v24 = vmax.f32 %v4904_v44, %v11669_v57 }
 0x421   :  { %v880_v41 = vpop.permute.xlu0 %879  ;;  %v11813_v55 = vld [vmem:[#allocation3 + $0x154] sm:$0xff]  ;;  %2799 = vst.msk [vmem:[#allocation2 + $0x1d0] sm:$0xff] %vm2740_vm10, %v2638_v33  ;;  %7633 = vmatmul.mubr.msk.f32.gmra.mrb[114].mxu0 %vm13913_vm13, %v3752_v25  ;;  %v11820_v22 = vmax.f32 %v4485_v7, %v4686_v0  ;;  %v5072_v33 = vmax.f32 %v4962_v32, %v11636_v40 }
 0x422   :  { %1040 = vst.msk [vmem:[#allocation2 + $0x1d8] sm:$0xff] %vm980_vm6, %v880_v41  ;;  %v5130_v23 = vmax.f32 %v5071_v28, %v11813_v55  ;;  %7635 = vmatprep.mubr.msk.f32.mxu0 %vm13911_vm1, %v8235_v14  ;;  %v5020_v39 = vld [vmem:[#allocation3 + $0x156] sm:$0xff]  ;;  %7801 = vmatpush1.bf16.msra.mxu1 %v7800_v18  ;;  %v6128_v18 = vld [vmem:[%s13906_s3 + $0x728] sm:$0xff] }
 0x423   :  { %5397 = vrot.lane.b32.xlu0 %v7235_v12, %s8242_s22  ;;  %v4851_v7 = vmax.f32 %v11820_v22, %v11813_v55  ;;  %7803 = vmatprep.subr.bf16.mxu1 %v7802_v16  ;;  %v7814_v46 = vpack.c.bf16 %v6128_v18, %v6124_v48  ;;  %v6127_v32 = vld [vmem:[%s13906_s3 + $0x720] sm:$0xff]  ;;  %v6132_v16 = vld [vmem:[%s13906_s3 + $0x748] sm:$0xff] }
 0x424   :  { %v5189_v26 = vmax.f32 %v5130_v23, %v5020_v39  ;;  %v3078_v9 = vpop.permute.xlu1 %3077  ;;  %v4299_v38 = vpop.f32.mrb[88].mxu0  ;;  %v6111_v39 = vld [vmem:[%s13906_s3 + $0x6a0] sm:$0xff]  ;;  %v7818_v3 = vpack.c.bf16 %v6136_v58, %v6132_v16 }
 0x425   :  { %v1320_v27 = vpop.permute.xlu0 %1319  ;;  %3239 = vst.msk [vmem:[#allocation2 + $0x1d0] sm:$0xff] %vm3180_vm11, %v3078_v9  ;;  %v4300_v63 = vadd.f32 %v11764_v15, %v4299_v38  ;;  %v7595_v31 = vpop.f32.mrb[89].mxu0  ;;  %v7808_v9 = vpack.c.bf16 %v6111_v39, %v6107_v52  ;;  %v7251_v38 = vld.sshfl [vmem:[#allocation4 + $0xd4] sm:$0x3 pattern:$0x76325410] }
 0x426   :  { %1480 = vst.msk [vmem:[#allocation2 + $0x1d8] sm:$0xff] %vm1420_vm7, %v1320_v27  ;;  %v5253_v60 = vmax.f32 %v5189_v26, %v11771_v30  ;;  %7805 = vmatpush1.bf16.msra.mxu1 %v7804_v49  ;;  %v7806_v26 = vpack.c.bf16 %v6112_v6, %v6108_v17  ;;  %v6119_v31 = vld [vmem:[%s13906_s3 + $0x6e0] sm:$0xff] }
 0x427   :  { %5586 = vrot.lane.b32.xlu0 %v7249_v43, %s8242_s22  ;;  %v11853_v56 = vmax.f32 %v4300_v63, 0.0  ;;  %v6115_v63 = vld [vmem:[%s13906_s3 + $0x6c0] sm:$0xff] }
 0x428   :  { %5308 = vst [vmem:[#allocation4 + $0x110] sm:$0xff] %v5253_v60  ;;  %v3518_v53 = vpop.permute.xlu1 %3517  ;;  %7807 = vmatprep.subr.bf16.mxu1 %v7806_v26  ;;  %v7810_v60 = vpack.c.bf16 %v6120_v59, %v6116_v51  ;;  %v7812_v11 = vpack.c.bf16 %v6119_v31, %v6115_v63  ;;  %v6131_v57 = vld [vmem:[%s13906_s3 + $0x740] sm:$0xff] }
 0x429   :  { %v1760_v20 = vpop.permute.xlu0 %1759  ;;  %3679 = vst.msk [vmem:[#allocation2 + $0x1d0] sm:$0xff] %vm13914_vm12, %v3518_v53  ;;  %4560 = vst [vmem:[#allocation3 + $0x160] sm:$0xff] %v11853_v56  ;;  %v6135_v49 = vld [vmem:[%s13906_s3 + $0x760] sm:$0xff] }
 0x42a   :  { %1920 = vst.msk [vmem:[#allocation2 + $0x1d8] sm:$0xff] %vm1860_vm8, %v1760_v20  ;;  %7809 = vmatpush1.bf16.msra.mxu1 %v7808_v9  ;;  %v6139_v6 = vld [vmem:[%s13906_s3 + $0x780] sm:$0xff] }
 0x42b   :  { %5411 = vrot.lane.b32.xlu0 %v7236_v8, %s8237_s16  ;;  %7811 = vmatprep.subr.bf16.mxu1 %v7810_v60  ;;  %v6143_v52 = vld [vmem:[%s13906_s3 + $0x7a0] sm:$0xff] }
 0x42c   :  { %v2200_v50 = vpop.permute.xlu1 %2199  ;;  %v6151_v60 = vld [vmem:[%s13906_s3 + $0x7e0] sm:$0xff] }
 0x42d   :  { %v442_v13 = vpop.permute.xlu0 %441  ;;  %2360 = vst.msk [vmem:[#allocation2 + $0x1d8] sm:$0xff] %vm2300_vm9, %v2200_v50  ;;  %v7816_v50 = vpack.c.bf16 %v6127_v32, %v6123_v37 }
 0x42e   :  { %601 = vst.msk [vmem:[#allocation2 + $0x1e0] sm:$0xff] %vm540_vm5, %v442_v13  ;;  %7813 = vmatpush1.bf16.msra.mxu1 %v7812_v11  ;;  %v7243_v13 = vld.sshfl [vmem:[#allocation4 + $0x88] sm:$0x3 pattern:$0x76325410] }
 0x42f   :  { %5599 = vrot.lane.b32.xlu0 %v7250_v34, %s8237_s16  ;;  %v7255_v28 = vld.sshfl [vmem:[#allocation4 + $0x110] sm:$0x3 pattern:$0x76325410]  ;;  %7815 = vmatprep.subr.bf16.mxu1 %v7814_v46 }
 0x430   :  { %5666 = vrot.lane.b32.xlu1 %v7255_v28, %s8241_s24  ;;  %v2640_v41 = vpop.permute.xlu1 %2639  ;;  %v3753_v29 = vld [vmem:[#allocation2 + $0x1d0] sm:$0xff]  ;;  %v4687_v0 = vld [vmem:[#allocation3 + $0x15a] sm:$0xff]  ;;  %v7820_v28 = vpack.c.bf16 %v6135_v49, %v6131_v57 }
 0x431   :  { %v882_v25 = vpop.permute.xlu0 %881  ;;  %v4797_v12 = vld [vmem:[#allocation3 + $0x15c] sm:$0xff]  ;;  %2800 = vst.msk [vmem:[#allocation2 + $0x1d8] sm:$0xff] %vm2740_vm10, %v2640_v41  ;;  %7636 = vmatmul.mubr.msk.f32.gmra.mrb[116].mxu0 %vm13913_vm13, %v3753_v29  ;;  %v4742_v40 = vmax.f32 %v11771_v30, %v4687_v0  ;;  %v5073_v41 = vmax.f32 %v4963_v24, %v11676_v36 }
 0x432   :  { %1041 = vst.msk [vmem:[#allocation2 + $0x1e0] sm:$0xff] %vm980_vm6, %v882_v25  ;;  %v5131_v23 = vmax.f32 %v5072_v33, %v4797_v12  ;;  %7638 = vmatprep.mubr.msk.f32.mxu0 %vm13911_vm1, %v8235_v14  ;;  %v5021_v30 = vld [vmem:[#allocation3 + $0x15e] sm:$0xff]  ;;  %v7256_v20 = vld.sshfl [vmem:[#allocation4 + $0x114] sm:$0x3 pattern:$0x76325410]  ;;  %7817 = vmatpush1.bf16.msra.mxu1 %v7816_v50 }
 0x433   :  { %5425 = vrot.lane.b32.xlu0 %v7237_v10, %s8243_s10  ;;  %v11908_v27 = vmax.f32 %v4742_v40, %v4797_v12  ;;  %7819 = vmatprep.subr.bf16.mxu1 %v7818_v3  ;;  %v6140_v0 = vld [vmem:[%s13906_s3 + $0x788] sm:$0xff] }
 0x434   :  { %v5190_v43 = vmax.f32 %v5131_v23, %v5021_v30  ;;  %5493 = vrot.lane.b32.xlu1 %v7242_v45, %s8242_s22  ;;  %v3080_v62 = vpop.permute.xlu1 %3079  ;;  %v4304_v21 = vpop.f32.mrb[90].mxu0  ;;  %v6144_v23 = vld [vmem:[%s13906_s3 + $0x7a8] sm:$0xff]  ;;  %v7244_v30 = vld.sshfl [vmem:[#allocation4 + $0x8c] sm:$0x3 pattern:$0x76325410]  ;;  %v7824_v45 = vpack.c.bf16 %v6143_v52, %v6139_v6 }
 0x435   :  { %v1322_v61 = vpop.permute.xlu0 %1321  ;;  %3240 = vst.msk [vmem:[#allocation2 + $0x1d8] sm:$0xff] %vm3180_vm11, %v3080_v62  ;;  %v4305_v35 = vadd.f32 %v11764_v15, %v4304_v21  ;;  %v7598_v53 = vpop.f32.mrb[91].mxu0  ;;  %v6147_v21 = vld [vmem:[%s13906_s3 + $0x7c0] sm:$0xff] }
 0x436   :  { %1481 = vst.msk [vmem:[#allocation2 + $0x1e0] sm:$0xff] %vm1420_vm7, %v1322_v61  ;;  %v5254_v5 = vmax.f32 %v5190_v43, %v11853_v56  ;;  %7821 = vmatpush1.bf16.msra.mxu1 %v7820_v28  ;;  %v6148_v61 = vld [vmem:[%s13906_s3 + $0x7c8] sm:$0xff] }
 0x437   :  { %5612 = vrot.lane.b32.xlu0 %v7251_v38, %s8243_s10  ;;  %v11930_v8 = vmax.f32 %v4305_v35, 0.0  ;;  %v6152_v38 = vld [vmem:[%s13906_s3 + $0x7e8] sm:$0xff]  ;;  %v7828_v35 = vpack.c.bf16 %v6151_v60, %v6147_v21 }
 0x438   :  { %5309 = vst [vmem:[#allocation4 + $0x118] sm:$0xff] %v5254_v5  ;;  %5679 = vrot.lane.b32.xlu1 %v7256_v20, %s8242_s22  ;;  %v3520_v1 = vpop.permute.xlu1 %3519  ;;  %v7826_v59 = vpack.c.bf16 %v6152_v38, %v6148_v61  ;;  %v4905_v20 = vmax.f32 %v11553_v47, %v11728_v54 }
 0x439   :  { %v1762_v2 = vpop.permute.xlu0 %1761  ;;  %3680 = vst.msk [vmem:[#allocation2 + $0x1d8] sm:$0xff] %vm13914_vm12, %v3520_v1  ;;  %4561 = vst [vmem:[#allocation3 + $0x168] sm:$0xff] %v11930_v8 }
 0x43a   :  { %1921 = vst.msk [vmem:[#allocation2 + $0x1e0] sm:$0xff] %vm1860_vm8, %v1762_v2  ;;  %v4964_v2 = vmax.f32 %v4905_v20, %v11730_v42 }
 0x43c   :  { %5506 = vrot.lane.b32.xlu1 %v7243_v13, %s8237_s16  ;;  %v2202_v4 = vpop.permute.xlu1 %2201  ;;  %v5074_v46 = vmax.f32 %v4964_v2, %v11743_v19 }
 0x43d   :  { %v444_v34 = vpop.permute.xlu0 %443  ;;  %2361 = vst.msk [vmem:[#allocation2 + $0x1e0] sm:$0xff] %vm2300_vm9, %v2202_v4 }
 0x43e   :  { %602 = vst.msk [vmem:[#allocation2 + $0x1e8] sm:$0xff] %vm540_vm5, %v444_v34 }
 0x43f   :  { %v7257_v33 = vld.sshfl [vmem:[#allocation4 + $0x118] sm:$0x3 pattern:$0x76325410] }
 0x440   :  { %5692 = vrot.lane.b32.xlu1 %v7257_v33, %s8237_s16  ;;  %v2642_v25 = vpop.permute.xlu1 %2641  ;;  %v3754_v17 = vld [vmem:[#allocation2 + $0x1d8] sm:$0xff]  ;;  %v4688_v12 = vld [vmem:[#allocation3 + $0x162] sm:$0xff] }
 0x441   :  { %v884_v29 = vpop.permute.xlu0 %883  ;;  %v4798_v10 = vld [vmem:[#allocation3 + $0x164] sm:$0xff]  ;;  %2801 = vst.msk [vmem:[#allocation2 + $0x1e0] sm:$0xff] %vm2740_vm10, %v2642_v25  ;;  %7639 = vmatmul.mubr.msk.f32.gmra.mrb[118].mxu0 %vm13913_vm13, %v3754_v17  ;;  %v4743_v40 = vmax.f32 %v11853_v56, %v4688_v12  ;;  %v7822_v56 = vpack.c.bf16 %v6144_v23, %v6140_v0 }
 0x442   :  { %1042 = vst.msk [vmem:[#allocation2 + $0x1e8] sm:$0xff] %vm980_vm6, %v884_v29  ;;  %v5132_v36 = vmax.f32 %v5073_v41, %v4798_v10  ;;  %7641 = vmatprep.mubr.msk.f32.mxu0 %vm13911_vm1, %v8235_v14  ;;  %v5022_v39 = vld [vmem:[#allocation3 + $0x166] sm:$0xff]  ;;  %v7258_v53 = vld.sshfl [vmem:[#allocation4 + $0x11c] sm:$0x3 pattern:$0x76325410] }
 0x443   :  { %v11984_v26 = vmax.f32 %v4743_v40, %v4798_v10  ;;  %7823 = vmatprep.subr.bf16.mxu1 %v7822_v56 }
 0x444   :  { %v5191_v9 = vmax.f32 %v5132_v36, %v5022_v39  ;;  %5519 = vrot.lane.b32.xlu1 %v7244_v30, %s8243_s10  ;;  %v3082_v43 = vpop.permute.xlu1 %3081  ;;  %v4309_v51 = vpop.f32.mrb[92].mxu0  ;;  %7825 = vmatpush1.bf16.msra.mxu1 %v7824_v45 }
 0x445   :  { %v1324_v62 = vpop.permute.xlu0 %1323  ;;  %3241 = vst.msk [vmem:[#allocation2 + $0x1e0] sm:$0xff] %vm3180_vm11, %v3082_v43  ;;  %v4310_v31 = vadd.f32 %v11764_v15, %v4309_v51  ;;  %v7601_v5 = vpop.f32.mrb[93].mxu0  ;;  %7827 = vmatprep.subr.bf16.mxu1 %v7826_v59 }
 0x446   :  { %1482 = vst.msk [vmem:[#allocation2 + $0x1e8] sm:$0xff] %vm1420_vm7, %v1324_v62  ;;  %v5255_v63 = vmax.f32 %v5191_v9, %v11930_v8 }
 0x447   :  { %v4489_v11 = vmax.f32 %v4310_v31, 0.0 }
 0x448   :  { %5310 = vst [vmem:[#allocation4 + $0x120] sm:$0xff] %v5255_v63  ;;  %5705 = vrot.lane.b32.xlu1 %v7258_v53, %s8243_s10  ;;  %v3522_v44 = vpop.permute.xlu1 %3521  ;;  %7829 = vmatpush1.bf16.msra.mxu1 %v7828_v35 }
 0x449   :  { %v1764_v1 = vpop.permute.xlu0 %1763  ;;  %3681 = vst.msk [vmem:[#allocation2 + $0x1e0] sm:$0xff] %vm13914_vm12, %v3522_v44  ;;  %4562 = vst [vmem:[#allocation3 + $0x170] sm:$0xff] %v4489_v11 }
 0x44a   :  { %1922 = vst.msk [vmem:[#allocation2 + $0x1e8] sm:$0xff] %vm1860_vm8, %v1764_v1 }
 0x44c   :  { %v2204_v48 = vpop.permute.xlu1 %2203 }
 0x44d   :  { %v446_v18 = vpop.permute.xlu0 %445  ;;  %2362 = vst.msk [vmem:[#allocation2 + $0x1e8] sm:$0xff] %vm2300_vm9, %v2204_v48 }
 0x44e   :  { %603 = vst.msk [vmem:[#allocation2 + $0x1f0] sm:$0xff] %vm540_vm5, %v446_v18 }
 0x44f   :  { %v7259_v47 = vld.sshfl [vmem:[#allocation4 + $0x124] sm:$0x3 pattern:$0x76325410]  ;;  %v5709_v54 = vld [vmem:[#allocation4 + $0x120] sm:$0x3] }
 0x450   :  { %5720 = vrot.lane.b32.xlu0 %v7259_v47, %s8239_s23  ;;  %v2644_v37 = vpop.permute.xlu1 %2643  ;;  %v3755_v50 = vld [vmem:[#allocation2 + $0x1e0] sm:$0xff]  ;;  %5710 = vst.msk [vmem:[#allocation5 + $0x8] sm:$0x3] %vm5330_vm14, %v5709_v54  ;;  %v4689_v13 = vld [vmem:[#allocation3 + $0x16a] sm:$0xff] }
 0x451   :  { %v886_v32 = vpop.permute.xlu0 %885  ;;  %v4799_v24 = vld [vmem:[#allocation3 + $0x16c] sm:$0xff]  ;;  %2802 = vst.msk [vmem:[#allocation2 + $0x1e8] sm:$0xff] %vm2740_vm10, %v2644_v37  ;;  %7642 = vmatmul.mubr.msk.f32.gmra.mrb[120].mxu0 %vm13913_vm13, %v3755_v50  ;;  %v4744_v42 = vmax.f32 %v11930_v8, %v4689_v13 }
 0x452   :  { %1043 = vst.msk [vmem:[#allocation2 + $0x1f0] sm:$0xff] %vm980_vm6, %v886_v32  ;;  %v5133_v4 = vmax.f32 %v5074_v46, %v4799_v24  ;;  %7644 = vmatprep.mubr.msk.f32.mxu0 %vm13911_vm1, %v8235_v14  ;;  %v5023_v19 = vld [vmem:[#allocation3 + $0x16e] sm:$0xff] }
 0x453   :  { %v12020_v34 = vmax.f32 %v4744_v42, %v4799_v24 }
 0x454   :  { %v5192_v16 = vmax.f32 %v5133_v4, %v5023_v19  ;;  %v3084_v58 = vpop.permute.xlu1 %3083  ;;  %v4314_v57 = vpop.f32.mrb[94].mxu0 }
 0x455   :  { %v1326_v3 = vpop.permute.xlu0 %1325  ;;  %3242 = vst.msk [vmem:[#allocation2 + $0x1e8] sm:$0xff] %vm3180_vm11, %v3084_v58  ;;  %v4315_v28 = vadd.f32 %v11764_v15, %v4314_v57  ;;  %v7604_v33 = vpop.f32.mrb[95].mxu0 }
 0x456   :  { %1483 = vst.msk [vmem:[#allocation2 + $0x1f0] sm:$0xff] %vm1420_vm7, %v1326_v3  ;;  %v5256_v49 = vmax.f32 %v5192_v16, %v4489_v11 }
 0x457   :  { %v4490_v8 = vmax.f32 %v4315_v28, 0.0 }
 0x458   :  { %5311 = vst [vmem:[#allocation4 + $0x128] sm:$0xff] %v5256_v49  ;;  %v3524_v41 = vpop.permute.xlu1 %3523 }
 0x459   :  { %v1766_v25 = vpop.permute.xlu0 %1765  ;;  %3682 = vst.msk [vmem:[#allocation2 + $0x1e8] sm:$0xff] %vm13914_vm12, %v3524_v41  ;;  %4563 = vst [vmem:[#allocation3 + $0x178] sm:$0xff] %v4490_v8 }
 0x45a   :  { %1923 = vst.msk [vmem:[#allocation2 + $0x1f0] sm:$0xff] %vm1860_vm8, %v1766_v25 }
 0x45c   :  { %v2646_v29 = vpop.permute.xlu1 %2645 }
 0x45d   :  { %v2206_v17 = vpop.permute.xlu0 %2205 }
 0x45e   :  { %2363 = vst.msk [vmem:[#allocation2 + $0x1f0] sm:$0xff] %vm2300_vm9, %v2206_v17 }
 0x45f   :  { %2803 = vst.msk [vmem:[#allocation2 + $0x1f0] sm:$0xff] %vm2740_vm10, %v2646_v29  ;;  %v7260_v0 = vld.sshfl [vmem:[#allocation4 + $0x128] sm:$0x3 pattern:$0x76325410] }
 0x460   :  { %5733 = vrot.lane.b32.xlu0 %v7260_v0, %s8240_s11  ;;  %v3526_v12 = vpop.permute.xlu1 %3525  ;;  %v3756_v40 = vld [vmem:[#allocation2 + $0x1e8] sm:$0xff]  ;;  %v12030_v36 = vld [vmem:[#allocation3 + $0x172] sm:$0xff] }
 0x461   :  { %v3086_v10 = vpop.permute.xlu0 %3085  ;;  %v12032_v23 = vld [vmem:[#allocation3 + $0x174] sm:$0xff]  ;;  %7645 = vmatmul.mubr.msk.f32.gmra.mrb[122].mxu0 %vm13913_vm13, %v3756_v40 }
 0x462   :  { %3243 = vst.msk [vmem:[#allocation2 + $0x1f0] sm:$0xff] %vm3180_vm11, %v3086_v10  ;;  %7647 = vmatprep.mubr.msk.f32.mxu0 %vm13911_vm1, %v8235_v14  ;;  %v12039_v6 = vld [vmem:[#allocation3 + $0x176] sm:$0xff] }
 0x463   :  { %3683 = vst.msk [vmem:[#allocation2 + $0x1f0] sm:$0xff] %vm13914_vm12, %v3526_v12  ;;  %v4910_v12 = vmax.f32 %v4851_v7, %v12030_v36 }
 0x464   :  { %v888_v52 = vpop.permute.xlu1 %887  ;;  %v4319_v30 = vpop.f32.mrb[96].mxu0 }
 0x465   :  { %v448_v39 = vpop.permute.xlu0 %447  ;;  %v4320_v56 = vadd.f32 %v11764_v15, %v4319_v30  ;;  %v7607_v45 = vpop.f32.mrb[97].mxu0 }
 0x466   :  { %604 = vst.msk [vmem:[#allocation2 + $0x1f8] sm:$0xff] %vm540_vm5, %v448_v39 }
 0x467   :  { %1044 = vst.msk [vmem:[#allocation2 + $0x1f8] sm:$0xff] %vm980_vm6, %v888_v52  ;;  %v4491_v9 = vmax.f32 %v4320_v56, 0.0  ;;  %v4969_v52 = vmax.f32 %v4910_v12, %v12032_v23 }
 0x468   :  { %v1768_v43 = vpop.permute.xlu1 %1767 }
 0x469   :  { %v1328_v62 = vpop.permute.xlu0 %1327  ;;  %4564 = vst [vmem:[#allocation3 + $0x180] sm:$0xff] %v4491_v9  ;;  %v5079_v30 = vmax.f32 %v4969_v52, %v12039_v6 }
 0x46a   :  { %1484 = vst.msk [vmem:[#allocation2 + $0x1f8] sm:$0xff] %vm1420_vm7, %v1328_v62  ;;  %v3757_v61 = vld [vmem:[#allocation2 + $0x1f0] sm:$0xff] }
 0x46b   :  { %1924 = vst.msk [vmem:[#allocation2 + $0x1f8] sm:$0xff] %vm1860_vm8, %v1768_v43  ;;  %7648 = vmatmul.mubr.msk.f32.gmra.mrb[124].mxu0 %vm13913_vm13, %v3757_v61 }
 0x46c   :  { %7650 = vmatprep.mubr.msk.f32.mxu0 %vm13911_vm1, %v8235_v14  ;;  %v2648_v38 = vpop.permute.xlu1 %2647 }
 0x46d   :  { %v2208_v51 = vpop.permute.xlu0 %2207 }
 0x46e   :  { %2364 = vst.msk [vmem:[#allocation2 + $0x1f8] sm:$0xff] %vm2300_vm9, %v2208_v51 }
 0x46f   :  { %2804 = vst.msk [vmem:[#allocation2 + $0x1f8] sm:$0xff] %vm2740_vm10, %v2648_v38 }
 0x470   :  { %v3528_v59 = vpop.permute.xlu1 %3527  ;;  %v12051_v60 = vld [vmem:[#allocation3 + $0x17a] sm:$0xff] }
 0x471   :  { %v3088_v21 = vpop.permute.xlu0 %3087  ;;  %v12053_v63 = vld [vmem:[#allocation3 + $0x17c] sm:$0xff]  ;;  %v4911_v38 = vmax.f32 %v11908_v27, %v12051_v60 }
 0x472   :  { %3244 = vst.msk [vmem:[#allocation2 + $0x1f8] sm:$0xff] %vm3180_vm11, %v3088_v21  ;;  %v12057_v31 = vld [vmem:[#allocation3 + $0x17e] sm:$0xff] }
 0x473   :  { %3684 = vst.msk [vmem:[#allocation2 + $0x1f8] sm:$0xff] %vm13914_vm12, %v3528_v59  ;;  %vm5428_vm12 = vcmask 1042304  }
 0x474   :  { %v5442_v35 = vpop.permute.xlu1 %5441  ;;  %v4324_v53 = vpop.f32.mrb[98].mxu0 }
 0x475   :  { %v5342_v5 = vpop.permute.xlu0 %5341  ;;  %5444 = vst.msk [vmem:[#allocation5 + $0x2] sm:$0x3] %vm5344_vm15, %v5442_v35  ;;  %v4325_v20 = vadd.f32 %v11764_v15, %v4324_v53  ;;  %v7610_v11 = vpop.f32.mrb[99].mxu0 }
 0x476   :  { %5345 = vst.msk [vmem:[#allocation5] sm:$0x3] %vm5344_vm15, %v5342_v5  ;;  %v4970_v5 = vmax.f32 %v4911_v38, %v12053_v63 }
 0x477   :  { %v4492_v44 = vmax.f32 %v4325_v20, 0.0 }
 0x478   :  { %v5628_v2 = vpop.permute.xlu1 %5627  ;;  %v5080_v20 = vmax.f32 %v4970_v5, %v12057_v31 }
 0x479   :  { %v5535_v1 = vpop.permute.xlu0 %5534  ;;  %5630 = vst.msk [vmem:[#allocation5 + $0x6] sm:$0x3] %vm5344_vm15, %v5628_v2  ;;  %4565 = vst [vmem:[#allocation3 + $0x188] sm:$0xff] %v4492_v44 }
 0x47a   :  { %5537 = vst.msk [vmem:[#allocation5 + $0x4] sm:$0x3] %vm5344_vm15, %v5535_v1  ;;  %v3758_v48 = vld [vmem:[#allocation2 + $0x1f8] sm:$0xff] }
 0x47b   :  { %7651 = vmatmul.mubr.msk.f32.gmra.mrb[126].mxu0 %vm13913_vm13, %v3758_v48  ;;  %vm5414_vm13 = vcmask 911104  }
 0x47c   :  { %7653 = vmatprep.mubr.msk.f32.mxu0 %vm13911_vm1, %v8235_v14  ;;  %v5455_v47 = vpop.permute.xlu1 %5454  ;;  %vm5400_vm1 = vcmask 779904  }
 0x47d   :  { %v5356_v18 = vpop.permute.xlu0 %5355  ;;  %5457 = vst.msk [vmem:[#allocation5 + $0x2] sm:$0x3] %vm5358_vm2, %v5455_v47 }
 0x47e   :  { %5359 = vst.msk [vmem:[#allocation5] sm:$0x3] %vm5358_vm2, %v5356_v18 }
 0x480   :  { %v5641_v46 = vpop.permute.xlu1 %5640  ;;  %v12069_v37 = vld [vmem:[#allocation3 + $0x182] sm:$0xff] }
 0x481   :  { %v5548_v54 = vpop.permute.xlu0 %5547  ;;  %v12071_v32 = vld [vmem:[#allocation3 + $0x184] sm:$0xff]  ;;  %5643 = vst.msk [vmem:[#allocation5 + $0x6] sm:$0x3] %vm5358_vm2, %v5641_v46 }
 0x482   :  { %5550 = vst.msk [vmem:[#allocation5 + $0x4] sm:$0x3] %vm5358_vm2, %v5548_v54  ;;  %v12075_v50 = vld [vmem:[#allocation3 + $0x186] sm:$0xff] }
 0x484   :  { %v5468_v24 = vpop.permute.xlu1 %5467  ;;  %v4329_v42 = vpop.f32.mrb[100].mxu0 }
 0x485   :  { %v5370_v13 = vpop.permute.xlu0 %5369  ;;  %5470 = vst.msk [vmem:[#allocation5 + $0x2] sm:$0x3] %vm5372_vm3, %v5468_v24  ;;  %v4330_v4 = vadd.f32 %v11764_v15, %v4329_v42  ;;  %v7613_v19 = vpop.f32.mrb[101].mxu0 }
 0x486   :  { %5373 = vst.msk [vmem:[#allocation5] sm:$0x3] %vm5372_vm3, %v5370_v13  ;;  %v4912_v13 = vmax.f32 %v11984_v26, %v12069_v37  ;;  %v6293_v19 = vlaneseq }
 0x487   :  { %v4493_v16 = vmax.f32 %v4330_v4, 0.0 }
 0x488   :  { %v5654_v3 = vpop.permute.xlu1 %5653  ;;  %v4971_v4 = vmax.f32 %v4912_v13, %v12071_v32  ;;  %v680_v13 = vld [vmem:[%s13903_s0 + $0x20c] sm:$0xff] }
 0x489   :  { %v5561_v58 = vpop.permute.xlu0 %5560  ;;  %5656 = vst.msk [vmem:[#allocation5 + $0x6] sm:$0x3] %vm5372_vm3, %v5654_v3  ;;  %4566 = vst [vmem:[#allocation3 + $0x190] sm:$0xff] %v4493_v16  ;;  %v8244_v16 = vmov 1983009808  }
 0x48a   :  { %5563 = vst.msk [vmem:[#allocation5 + $0x4] sm:$0x3] %vm5372_vm3, %v5561_v58  ;;  %v6317_v58 = vunpack.c.l.s4 %v8244_v16 }
 0x48c   :  { %v5481_v49 = vpop.permute.xlu1 %5480  ;;  %v6318_v26 = vunpack.c.0.s8 %v6317_v58 }
 0x48d   :  { %v5384_v57 = vpop.permute.xlu0 %5383  ;;  %5483 = vst.msk [vmem:[#allocation5 + $0x2] sm:$0x3] %vm5386_vm4, %v5481_v49 }
 0x48e   :  { %5387 = vst.msk [vmem:[#allocation5] sm:$0x3] %vm5386_vm4, %v5384_v57  ;;  %v12125_v57 = vshrl.u32 %v6293_v19, 7  ;;  %v12197_v19 = vld [vmem:[%s13903_s0 + $0x22c] sm:$0xff] }
 0x490   :  { %v12084_v33 = vld [vmem:[#allocation3 + $0x18a] sm:$0xff] }
 0x491   :  { %v5574_v28 = vpop.permute.xlu0 %5573  ;;  %v12086_v8 = vld [vmem:[#allocation3 + $0x18c] sm:$0xff] }
 0x492   :  { %5576 = vst.msk [vmem:[#allocation5 + $0x4] sm:$0x3] %vm5386_vm4, %v5574_v28  ;;  %v12089_v41 = vld [vmem:[#allocation3 + $0x18e] sm:$0xff] }
 0x494   :  { %v4334_v29 = vpop.f32.mrb[102].mxu0 }
 0x495   :  { %v5398_v25 = vpop.permute.xlu0 %5397  ;;  %v4335_v17 = vadd.f32 %v11764_v15, %v4334_v29  ;;  %v7616_v0 = vpop.f32.mrb[103].mxu0 }
 0x496   :  { %5401 = vst.msk [vmem:[#allocation5] sm:$0x3] %vm5400_vm1, %v5398_v25 }
 0x497   :  { %v4494_v10 = vmax.f32 %v4335_v17, 0.0 }
 0x499   :  { %v5587_v40 = vpop.permute.xlu0 %5586  ;;  %4567 = vst [vmem:[#allocation3 + $0x198] sm:$0xff] %v4494_v10 }
 0x49a   :  { %5589 = vst.msk [vmem:[#allocation5 + $0x4] sm:$0x3] %vm5400_vm1, %v5587_v40  ;;  %v12132_v40 = vsub.s32 %v6318_v26, %v12125_v57  ;;  %v241_v26 = vld [vmem:[%s13903_s0 + $0x212] sm:$0xff] }
 0x49d   :  { %v5412_v39 = vpop.permute.xlu0 %5411 }
 0x49e   :  { %5415 = vst.msk [vmem:[#allocation5] sm:$0x3] %vm5414_vm13, %v5412_v39 }
 0x4a0   :  { %v4804_v56 = vld [vmem:[#allocation3 + $0x194] sm:$0xff] }
 0x4a1   :  { %v5600_v45 = vpop.permute.xlu0 %5599  ;;  %v5138_v9 = vmax.f32 %v5079_v30, %v4804_v56  ;;  %v5028_v55 = vld [vmem:[#allocation3 + $0x196] sm:$0xff] }
 0x4a2   :  { %5602 = vst.msk [vmem:[#allocation5 + $0x4] sm:$0x3] %vm5414_vm13, %v5600_v45  ;;  %v5667_v22 = vpop.permute.xlu1 %5666  ;;  %v12137_v30 = vld [vmem:[%s13905_s2] ss:$0 sm:$0xff] }
 0x4a3   :  { %v5197_v7 = vmax.f32 %v5138_v9, %v5028_v55  ;;  %5669 = vst.msk [vmem:[#allocation5 + $0x6] sm:$0x3] %vm5386_vm4, %v5667_v22  ;;  %v4913_v55 = vmax.f32 %v12020_v34, %v12084_v33 }
 0x4a4   :  { %v4339_v43 = vpop.f32.mrb[104].mxu0 }
 0x4a5   :  { %v5426_v36 = vpop.permute.xlu0 %5425  ;;  %v5261_v62 = vmax.f32 %v5197_v7, %v4494_v10  ;;  %v4340_v23 = vadd.f32 %v11764_v15, %v4339_v43  ;;  %v7619_v61 = vpop.f32.mrb[105].mxu0 }
 0x4a6   :  { %5429 = vst.msk [vmem:[#allocation5] sm:$0x3] %vm5428_vm12, %v5426_v36  ;;  %v5494_v6 = vpop.permute.xlu1 %5493  ;;  %v4972_v36 = vmax.f32 %v4913_v55, %v12086_v8 }
 0x4a7   :  { %5316 = vst [vmem:[#allocation4 + $0x150] sm:$0xff] %v5261_v62  ;;  %v4495_v51 = vmax.f32 %v4340_v23, 0.0  ;;  %5496 = vst.msk [vmem:[#allocation5 + $0x2] sm:$0x3] %vm5400_vm1, %v5494_v6 }
 0x4a8   :  { %v5082_v62 = vmax.f32 %v4972_v36, %v12089_v41  ;;  %v5908_v36 = vld [vmem:[%s13906_s3 + $0x48] sm:$0xff] }
 0x4a9   :  { %v5613_v59 = vpop.permute.xlu0 %5612  ;;  %4568 = vst [vmem:[#allocation3 + $0x1a0] sm:$0xff] %v4495_v51 }
 0x4aa   :  { %5615 = vst.msk [vmem:[#allocation5 + $0x4] sm:$0x3] %vm5428_vm12, %v5613_v59  ;;  %v5680_v21 = vpop.permute.xlu1 %5679 }
 0x4ab   :  { %5682 = vst.msk [vmem:[#allocation5 + $0x6] sm:$0x3] %vm5400_vm1, %v5680_v21 }
 0x4ae   :  { %v5507_v35 = vpop.permute.xlu1 %5506  ;;  %v7261_v53 = vld.sshfl [vmem:[#allocation4 + $0x154] sm:$0x3 pattern:$0x76325410] }
 0x4af   :  { %5509 = vst.msk [vmem:[#allocation5 + $0x2] sm:$0x3] %vm5414_vm13, %v5507_v35  ;;  %5746 = vrot.lane.b32.xlu0 %v7261_v53, %s8230_s13 }
 0x4b0   :  { %v4695_v27 = vld [vmem:[#allocation3 + $0x19a] sm:$0xff] }
 0x4b1   :  { %v4805_v60 = vld [vmem:[#allocation3 + $0x19c] sm:$0xff]  ;;  %v4750_v11 = vmax.f32 %v4494_v10, %v4695_v27 }
 0x4b2   :  { %v5139_v44 = vmax.f32 %v5080_v20, %v4805_v60  ;;  %v5029_v1 = vld [vmem:[#allocation3 + $0x19e] sm:$0xff]  ;;  %v5693_v2 = vpop.permute.xlu1 %5692 }
 0x4b3   :  { %v12114_v48 = vmax.f32 %v4750_v11, %v4805_v60  ;;  %5695 = vst.msk [vmem:[#allocation5 + $0x6] sm:$0x3] %vm5414_vm13, %v5693_v2 }
 0x4b4   :  { %v5198_v18 = vmax.f32 %v5139_v44, %v5029_v1  ;;  %v4344_v63 = vpop.f32.mrb[106].mxu0  ;;  %v239_v1 = vld [vmem:[%s13903_s0 + $0x202] sm:$0xff] }
 0x4b5   :  { %v4345_v54 = vadd.f32 %v11764_v15, %v4344_v63  ;;  %v7622_v31 = vpop.f32.mrb[107].mxu0  ;;  %v5081_v15 = vmax.f32 %v4971_v4, %v12075_v50 }
 0x4b6   :  { %v5262_v47 = vmax.f32 %v5198_v18, %v4495_v51  ;;  %v5520_v46 = vpop.permute.xlu1 %5519  ;;  %v12170_v18 = vld [vmem:[%s13903_s0 + $0x222] sm:$0xff] }
 0x4b7   :  { %v4496_v24 = vmax.f32 %v4345_v54, 0.0  ;;  %5522 = vst.msk [vmem:[#allocation5 + $0x2] sm:$0x3] %vm5428_vm12, %v5520_v46  ;;  %v240_v46 = vld [vmem:[%s13903_s0 + $0x20a] sm:$0xff] }
 0x4b8   :  { %5317 = vst [vmem:[#allocation4 + $0x158] sm:$0xff] %v5262_v47 }
 0x4b9   :  { %4569 = vst [vmem:[#allocation3 + $0x1a8] sm:$0xff] %v4496_v24 }
 0x4ba   :  { %v5706_v42 = vpop.permute.xlu1 %5705 }
 0x4bb   :  { %5708 = vst.msk [vmem:[#allocation5 + $0x6] sm:$0x3] %vm5428_vm12, %v5706_v42 }
 0x4bf   :  { %v7262_v3 = vld.sshfl [vmem:[#allocation4 + $0x158] sm:$0x3 pattern:$0x76325410] }
 0x4c0   :  { %5759 = vrot.lane.b32.xlu0 %v7262_v3, %s8241_s24  ;;  %v4696_v37 = vld [vmem:[#allocation3 + $0x1a2] sm:$0xff] }
 0x4c1   :  { %v4806_v49 = vld [vmem:[#allocation3 + $0x1a4] sm:$0xff]  ;;  %v4751_v28 = vmax.f32 %v4495_v51, %v4696_v37 }
 0x4c2   :  { %v5140_v25 = vmax.f32 %v5081_v15, %v4806_v49  ;;  %v5030_v29 = vld [vmem:[#allocation3 + $0x1a6] sm:$0xff]  ;;  %v5721_v17 = vpop.permute.xlu0 %5720  ;;  %v7263_v32 = vld.sshfl [vmem:[#allocation4 + $0x15c] sm:$0x3 pattern:$0x76325410] }
 0x4c3   :  { %v5897_v0 = vld [vmem:[#allocation5] sm:$0xff]  ;;  %v12127_v12 = vmax.f32 %v4751_v28, %v4806_v49  ;;  %5723 = vst.msk [vmem:[#allocation5 + $0x8] sm:$0x3] %vm5344_vm15, %v5721_v17  ;;  %v5899_v28 = vld [vmem:[%s13906_s3] sm:$0xff] }
 0x4c4   :  { %v5199_v10 = vmax.f32 %v5140_v25, %v5030_v29  ;;  %5772 = vrot.lane.b32.xlu0 %v7263_v32, %s8242_s22  ;;  %v6315_v50 = vcombine.high %v5897_v0, %v5897_v0  ;;  %v4349_v52 = vpop.f32.mrb[108].mxu0  ;;  %v5900_v37 = vld [vmem:[%s13906_s3 + $0x8] sm:$0xff]  ;;  %v5903_v29 = vld [vmem:[%s13906_s3 + $0x20] sm:$0xff]  ;;  %v681_v32 = vld [vmem:[%s13903_s0 + $0x214] sm:$0xff] }
 0x4c5   :  { %v4350_v56 = vadd.f32 %v12137_v30, %v4349_v52  ;;  %v7625_v45 = vpop.f32.mrb[109].mxu0  ;;  %v5904_v49 = vld [vmem:[%s13906_s3 + $0x28] sm:$0xff]  ;;  %v7704_v17 = vpack.c.bf16 %v5903_v29, %v5899_v28  ;;  %v12225_v0 = vld [vmem:[%s13903_s0 + $0x232] sm:$0xff] }
 0x4c6   :  { %v5263_v39 = vmax.f32 %v5199_v10, %v4496_v24  ;;  %v12141_v9 = vrot.slane %v6315_v50, %v12132_v40  ;;  %v7702_v25 = vpack.c.bf16 %v5904_v49, %v5900_v37  ;;  %v12236_v52 = vld [vmem:[%s13903_s0 + $0x234] sm:$0xff]  ;;  %v6176_v29 = vld [vmem:[%s13906_s3 + $0x8a8] sm:$0xff] }
 0x4c7   :  { %v4497_v22 = vmax.f32 %v4350_v56, 0.0 }
 0x4c8   :  { %5318 = vst [vmem:[#allocation4 + $0x160] sm:$0xff] %v5263_v39  ;;  %v12147_v7 = vcombine.high %v12141_v9, %v12141_v9  ;;  %7703 = vmatprep.subr.bf16.mxu0 %v7702_v25  ;;  %v6172_v25 = vld [vmem:[%s13906_s3 + $0x888] sm:$0xff] }
 0x4c9   :  { %4570 = vst [vmem:[#allocation3 + $0x1b0] sm:$0xff] %v4497_v22  ;;  %7705 = vmatpush1.bf16.msra.mxu0 %v7704_v17  ;;  %v6171_v17 = vld [vmem:[%s13906_s3 + $0x880] sm:$0xff] }
 0x4ca   :  { %6492 = vmatprep.mubr.f32.mxu1 %v12147_v7 }
 0x4cb   :  { %6493 = vmatmul.mubr.f32.vlgmr.msra.gmra.mrb[0].mxu1 %v12141_v9 }
 0x4cf   :  { %v7264_v43 = vld.sshfl [vmem:[#allocation4 + $0x160] sm:$0x3 pattern:$0x76325410] }
 0x4d0   :  { %5785 = vrot.lane.b32.xlu0 %v7264_v43, %s8237_s16  ;;  %v4697_v23 = vld [vmem:[#allocation3 + $0x1aa] sm:$0xff]  ;;  %v5912_v43 = vld [vmem:[%s13906_s3 + $0x68] sm:$0xff] }
 0x4d1   :  { %v4807_v34 = vld [vmem:[#allocation3 + $0x1ac] sm:$0xff]  ;;  %v4752_v33 = vmax.f32 %v4496_v24, %v4697_v23  ;;  %v12186_v24 = vld [vmem:[%s13903_s0 + $0x22a] sm:$0xff]  ;;  %v682_v23 = vld [vmem:[%s13903_s0 + $0x21c] sm:$0xff] }
 0x4d2   :  { %v5141_v61 = vmax.f32 %v5082_v62, %v4807_v34  ;;  %v5031_v6 = vld [vmem:[#allocation3 + $0x1ae] sm:$0xff]  ;;  %v5734_v38 = vpop.permute.xlu0 %5733  ;;  %v7265_v51 = vld.sshfl [vmem:[#allocation4 + $0x164] sm:$0x3 pattern:$0x76325410]  ;;  %v7706_v62 = vpack.c.bf16 %v5912_v43, %v5908_v36  ;;  %v6180_v36 = vld [vmem:[%s13906_s3 + $0x8c8] sm:$0xff] }
 0x4d3   :  { %v12154_v59 = vmax.f32 %v4752_v33, %v4807_v34  ;;  %5736 = vst.msk [vmem:[#allocation5 + $0x8] sm:$0x3] %vm5358_vm2, %v5734_v38  ;;  %v5907_v34 = vld [vmem:[%s13906_s3 + $0x40] sm:$0xff]  ;;  %v6184_v43 = vld [vmem:[%s13906_s3 + $0x8e8] sm:$0xff] }
 0x4d4   :  { %v5200_v21 = vmax.f32 %v5141_v61, %v5031_v6  ;;  %5798 = vrot.lane.b32.xlu0 %v7265_v51, %s8243_s10  ;;  %v4354_v8 = vpop.f32.mrb[110].mxu0  ;;  %7707 = vmatprep.subr.bf16.mxu0 %v7706_v62  ;;  %v5911_v33 = vld [vmem:[%s13906_s3 + $0x60] sm:$0xff] }
 0x4d5   :  { %v4355_v41 = vadd.f32 %v12137_v30, %v4354_v8  ;;  %v7628_v35 = vpop.f32.mrb[111].mxu0  ;;  %v7708_v61 = vpack.c.bf16 %v5911_v33, %v5907_v34  ;;  %v12264_v6 = vld [vmem:[%s13903_s0 + $0x23a] sm:$0xff]  ;;  %v12359_v33 = vld [vmem:[%s13903_s0 + $0x244] sm:$0xff] }
 0x4d6   :  { %v5264_v5 = vmax.f32 %v5200_v21, %v4497_v22  ;;  %v12275_v21 = vld [vmem:[%s13903_s0 + $0x23c] sm:$0xff] }
 0x4d7   :  { %v4498_v53 = vmax.f32 %v4355_v41, 0.0  ;;  %7709 = vmatpush1.bf16.msra.mxu0 %v7708_v61  ;;  %v6179_v62 = vld [vmem:[%s13906_s3 + $0x8c0] sm:$0xff]  ;;  %v7842_v61 = vpack.c.bf16 %v6184_v43, %v6180_v36 }
 0x4d8   :  { %5319 = vst [vmem:[#allocation4 + $0x168] sm:$0xff] %v5264_v5  ;;  %449 = vrot.lane.b32.xlu0 %v239_v1, %s8228_s29  ;;  %v12297_v1 = vld [vmem:[%s13903_s0 + $0x224] sm:$0xff] }
 0x4d9   :  { %4571 = vst [vmem:[#allocation3 + $0x1b8] sm:$0xff] %v4498_v53  ;;  %v6156_v53 = vld [vmem:[%s13906_s3 + $0x808] sm:$0xff] }
 0x4dc   :  { %1329 = vrot.lane.b32.xlu0 %v12170_v18, %s8227_s28 }
 0x4df   :  { %v7266_v20 = vld.sshfl [vmem:[#allocation4 + $0x16c] sm:$0x3 pattern:$0x76325410]  ;;  %v5802_v27 = vld [vmem:[#allocation4 + $0x168] sm:$0x3] }
 0x4e0   :  { %5813 = vrot.lane.b32.xlu1 %v7266_v20, %s8239_s23  ;;  %5803 = vst.msk [vmem:[#allocation5 + $0xa] sm:$0x3] %vm5330_vm14, %v5802_v27  ;;  %v4698_v60 = vld [vmem:[#allocation3 + $0x1b2] sm:$0xff]  ;;  %451 = vrot.lane.b32.xlu0 %v240_v46, %s8228_s29  ;;  %v6160_v20 = vld [vmem:[%s13906_s3 + $0x828] sm:$0xff] }
 0x4e1   :  { %v4808_v11 = vld [vmem:[#allocation3 + $0x1b4] sm:$0xff]  ;;  %v4753_v44 = vmax.f32 %v4497_v22, %v4698_v60  ;;  %v7830_v60 = vpack.c.bf16 %v6160_v20, %v6156_v53  ;;  %v6164_v46 = vld [vmem:[%s13906_s3 + $0x848] sm:$0xff] }
 0x4e2   :  { %v242_v22 = vld [vmem:[%s13903_s0 + $0x21a] sm:$0xff]  ;;  %v6188_v53 = vld [vmem:[%s13906_s3 + $0x908] sm:$0xff] }
 0x4e3   :  { %v12165_v2 = vmax.f32 %v4753_v44, %v4808_v11  ;;  %v6155_v27 = vld [vmem:[%s13906_s3 + $0x800] sm:$0xff]  ;;  %7831 = vmatprep.subr.bf16.mxu1 %v7830_v60  ;;  %v6192_v20 = vld [vmem:[%s13906_s3 + $0x928] sm:$0xff] }
 0x4e4   :  { %v4359_v63 = vpop.f32.mrb[112].mxu0  ;;  %891 = vrot.lane.b32.xlu0 %v680_v13, %s8231_s14  ;;  %v6159_v11 = vld [vmem:[%s13906_s3 + $0x820] sm:$0xff]  ;;  %v6168_v13 = vld [vmem:[%s13906_s3 + $0x868] sm:$0xff]  ;;  %v7846_v60 = vpack.c.bf16 %v6192_v20, %v6188_v53 }
 0x4e5   :  { %v4360_v47 = vadd.f32 %v12137_v30, %v4359_v63  ;;  %v7631_v54 = vpop.f32.mrb[113].mxu0  ;;  %v7832_v44 = vpack.c.bf16 %v6159_v11, %v6155_v27  ;;  %v5916_v63 = vld [vmem:[%s13906_s3 + $0x88] sm:$0xff]  ;;  %v6187_v27 = vld [vmem:[%s13906_s3 + $0x900] sm:$0xff] }
 0x4e7   :  { %v4499_v31 = vmax.f32 %v4360_v47, 0.0  ;;  %7833 = vmatpush1.bf16.msra.mxu1 %v7832_v44  ;;  %v5920_v47 = vld [vmem:[%s13906_s3 + $0xa8] sm:$0xff] }
 0x4e8   :  { %1331 = vrot.lane.b32.xlu0 %v12186_v24, %s8227_s28  ;;  %v7710_v54 = vpack.c.bf16 %v5920_v47, %v5916_v63  ;;  %v6196_v63 = vld [vmem:[%s13906_s3 + $0x948] sm:$0xff] }
 0x4e9   :  { %4572 = vst [vmem:[#allocation3 + $0x1c0] sm:$0xff] %v4499_v31  ;;  %v5919_v31 = vld [vmem:[%s13906_s3 + $0xa0] sm:$0xff]  ;;  %v6200_v47 = vld [vmem:[%s13906_s3 + $0x968] sm:$0xff] }
 0x4ea   :  { %7711 = vmatprep.subr.bf16.mxu0 %v7710_v54  ;;  %v5924_v54 = vld [vmem:[%s13906_s3 + $0xc8] sm:$0xff] }
 0x4ec   :  { %1771 = vrot.lane.b32.xlu0 %v12197_v19, %s8230_s13 }
 0x4f0   :  { %v12188_v42 = vld [vmem:[#allocation3 + $0x1bc] sm:$0xff]  ;;  %453 = vrot.lane.b32.xlu0 %v241_v26, %s8228_s29 }
 0x4f1   :  { %v12190_v4 = vld [vmem:[#allocation3 + $0x1be] sm:$0xff] }
 0x4f2   :  { %v1123_v26 = vld [vmem:[%s13903_s0 + $0x242] sm:$0xff] }
 0x4f4   :  { %v4364_v16 = vpop.f32.mrb[114].mxu0  ;;  %893 = vrot.lane.b32.xlu0 %v681_v32, %s8231_s14 }
 0x4f5   :  { %v4365_v58 = vadd.f32 %v12137_v30, %v4364_v16  ;;  %v7634_v3 = vpop.f32.mrb[115].mxu0 }
 0x4f6   :  { %v6163_v3 = vld [vmem:[%s13906_s3 + $0x840] sm:$0xff] }
 0x4f7   :  { %v4500_v15 = vmax.f32 %v4365_v58, 0.0  ;;  %v7834_v58 = vpack.c.bf16 %v6168_v13, %v6164_v46  ;;  %v6199_v46 = vld [vmem:[%s13906_s3 + $0x960] sm:$0xff] }
 0x4f8   :  { %1333 = vrot.lane.b32.xlu0 %v12225_v0, %s8227_s28 }
 0x4f9   :  { %4573 = vst [vmem:[#allocation3 + $0x1c8] sm:$0xff] %v4500_v15  ;;  %v6167_v15 = vld [vmem:[%s13906_s3 + $0x860] sm:$0xff]  ;;  %7835 = vmatprep.subr.bf16.mxu1 %v7834_v58 }
 0x4fa   :  { %v7836_v37 = vpack.c.bf16 %v6167_v15, %v6163_v3  ;;  %v5923_v15 = vld [vmem:[%s13906_s3 + $0xc0] sm:$0xff] }
 0x4fc   :  { %1773 = vrot.lane.b32.xlu0 %v12236_v52, %s8230_s13  ;;  %7837 = vmatpush1.bf16.msra.mxu1 %v7836_v37 }
 0x500   :  { %v12227_v10 = vld [vmem:[#allocation3 + $0x1c4] sm:$0xff]  ;;  %455 = vrot.lane.b32.xlu0 %v242_v22, %s8228_s29 }
 0x501   :  { %v12229_v50 = vld [vmem:[#allocation3 + $0x1c6] sm:$0xff] }
 0x504   :  { %v4369_v39 = vpop.f32.mrb[116].mxu0  ;;  %895 = vrot.lane.b32.xlu0 %v682_v23, %s8231_s14 }
 0x505   :  { %v4370_v56 = vadd.f32 %v12137_v30, %v4369_v39  ;;  %v7637_v45 = vpop.f32.mrb[117].mxu0  ;;  %v7838_v39 = vpack.c.bf16 %v6176_v29, %v6172_v25  ;;  %v6204_v25 = vld [vmem:[%s13906_s3 + $0x988] sm:$0xff] }
 0x506   :  { %v4864_v45 = vld [vmem:[#allocation3 + $0x1ba] sm:$0xff] }
 0x507   :  { %v4501_v55 = vmax.f32 %v4370_v56, 0.0  ;;  %v6175_v56 = vld [vmem:[%s13906_s3 + $0x8a0] sm:$0xff]  ;;  %7839 = vmatprep.subr.bf16.mxu1 %v7838_v39  ;;  %v6208_v29 = vld [vmem:[%s13906_s3 + $0x9a8] sm:$0xff] }
 0x508   :  { %1335 = vrot.lane.b32.xlu0 %v12264_v6, %s8227_s28 }
 0x509   :  { %4574 = vst [vmem:[#allocation3 + $0x1d0] sm:$0xff] %v4501_v55  ;;  %v7840_v55 = vpack.c.bf16 %v6175_v56, %v6171_v17  ;;  %v6203_v17 = vld [vmem:[%s13906_s3 + $0x980] sm:$0xff]  ;;  %v7854_v56 = vpack.c.bf16 %v6208_v29, %v6204_v25 }
 0x50b   :  { %7841 = vmatpush1.bf16.msra.mxu1 %v7840_v55  ;;  %v4865_v55 = vld [vmem:[#allocation3 + $0x1c2] sm:$0xff] }
 0x50c   :  { %1775 = vrot.lane.b32.xlu0 %v12275_v21, %s8230_s13  ;;  %7843 = vmatprep.subr.bf16.mxu1 %v7842_v61  ;;  %v12432_v61 = vld [vmem:[%s13903_s0 + $0x24c] sm:$0xff] }
 0x510   :  { %v12266_v38 = vld [vmem:[#allocation3 + $0x1cc] sm:$0xff]  ;;  %457 = vrot.lane.b32.xlu0 %v12170_v18, %s8228_s29  ;;  %v5915_v18 = vld [vmem:[%s13906_s3 + $0x80] sm:$0xff] }
 0x511   :  { %v12268_v51 = vld [vmem:[#allocation3 + $0x1ce] sm:$0xff]  ;;  %v7712_v16 = vpack.c.bf16 %v5919_v31, %v5915_v18  ;;  %v7850_v18 = vpack.c.bf16 %v6200_v47, %v6196_v63  ;;  %v6223_v63 = vld [vmem:[%s13906_s3 + $0xa20] sm:$0xff] }
 0x513   :  { %7713 = vmatpush1.bf16.msra.mxu0 %v7712_v16  ;;  %v1124_v16 = vld [vmem:[%s13903_s0 + $0x24a] sm:$0xff] }
 0x514   :  { %v4374_v8 = vpop.f32.mrb[118].mxu0  ;;  %897 = vrot.lane.b32.xlu0 %v12297_v1, %s8231_s14 }
 0x515   :  { %v4375_v5 = vadd.f32 %v12137_v30, %v4374_v8  ;;  %v7640_v41 = vpop.f32.mrb[119].mxu0  ;;  %v6183_v8 = vld [vmem:[%s13906_s3 + $0x8e0] sm:$0xff] }
 0x516   :  { %v4919_v41 = vmax.f32 %v12114_v48, %v4864_v45  ;;  %v6191_v48 = vld [vmem:[%s13906_s3 + $0x920] sm:$0xff] }
 0x517   :  { %v4502_v35 = vmax.f32 %v4375_v5, 0.0  ;;  %v7844_v5 = vpack.c.bf16 %v6183_v8, %v6179_v62  ;;  %v7848_v11 = vpack.c.bf16 %v6191_v48, %v6187_v27  ;;  %v6207_v45 = vld [vmem:[%s13906_s3 + $0x9a0] sm:$0xff]  ;;  %v6212_v8 = vld [vmem:[%s13906_s3 + $0x9c8] sm:$0xff] }
 0x518   :  { %1337 = vrot.lane.b32.xlu0 %v1123_v26, %s8227_s28  ;;  %v4978_v44 = vmax.f32 %v4919_v41, %v12188_v42  ;;  %v6195_v42 = vld [vmem:[%s13906_s3 + $0x940] sm:$0xff]  ;;  %v7856_v36 = vpack.c.bf16 %v6207_v45, %v6203_v17  ;;  %v6220_v48 = vld [vmem:[%s13906_s3 + $0xa08] sm:$0xff] }
 0x519   :  { %4575 = vst [vmem:[#allocation3 + $0x1d8] sm:$0xff] %v4502_v35  ;;  %7845 = vmatpush1.bf16.msra.mxu1 %v7844_v5  ;;  %v7852_v58 = vpack.c.bf16 %v6199_v46, %v6195_v42  ;;  %v6216_v5 = vld [vmem:[%s13906_s3 + $0x9e8] sm:$0xff]  ;;  %v6211_v41 = vld [vmem:[%s13906_s3 + $0x9c0] sm:$0xff]  ;;  %v4866_v42 = vld [vmem:[#allocation3 + $0x1ca] sm:$0xff] }
 0x51a   :  { %7847 = vmatprep.subr.bf16.mxu1 %v7846_v60  ;;  %v5088_v13 = vmax.f32 %v4978_v44, %v12190_v4  ;;  %v5927_v4 = vld [vmem:[%s13906_s3 + $0xe0] sm:$0xff]  ;;  %v7858_v20 = vpack.c.bf16 %v6216_v5, %v6212_v8 }
 0x51b   :  { %v6215_v27 = vld [vmem:[%s13906_s3 + $0x9e0] sm:$0xff] }
 0x51c   :  { %1777 = vrot.lane.b32.xlu0 %v12359_v33, %s8230_s13  ;;  %v7860_v60 = vpack.c.bf16 %v6215_v27, %v6211_v41  ;;  %v5931_v17 = vld [vmem:[%s13906_s3 + $0x100] sm:$0xff]  ;;  %v12521_v41 = vld [vmem:[%s13903_s0 + $0x254] sm:$0xff] }
 0x51d   :  { %7849 = vmatpush1.bf16.msra.mxu1 %v7848_v11  ;;  %v6224_v11 = vld [vmem:[%s13906_s3 + $0xa28] sm:$0xff]  ;;  %v5935_v45 = vld [vmem:[%s13906_s3 + $0x120] sm:$0xff] }
 0x51e   :  { %7851 = vmatprep.subr.bf16.mxu1 %v7850_v18  ;;  %v7862_v44 = vpack.c.bf16 %v6224_v11, %v6220_v48 }
 0x520   :  { %v12328_v49 = vld [vmem:[#allocation3 + $0x1d4] sm:$0xff]  ;;  %459 = vrot.lane.b32.xlu0 %v12186_v24, %s8228_s29  ;;  %v5928_v24 = vld [vmem:[%s13906_s3 + $0xe8] sm:$0xff] }
 0x521   :  { %v5747_v28 = vpop.permute.xlu0 %5746  ;;  %v12339_v32 = vld [vmem:[#allocation3 + $0x1d6] sm:$0xff]  ;;  %v7714_v31 = vpack.c.bf16 %v5928_v24, %v5924_v54  ;;  %7853 = vmatpush1.bf16.msra.mxu1 %v7852_v58  ;;  %v6228_v54 = vld [vmem:[%s13906_s3 + $0xa48] sm:$0xff] }
 0x522   :  { %5749 = vst.msk [vmem:[#allocation5 + $0x8] sm:$0x3] %vm5372_vm3, %v5747_v28  ;;  %v7716_v28 = vpack.c.bf16 %v5927_v4, %v5923_v15  ;;  %7855 = vmatprep.subr.bf16.mxu1 %v7854_v56  ;;  %v6232_v24 = vld [vmem:[%s13906_s3 + $0xa68] sm:$0xff] }
 0x523   :  { %7715 = vmatprep.subr.bf16.mxu0 %v7714_v31  ;;  %v7866_v46 = vpack.c.bf16 %v6232_v24, %v6228_v54  ;;  %v6255_v24 = vld [vmem:[%s13906_s3 + $0xb20] sm:$0xff] }
 0x524   :  { %v4379_v22 = vpop.f32.mrb[120].mxu0  ;;  %899 = vrot.lane.b32.xlu0 %v12197_v19, %s8231_s14  ;;  %7717 = vmatpush1.bf16.msra.mxu0 %v7716_v28 }
 0x525   :  { %v4380_v23 = vadd.f32 %v12137_v30, %v4379_v22  ;;  %v7643_v34 = vpop.f32.mrb[121].mxu0  ;;  %7857 = vmatpush1.bf16.msra.mxu1 %v7856_v36 }
 0x526   :  { %7859 = vmatprep.subr.bf16.mxu1 %v7858_v20  ;;  %v6243_v20 = vld [vmem:[%s13906_s3 + $0xac0] sm:$0xff] }
 0x527   :  { %v4503_v35 = vmax.f32 %v4380_v23, 0.0 }
 0x528   :  { %1339 = vrot.lane.b32.xlu0 %v1124_v16, %s8227_s28 }
 0x529   :  { %4576 = vst [vmem:[#allocation3 + $0x1e0] sm:$0xff] %v4503_v35  ;;  %7861 = vmatpush1.bf16.msra.mxu1 %v7860_v60  ;;  %v6247_v60 = vld [vmem:[%s13906_s3 + $0xae0] sm:$0xff] }
 0x52a   :  { %7863 = vmatprep.subr.bf16.mxu1 %v7862_v44  ;;  %v7876_v11 = vpack.c.bf16 %v6247_v60, %v6243_v20  ;;  %v247_v20 = vld [vmem:[%s13903_s0 + $0x242] sm:$0x3] }
 0x52b   :  { %v6279_v60 = vld [vmem:[%s13906_s3 + $0xbe0] sm:$0xff] }
 0x52c   :  { %1779 = vrot.lane.b32.xlu0 %v12432_v61, %s8230_s13 }
 0x530   :  { %v5092_v3 = vld [vmem:[#allocation3 + $0x1dc] sm:$0xff]  ;;  %461 = vrot.lane.b32.xlu0 %v12225_v0, %s8228_s29 }
 0x531   :  { %v5147_v19 = vmax.f32 %v5088_v13, %v5092_v3  ;;  %v5151_v26 = vld [vmem:[#allocation3 + $0x1de] sm:$0xff] }
 0x532   :  { %v5760_v37 = vpop.permute.xlu0 %5759  ;;  %v6227_v0 = vld [vmem:[%s13906_s3 + $0xa40] sm:$0xff] }
 0x533   :  { %5762 = vst.msk [vmem:[#allocation5 + $0x8] sm:$0x3] %vm5386_vm4, %v5760_v37  ;;  %v5206_v39 = vmax.f32 %v5147_v19, %v5151_v26  ;;  %v1125_v19 = vld [vmem:[%s13903_s0 + $0x252] sm:$0xff]  ;;  %v4921_v26 = vmax.f32 %v12154_v59, %v4866_v42  ;;  %v5936_v59 = vld [vmem:[%s13906_s3 + $0x128] sm:$0xff] }
 0x534   :  { %v4384_v22 = vpop.f32.mrb[122].mxu0  ;;  %901 = vrot.lane.b32.xlu0 %v12236_v52, %s8231_s14 }
 0x535   :  { %v5270_v43 = vmax.f32 %v5206_v39, %v4503_v35  ;;  %v12427_v62 = vadd.f32 %v12137_v30, %v4384_v22  ;;  %v7646_v34 = vpop.f32.mrb[123].mxu0  ;;  %v4920_v35 = vmax.f32 %v12127_v12, %v4865_v55  ;;  %v6219_v12 = vld [vmem:[%s13906_s3 + $0xa00] sm:$0xff]  ;;  %v6236_v55 = vld [vmem:[%s13906_s3 + $0xa88] sm:$0xff]  ;;  %v4980_v36 = vmax.f32 %v4921_v26, %v12266_v38 }
 0x536   :  { %v5773_v23 = vpop.permute.xlu0 %5772  ;;  %v7864_v47 = vpack.c.bf16 %v6223_v63, %v6219_v12  ;;  %v6240_v22 = vld [vmem:[%s13906_s3 + $0xaa8] sm:$0xff]  ;;  %v6239_v34 = vld [vmem:[%s13906_s3 + $0xaa0] sm:$0xff] }
 0x537   :  { %5775 = vst.msk [vmem:[#allocation5 + $0x8] sm:$0x3] %vm5400_vm1, %v5773_v23  ;;  %5325 = vst [vmem:[#allocation4 + $0x198] sm:$0xff] %v5270_v43  ;;  %v4504_v53 = vmax.f32 %v12427_v62, 0.0  ;;  %v4979_v18 = vmax.f32 %v4920_v35, %v12227_v10  ;;  %v6231_v10 = vld [vmem:[%s13906_s3 + $0xa60] sm:$0xff]  ;;  %v7720_v43 = vpack.c.bf16 %v5935_v45, %v5931_v17  ;;  %v7870_v62 = vpack.c.bf16 %v6240_v22, %v6236_v55  ;;  %v6244_v38 = vld [vmem:[%s13906_s3 + $0xac8] sm:$0xff] }
 0x538   :  { %7865 = vmatpush1.bf16.msra.mxu1 %v7864_v47  ;;  %v7868_v3 = vpack.c.bf16 %v6231_v10, %v6227_v0  ;;  %1341 = vrot.lane.b32.xlu0 %v1125_v19, %s8227_s28  ;;  %v6235_v23 = vld [vmem:[%s13906_s3 + $0xa80] sm:$0xff]  ;;  %v5090_v48 = vmax.f32 %v4980_v36, %v12268_v51  ;;  %v6252_v63 = vld [vmem:[%s13906_s3 + $0xb08] sm:$0xff] }
 0x539   :  { %4577 = vst [vmem:[#allocation3 + $0x1e8] sm:$0xff] %v4504_v53  ;;  %v5089_v15 = vmax.f32 %v4979_v18, %v12229_v50  ;;  %7867 = vmatprep.subr.bf16.mxu1 %v7866_v46  ;;  %v5932_v50 = vld [vmem:[%s13906_s3 + $0x108] sm:$0xff]  ;;  %v7872_v35 = vpack.c.bf16 %v6239_v34, %v6235_v23  ;;  %v6251_v51 = vld [vmem:[%s13906_s3 + $0xb00] sm:$0xff] }
 0x53a   :  { %v7718_v56 = vpack.c.bf16 %v5936_v59, %v5932_v50  ;;  %v6256_v47 = vld [vmem:[%s13906_s3 + $0xb28] sm:$0xff]  ;;  %v4867_v46 = vld [vmem:[#allocation3 + $0x1d2] sm:$0xff] }
 0x53b   :  { %v7878_v54 = vpack.c.bf16 %v6256_v47, %v6252_v63  ;;  %v1126_v26 = vld [vmem:[%s13903_s0 + $0x25a] sm:$0xff]  ;;  %v5940_v55 = vld [vmem:[%s13906_s3 + $0x148] sm:$0xff] }
 0x53c   :  { %7869 = vmatpush1.bf16.msra.mxu1 %v7868_v3  ;;  %7719 = vmatprep.subr.bf16.mxu0 %v7718_v56  ;;  %v6264_v3 = vld [vmem:[%s13906_s3 + $0xb68] sm:$0xff]  ;;  %v6267_v59 = vld [vmem:[%s13906_s3 + $0xb80] sm:$0xff]  ;;  %v5906_v63 = vld [vmem:[%s13906_s3 + $0x38] sm:$0xff] }
 0x53d   :  { %7721 = vmatpush1.bf16.msra.mxu0 %v7720_v43  ;;  %7871 = vmatprep.subr.bf16.mxu1 %v7870_v62  ;;  %v6271_v17 = vld [vmem:[%s13906_s3 + $0xba0] sm:$0xff]  ;;  %v5944_v22 = vld [vmem:[%s13906_s3 + $0x168] sm:$0xff] }
 0x53e   :  { %v4389_v31 = vpop.f32.mrb[124].mxu0  ;;  %v7267_v58 = vld.sshfl [vmem:[#allocation4 + $0x198] sm:$0x3 pattern:$0x76325410]  ;;  %1781 = vrot.lane.b32.xlu0 %v12521_v41, %s8230_s13  ;;  %v7888_v45 = vpack.c.bf16 %v6271_v17, %v6267_v59  ;;  %v7722_v36 = vpack.c.bf16 %v5944_v22, %v5940_v55  ;;  %v5939_v43 = vld [vmem:[%s13906_s3 + $0x140] sm:$0xff] }
 0x53f   :  { %v12479_v13 = vadd.f32 %v12137_v30, %v4389_v31  ;;  %v7649_v16 = vpop.f32.mrb[125].mxu0  ;;  %5826 = vrot.lane.b32.xlu1 %v7267_v58, %s8240_s11  ;;  %v7268_v52 = vld.sshfl [vmem:[#allocation4 + $0x19c] sm:$0x3 pattern:$0x76325410]  ;;  %v7880_v31 = vpack.c.bf16 %v6255_v24, %v6251_v51  ;;  %v12614_v62 = vld [vmem:[%s13903_s0 + $0x25c] sm:$0xff] }
 0x540   :  { %v5093_v37 = vld [vmem:[#allocation3 + $0x1e4] sm:$0xff]  ;;  %7873 = vmatpush1.bf16.msra.mxu1 %v7872_v35  ;;  %7723 = vmatprep.subr.bf16.mxu0 %v7722_v36  ;;  %v5955_v55 = vld [vmem:[%s13906_s3 + $0x1c0] sm:$0xff]  ;;  %s7148_s11 = sshll.u32 %s8245_s9, 4  ;;  %s7149_s11 = int_to_ptr.vmem [resolvable:$true] %s7148_s11 }
 0x541   :  { %v4505_v4 = vmax.f32 %v12479_v13, 0.0  ;;  %v5148_v28 = vmax.f32 %v5089_v15, %v5093_v37  ;;  %v5152_v25 = vld [vmem:[#allocation3 + $0x1e6] sm:$0xff]  ;;  %v4922_v15 = vmax.f32 %v12165_v2, %v4867_v46  ;;  %v6259_v37 = vld [vmem:[%s13906_s3 + $0xb40] sm:$0xff]  ;;  %s8203_s12 = scalar_lea.vmem %s7149_s11, 32  ;;  %p8208_p1 = scmp.lt.s32.totalorder %s7149_s11, %s7149_s11 }
 0x542   :  { %v5786_v29 = vpop.permute.xlu0 %5785  ;;  %463 = vrot.lane.b32.xlu0 %v12264_v6, %s8228_s29  ;;  %v6260_v58 = vld [vmem:[%s13906_s3 + $0xb48] sm:$0xff]  ;;  %v91_v2 = vld [vmem:[%s13903_s0 + $0x200] sm:$0xff]  ;;  %p8204_p0 = scmp.ne.s32.totalorder %s7149_s11, %s8203_s12  ;;  %p8209_p2 = scmp.lt.s32.totalorder %s8203_s12, %s8203_s12 }
 0x543   :  { %4578 = vst [vmem:[#allocation3 + $0x1f0] sm:$0xff] %v4505_v4  ;;  %5788 = vst.msk [vmem:[#allocation5 + $0x8] sm:$0x3] %vm5414_vm13, %v5786_v29  ;;  %v5207_v39 = vmax.f32 %v5148_v28, %v5152_v25  ;;  %5839 = vrot.lane.b32.xlu1 %v7268_v52, %s8230_s13  ;;  %v7882_v19 = vpack.c.bf16 %v6264_v3, %v6260_v58  ;;  %v6268_v29 = vld [vmem:[%s13906_s3 + $0xb88] sm:$0xff]  ;;  %v5959_v22 = vld [vmem:[%s13906_s3 + $0x1e0] sm:$0xff] }
 0x544   :  { %165 = vst.msk [vmem:[#allocation2 + $0x200] sm:$0xff] %vm100_vm0, %v91_v2  ;;  %v6272_v52 = vld [vmem:[%s13906_s3 + $0xba8] sm:$0xff]  ;;  %v2887_v2 = vld [vmem:[%s13903_s0 + $0x286] sm:$0x3]  ;;  %v7732_v36 = vpack.c.bf16 %v5959_v22, %v5955_v55  ;;  %v3324_v55 = vld [vmem:[%s13903_s0 + $0x270] sm:$0xff]  ;;  %p8210_p3 = por %p8209_p2, %p8208_p1 }
 0x545   :  { %v5271_v8 = vmax.f32 %v5207_v39, %v4504_v53  ;;  %v6248_v53 = vld [vmem:[%s13906_s3 + $0xae8] sm:$0xff]  ;;  %v7886_v50 = vpack.c.bf16 %v6272_v52, %v6268_v29  ;;  %v4981_v39 = vmax.f32 %v4922_v15, %v12328_v49  ;;  %v5943_v49 = vld [vmem:[%s13906_s3 + $0x160] sm:$0xff] }
 0x546   :  { %v5799_v5 = vpop.permute.xlu0 %5798  ;;  %v7874_v27 = vpack.c.bf16 %v6248_v53, %v6244_v38  ;;  %903 = vrot.lane.b32.xlu0 %v12275_v21, %s8231_s14  ;;  %v6263_v21 = vld [vmem:[%s13906_s3 + $0xb60] sm:$0xff]  ;;  %v7724_v23 = vpack.c.bf16 %v5943_v49, %v5939_v43  ;;  %v6276_v34 = vld [vmem:[%s13906_s3 + $0xbc8] sm:$0xff]  ;;  %p8211_p4 = pnand %p8210_p3, %p8204_p0 }
 0x547   :  { %5801 = vst.msk [vmem:[#allocation5 + $0x8] sm:$0x3] %vm5428_vm12, %v5799_v5  ;;  %5326 = vst [vmem:[#allocation4 + $0x1a0] sm:$0xff] %v5271_v8  ;;  %v7884_v28 = vpack.c.bf16 %v6263_v21, %v6259_v37  ;;  %v6280_v8 = vld [vmem:[%s13906_s3 + $0xbe8] sm:$0xff]  ;;  %v5091_v38 = vmax.f32 %v4981_v39, %v12339_v32  ;;  %v5951_v37 = vld [vmem:[%s13906_s3 + $0x1a0] sm:$0xff] }
 0x548   :  { %7875 = vmatprep.subr.bf16.mxu1 %v7874_v27  ;;  %v7890_v35 = vpack.c.bf16 %v6280_v8, %v6276_v34  ;;  %v6275_v27 = vld [vmem:[%s13906_s3 + $0xbc0] sm:$0xff]  ;;  %7725 = vmatpush1.bf16.msra.mxu0 %v7724_v23  ;;  %v5948_v3 = vld [vmem:[%s13906_s3 + $0x188] sm:$0xff]  ;;  %v3320_v34 = vld [vmem:[%s13903_s0 + $0x250] sm:$0xff] }
 0x549   :  { %7877 = vmatpush1.bf16.msra.mxu1 %v7876_v11  ;;  %v7892_v32 = vpack.c.bf16 %v6279_v60, %v6275_v27  ;;  %v92_v11 = vld [vmem:[%s13903_s0 + $0x208] sm:$0xff]  ;;  %v2001_v8 = vld [vmem:[%s13903_s0 + $0x236] sm:$0xff]  ;;  %v5963_v27 = vld [vmem:[%s13906_s3 + $0x200] sm:$0xff] }
 0x54a   :  { %v5094_v12 = vld [vmem:[#allocation3 + $0x1ec] sm:$0xff]  ;;  %7879 = vmatprep.subr.bf16.mxu1 %v7878_v54  ;;  %1343 = vrot.lane.b32.xlu0 %v1126_v26, %s8227_s28  ;;  %v450_v56 = vpop.permute.xlu0 %449  ;;  %166 = vst.msk [vmem:[#allocation2 + $0x208] sm:$0xff] %vm100_vm0, %v92_v11  ;;  %v5947_v26 = vld [vmem:[%s13906_s3 + $0x180] sm:$0xff]  ;;  %v5956_v17 = vld [vmem:[%s13906_s3 + $0x1c8] sm:$0xff] }
 0x54b   :  { %v5149_v44 = vmax.f32 %v5090_v48, %v5094_v12  ;;  %v5153_v18 = vld [vmem:[#allocation3 + $0x1ee] sm:$0xff]  ;;  %605 = vst.msk [vmem:[#allocation2 + $0x200] sm:$0xff] %vm540_vm5, %v450_v56  ;;  %v7728_v21 = vpack.c.bf16 %v5951_v37, %v5947_v26  ;;  %v5960_v39 = vld [vmem:[%s13906_s3 + $0x1e8] sm:$0xff] }
 0x54c   :  { %v94_v56 = vld [vmem:[%s13903_s0 + $0x218] sm:$0xff]  ;;  %v12744_v49 = vld [vmem:[%s13903_s0 + $0x24e] sm:$0xff] }
 0x54d   :  { %v5208_v42 = vmax.f32 %v5149_v44, %v5153_v18  ;;  %7881 = vmatpush1.bf16.msra.mxu1 %v7880_v31  ;;  %v5902_v44 = vld [vmem:[%s13906_s3 + $0x18] sm:$0xff]  ;;  %v679_v31 = vld [vmem:[%s13903_s0 + $0x204] sm:$0xff]  ;;  %168 = vst.msk [vmem:[#allocation2 + $0x218] sm:$0xff] %vm100_vm0, %v94_v56 }
 0x54e   :  { %v4394_v0 = vpop.f32.mrb[126].mxu0  ;;  %v7269_v6 = vld.sshfl [vmem:[#allocation4 + $0x1a0] sm:$0x3 pattern:$0x76325410]  ;;  %7883 = vmatprep.subr.bf16.mxu1 %v7882_v19  ;;  %1783 = vrot.lane.b32.xlu0 %v12614_v62, %s8230_s13  ;;  %v12626_v53 = vpop.permute.xlu0 %1329  ;;  %v7898_v54 = vpack.c.bf16 %v5906_v63, %v5902_v44  ;;  %v12781_v11 = vld [vmem:[%s13903_s0 + $0x256] sm:$0xff] }
 0x54f   :  { %v5272_v10 = vmax.f32 %v5208_v42, %v4505_v4  ;;  %v12554_v13 = vadd.f32 %v12137_v30, %v4394_v0  ;;  %v7652_v16 = vpop.f32.mrb[127].mxu0  ;;  %5852 = vrot.lane.b32.xlu1 %v7269_v6, %s8241_s24  ;;  %v7270_v25 = vld.sshfl [vmem:[#allocation4 + $0x1a4] sm:$0x3 pattern:$0x76325410]  ;;  %v3321_v44 = vld [vmem:[%s13903_s0 + $0x258] sm:$0xff] }
 0x550   :  { %v687_v42 = vld [vmem:[%s13903_s0 + $0x244] sm:$0x3]  ;;  %v1999_v16 = vld [vmem:[%s13903_s0 + $0x226] sm:$0xff] }
 0x551   :  { %5327 = vst [vmem:[#allocation4 + $0x1a8] sm:$0xff] %v5272_v10  ;;  %v4506_v30 = vmax.f32 %v12554_v13, 0.0  ;;  %7885 = vmatpush1.bf16.msra.mxu1 %v7884_v28  ;;  %v1127_v10 = vld [vmem:[%s13903_s0 + $0x262] sm:$0x3]  ;;  %v1567_v13 = vld [vmem:[%s13903_s0 + $0x264] sm:$0x3] }
 0x552   :  { %v5814_v4 = vpop.permute.xlu1 %5813  ;;  %7887 = vmatprep.subr.bf16.mxu1 %v7886_v50  ;;  %465 = vrot.lane.b32.xlu0 %v247_v20, %s8228_s29  ;;  %v452_v24 = vpop.permute.xlu0 %451  ;;  %v2007_v19 = vld [vmem:[%s13903_s0 + $0x266] sm:$0x3]  ;;  %v2000_v50 = vld [vmem:[%s13903_s0 + $0x22e] sm:$0xff] }
 0x553   :  { %4579 = vst [vmem:[#allocation3 + $0x1f8] sm:$0xff] %v4506_v30  ;;  %5816 = vst.msk [vmem:[#allocation5 + $0xa] sm:$0x3] %vm5344_vm15, %v5814_v4  ;;  %5865 = vrot.lane.b32.xlu1 %v7270_v25, %s8242_s22  ;;  %v93_v4 = vld [vmem:[%s13903_s0 + $0x210] sm:$0xff]  ;;  %v12706_v25 = vld [vmem:[%s13903_s0 + $0x246] sm:$0xff] }
 0x554   :  { %606 = vst.msk [vmem:[#allocation2 + $0x208] sm:$0xff] %vm540_vm5, %v452_v24  ;;  %v5968_v20 = vld [vmem:[%s13906_s3 + $0x228] sm:$0xff]  ;;  %v12806_v24 = vld [vmem:[%s13903_s0 + $0x25e] sm:$0xff] }
 0x555   :  { %7889 = vmatpush1.bf16.msra.mxu1 %v7888_v45  ;;  %167 = vst.msk [vmem:[#allocation2 + $0x210] sm:$0xff] %vm100_vm0, %v93_v4  ;;  %v7730_v45 = vpack.c.bf16 %v5960_v39, %v5956_v17  ;;  %v5984_v26 = vld [vmem:[%s13906_s3 + $0x2a8] sm:$0xff]  ;;  %v98_v17 = vld [vmem:[%s13903_s0 + $0x238] sm:$0xff] }
 0x556   :  { %7891 = vmatprep.subr.bf16.mxu1 %v7890_v35  ;;  %905 = vrot.lane.b32.xlu0 %v687_v42, %s8231_s14  ;;  %v892_v0 = vpop.permute.xlu0 %891  ;;  %v95_v35 = vld [vmem:[%s13903_s0 + $0x220] sm:$0xff]  ;;  %v5972_v42 = vld [vmem:[%s13906_s3 + $0x248] sm:$0xff]  ;;  %172 = vst.msk [vmem:[#allocation2 + $0x238] sm:$0xff] %vm100_vm0, %v98_v17 }
 0x557   :  { %1046 = vst.msk [vmem:[#allocation2 + $0x208] sm:$0xff] %vm980_vm6, %v892_v0  ;;  %v5975_v0 = vld [vmem:[%s13906_s3 + $0x260] sm:$0xff]  ;;  %v2884_v39 = vld [vmem:[%s13903_s0 + $0x26e] sm:$0xff] }
 0x558   :  { %v7271_v5 = vld.sshfl [vmem:[#allocation4 + $0x1a8] sm:$0x3 pattern:$0x76325410]  ;;  %169 = vst.msk [vmem:[#allocation2 + $0x220] sm:$0xff] %vm100_vm0, %v95_v35  ;;  %v6008_v17 = vld [vmem:[%s13906_s3 + $0x368] sm:$0xff] }
 0x559   :  { %5878 = vrot.lane.b32.xlu1 %v7271_v5, %s8237_s16  ;;  %v7272_v18 = vld.sshfl [vmem:[#allocation4 + $0x1ac] sm:$0x3 pattern:$0x76325410]  ;;  %7893 = vmatpush1.bf16.msra.mxu1 %v7892_v32  ;;  %v5967_v32 = vld [vmem:[%s13906_s3 + $0x220] sm:$0xff]  ;;  %v2445_v35 = vld [vmem:[%s13903_s0 + $0x274] sm:$0xff] }
 0x55a   :  { %v5095_v48 = vld [vmem:[#allocation3 + $0x1f4] sm:$0xff]  ;;  %7899 = vmatprep.subr.bf16.mxu1 %v7898_v54  ;;  %1345 = vrot.lane.b32.xlu0 %v1127_v10, %s8227_s28  ;;  %v1332_v6 = vpop.permute.xlu0 %1331  ;;  %v96_v54 = vld [vmem:[%s13903_s0 + $0x228] sm:$0xff] }
 0x55b   :  { %v5150_v12 = vmax.f32 %v5091_v38, %v5095_v48  ;;  %v5154_v47 = vld [vmem:[#allocation3 + $0x1f6] sm:$0xff]  ;;  %1486 = vst.msk [vmem:[#allocation2 + $0x208] sm:$0xff] %vm1420_vm7, %v1332_v6  ;;  %v5964_v38 = vld [vmem:[%s13906_s3 + $0x208] sm:$0xff] }
 0x55c   :  { %v7734_v48 = vpack.c.bf16 %v5968_v20, %v5964_v38  ;;  %170 = vst.msk [vmem:[#allocation2 + $0x228] sm:$0xff] %vm100_vm0, %v96_v54  ;;  %v99_v20 = vld [vmem:[%s13903_s0 + $0x240] sm:$0x3] }
 0x55d   :  { %v5209_v51 = vmax.f32 %v5150_v12, %v5154_v47  ;;  %5891 = vrot.lane.b32.xlu1 %v7272_v18, %s8243_s10  ;;  %v7736_v12 = vpack.c.bf16 %v5967_v32, %v5963_v27  ;;  %v2002_v47 = vld [vmem:[%s13903_s0 + $0x23e] sm:$0xff] }
 0x55e   :  { %1785 = vrot.lane.b32.xlu0 %v1567_v13, %s8230_s13  ;;  %v1772_v15 = vpop.permute.xlu0 %1771  ;;  %v3322_v13 = vld [vmem:[%s13903_s0 + $0x260] sm:$0xff] }
 0x55f   :  { %v5273_v46 = vmax.f32 %v5209_v51, %v4506_v30  ;;  %1926 = vst.msk [vmem:[#allocation2 + $0x208] sm:$0xff] %vm1860_vm8, %v1772_v15  ;;  %v5995_v54 = vld [vmem:[%s13906_s3 + $0x300] sm:$0xff] }
 0x561   :  { %5328 = vst [vmem:[#allocation4 + $0x1b0] sm:$0xff] %v5273_v46  ;;  %889 = vrot.lane.b32.xlu1 %v679_v31, %s8231_s14  ;;  %v5976_v31 = vld [vmem:[%s13906_s3 + $0x268] sm:$0xff] }
 0x562   :  { %2225 = vrot.lane.b32.xlu0 %v2007_v19, %s8232_s21  ;;  %v454_v28 = vpop.permute.xlu0 %453  ;;  %v7738_v46 = vpack.c.bf16 %v5976_v31, %v5972_v42  ;;  %v5980_v19 = vld [vmem:[%s13906_s3 + $0x288] sm:$0xff] }
 0x563   :  { %607 = vst.msk [vmem:[#allocation2 + $0x210] sm:$0xff] %vm540_vm5, %v454_v28  ;;  %v3323_v28 = vld [vmem:[%s13903_s0 + $0x268] sm:$0xff] }
 0x565   :  { %1769 = vrot.lane.b32.xlu1 %v12297_v1, %s8230_s13  ;;  %v5952_v1 = vld [vmem:[%s13906_s3 + $0x1a8] sm:$0xff] }
 0x566   :  { %v7726_v30 = vpack.c.bf16 %v5952_v1, %v5948_v3  ;;  %3105 = vrot.lane.b32.xlu0 %v2887_v2, %s8236_s20  ;;  %v894_v29 = vpop.permute.xlu0 %893  ;;  %v2443_v3 = vld [vmem:[%s13903_s0 + $0x264] sm:$0xff]  ;;  %v97_v1 = vld [vmem:[%s13903_s0 + $0x230] sm:$0xff] }
 0x567   :  { %1047 = vst.msk [vmem:[#allocation2 + $0x210] sm:$0xff] %vm980_vm6, %v894_v29  ;;  %v5979_v2 = vld [vmem:[%s13906_s3 + $0x280] sm:$0xff] }
 0x568   :  { %v5895_v58 = vld [vmem:[#allocation4 + $0x1b0] sm:$0x3]  ;;  %7727 = vmatprep.subr.bf16.mxu0 %v7726_v30  ;;  %171 = vst.msk [vmem:[#allocation2 + $0x230] sm:$0xff] %vm100_vm0, %v97_v1  ;;  %v2883_v30 = vld [vmem:[%s13903_s0 + $0x266] sm:$0xff]  ;;  %vm173_vm0 = vcmask 91136  }
 0x569   :  { %2209 = vrot.lane.b32.xlu1 %v1999_v16, %s8232_s21  ;;  %5896 = vst.msk [vmem:[#allocation5 + $0xc] sm:$0x3] %vm5330_vm14, %v5895_v58  ;;  %7729 = vmatpush1.bf16.msra.mxu0 %v7728_v21  ;;  %v7742_v21 = vpack.c.bf16 %v5984_v26, %v5980_v19  ;;  %v5909_v19 = vld [vmem:[%s13906_s3 + $0x50] sm:$0xff]  ;;  %vm13917_vm14 = vmmov 0  }
 0x56a   :  { %v1334_v52 = vpop.permute.xlu0 %1333  ;;  %7731 = vmatprep.subr.bf16.mxu0 %v7730_v45  ;;  %174 = vst.msk [vmem:[#allocation2 + $0x240] sm:$0x3] %vm173_vm0, %v99_v20  ;;  %v6015_v20 = vld [vmem:[%s13906_s3 + $0x3a0] sm:$0xff] }
 0x56b   :  { %1487 = vst.msk [vmem:[#allocation2 + $0x210] sm:$0xff] %vm1420_vm7, %v1334_v52 }
 0x56d   :  { %2649 = vrot.lane.b32.xlu1 %v12359_v33, %s8233_s30  ;;  %v3319_v33 = vld [vmem:[%s13903_s0 + $0x248] sm:$0xff]  ;;  %7733 = vmatpush1.bf16.msra.mxu0 %v7732_v36 }
 0x56e   :  { %v1774_v59 = vpop.permute.xlu0 %1773  ;;  %7735 = vmatprep.subr.bf16.mxu0 %v7734_v48  ;;  %v5988_v36 = vld [vmem:[%s13906_s3 + $0x2c8] sm:$0xff] }
 0x56f   :  { %1927 = vst.msk [vmem:[#allocation2 + $0x210] sm:$0xff] %vm1860_vm8, %v1774_v59 }
 0x571   :  { %3089 = vrot.lane.b32.xlu1 %v12706_v25, %s8236_s20  ;;  %7737 = vmatpush1.bf16.msra.mxu0 %v7736_v12 }
 0x572   :  { %v456_v43 = vpop.permute.xlu0 %455  ;;  %7739 = vmatprep.subr.bf16.mxu0 %v7738_v46  ;;  %v5901_v46 = vld [vmem:[%s13906_s3 + $0x10] sm:$0xff] }
 0x573   :  { %608 = vst.msk [vmem:[#allocation2 + $0x218] sm:$0xff] %vm540_vm5, %v456_v43  ;;  %v5992_v43 = vld [vmem:[%s13906_s3 + $0x2e8] sm:$0xff] }
 0x575   :  { %3529 = vrot.lane.b32.xlu1 %v3319_v33, %s8237_s16 }
 0x576   :  { %v896_v23 = vpop.permute.xlu0 %895 }
 0x577   :  { %1048 = vst.msk [vmem:[#allocation2 + $0x218] sm:$0xff] %vm980_vm6, %v896_v23  ;;  %v5987_v23 = vld [vmem:[%s13906_s3 + $0x2c0] sm:$0xff] }
 0x579   :  { %2211 = vrot.lane.b32.xlu1 %v2000_v50, %s8232_s21  ;;  %v2444_v50 = vld [vmem:[%s13903_s0 + $0x26c] sm:$0xff] }
 0x57d   :  { %2651 = vrot.lane.b32.xlu1 %v12432_v61, %s8233_s30  ;;  %v1336_v61 = vpop.permute.xlu0 %1335 }
 0x57e   :  { %1488 = vst.msk [vmem:[#allocation2 + $0x218] sm:$0xff] %vm1420_vm7, %v1336_v61 }
 0x581   :  { %3091 = vrot.lane.b32.xlu1 %v12744_v49, %s8236_s20  ;;  %v1776_v5 = vpop.permute.xlu0 %1775 }
 0x582   :  { %1928 = vst.msk [vmem:[#allocation2 + $0x218] sm:$0xff] %vm1860_vm8, %v1776_v5 }
 0x585   :  { %3531 = vrot.lane.b32.xlu1 %v3320_v34, %s8237_s16  ;;  %v458_v60 = vpop.permute.xlu0 %457  ;;  %v5991_v34 = vld [vmem:[%s13906_s3 + $0x2e0] sm:$0xff] }
 0x586   :  { %609 = vst.msk [vmem:[#allocation2 + $0x220] sm:$0xff] %vm540_vm5, %v458_v60  ;;  %v7748_v61 = vpack.c.bf16 %v5991_v34, %v5987_v23  ;;  %v2885_v60 = vld [vmem:[%s13903_s0 + $0x276] sm:$0xff]  ;;  %v6012_v23 = vld [vmem:[%s13906_s3 + $0x388] sm:$0xff] }
 0x587   :  { %v6016_v34 = vld [vmem:[%s13906_s3 + $0x3a8] sm:$0xff] }
 0x589   :  { %2213 = vrot.lane.b32.xlu1 %v2001_v8, %s8232_s21 }
 0x58d   :  { %2653 = vrot.lane.b32.xlu1 %v12521_v41, %s8233_s30  ;;  %v898_v41 = vpop.permute.xlu0 %897 }
 0x58e   :  { %1049 = vst.msk [vmem:[#allocation2 + $0x220] sm:$0xff] %vm980_vm6, %v898_v41 }
 0x591   :  { %3093 = vrot.lane.b32.xlu1 %v12781_v11, %s8236_s20  ;;  %v1338_v63 = vpop.permute.xlu0 %1337 }
 0x592   :  { %1489 = vst.msk [vmem:[#allocation2 + $0x220] sm:$0xff] %vm1420_vm7, %v1338_v63  ;;  %v6000_v63 = vld [vmem:[%s13906_s3 + $0x328] sm:$0xff] }
 0x595   :  { %3533 = vrot.lane.b32.xlu1 %v3321_v44, %s8237_s16  ;;  %v1778_v18 = vpop.permute.xlu0 %1777  ;;  %v5996_v44 = vld [vmem:[%s13906_s3 + $0x308] sm:$0xff] }
 0x596   :  { %1929 = vst.msk [vmem:[#allocation2 + $0x220] sm:$0xff] %vm1860_vm8, %v1778_v18 }
 0x599   :  { %2215 = vrot.lane.b32.xlu1 %v2002_v47, %s8232_s21  ;;  %v460_v51 = vpop.permute.xlu0 %459  ;;  %v7750_v47 = vpack.c.bf16 %v6000_v63, %v5996_v44 }
 0x59a   :  { %610 = vst.msk [vmem:[#allocation2 + $0x228] sm:$0xff] %vm540_vm5, %v460_v51  ;;  %v5999_v51 = vld [vmem:[%s13906_s3 + $0x320] sm:$0xff] }
 0x59d   :  { %2655 = vrot.lane.b32.xlu1 %v12614_v62, %s8233_s30  ;;  %v5971_v62 = vld [vmem:[%s13906_s3 + $0x240] sm:$0xff]  ;;  %v900_v10 = vpop.permute.xlu0 %899 }
 0x59e   :  { %v7740_v6 = vpack.c.bf16 %v5975_v0, %v5971_v62  ;;  %1050 = vst.msk [vmem:[#allocation2 + $0x228] sm:$0xff] %vm980_vm6, %v900_v10  ;;  %v7752_v62 = vpack.c.bf16 %v5999_v51, %v5995_v54  ;;  %v12949_v10 = vld.sshfl [vmem:[#allocation5] sm:$0xff pattern:$0x76325410]  ;;  %v5946_v51 = vld [vmem:[%s13906_s3 + $0x178] sm:$0xff] }
 0x59f   :  { %v12976_v26 = vcombine.high %v12949_v10, %v12949_v10  ;;  %v6024_v54 = vld [vmem:[%s13906_s3 + $0x3e8] sm:$0xff] }
 0x5a0   :  { %7741 = vmatpush1.bf16.msra.mxu0 %v7740_v6  ;;  %v5910_v6 = vld [vmem:[%s13906_s3 + $0x58] sm:$0xff] }
 0x5a1   :  { %3095 = vrot.lane.b32.xlu1 %v12806_v24, %s8236_s20  ;;  %v1340_v16 = vpop.permute.xlu0 %1339  ;;  %7743 = vmatprep.subr.bf16.mxu0 %v7742_v21  ;;  %v5922_v21 = vld [vmem:[%s13906_s3 + $0xb8] sm:$0xff] }
 0x5a2   :  { %1490 = vst.msk [vmem:[#allocation2 + $0x228] sm:$0xff] %vm1420_vm7, %v1340_v16 }
 0x5a5   :  { %3535 = vrot.lane.b32.xlu1 %v3322_v13, %s8237_s16  ;;  %v1780_v58 = vpop.permute.xlu0 %1779  ;;  %v5914_v13 = vld [vmem:[%s13906_s3 + $0x78] sm:$0xff] }
 0x5a6   :  { %1930 = vst.msk [vmem:[#allocation2 + $0x228] sm:$0xff] %vm1860_vm8, %v1780_v58  ;;  %v2446_v58 = vld [vmem:[%s13903_s0 + $0x27c] sm:$0xff] }
 0x5a9   :  { %2217 = vrot.lane.b32.xlu1 %v12706_v25, %s8232_s21  ;;  %v462_v15 = vpop.permute.xlu0 %461  ;;  %v5983_v25 = vld [vmem:[%s13906_s3 + $0x2a0] sm:$0xff] }
 0x5aa   :  { %611 = vst.msk [vmem:[#allocation2 + $0x230] sm:$0xff] %vm540_vm5, %v462_v15  ;;  %v7744_v29 = vpack.c.bf16 %v5983_v25, %v5979_v2  ;;  %v5917_v2 = vld [vmem:[%s13906_s3 + $0x90] sm:$0xff] }
 0x5ab   :  { %v5921_v25 = vld [vmem:[%s13906_s3 + $0xb0] sm:$0xff] }
 0x5ac   :  { %7745 = vmatpush1.bf16.msra.mxu0 %v7744_v29 }
 0x5ad   :  { %2657 = vrot.lane.b32.xlu1 %v2443_v3, %s8233_s30  ;;  %v902_v37 = vpop.permute.xlu0 %901 }
 0x5ae   :  { %1051 = vst.msk [vmem:[#allocation2 + $0x230] sm:$0xff] %vm980_vm6, %v902_v37  ;;  %v5918_v37 = vld [vmem:[%s13906_s3 + $0x98] sm:$0xff] }
 0x5b1   :  { %3097 = vrot.lane.b32.xlu1 %v2883_v30, %s8236_s20  ;;  %v5827_v4 = vpop.permute.xlu1 %5826  ;;  %v1342_v33 = vpop.permute.xlu0 %1341  ;;  %v7902_v30 = vpack.c.bf16 %v5914_v13, %v5910_v6  ;;  %v3327_v6 = vld [vmem:[%s13903_s0 + $0x288] sm:$0x3] }
 0x5b2   :  { %5829 = vst.msk [vmem:[#allocation5 + $0xa] sm:$0x3] %vm5358_vm2, %v5827_v4  ;;  %v2886_v4 = vld [vmem:[%s13903_s0 + $0x27e] sm:$0xff] }
 0x5b3   :  { %1491 = vst.msk [vmem:[#allocation2 + $0x230] sm:$0xff] %vm1420_vm7, %v1342_v33 }
 0x5b5   :  { %3537 = vrot.lane.b32.xlu1 %v3323_v28, %s8237_s16  ;;  %v5840_v52 = vpop.permute.xlu1 %5839  ;;  %v1782_v59 = vpop.permute.xlu0 %1781 }
 0x5b6   :  { %5842 = vst.msk [vmem:[#allocation5 + $0xa] sm:$0x3] %vm5372_vm3, %v5840_v52  ;;  %v7906_v52 = vpack.c.bf16 %v5922_v21, %v5918_v37  ;;  %v5954_v37 = vld [vmem:[%s13906_s3 + $0x1b8] sm:$0xff] }
 0x5b7   :  { %1931 = vst.msk [vmem:[#allocation2 + $0x230] sm:$0xff] %vm1860_vm8, %v1782_v59  ;;  %v6004_v59 = vld [vmem:[%s13906_s3 + $0x348] sm:$0xff] }
 0x5b9   :  { %2219 = vrot.lane.b32.xlu1 %v12744_v49, %s8232_s21  ;;  %v464_v56 = vpop.permute.xlu0 %463  ;;  %v7746_v49 = vpack.c.bf16 %v5992_v43, %v5988_v36  ;;  %v7908_v43 = vpack.c.bf16 %v5921_v25, %v5917_v2  ;;  %v5949_v25 = vld [vmem:[%s13906_s3 + $0x190] sm:$0xff] }
 0x5ba   :  { %612 = vst.msk [vmem:[#allocation2 + $0x238] sm:$0xff] %vm540_vm5, %v464_v56  ;;  %vm1053_vm5 = vcmask 287936   ;;  %v7754_v56 = vpack.c.bf16 %v6008_v17, %v6004_v59 }
 0x5bb   :  { %7747 = vmatprep.subr.bf16.mxu0 %v7746_v49  ;;  %v5925_v49 = vld [vmem:[%s13906_s3 + $0xd0] sm:$0xff] }
 0x5bc   :  { %7749 = vmatpush1.bf16.msra.mxu0 %v7748_v61 }
 0x5bd   :  { %2659 = vrot.lane.b32.xlu1 %v2444_v50, %s8233_s30  ;;  %v904_v22 = vpop.permute.xlu0 %903  ;;  %7751 = vmatprep.subr.bf16.mxu0 %v7750_v47  ;;  %v5926_v50 = vld [vmem:[%s13906_s3 + $0xd8] sm:$0xff] }
 0x5be   :  { %1052 = vst.msk [vmem:[#allocation2 + $0x238] sm:$0xff] %vm980_vm6, %v904_v22  ;;  %v3326_v22 = vld [vmem:[%s13903_s0 + $0x280] sm:$0xff]  ;;  %v5942_v47 = vld [vmem:[%s13906_s3 + $0x158] sm:$0xff] }
 0x5c0   :  { %7753 = vmatpush1.bf16.msra.mxu0 %v7752_v62 }
 0x5c1   :  { %3099 = vrot.lane.b32.xlu1 %v2884_v39, %s8236_s20  ;;  %v5853_v45 = vpop.permute.xlu1 %5852  ;;  %v1344_v5 = vpop.permute.xlu0 %1343  ;;  %v5930_v39 = vld [vmem:[%s13906_s3 + $0xf8] sm:$0xff]  ;;  %7755 = vmatprep.subr.bf16.mxu0 %v7754_v56  ;;  %v5957_v56 = vld [vmem:[%s13906_s3 + $0x1d0] sm:$0xff] }
 0x5c2   :  { %5855 = vst.msk [vmem:[#allocation5 + $0xa] sm:$0x3] %vm5386_vm4, %v5853_v45  ;;  %v6003_v45 = vld [vmem:[%s13906_s3 + $0x340] sm:$0xff] }
 0x5c3   :  { %1492 = vst.msk [vmem:[#allocation2 + $0x238] sm:$0xff] %vm1420_vm7, %v1344_v5  ;;  %v5929_v5 = vld [vmem:[%s13906_s3 + $0xf0] sm:$0xff] }
 0x5c5   :  { %3539 = vrot.lane.b32.xlu1 %v3324_v55, %s8237_s16  ;;  %v5866_v8 = vpop.permute.xlu1 %5865  ;;  %v1784_v38 = vpop.permute.xlu0 %1783  ;;  %v6007_v55 = vld [vmem:[%s13906_s3 + $0x360] sm:$0xff] }
 0x5c6   :  { %5868 = vst.msk [vmem:[#allocation5 + $0xa] sm:$0x3] %vm5400_vm1, %v5866_v8  ;;  %vm613_vm1 = vcmask 189536   ;;  %v7756_v36 = vpack.c.bf16 %v6007_v55, %v6003_v45  ;;  %v7910_v8 = vpack.c.bf16 %v5930_v39, %v5926_v50  ;;  %v5962_v50 = vld [vmem:[%s13906_s3 + $0x1f8] sm:$0xff]  ;;  %v5961_v45 = vld [vmem:[%s13906_s3 + $0x1f0] sm:$0xff] }
 0x5c7   :  { %1932 = vst.msk [vmem:[#allocation2 + $0x238] sm:$0xff] %vm1860_vm8, %v1784_v38  ;;  %v6011_v38 = vld [vmem:[%s13906_s3 + $0x380] sm:$0xff]  ;;  %v5966_v55 = vld [vmem:[%s13906_s3 + $0x218] sm:$0xff] }
 0x5c8   :  { %7757 = vmatpush1.bf16.msra.mxu0 %v7756_v36  ;;  %v7928_v36 = vpack.c.bf16 %v5961_v45, %v5957_v56  ;;  %v6026_v56 = vld [vmem:[%s13906_s3 + $0x3f8] sm:$0xff] }
 0x5c9   :  { %2221 = vrot.lane.b32.xlu1 %v12781_v11, %s8232_s21  ;;  %v466_v48 = vpop.permute.xlu0 %465  ;;  %v3325_v11 = vld [vmem:[%s13903_s0 + $0x278] sm:$0xff] }
 0x5ca   :  { %614 = vst.msk [vmem:[#allocation2 + $0x240] sm:$0x3] %vm613_vm1, %v466_v48  ;;  %v7760_v48 = vpack.c.bf16 %v6015_v20, %v6011_v38  ;;  %v5973_v20 = vld [vmem:[%s13906_s3 + $0x250] sm:$0xff] }
 0x5cb   :  { %v5879_v27 = vpop.permute.xlu1 %5878 }
 0x5cc   :  { %5881 = vst.msk [vmem:[#allocation5 + $0xa] sm:$0x3] %vm5414_vm13, %v5879_v27  ;;  %vm1493_vm13 = vcmask 386336   ;;  %v5934_v27 = vld [vmem:[%s13906_s3 + $0x118] sm:$0xff] }
 0x5cd   :  { %2661 = vrot.lane.b32.xlu1 %v2445_v35, %s8233_s30  ;;  %v906_v12 = vpop.permute.xlu0 %905  ;;  %v7758_v35 = vpack.c.bf16 %v6016_v34, %v6012_v23  ;;  %v5965_v23 = vld [vmem:[%s13906_s3 + $0x210] sm:$0xff] }
 0x5ce   :  { %1054 = vst.msk [vmem:[#allocation2 + $0x240] sm:$0x3] %vm1053_vm5, %v906_v12  ;;  %v5933_v12 = vld [vmem:[%s13906_s3 + $0x110] sm:$0xff] }
 0x5cf   :  { %v5892_v32 = vpop.permute.xlu1 %5891  ;;  %7759 = vmatprep.subr.bf16.mxu0 %v7758_v35  ;;  %v5969_v34 = vld [vmem:[%s13906_s3 + $0x230] sm:$0xff] }
 0x5d0   :  { %5894 = vst.msk [vmem:[#allocation5 + $0xa] sm:$0x3] %vm5428_vm12, %v5892_v32  ;;  %v2447_v32 = vld [vmem:[%s13903_s0 + $0x284] sm:$0x3]  ;;  %7761 = vmatpush1.bf16.msra.mxu0 %v7760_v48  ;;  %vm13916_vm12 = vcmask 883712   ;;  %v5986_v48 = vld [vmem:[%s13906_s3 + $0x2b8] sm:$0xff] }
 0x5d1   :  { %3101 = vrot.lane.b32.xlu1 %v2885_v60, %s8236_s20  ;;  %v1346_v18 = vpop.permute.xlu0 %1345  ;;  %v5938_v60 = vld [vmem:[%s13906_s3 + $0x138] sm:$0xff]  ;;  %vm13919_vm2 = vmmov %vm13916_vm12 }
 0x5d2   :  { %1494 = vst.msk [vmem:[#allocation2 + $0x240] sm:$0x3] %vm1493_vm13, %v1346_v18  ;;  %v7914_v63 = vpack.c.bf16 %v5938_v60, %v5934_v27  ;;  %v6020_v18 = vld [vmem:[%s13906_s3 + $0x3c8] sm:$0xff]  ;;  %v5977_v27 = vld [vmem:[%s13906_s3 + $0x270] sm:$0xff]  ;;  %v5982_v60 = vld [vmem:[%s13906_s3 + $0x298] sm:$0xff] }
 0x5d3   :  { %v890_v41 = vpop.permute.xlu1 %889  ;;  %vm13921_vm4 = vmmov %vm13919_vm2 }
 0x5d4   :  { %1045 = vst.msk [vmem:[#allocation2 + $0x200] sm:$0xff] %vm980_vm6, %v890_v41  ;;  %vm1933_vm6 = vcmask 484736   ;;  %v5937_v41 = vld [vmem:[%s13906_s3 + $0x130] sm:$0xff]  ;;  %vm13923_vm1 = vmmov %vm13919_vm2 }
 0x5d5   :  { %3541 = vrot.lane.b32.xlu1 %v3325_v11, %s8237_s16  ;;  %1485 = vst.msk [vmem:[#allocation2 + $0x200] sm:$0xff] %vm1420_vm7, %v12626_v53  ;;  %v5905_v53 = vld [vmem:[%s13906_s3 + $0x30] sm:$0xff]  ;;  %v1786_v1 = vpop.permute.xlu0 %1785  ;;  %vm2373_vm7 = vcmask 583136   ;;  %v7912_v11 = vpack.c.bf16 %v5929_v5, %v5925_v49  ;;  %v7916_v13 = vpack.c.bf16 %v5937_v41, %v5933_v12  ;;  %v7932_v5 = vpack.c.bf16 %v5969_v34, %v5965_v23  ;;  %v6034_v23 = vld [vmem:[%s13906_s3 + $0x438] sm:$0xff]  ;;  %vm13925_vm13 = vmmov %vm13923_vm1 }
 0x5d6   :  { %v7900_v3 = vpack.c.bf16 %v5905_v53, %v5901_v46  ;;  %1934 = vst.msk [vmem:[#allocation2 + $0x240] sm:$0x3] %vm1933_vm6, %v1786_v1  ;;  %v6019_v46 = vld [vmem:[%s13906_s3 + $0x3c0] sm:$0xff]  ;;  %v7918_v1 = vpack.c.bf16 %v5946_v51, %v5942_v47  ;;  %v7938_v12 = vpack.c.bf16 %v5986_v48, %v5982_v60  ;;  %v5981_v41 = vld [vmem:[%s13906_s3 + $0x290] sm:$0xff]  ;;  %v5990_v47 = vld [vmem:[%s13906_s3 + $0x2d8] sm:$0xff] }
 0x5d7   :  { %v1770_v42 = vpop.permute.xlu1 %1769  ;;  %v12936_v31 = vld [vmem:[#allocation5 + $0x8] sm:$0x3f]  ;;  %v6023_v53 = vld [vmem:[%s13906_s3 + $0x3e0] sm:$0xff] }
 0x5d8   :  { %1925 = vst.msk [vmem:[#allocation2 + $0x200] sm:$0xff] %vm1860_vm8, %v1770_v42  ;;  %v12947_v0 = vrot.slane %v12936_v31, %v12132_v40  ;;  %vm13915_vm8 = vcmask 884480   ;;  %v7762_v42 = vpack.c.bf16 %v6024_v54, %v6020_v18  ;;  %v7764_v62 = vpack.c.bf16 %v6023_v53, %v6019_v46  ;;  %v5994_v18 = vld [vmem:[%s13906_s3 + $0x2f8] sm:$0xff]  ;;  %v5989_v46 = vld [vmem:[%s13906_s3 + $0x2d0] sm:$0xff] }
 0x5d9   :  { %2223 = vrot.lane.b32.xlu1 %v12806_v24, %s8232_s21  ;;  %v5913_v24 = vld [vmem:[%s13906_s3 + $0x70] sm:$0xff]  ;;  %v2226_v29 = vpop.permute.xlu0 %2225  ;;  %vm13918_vm15 = vmmov %vm13915_vm8 }
 0x5da   :  { %v12961_v16 = vcombine.high %v12947_v0, %v12947_v0  ;;  %v7904_v28 = vpack.c.bf16 %v5913_v24, %v5909_v19  ;;  %2374 = vst.msk [vmem:[#allocation2 + $0x240] sm:$0x3] %vm2373_vm7, %v2226_v29  ;;  %7763 = vmatprep.subr.bf16.mxu0 %v7762_v42  ;;  %v6288_v19 = vld [vmem:[%s13906_s3 + $0xc28] sm:$0xff]  ;;  %v5950_v24 = vld [vmem:[%s13906_s3 + $0x198] sm:$0xff]  ;;  %v5953_v29 = vld [vmem:[%s13906_s3 + $0x1b0] sm:$0xff]  ;;  %v7942_v42 = vpack.c.bf16 %v5994_v18, %v5990_v47 }
 0x5db   :  { %v2210_v15 = vpop.permute.xlu1 %2209  ;;  %7765 = vmatpush1.bf16.msra.mxu0 %v7764_v62  ;;  %v7922_v2 = vpack.c.bf16 %v5954_v37, %v5950_v24  ;;  %v7924_v59 = vpack.c.bf16 %v5953_v29, %v5949_v25  ;;  %v5993_v53 = vld [vmem:[%s13906_s3 + $0x2f0] sm:$0xff]  ;;  %v5998_v62 = vld [vmem:[%s13906_s3 + $0x318] sm:$0xff]  ;;  %vm13920_vm3 = vmmov %vm13915_vm8 }
 0x5dc   :  { %2365 = vst.msk [vmem:[#allocation2 + $0x200] sm:$0xff] %vm2300_vm9, %v2210_v15  ;;  %6563 = vmatprep.mubr.f32.mxu1 %v12961_v16  ;;  %v5945_v15 = vld [vmem:[%s13906_s3 + $0x170] sm:$0xff]  ;;  %v6018_v25 = vld [vmem:[%s13906_s3 + $0x3b8] sm:$0xff]  ;;  %vm13922_vm0 = vmmov %vm13920_vm3 }
 0x5dd   :  { %2663 = vrot.lane.b32.xlu1 %v2446_v58, %s8233_s30  ;;  %6564 = vmatmul.mubr.f32.vlgmr.msra.gmra.mrb[0].mxu1 %v12947_v0  ;;  %v5941_v58 = vld [vmem:[%s13906_s3 + $0x150] sm:$0xff]  ;;  %vm13924_vm5 = vmmov %vm13922_vm0 }
 0x5de   :  { %7901 = vmatpush1.bf16.msra.mxu1 %v7900_v3  ;;  %6705 = vmatprep.mubr.f32.mxu1 %v12976_v26  ;;  %v6045_v18 = vld [vmem:[%s13906_s3 + $0x490] sm:$0xff]  ;;  %vm13926_vm6 = vmmov %vm13922_vm0 }
 0x5df   :  { %v2650_v33 = vpop.permute.xlu1 %2649  ;;  %7903 = vmatprep.subr.bf16.mxu1 %v7902_v30  ;;  %v6284_v30 = vld [vmem:[%s13906_s3 + $0xc08] sm:$0xff]  ;;  %vm13927_vm7 = vmmov %vm13923_vm1 }
 0x5e0   :  { %2805 = vst.msk [vmem:[#allocation2 + $0x200] sm:$0xff] %vm2740_vm10, %v2650_v33  ;;  %v7894_v21 = vpack.c.bf16 %v6288_v19, %v6284_v30  ;;  %v6006_v30 = vld [vmem:[%s13906_s3 + $0x358] sm:$0xff] }
 0x5e1   :  { %3103 = vrot.lane.b32.xlu1 %v2886_v4, %s8236_s20  ;;  %v7920_v4 = vpack.c.bf16 %v5945_v15, %v5941_v58  ;;  %v6001_v15 = vld [vmem:[%s13906_s3 + $0x330] sm:$0xff]  ;;  %v6010_v19 = vld [vmem:[%s13906_s3 + $0x378] sm:$0xff] }
 0x5e2   :  { %7905 = vmatpush1.bf16.msra.mxu1 %v7904_v28  ;;  %7895 = vmatprep.subr.bf16.mxu0 %v7894_v21  ;;  %v7950_v21 = vpack.c.bf16 %v6010_v19, %v6006_v30  ;;  %v6061_v19 = vld [vmem:[%s13906_s3 + $0x510] sm:$0xff] }
 0x5e3   :  { %v3090_v61 = vpop.permute.xlu1 %3089  ;;  %7907 = vmatprep.subr.bf16.mxu1 %v7906_v52  ;;  %v5958_v52 = vld [vmem:[%s13906_s3 + $0x1d8] sm:$0xff] }
 0x5e4   :  { %3245 = vst.msk [vmem:[#allocation2 + $0x200] sm:$0xff] %vm3180_vm11, %v3090_v61  ;;  %v7926_v39 = vpack.c.bf16 %v5962_v50, %v5958_v52  ;;  %v5974_v61 = vld [vmem:[%s13906_s3 + $0x258] sm:$0xff]  ;;  %v6013_v50 = vld [vmem:[%s13906_s3 + $0x390] sm:$0xff] }
 0x5e5   :  { %3543 = vrot.lane.b32.xlu1 %v3326_v22, %s8237_s16  ;;  %v5970_v22 = vld [vmem:[%s13906_s3 + $0x238] sm:$0xff] }
 0x5e6   :  { %7909 = vmatpush1.bf16.msra.mxu1 %v7908_v43  ;;  %v7930_v49 = vpack.c.bf16 %v5970_v22, %v5966_v55 }
 0x5e7   :  { %v3530_v44 = vpop.permute.xlu1 %3529  ;;  %7911 = vmatprep.subr.bf16.mxu1 %v7910_v8  ;;  %v5978_v8 = vld [vmem:[%s13906_s3 + $0x278] sm:$0xff] }
 0x5e8   :  { %3685 = vst.msk [vmem:[#allocation2 + $0x200] sm:$0xff] %vm13915_vm8, %v3530_v44  ;;  %v7934_v38 = vpack.c.bf16 %v5978_v8, %v5974_v61  ;;  %v5985_v44 = vld [vmem:[%s13906_s3 + $0x2b0] sm:$0xff]  ;;  %vm13928_vm8 = vmmov %vm13922_vm0 }
 0x5e9   :  { %2665 = vrot.lane.b32.xlu1 %v2447_v32, %s8233_s30  ;;  %v7936_v32 = vpack.c.bf16 %v5977_v27, %v5973_v20  ;;  %v7940_v54 = vpack.c.bf16 %v5985_v44, %v5981_v41  ;;  %v6042_v20 = vld [vmem:[%s13906_s3 + $0x478] sm:$0xff] }
 0x5ea   :  { %7913 = vmatpush1.bf16.msra.mxu1 %v7912_v11  ;;  %v6050_v41 = vld [vmem:[%s13906_s3 + $0x4b8] sm:$0xff] }
 0x5eb   :  { %v2212_v3 = vpop.permute.xlu1 %2211  ;;  %7915 = vmatprep.subr.bf16.mxu1 %v7914_v63 }
 0x5ec   :  { %2366 = vst.msk [vmem:[#allocation2 + $0x208] sm:$0xff] %vm2300_vm9, %v2212_v3 }
 0x5ed   :  { %3545 = vrot.lane.b32.xlu1 %v3327_v6, %s8237_s16  ;;  %v6002_v6 = vld [vmem:[%s13906_s3 + $0x338] sm:$0xff] }
 0x5ee   :  { %7917 = vmatpush1.bf16.msra.mxu1 %v7916_v13  ;;  %v7944_v13 = vpack.c.bf16 %v5993_v53, %v5989_v46  ;;  %v7946_v3 = vpack.c.bf16 %v6002_v6, %v5998_v62  ;;  %v6053_v6 = vld [vmem:[%s13906_s3 + $0x4d0] sm:$0xff] }
 0x5ef   :  { %v2652_v28 = vpop.permute.xlu1 %2651  ;;  %7919 = vmatprep.subr.bf16.mxu1 %v7918_v1  ;;  %v3759_v33 = vld [vmem:[#allocation2 + $0x200] sm:$0xff]  ;;  %v5997_v1 = vld [vmem:[%s13906_s3 + $0x310] sm:$0xff] }
 0x5f0   :  { %2806 = vst.msk [vmem:[#allocation2 + $0x208] sm:$0xff] %vm2740_vm10, %v2652_v28  ;;  %7654 = vmatmul.mubr.msk.f32.gmra.mrb[128].mxu0 %vm13916_vm12, %v3759_v33  ;;  %v7948_v24 = vpack.c.bf16 %v6001_v15, %v5997_v1  ;;  %v6009_v28 = vld [vmem:[%s13906_s3 + $0x370] sm:$0xff]  ;;  %vm3253_vm12 = vcmask 779936  }
 0x5f1   :  { %7656 = vmatprep.mubr.msk.f32.mxu0 %vm13917_vm14, %v8235_v14 }
 0x5f2   :  { %7921 = vmatpush1.bf16.msra.mxu1 %v7920_v4  ;;  %v6005_v4 = vld [vmem:[%s13906_s3 + $0x350] sm:$0xff] }
 0x5f3   :  { %v3092_v17 = vpop.permute.xlu1 %3091  ;;  %7923 = vmatprep.subr.bf16.mxu1 %v7922_v2  ;;  %v6014_v2 = vld [vmem:[%s13906_s3 + $0x398] sm:$0xff]  ;;  %v7952_v29 = vpack.c.bf16 %v6009_v28, %v6005_v4 }
 0x5f4   :  { %3246 = vst.msk [vmem:[#allocation2 + $0x208] sm:$0xff] %vm3180_vm11, %v3092_v17  ;;  %v7954_v52 = vpack.c.bf16 %v6018_v25, %v6014_v2  ;;  %v6069_v25 = vld [vmem:[%s13906_s3 + $0x550] sm:$0xff] }
 0x5f6   :  { %7925 = vmatpush1.bf16.msra.mxu1 %v7924_v59  ;;  %v6017_v59 = vld [vmem:[%s13906_s3 + $0x3b0] sm:$0xff] }
 0x5f7   :  { %v3532_v43 = vpop.permute.xlu1 %3531  ;;  %7927 = vmatprep.subr.bf16.mxu1 %v7926_v39  ;;  %v6022_v39 = vld [vmem:[%s13906_s3 + $0x3d8] sm:$0xff]  ;;  %v7956_v45 = vpack.c.bf16 %v6017_v59, %v6013_v50 }
 0x5f8   :  { %3686 = vst.msk [vmem:[#allocation2 + $0x208] sm:$0xff] %vm13918_vm15, %v3532_v43  ;;  %v7958_v22 = vpack.c.bf16 %v6026_v56, %v6022_v39  ;;  %v6025_v43 = vld [vmem:[%s13906_s3 + $0x3f0] sm:$0xff]  ;;  %vm3693_vm15 = vcmask 878336  }
 0x5f9   :  { %v6077_v39 = vld [vmem:[%s13906_s3 + $0x590] sm:$0xff] }
 0x5fa   :  { %7929 = vmatpush1.bf16.msra.mxu1 %v7928_v36  ;;  %v6021_v36 = vld [vmem:[%s13906_s3 + $0x3d0] sm:$0xff] }
 0x5fb   :  { %v2214_v35 = vpop.permute.xlu1 %2213  ;;  %7931 = vmatprep.subr.bf16.mxu1 %v7930_v49  ;;  %v6030_v49 = vld [vmem:[%s13906_s3 + $0x418] sm:$0xff]  ;;  %v7960_v34 = vpack.c.bf16 %v6025_v43, %v6021_v36  ;;  %v6081_v56 = vld [vmem:[%s13906_s3 + $0x5b0] sm:$0xff] }
 0x5fc   :  { %2367 = vst.msk [vmem:[#allocation2 + $0x210] sm:$0xff] %vm2300_vm9, %v2214_v35  ;;  %v7962_v8 = vpack.c.bf16 %v6034_v23, %v6030_v49  ;;  %v6033_v35 = vld [vmem:[%s13906_s3 + $0x430] sm:$0xff]  ;;  %v7988_v36 = vpack.c.bf16 %v6081_v56, %v6077_v39 }
 0x5fd   :  { %v6085_v23 = vld [vmem:[%s13906_s3 + $0x5d0] sm:$0xff] }
 0x5fe   :  { %7933 = vmatpush1.bf16.msra.mxu1 %v7932_v5  ;;  %v6029_v5 = vld [vmem:[%s13906_s3 + $0x410] sm:$0xff] }
 0x5ff   :  { %v2654_v11 = vpop.permute.xlu1 %2653  ;;  %7935 = vmatprep.subr.bf16.mxu1 %v7934_v38  ;;  %v3760_v63 = vld [vmem:[#allocation2 + $0x208] sm:$0xff]  ;;  %v6038_v38 = vld [vmem:[%s13906_s3 + $0x458] sm:$0xff]  ;;  %v7964_v27 = vpack.c.bf16 %v6033_v35, %v6029_v5 }
 0x600   :  { %2807 = vst.msk [vmem:[#allocation2 + $0x210] sm:$0xff] %vm2740_vm10, %v2654_v11  ;;  %7657 = vmatmul.mubr.msk.f32.gmra.mrb[130].mxu0 %vm13919_vm2, %v3760_v63  ;;  %v7966_v48 = vpack.c.bf16 %v6042_v20, %v6038_v38  ;;  %v6041_v11 = vld [vmem:[%s13906_s3 + $0x470] sm:$0xff]  ;;  %vm13931_vm2 = vmmov %vm13923_vm1 }
 0x601   :  { %7659 = vmatprep.mubr.msk.f32.mxu0 %vm13917_vm14, %v8235_v14  ;;  %v6093_v20 = vld [vmem:[%s13906_s3 + $0x610] sm:$0xff] }
 0x602   :  { %7937 = vmatpush1.bf16.msra.mxu1 %v7936_v32  ;;  %v6037_v32 = vld [vmem:[%s13906_s3 + $0x450] sm:$0xff] }
 0x603   :  { %v3094_v51 = vpop.permute.xlu1 %3093  ;;  %7939 = vmatprep.subr.bf16.mxu1 %v7938_v12  ;;  %v6046_v12 = vld [vmem:[%s13906_s3 + $0x498] sm:$0xff]  ;;  %v7968_v44 = vpack.c.bf16 %v6041_v11, %v6037_v32 }
 0x604   :  { %3247 = vst.msk [vmem:[#allocation2 + $0x210] sm:$0xff] %vm3180_vm11, %v3094_v51  ;;  %v7970_v47 = vpack.c.bf16 %v6050_v41, %v6046_v12  ;;  %v6101_v41 = vld [vmem:[%s13906_s3 + $0x650] sm:$0xff] }
 0x606   :  { %7941 = vmatpush1.bf16.msra.mxu1 %v7940_v54  ;;  %v6049_v54 = vld [vmem:[%s13906_s3 + $0x4b0] sm:$0xff] }
 0x607   :  { %v3534_v58 = vpop.permute.xlu1 %3533  ;;  %7943 = vmatprep.subr.bf16.mxu1 %v7942_v42  ;;  %v6054_v42 = vld [vmem:[%s13906_s3 + $0x4d8] sm:$0xff]  ;;  %v7972_v46 = vpack.c.bf16 %v6049_v54, %v6045_v18 }
 0x608   :  { %3687 = vst.msk [vmem:[#allocation2 + $0x210] sm:$0xff] %vm13920_vm3, %v3534_v58  ;;  %v6062_v58 = vld [vmem:[%s13906_s3 + $0x518] sm:$0xff]  ;;  %vm6354_vm3 = vcmask 130048  }
 0x60a   :  { %7945 = vmatpush1.bf16.msra.mxu1 %v7944_v13  ;;  %v6057_v13 = vld [vmem:[%s13906_s3 + $0x4f0] sm:$0xff] }
 0x60b   :  { %v2216_v37 = vpop.permute.xlu1 %2215  ;;  %7947 = vmatprep.subr.bf16.mxu1 %v7946_v3  ;;  %v6066_v3 = vld [vmem:[%s13906_s3 + $0x538] sm:$0xff]  ;;  %v7976_v1 = vpack.c.bf16 %v6057_v13, %v6053_v6 }
 0x60c   :  { %2368 = vst.msk [vmem:[#allocation2 + $0x218] sm:$0xff] %vm2300_vm9, %v2216_v37  ;;  %v7978_v30 = vpack.c.bf16 %v6066_v3, %v6062_v58  ;;  %v6070_v37 = vld [vmem:[%s13906_s3 + $0x558] sm:$0xff]  ;;  %v6117_v3 = vld [vmem:[%s13906_s3 + $0x6d0] sm:$0xff] }
 0x60e   :  { %7949 = vmatpush1.bf16.msra.mxu1 %v7948_v24  ;;  %v6065_v24 = vld [vmem:[%s13906_s3 + $0x530] sm:$0xff] }
 0x60f   :  { %v2656_v33 = vpop.permute.xlu1 %2655  ;;  %7951 = vmatprep.subr.bf16.mxu1 %v7950_v21  ;;  %v3761_v17 = vld [vmem:[#allocation2 + $0x210] sm:$0xff]  ;;  %v6074_v21 = vld [vmem:[%s13906_s3 + $0x578] sm:$0xff]  ;;  %v7980_v4 = vpack.c.bf16 %v6065_v24, %v6061_v19 }
 0x610   :  { %2808 = vst.msk [vmem:[#allocation2 + $0x218] sm:$0xff] %vm2740_vm10, %v2656_v33  ;;  %7660 = vmatmul.mubr.msk.f32.gmra.mrb[132].mxu0 %vm13921_vm4, %v3761_v17  ;;  %v7982_v2 = vpack.c.bf16 %v6074_v21, %v6070_v37  ;;  %v6078_v33 = vld [vmem:[%s13906_s3 + $0x598] sm:$0xff]  ;;  %v6125_v21 = vld [vmem:[%s13906_s3 + $0x710] sm:$0xff]  ;;  %vm7140_vm4 = vcmask 74752  }
 0x611   :  { %7662 = vmatprep.mubr.msk.f32.mxu0 %vm13917_vm14, %v8235_v14 }
 0x612   :  { %7953 = vmatpush1.bf16.msra.mxu1 %v7952_v29  ;;  %v6073_v29 = vld [vmem:[%s13906_s3 + $0x570] sm:$0xff] }
 0x613   :  { %v3096_v55 = vpop.permute.xlu1 %3095  ;;  %7955 = vmatprep.subr.bf16.mxu1 %v7954_v52  ;;  %v6082_v52 = vld [vmem:[%s13906_s3 + $0x5b8] sm:$0xff]  ;;  %v7984_v50 = vpack.c.bf16 %v6073_v29, %v6069_v25 }
 0x614   :  { %3248 = vst.msk [vmem:[#allocation2 + $0x218] sm:$0xff] %vm3180_vm11, %v3096_v55  ;;  %v7986_v17 = vpack.c.bf16 %v6082_v52, %v6078_v33  ;;  %v6086_v55 = vld [vmem:[%s13906_s3 + $0x5d8] sm:$0xff]  ;;  %v6133_v52 = vld [vmem:[%s13906_s3 + $0x750] sm:$0xff] }
 0x616   :  { %7957 = vmatpush1.bf16.msra.mxu1 %v7956_v45 }
 0x617   :  { %v3536_v61 = vpop.permute.xlu1 %3535  ;;  %7959 = vmatprep.subr.bf16.mxu1 %v7958_v22  ;;  %v6090_v22 = vld [vmem:[%s13906_s3 + $0x5f8] sm:$0xff] }
 0x618   :  { %3688 = vst.msk [vmem:[#allocation2 + $0x218] sm:$0xff] %vm13922_vm0, %v3536_v61  ;;  %v7990_v49 = vpack.c.bf16 %v6090_v22, %v6086_v55  ;;  %v6094_v61 = vld [vmem:[%s13906_s3 + $0x618] sm:$0xff]  ;;  %v6141_v55 = vld [vmem:[%s13906_s3 + $0x790] sm:$0xff] }
 0x619   :  { %v6145_v22 = vld [vmem:[%s13906_s3 + $0x7b0] sm:$0xff] }
 0x61a   :  { %7961 = vmatpush1.bf16.msra.mxu1 %v7960_v34  ;;  %v6089_v34 = vld [vmem:[%s13906_s3 + $0x5f0] sm:$0xff] }
 0x61b   :  { %v2218_v60 = vpop.permute.xlu1 %2217  ;;  %7963 = vmatprep.subr.bf16.mxu1 %v7962_v8  ;;  %v6098_v8 = vld [vmem:[%s13906_s3 + $0x638] sm:$0xff]  ;;  %v7992_v5 = vpack.c.bf16 %v6089_v34, %v6085_v23  ;;  %v8020_v23 = vpack.c.bf16 %v6145_v22, %v6141_v55 }
 0x61c   :  { %2369 = vst.msk [vmem:[#allocation2 + $0x220] sm:$0xff] %vm2300_vm9, %v2218_v60  ;;  %v7994_v38 = vpack.c.bf16 %v6098_v8, %v6094_v61  ;;  %v6102_v60 = vld [vmem:[%s13906_s3 + $0x658] sm:$0xff]  ;;  %v6149_v8 = vld [vmem:[%s13906_s3 + $0x7d0] sm:$0xff] }
 0x61d   :  { %6706 = vmatmul.mubr.f32.vlgmr.msra.gmra.mrb[2].mxu1 %v12949_v10 }
 0x61e   :  { %7965 = vmatpush1.bf16.msra.mxu1 %v7964_v27  ;;  %6776 = vmatprep.mubr.f32.mxu1 %v12147_v7  ;;  %v6058_v7 = vld [vmem:[%s13906_s3 + $0x4f8] sm:$0xff]  ;;  %v6097_v27 = vld [vmem:[%s13906_s3 + $0x630] sm:$0xff] }
 0x61f   :  { %v2658_v63 = vpop.permute.xlu1 %2657  ;;  %7967 = vmatprep.subr.bf16.mxu1 %v7966_v48  ;;  %v3762_v51 = vld [vmem:[#allocation2 + $0x218] sm:$0xff]  ;;  %v7974_v62 = vpack.c.bf16 %v6058_v7, %v6054_v42  ;;  %v7996_v32 = vpack.c.bf16 %v6097_v27, %v6093_v20  ;;  %v6109_v42 = vld [vmem:[%s13906_s3 + $0x690] sm:$0xff] }
 0x620   :  { %2809 = vst.msk [vmem:[#allocation2 + $0x220] sm:$0xff] %vm2740_vm10, %v2658_v63  ;;  %7663 = vmatmul.mubr.msk.f32.gmra.mrb[134].mxu0 %vm13923_vm1, %v3762_v51  ;;  %v6106_v48 = vld [vmem:[%s13906_s3 + $0x678] sm:$0xff]  ;;  %v6113_v7 = vld [vmem:[%s13906_s3 + $0x6b0] sm:$0xff] }
 0x621   :  { %7665 = vmatprep.mubr.msk.f32.mxu0 %vm13917_vm14, %v8235_v14  ;;  %v7998_v12 = vpack.c.bf16 %v6106_v48, %v6102_v60  ;;  %v6110_v63 = vld [vmem:[%s13906_s3 + $0x698] sm:$0xff]  ;;  %v8004_v6 = vpack.c.bf16 %v6113_v7, %v6109_v42  ;;  %v6157_v48 = vld [vmem:[%s13906_s3 + $0x810] sm:$0xff] }
 0x622   :  { %7969 = vmatpush1.bf16.msra.mxu1 %v7968_v44  ;;  %v6105_v44 = vld [vmem:[%s13906_s3 + $0x670] sm:$0xff]  ;;  %v6178_v42 = vld [vmem:[%s13906_s3 + $0x8b8] sm:$0xff] }
 0x623   :  { %v3098_v53 = vpop.permute.xlu1 %3097  ;;  %7971 = vmatprep.subr.bf16.mxu1 %v7970_v47  ;;  %v6114_v47 = vld [vmem:[%s13906_s3 + $0x6b8] sm:$0xff]  ;;  %v8000_v18 = vpack.c.bf16 %v6105_v44, %v6101_v41  ;;  %v3106_v44 = vpop.permute.xlu0 %3105 }
 0x624   :  { %3249 = vst.msk [vmem:[#allocation2 + $0x220] sm:$0xff] %vm3180_vm11, %v3098_v53  ;;  %v8002_v51 = vpack.c.bf16 %v6114_v47, %v6110_v63  ;;  %v6118_v53 = vld [vmem:[%s13906_s3 + $0x6d8] sm:$0xff] }
 0x626   :  { %7973 = vmatpush1.bf16.msra.mxu1 %v7972_v46 }
 0x627   :  { %v3538_v15 = vpop.permute.xlu1 %3537  ;;  %7975 = vmatprep.subr.bf16.mxu1 %v7974_v62  ;;  %v6122_v62 = vld [vmem:[%s13906_s3 + $0x6f8] sm:$0xff] }
 0x628   :  { %3689 = vst.msk [vmem:[#allocation2 + $0x220] sm:$0xff] %vm13924_vm5, %v3538_v15  ;;  %v8006_v58 = vpack.c.bf16 %v6122_v62, %v6118_v53  ;;  %v6126_v15 = vld [vmem:[%s13906_s3 + $0x718] sm:$0xff] }
 0x62a   :  { %7977 = vmatpush1.bf16.msra.mxu1 %v7976_v1  ;;  %v6121_v1 = vld [vmem:[%s13906_s3 + $0x6f0] sm:$0xff] }
 0x62b   :  { %v2220_v28 = vpop.permute.xlu1 %2219  ;;  %7979 = vmatprep.subr.bf16.mxu1 %v7978_v30  ;;  %v6130_v30 = vld [vmem:[%s13906_s3 + $0x738] sm:$0xff]  ;;  %v8008_v19 = vpack.c.bf16 %v6121_v1, %v6117_v3  ;;  %v6181_v1 = vld [vmem:[%s13906_s3 + $0x8d0] sm:$0xff] }
 0x62c   :  { %2370 = vst.msk [vmem:[#allocation2 + $0x228] sm:$0xff] %vm2300_vm9, %v2220_v28  ;;  %v8010_v37 = vpack.c.bf16 %v6130_v30, %v6126_v15  ;;  %v6134_v28 = vld [vmem:[%s13906_s3 + $0x758] sm:$0xff]  ;;  %v6185_v15 = vld [vmem:[%s13906_s3 + $0x8f0] sm:$0xff] }
 0x62d   :  { %v6190_v30 = vld [vmem:[%s13906_s3 + $0x918] sm:$0xff] }
 0x62e   :  { %7981 = vmatpush1.bf16.msra.mxu1 %v7980_v4  ;;  %v6129_v4 = vld [vmem:[%s13906_s3 + $0x730] sm:$0xff] }
 0x62f   :  { %v2660_v59 = vpop.permute.xlu1 %2659  ;;  %7983 = vmatprep.subr.bf16.mxu1 %v7982_v2  ;;  %v3763_v45 = vld [vmem:[#allocation2 + $0x220] sm:$0xff]  ;;  %v6138_v2 = vld [vmem:[%s13906_s3 + $0x778] sm:$0xff]  ;;  %v8012_v25 = vpack.c.bf16 %v6129_v4, %v6125_v21 }
 0x630   :  { %2810 = vst.msk [vmem:[#allocation2 + $0x228] sm:$0xff] %vm2740_vm10, %v2660_v59  ;;  %7666 = vmatmul.mubr.msk.f32.gmra.mrb[136].mxu0 %vm13925_vm13, %v3763_v45  ;;  %v8014_v33 = vpack.c.bf16 %v6138_v2, %v6134_v28  ;;  %v6142_v59 = vld [vmem:[%s13906_s3 + $0x798] sm:$0xff]  ;;  %v6287_v21 = vld [vmem:[%s13906_s3 + $0xc20] sm:$0xff]  ;;  %v6189_v2 = vld [vmem:[%s13906_s3 + $0x910] sm:$0xff] }
 0x631   :  { %7668 = vmatprep.mubr.msk.f32.mxu0 %vm13917_vm14, %v8235_v14 }
 0x632   :  { %7985 = vmatpush1.bf16.msra.mxu1 %v7984_v50  ;;  %v6137_v50 = vld [vmem:[%s13906_s3 + $0x770] sm:$0xff] }
 0x633   :  { %v3100_v43 = vpop.permute.xlu1 %3099  ;;  %7987 = vmatprep.subr.bf16.mxu1 %v7986_v17  ;;  %v6146_v17 = vld [vmem:[%s13906_s3 + $0x7b8] sm:$0xff]  ;;  %v8016_v39 = vpack.c.bf16 %v6137_v50, %v6133_v52  ;;  %v6332_v50 = vcombine.high %v12936_v31, %v12936_v31 }
 0x634   :  { %3250 = vst.msk [vmem:[#allocation2 + $0x228] sm:$0xff] %vm3180_vm11, %v3100_v43  ;;  %v8018_v45 = vpack.c.bf16 %v6146_v17, %v6142_v59  ;;  %v6150_v43 = vld [vmem:[%s13906_s3 + $0x7d8] sm:$0xff] }
 0x635   :  { %v6210_v31 = vld [vmem:[%s13906_s3 + $0x9b8] sm:$0xff] }
 0x636   :  { %7989 = vmatpush1.bf16.msra.mxu1 %v7988_v36 }
 0x637   :  { %v3540_v35 = vpop.permute.xlu1 %3539  ;;  %7991 = vmatprep.subr.bf16.mxu1 %v7990_v49  ;;  %v6154_v49 = vld [vmem:[%s13906_s3 + $0x7f8] sm:$0xff] }
 0x638   :  { %3690 = vst.msk [vmem:[#allocation2 + $0x228] sm:$0xff] %vm13926_vm6, %v3540_v35  ;;  %v8022_v61 = vpack.c.bf16 %v6154_v49, %v6150_v43  ;;  %v6158_v35 = vld [vmem:[%s13906_s3 + $0x818] sm:$0xff] }
 0x639   :  { %v6214_v43 = vld [vmem:[%s13906_s3 + $0x9d8] sm:$0xff] }
 0x63a   :  { %7993 = vmatpush1.bf16.msra.mxu1 %v7992_v5  ;;  %v6153_v5 = vld [vmem:[%s13906_s3 + $0x7f0] sm:$0xff] }
 0x63b   :  { %v2222_v11 = vpop.permute.xlu1 %2221  ;;  %7995 = vmatprep.subr.bf16.mxu1 %v7994_v38  ;;  %v6162_v38 = vld [vmem:[%s13906_s3 + $0x838] sm:$0xff]  ;;  %v8024_v20 = vpack.c.bf16 %v6153_v5, %v6149_v8 }
 0x63c   :  { %2371 = vst.msk [vmem:[#allocation2 + $0x230] sm:$0xff] %vm2300_vm9, %v2222_v11  ;;  %v8026_v60 = vpack.c.bf16 %v6162_v38, %v6158_v35  ;;  %v6166_v11 = vld [vmem:[%s13906_s3 + $0x858] sm:$0xff] }
 0x63d   :  { %v6222_v8 = vld [vmem:[%s13906_s3 + $0xa18] sm:$0xff] }
 0x63e   :  { %7997 = vmatpush1.bf16.msra.mxu1 %v7996_v32  ;;  %v6161_v32 = vld [vmem:[%s13906_s3 + $0x830] sm:$0xff]  ;;  %v6226_v5 = vld [vmem:[%s13906_s3 + $0xa38] sm:$0xff] }
 0x63f   :  { %v2662_v54 = vpop.permute.xlu1 %2661  ;;  %7999 = vmatprep.subr.bf16.mxu1 %v7998_v12  ;;  %v3764_v46 = vld [vmem:[#allocation2 + $0x228] sm:$0xff]  ;;  %v6170_v12 = vld [vmem:[%s13906_s3 + $0x878] sm:$0xff]  ;;  %v8028_v41 = vpack.c.bf16 %v6161_v32, %v6157_v48  ;;  %v8058_v38 = vpack.c.bf16 %v6226_v5, %v6222_v8  ;;  %v6947_v8 = vld [vmem:[%s13908_s5 + $0x90] sm:$0xff] }
 0x640   :  { %2811 = vst.msk [vmem:[#allocation2 + $0x230] sm:$0xff] %vm2740_vm10, %v2662_v54  ;;  %7669 = vmatmul.mubr.msk.f32.gmra.mrb[138].mxu0 %vm13927_vm7, %v3764_v46  ;;  %v8030_v47 = vpack.c.bf16 %v6170_v12, %v6166_v11  ;;  %v6169_v54 = vld [vmem:[%s13906_s3 + $0x870] sm:$0xff]  ;;  %v6234_v48 = vld [vmem:[%s13906_s3 + $0xa78] sm:$0xff] }
 0x641   :  { %7671 = vmatprep.mubr.msk.f32.mxu0 %vm13917_vm14, %v8235_v14  ;;  %v6229_v12 = vld [vmem:[%s13906_s3 + $0xa50] sm:$0xff] }
 0x642   :  { %8001 = vmatpush1.bf16.msra.mxu1 %v8000_v18  ;;  %v6165_v18 = vld [vmem:[%s13906_s3 + $0x850] sm:$0xff] }
 0x643   :  { %v3102_v13 = vpop.permute.xlu1 %3101  ;;  %8003 = vmatprep.subr.bf16.mxu1 %v8002_v51  ;;  %v6174_v51 = vld [vmem:[%s13906_s3 + $0x898] sm:$0xff]  ;;  %v8032_v7 = vpack.c.bf16 %v6169_v54, %v6165_v18  ;;  %v6237_v54 = vld [vmem:[%s13906_s3 + $0xa90] sm:$0xff] }
 0x644   :  { %3251 = vst.msk [vmem:[#allocation2 + $0x230] sm:$0xff] %vm3180_vm11, %v3102_v13  ;;  %v8034_v62 = vpack.c.bf16 %v6178_v42, %v6174_v51  ;;  %v6177_v13 = vld [vmem:[%s13906_s3 + $0x8b0] sm:$0xff]  ;;  %v6246_v42 = vld [vmem:[%s13906_s3 + $0xad8] sm:$0xff] }
 0x645   :  { %v6241_v51 = vld [vmem:[%s13906_s3 + $0xab0] sm:$0xff] }
 0x646   :  { %8005 = vmatpush1.bf16.msra.mxu1 %v8004_v6  ;;  %v6173_v6 = vld [vmem:[%s13906_s3 + $0x890] sm:$0xff] }
 0x647   :  { %v3542_v24 = vpop.permute.xlu1 %3541  ;;  %8007 = vmatprep.subr.bf16.mxu1 %v8006_v58  ;;  %v8036_v58 = vpack.c.bf16 %v6177_v13, %v6173_v6  ;;  %v6249_v6 = vld [vmem:[%s13906_s3 + $0xaf0] sm:$0xff]  ;;  %v6254_v13 = vld [vmem:[%s13906_s3 + $0xb18] sm:$0xff] }
 0x648   :  { %3691 = vst.msk [vmem:[#allocation2 + $0x230] sm:$0xff] %vm13928_vm8, %v3542_v24  ;;  %v8040_v24 = vpack.c.bf16 %v6185_v15, %v6181_v1  ;;  %v6257_v1 = vld [vmem:[%s13906_s3 + $0xb30] sm:$0xff]  ;;  %v6262_v15 = vld [vmem:[%s13906_s3 + $0xb58] sm:$0xff] }
 0x64a   :  { %8009 = vmatpush1.bf16.msra.mxu1 %v8008_v19  ;;  %v6194_v19 = vld [vmem:[%s13906_s3 + $0x938] sm:$0xff] }
 0x64b   :  { %v2224_v29 = vpop.permute.xlu1 %2223  ;;  %8011 = vmatprep.subr.bf16.mxu1 %v8010_v37  ;;  %v6283_v37 = vld [vmem:[%s13906_s3 + $0xc00] sm:$0xff]  ;;  %v8042_v28 = vpack.c.bf16 %v6194_v19, %v6190_v30  ;;  %v6266_v30 = vld [vmem:[%s13906_s3 + $0xb78] sm:$0xff] }
 0x64c   :  { %2372 = vst.msk [vmem:[#allocation2 + $0x238] sm:$0xff] %vm2300_vm9, %v2224_v29  ;;  %vm13929_vm9 = vmmov %vm13923_vm1  ;;  %v6198_v29 = vld [vmem:[%s13906_s3 + $0x958] sm:$0xff]  ;;  %v7896_v52 = vpack.c.bf16 %v6287_v21, %v6283_v37  ;;  %v6261_v37 = vld [vmem:[%s13906_s3 + $0xb50] sm:$0xff] }
 0x64d   :  { %v6265_v21 = vld [vmem:[%s13906_s3 + $0xb70] sm:$0xff] }
 0x64e   :  { %8013 = vmatpush1.bf16.msra.mxu1 %v8012_v25  ;;  %v6193_v25 = vld [vmem:[%s13906_s3 + $0x930] sm:$0xff] }
 0x64f   :  { %v2664_v56 = vpop.permute.xlu1 %2663  ;;  %8015 = vmatprep.subr.bf16.mxu1 %v8014_v33  ;;  %v3765_v36 = vld [vmem:[#allocation2 + $0x230] sm:$0xff]  ;;  %v6202_v33 = vld [vmem:[%s13906_s3 + $0x978] sm:$0xff]  ;;  %v8044_v59 = vpack.c.bf16 %v6193_v25, %v6189_v2  ;;  %v8080_v2 = vpack.c.bf16 %v6265_v21, %v6261_v37  ;;  %v6942_v37 = vld [vmem:[%s13908_s5 + $0x68] sm:$0xff] }
 0x650   :  { %2812 = vst.msk [vmem:[#allocation2 + $0x238] sm:$0xff] %vm2740_vm10, %v2664_v56  ;;  %7672 = vmatmul.mubr.msk.f32.gmra.mrb[140].mxu0 %vm13929_vm9, %v3765_v36  ;;  %vm13930_vm10 = vmmov %vm13922_vm0  ;;  %v8046_v17 = vpack.c.bf16 %v6202_v33, %v6198_v29  ;;  %v6201_v56 = vld [vmem:[%s13906_s3 + $0x970] sm:$0xff] }
 0x651   :  { %7674 = vmatprep.mubr.msk.f32.mxu0 %vm13917_vm14, %v8235_v14  ;;  %v6209_v36 = vld [vmem:[%s13906_s3 + $0x9b0] sm:$0xff] }
 0x652   :  { %8017 = vmatpush1.bf16.msra.mxu1 %v8016_v39  ;;  %v6197_v39 = vld [vmem:[%s13906_s3 + $0x950] sm:$0xff] }
 0x653   :  { %v3104_v34 = vpop.permute.xlu1 %3103  ;;  %8019 = vmatprep.subr.bf16.mxu1 %v8018_v45  ;;  %v13549_v45 = vrot.slane %v6332_v50, %v12132_v40  ;;  %v8048_v55 = vpack.c.bf16 %v6201_v56, %v6197_v39  ;;  %v6218_v40 = vld [vmem:[%s13906_s3 + $0x9f8] sm:$0xff]  ;;  %v6269_v29 = vld [vmem:[%s13906_s3 + $0xb90] sm:$0xff] }
 0x654   :  { %3252 = vst.msk [vmem:[#allocation2 + $0x238] sm:$0xff] %vm3180_vm11, %v3104_v34  ;;  %vm2813_vm11 = vcmask 681536   ;;  %v6213_v34 = vld [vmem:[%s13906_s3 + $0x9d0] sm:$0xff]  ;;  %v6282_v50 = vld [vmem:[%s13906_s3 + $0xbf8] sm:$0xff] }
 0x655   :  { %v6273_v33 = vld [vmem:[%s13906_s3 + $0xbb0] sm:$0xff] }
 0x656   :  { %8021 = vmatpush1.bf16.msra.mxu1 %v8020_v23  ;;  %v8054_v23 = vpack.c.bf16 %v6218_v40, %v6214_v43  ;;  %v6277_v39 = vld [vmem:[%s13906_s3 + $0xbd0] sm:$0xff]  ;;  %v6945_v43 = vld [vmem:[%s13908_s5 + $0x80] sm:$0xff]  ;;  %v6946_v40 = vld [vmem:[%s13908_s5 + $0x88] sm:$0xff] }
 0x657   :  { %v3544_v27 = vpop.permute.xlu1 %3543  ;;  %8023 = vmatprep.subr.bf16.mxu1 %v8022_v61  ;;  %v6217_v61 = vld [vmem:[%s13906_s3 + $0x9f0] sm:$0xff] }
 0x658   :  { %3692 = vst.msk [vmem:[#allocation2 + $0x238] sm:$0xff] %vm13930_vm10, %v3544_v27  ;;  %v8056_v35 = vpack.c.bf16 %v6217_v61, %v6213_v34  ;;  %v6225_v27 = vld [vmem:[%s13906_s3 + $0xa30] sm:$0xff]  ;;  %v6929_v34 = vld [vmem:[%s13908_s5] sm:$0xff]  ;;  %v6930_v61 = vld [vmem:[%s13908_s5 + $0x8] sm:$0xff] }
 0x659   :  { %v6281_v56 = vld [vmem:[%s13906_s3 + $0xbf0] sm:$0xff]  ;;  %v8096_v5 = vpack.c.bf16 %v6930_v61, %v6929_v34  ;;  %v6965_v61 = vld [vmem:[%s13908_s5 + $0x120] sm:$0xff] }
 0x65a   :  { %8025 = vmatpush1.bf16.msra.mxu1 %v8024_v20  ;;  %v6221_v20 = vld [vmem:[%s13906_s3 + $0xa10] sm:$0xff] }
 0x65b   :  { %v2666_v63 = vpop.permute.xlu1 %2665  ;;  %8027 = vmatprep.subr.bf16.mxu1 %v8026_v60  ;;  %v6230_v60 = vld [vmem:[%s13906_s3 + $0xa58] sm:$0xff]  ;;  %v8060_v32 = vpack.c.bf16 %v6225_v27, %v6221_v20  ;;  %v6949_v20 = vld [vmem:[%s13908_s5 + $0xa0] sm:$0xff]  ;;  %v6950_v27 = vld [vmem:[%s13908_s5 + $0xa8] sm:$0xff] }
 0x65c   :  { %2814 = vst.msk [vmem:[#allocation2 + $0x240] sm:$0x3] %vm2813_vm11, %v2666_v63  ;;  %v8062_v11 = vpack.c.bf16 %v6234_v48, %v6230_v60  ;;  %v6242_v63 = vld [vmem:[%s13906_s3 + $0xab8] sm:$0xff]  ;;  %v8102_v48 = vpack.c.bf16 %v6950_v27, %v6949_v20  ;;  %v6967_v20 = vld [vmem:[%s13908_s5 + $0x130] sm:$0xff] }
 0x65d   :  { %6777 = vmatmul.mubr.f32.vlgmr.msra.gmra.mrb[2].mxu1 %v12141_v9  ;;  %3254 = vst.msk [vmem:[#allocation2 + $0x240] sm:$0x3] %vm3253_vm12, %v3106_v44  ;;  %v6182_v9 = vld [vmem:[%s13906_s3 + $0x8d8] sm:$0xff] }
 0x65e   :  { %8029 = vmatpush1.bf16.msra.mxu1 %v8028_v41  ;;  %6847 = vmatprep.mubr.f32.mxu1 %v12961_v16  ;;  %v6186_v16 = vld [vmem:[%s13906_s3 + $0x8f8] sm:$0xff]  ;;  %v6233_v41 = vld [vmem:[%s13906_s3 + $0xa70] sm:$0xff] }
 0x65f   :  { %v3546_v46 = vpop.permute.xlu1 %3545  ;;  %8031 = vmatprep.subr.bf16.mxu1 %v8030_v47  ;;  %v3766_v53 = vld [vmem:[#allocation2 + $0x238] sm:$0xff]  ;;  %v8038_v3 = vpack.c.bf16 %v6186_v16, %v6182_v9  ;;  %v8064_v47 = vpack.c.bf16 %v6233_v41, %v6229_v12  ;;  %v6951_v12 = vld [vmem:[%s13908_s5 + $0xb0] sm:$0xff] }
 0x660   :  { %3694 = vst.msk [vmem:[#allocation2 + $0x240] sm:$0x3] %vm3693_vm15, %v3546_v46  ;;  %7675 = vmatmul.mubr.msk.f32.gmra.mrb[142].mxu0 %vm13931_vm2, %v3766_v53  ;;  %v6238_v44 = vld [vmem:[%s13906_s3 + $0xa98] sm:$0xff]  ;;  %v8068_v46 = vpack.c.bf16 %v6241_v51, %v6237_v54  ;;  %v6954_v54 = vld [vmem:[%s13908_s5 + $0xc8] sm:$0xff] }
 0x661   :  { %7677 = vmatprep.mubr.msk.f32.mxu0 %vm13917_vm14, %v8235_v14  ;;  %vm13932_vm14 = vmmov %vm13923_vm1  ;;  %v8066_v18 = vpack.c.bf16 %v6242_v63, %v6238_v44  ;;  %v6258_v9 = vld [vmem:[%s13906_s3 + $0xb38] sm:$0xff]  ;;  %v6935_v63 = vld [vmem:[%s13908_s5 + $0x30] sm:$0xff] }
 0x662   :  { %8033 = vmatpush1.bf16.msra.mxu1 %v8032_v7  ;;  %v6250_v7 = vld [vmem:[%s13906_s3 + $0xaf8] sm:$0xff] }
 0x663   :  { %8035 = vmatprep.subr.bf16.mxu1 %v8034_v62  ;;  %v8070_v53 = vpack.c.bf16 %v6250_v7, %v6246_v42  ;;  %v6245_v62 = vld [vmem:[%s13906_s3 + $0xad0] sm:$0xff]  ;;  %v6968_v27 = vld [vmem:[%s13908_s5 + $0x138] sm:$0xff] }
 0x664   :  { %v8072_v16 = vpack.c.bf16 %v6249_v6, %v6245_v62  ;;  %v6938_v62 = vld [vmem:[%s13908_s5 + $0x48] sm:$0xff] }
 0x666   :  { %8037 = vmatpush1.bf16.msra.mxu1 %v8036_v58  ;;  %v8074_v58 = vpack.c.bf16 %v6258_v9, %v6254_v13  ;;  %v6955_v13 = vld [vmem:[%s13908_s5 + $0xd0] sm:$0xff]  ;;  %v6956_v9 = vld [vmem:[%s13908_s5 + $0xd8] sm:$0xff] }
 0x667   :  { %v3767_v4 = vld [vmem:[#allocation2 + $0x240] sm:$0x3]  ;;  %8039 = vmatprep.subr.bf16.mxu1 %v8038_v3  ;;  %v6253_v3 = vld [vmem:[%s13906_s3 + $0xb10] sm:$0xff] }
 0x668   :  { %7678 = vmatmul.mubr.msk.f32.gmra.mrb[144].mxu0 %vm13932_vm14, %v3767_v4  ;;  %v8076_v19 = vpack.c.bf16 %v6257_v1, %v6253_v3  ;;  %v6270_v4 = vld [vmem:[%s13906_s3 + $0xb98] sm:$0xff] }
 0x669   :  { %6421 = vmatprep.mubr.f32.mxu0 %v12976_v26  ;;  %v6206_v26 = vld [vmem:[%s13906_s3 + $0x998] sm:$0xff] }
 0x66a   :  { %8041 = vmatpush1.bf16.msra.mxu1 %v8040_v24  ;;  %v8050_v22 = vpack.c.bf16 %v6210_v31, %v6206_v26  ;;  %v8078_v24 = vpack.c.bf16 %v6266_v30, %v6262_v15  ;;  %v6286_v26 = vld [vmem:[%s13906_s3 + $0xc18] sm:$0xff]  ;;  %v6957_v15 = vld [vmem:[%s13908_s5 + $0xe0] sm:$0xff]  ;;  %v6958_v30 = vld [vmem:[%s13908_s5 + $0xe8] sm:$0xff] }
 0x66b   :  { %8043 = vmatprep.subr.bf16.mxu1 %v8042_v28  ;;  %v6274_v28 = vld [vmem:[%s13906_s3 + $0xbb8] sm:$0xff] }
 0x66c   :  { %6422 = vmatmul.mubr.f32.vlgmr.msra.gmra.mrb[146].mxu0 %v12949_v10  ;;  %v6205_v10 = vld [vmem:[%s13906_s3 + $0x990] sm:$0xff]  ;;  %v8082_v25 = vpack.c.bf16 %v6274_v28, %v6270_v4  ;;  %v6290_v31 = vld [vmem:[%s13906_s3 + $0xc38] sm:$0xff] }
 0x66d   :  { %7897 = vmatpush1.bf16.msra.mxu0 %v7896_v52  ;;  %6634 = vmatprep.mubr.f32.mxu0 %v8235_v14  ;;  %v8052_v49 = vpack.c.bf16 %v6209_v36, %v6205_v10  ;;  %v6278_v52 = vld [vmem:[%s13906_s3 + $0xbd8] sm:$0xff]  ;;  %v6285_v10 = vld [vmem:[%s13906_s3 + $0xc10] sm:$0xff] }
 0x66e   :  { %8045 = vmatpush1.bf16.msra.mxu1 %v8044_v59  ;;  %v8084_v59 = vpack.c.bf16 %v6273_v33, %v6269_v29  ;;  %v6289_v36 = vld [vmem:[%s13906_s3 + $0xc30] sm:$0xff]  ;;  %v6940_v3 = vld [vmem:[%s13908_s5 + $0x58] sm:$0xff] }
 0x66f   :  { %8047 = vmatprep.subr.bf16.mxu1 %v8046_v17  ;;  %v8086_v17 = vpack.c.bf16 %v6282_v50, %v6278_v52  ;;  %v6943_v33 = vld [vmem:[%s13908_s5 + $0x70] sm:$0xff]  ;;  %v6944_v52 = vld [vmem:[%s13908_s5 + $0x78] sm:$0xff] }
 0x670   :  { %7273 = vmatmul.mubr.msk.f32.vlgmr.msra.gmra.mrb[148].mxu0 %vm6354_vm3, %v13549_v45  ;;  %v8124_v50 = vpack.c.bf16 %v6944_v52, %v6943_v33 }
 0x672   :  { %8049 = vmatpush1.bf16.msra.mxu1 %v8048_v55  ;;  %v8088_v55 = vpack.c.bf16 %v6281_v56, %v6277_v39  ;;  %v6961_v39 = vld [vmem:[%s13908_s5 + $0x100] sm:$0xff] }
 0x673   :  { %8051 = vmatprep.subr.bf16.mxu1 %v8050_v22  ;;  %v8090_v22 = vpack.c.bf16 %v6290_v31, %v6286_v26  ;;  %v6962_v26 = vld [vmem:[%s13908_s5 + $0x108] sm:$0xff]  ;;  %v6979_v31 = vld [vmem:[%s13908_s5 + $0x190] sm:$0xff] }
 0x676   :  { %8053 = vmatpush1.bf16.msra.mxu1 %v8052_v49  ;;  %v8092_v49 = vpack.c.bf16 %v6289_v36, %v6285_v10  ;;  %v6963_v36 = vld [vmem:[%s13908_s5 + $0x110] sm:$0xff] }
 0x677   :  { %8055 = vmatprep.subr.bf16.mxu1 %v8054_v23  ;;  %v8094_v23 = vpack.c.bf16 %v6946_v40, %v6945_v43  ;;  %v6964_v43 = vld [vmem:[%s13908_s5 + $0x118] sm:$0xff]  ;;  %v6981_v40 = vld [vmem:[%s13908_s5 + $0x1a0] sm:$0xff] }
 0x67a   :  { %8057 = vmatpush1.bf16.msra.mxu1 %v8056_v35 }
 0x67b   :  { %8059 = vmatprep.subr.bf16.mxu1 %v8058_v38  ;;  %v6932_v38 = vld [vmem:[%s13908_s5 + $0x18] sm:$0xff] }
 0x67e   :  { %8061 = vmatpush1.bf16.msra.mxu1 %v8060_v32  ;;  %v6933_v32 = vld [vmem:[%s13908_s5 + $0x20] sm:$0xff] }
 0x67f   :  { %8063 = vmatprep.subr.bf16.mxu1 %v8062_v11  ;;  %v6934_v11 = vld [vmem:[%s13908_s5 + $0x28] sm:$0xff] }
 0x680   :  { %v8104_v41 = vpack.c.bf16 %v6934_v11, %v6933_v32  ;;  %v6986_v32 = vld [vmem:[%s13908_s5 + $0x1c8] sm:$0xff]  ;;  %v8140_v11 = vpack.c.bf16 %v6968_v27, %v6967_v20 }
 0x682   :  { %8065 = vmatpush1.bf16.msra.mxu1 %v8064_v47  ;;  %v6936_v47 = vld [vmem:[%s13908_s5 + $0x38] sm:$0xff] }
 0x683   :  { %8067 = vmatprep.subr.bf16.mxu1 %v8066_v18  ;;  %v6953_v18 = vld [vmem:[%s13908_s5 + $0xc0] sm:$0xff]  ;;  %v8108_v51 = vpack.c.bf16 %v6936_v47, %v6935_v63  ;;  %v6988_v63 = vld [vmem:[%s13908_s5 + $0x1d8] sm:$0xff] }
 0x684   :  { %v8110_v42 = vpack.c.bf16 %v6954_v54, %v6953_v18  ;;  %v6971_v54 = vld [vmem:[%s13908_s5 + $0x150] sm:$0xff] }
 0x686   :  { %8069 = vmatpush1.bf16.msra.mxu1 %v8068_v46 }
 0x687   :  { %8071 = vmatprep.subr.bf16.mxu1 %v8070_v53  ;;  %v6937_v53 = vld [vmem:[%s13908_s5 + $0x40] sm:$0xff] }
 0x688   :  { %v8112_v6 = vpack.c.bf16 %v6938_v62, %v6937_v53  ;;  %v6990_v53 = vld [vmem:[%s13908_s5 + $0x1e8] sm:$0xff] }
 0x68a   :  { %8073 = vmatpush1.bf16.msra.mxu1 %v8072_v16  ;;  %v8114_v16 = vpack.c.bf16 %v6956_v9, %v6955_v13 }
 0x68b   :  { %8075 = vmatprep.subr.bf16.mxu1 %v8074_v58  ;;  %v6939_v58 = vld [vmem:[%s13908_s5 + $0x50] sm:$0xff] }
 0x68c   :  { %v8116_v1 = vpack.c.bf16 %v6940_v3, %v6939_v58  ;;  %v6973_v3 = vld [vmem:[%s13908_s5 + $0x160] sm:$0xff] }
 0x68e   :  { %8077 = vmatpush1.bf16.msra.mxu1 %v8076_v19  ;;  %v8118_v19 = vpack.c.bf16 %v6958_v30, %v6957_v15  ;;  %v6991_v30 = vld [vmem:[%s13908_s5 + $0x1f0] sm:$0xff] }
 0x68f   :  { %8079 = vmatprep.subr.bf16.mxu1 %v8078_v24  ;;  %v6941_v24 = vld [vmem:[%s13908_s5 + $0x60] sm:$0xff] }
 0x690   :  { %v8120_v4 = vpack.c.bf16 %v6942_v37, %v6941_v24  ;;  %v6975_v37 = vld [vmem:[%s13908_s5 + $0x170] sm:$0xff] }
 0x692   :  { %8081 = vmatpush1.bf16.msra.mxu1 %v8080_v2  ;;  %v6959_v2 = vld [vmem:[%s13908_s5 + $0xf0] sm:$0xff] }
 0x693   :  { %8083 = vmatprep.subr.bf16.mxu1 %v8082_v25  ;;  %v6960_v25 = vld [vmem:[%s13908_s5 + $0xf8] sm:$0xff] }
 0x694   :  { %v8122_v29 = vpack.c.bf16 %v6960_v25, %v6959_v2 }
 0x696   :  { %8085 = vmatpush1.bf16.msra.mxu1 %v8084_v59  ;;  %v6977_v59 = vld [vmem:[%s13908_s5 + $0x180] sm:$0xff] }
 0x697   :  { %8087 = vmatprep.subr.bf16.mxu1 %v8086_v17  ;;  %v6978_v17 = vld [vmem:[%s13908_s5 + $0x188] sm:$0xff] }
 0x698   :  { %v8126_v56 = vpack.c.bf16 %v6978_v17, %v6977_v59  ;;  %v6295_v17 = vsub.s32 0, %v12125_v57 }
 0x69a   :  { %8089 = vmatpush1.bf16.msra.mxu1 %v8088_v55  ;;  %v6980_v55 = vld [vmem:[%s13908_s5 + $0x198] sm:$0xff]  ;;  %8127 = vmatprep.subr.bf16.mxu0 %v8126_v56  ;;  %v6299_v56 = vsub.s32 1, %v12125_v57 }
 0x69b   :  { %8091 = vmatprep.subr.bf16.mxu1 %v8090_v22  ;;  %v8128_v22 = vpack.c.bf16 %v6962_v26, %v6961_v39  ;;  %v8130_v10 = vpack.c.bf16 %v6980_v55, %v6979_v31  ;;  %v6291_v39 = vld [vmem:[%s13907_s4] sm:$0xf] }
 0x69c   :  { %v6296_v55 = vrot.slane %v6291_v39, %v6295_v17 }
 0x69d   :  { %6848 = vmatmul.mubr.f32.vlgmr.msra.gmra.mrb[2].mxu1 %v12947_v0  ;;  %v6948_v0 = vld [vmem:[%s13908_s5 + $0x98] sm:$0xff]  ;;  %8129 = vmatpush3.bf16.msra.mxu0 %v8128_v22  ;;  %v6300_v22 = vrot.slane %v6291_v39, %v6299_v56 }
 0x69e   :  { %8093 = vmatpush1.bf16.msra.mxu1 %v8092_v49  ;;  %6918 = vmatprep.mubr.f32.mxu1 %v8235_v14  ;;  %v8098_v35 = vpack.c.bf16 %v6948_v0, %v6947_v8  ;;  %v6931_v14 = vld [vmem:[%s13908_s5 + $0x10] sm:$0xff]  ;;  %v6982_v49 = vld [vmem:[%s13908_s5 + $0x1a8] sm:$0xff] }
 0x69f   :  { %8095 = vmatprep.subr.bf16.mxu1 %v8094_v23  ;;  %v8100_v60 = vpack.c.bf16 %v6932_v38, %v6931_v14  ;;  %v8132_v23 = vpack.c.bf16 %v6964_v43, %v6963_v36  ;;  %8131 = vmatprep.subr.bf16.mxu0 %v8130_v10  ;;  %v8134_v34 = vpack.c.bf16 %v6982_v49, %v6981_v40  ;;  %v6966_v8 = vld [vmem:[%s13908_s5 + $0x128] sm:$0xff]  ;;  %v6983_v0 = vld [vmem:[%s13908_s5 + $0x1b0] sm:$0xff] }
 0x6a1   :  { %8133 = vmatpush3.bf16.msra.mxu0 %v8132_v23 }
 0x6a2   :  { %8135 = vmatprep.subr.bf16.mxu0 %v8134_v34 }
 0x6a5   :  { %7274 = vmatmul.mubr.msk.f32.vlgmr.msra.gmra.mrb[2].mxu1 %vm6354_vm3, %v13549_v45  ;;  %v6952_v45 = vld [vmem:[%s13908_s5 + $0xb8] sm:$0xff] }
 0x6a6   :  { %8097 = vmatpush3.bf16.msra.mxu1 %v8096_v5  ;;  %v8106_v44 = vpack.c.bf16 %v6952_v45, %v6951_v12  ;;  %v6984_v5 = vld [vmem:[%s13908_s5 + $0x1b8] sm:$0xff]  ;;  %v6969_v45 = vld [vmem:[%s13908_s5 + $0x140] sm:$0xff] }
 0x6a7   :  { %8099 = vmatprep.subr.bf16.mxu1 %v8098_v35  ;;  %v8136_v35 = vpack.c.bf16 %v6966_v8, %v6965_v61  ;;  %v8138_v38 = vpack.c.bf16 %v6984_v5, %v6983_v0 }
 0x6a9   :  { %8137 = vmatpush3.bf16.msra.mxu0 %v8136_v35 }
 0x6aa   :  { %8101 = vmatpush3.bf16.msra.mxu1 %v8100_v60  ;;  %8139 = vmatprep.subr.bf16.mxu0 %v8138_v38  ;;  %v6307_v38 = vsub.s32 3, %v12125_v57 }
 0x6ab   :  { %8103 = vmatprep.subr.bf16.mxu1 %v8102_v48  ;;  %v6985_v48 = vld [vmem:[%s13908_s5 + $0x1c0] sm:$0xff] }
 0x6ac   :  { %v8142_v12 = vpack.c.bf16 %v6986_v32, %v6985_v48  ;;  %v6308_v27 = vrot.slane %v6291_v39, %v6307_v38 }
 0x6ad   :  { %8141 = vmatpush3.bf16.msra.mxu0 %v8140_v11 }
 0x6ae   :  { %8105 = vmatpush3.bf16.msra.mxu1 %v8104_v41  ;;  %v6970_v41 = vld [vmem:[%s13908_s5 + $0x148] sm:$0xff]  ;;  %8143 = vmatprep.subr.bf16.mxu0 %v8142_v12 }
 0x6af   :  { %8107 = vmatprep.subr.bf16.mxu1 %v8106_v44  ;;  %v6987_v44 = vld [vmem:[%s13908_s5 + $0x1d0] sm:$0xff]  ;;  %v8144_v47 = vpack.c.bf16 %v6970_v41, %v6969_v45 }
 0x6b0   :  { %v13737_v7 = vpop.f32.mrb[0].mxu1  ;;  %v8146_v18 = vpack.c.bf16 %v6988_v63, %v6987_v44  ;;  %v7275_v44 = vld [vmem:[%s13909_s6] ss:$0 sm:$0xff] }
 0x6b1   :  { %v13739_v46 = vpop.f32.mrb[1].mxu1  ;;  %8145 = vmatpush3.bf16.msra.mxu0 %v8144_v47 }
 0x6b2   :  { %8109 = vmatpush3.bf16.msra.mxu1 %v8108_v51  ;;  %v6972_v51 = vld [vmem:[%s13908_s5 + $0x158] sm:$0xff]  ;;  %8147 = vmatprep.subr.bf16.mxu0 %v8146_v18 }
 0x6b3   :  { %8111 = vmatprep.subr.bf16.mxu1 %v8110_v42  ;;  %v6989_v42 = vld [vmem:[%s13908_s5 + $0x1e0] sm:$0xff]  ;;  %v8148_v62 = vpack.c.bf16 %v6972_v51, %v6971_v54 }
 0x6b5   :  { %8149 = vmatpush3.bf16.msra.mxu0 %v8148_v62 }
 0x6b6   :  { %8113 = vmatpush3.bf16.msra.mxu1 %v8112_v6  ;;  %v8150_v6 = vpack.c.bf16 %v6990_v53, %v6989_v42 }
 0x6b7   :  { %8115 = vmatprep.subr.bf16.mxu1 %v8114_v16 }
 0x6b8   :  { %8151 = vmatprep.subr.bf16.mxu0 %v8150_v6 }
 0x6ba   :  { %8117 = vmatpush3.bf16.msra.mxu1 %v8116_v1  ;;  %v6974_v1 = vld [vmem:[%s13908_s5 + $0x168] sm:$0xff] }
 0x6bb   :  { %8119 = vmatprep.subr.bf16.mxu1 %v8118_v19  ;;  %v8152_v15 = vpack.c.bf16 %v6974_v1, %v6973_v3  ;;  %v6992_v19 = vld [vmem:[%s13908_s5 + $0x1f8] sm:$0xff] }
 0x6bc   :  { %v8154_v24 = vpack.c.bf16 %v6992_v19, %v6991_v30 }
 0x6bd   :  { %8153 = vmatpush3.bf16.msra.mxu0 %v8152_v15 }
 0x6be   :  { %8121 = vmatpush3.bf16.msra.mxu1 %v8120_v4  ;;  %8155 = vmatprep.subr.bf16.mxu0 %v8154_v24 }
 0x6bf   :  { %8123 = vmatprep.subr.bf16.mxu1 %v8122_v29 }
 0x6c2   :  { %8125 = vmatpush3.bf16.msra.mxu1 %v8124_v50 }
 0x6c3   :  { %v4399_v21 = vpop.f32.mrb[128].mxu0 }
 0x6c4   :  { %v7655_v28 = vpop.f32.mrb[129].mxu0  ;;  %v6976_v21 = vld [vmem:[%s13908_s5 + $0x178] sm:$0xff] }
 0x6c5   :  { %v8156_v4 = vpack.c.bf16 %v6976_v21, %v6975_v37 }
 0x6c7   :  { %8157 = vmatpush3.bf16.msra.mxu0 %v8156_v4 }
 0x6d3   :  { %v4404_v14 = vpop.f32.mrb[130].mxu0 }
 0x6d4   :  { %v7658_v60 = vpop.f32.mrb[131].mxu0  ;;  %v6303_v14 = vsub.s32 2, %v12125_v57 }
 0x6d6   :  { %v6304_v20 = vrot.slane %v6291_v39, %v6303_v14 }
 0x6e3   :  { %v4409_v13 = vpop.f32.mrb[132].mxu0 }
 0x6e4   :  { %v7661_v9 = vpop.f32.mrb[133].mxu0 }
 0x6f3   :  { %v4414_v16 = vpop.f32.mrb[134].mxu0 }
 0x6f4   :  { %v7664_v58 = vpop.f32.mrb[135].mxu0 }
 0x703   :  { %v4419_v28 = vpop.f32.mrb[136].mxu0 }
 0x704   :  { %v7667_v2 = vpop.f32.mrb[137].mxu0 }
 0x713   :  { %v4424_v25 = vpop.f32.mrb[138].mxu0 }
 0x714   :  { %v7670_v29 = vpop.f32.mrb[139].mxu0 }
 0x723   :  { %v4429_v33 = vpop.f32.mrb[140].mxu0 }
 0x724   :  { %v7673_v52 = vpop.f32.mrb[141].mxu0 }
 0x733   :  { %v4434_v50 = vpop.f32.mrb[142].mxu0 }
 0x734   :  { %v7676_v59 = vpop.f32.mrb[143].mxu0 }
 0x73b   :  { %v4439_v26 = vpop.f32.mrb[144].mxu0 }
 0x73c   :  { %v7679_v31 = vpop.f32.mrb[145].mxu0 }
 0x73f   :  { %v6423_v10 = vpop.f32.mrb[146].mxu0 }
 0x740   :  { %v6424_v36 = vadd.f32 %v6423_v10, %v6296_v55  ;;  %v6425_v43 = vpop.f32.mrb[147].mxu0 }
 0x741   :  { %v6426_v40 = vadd.f32 %v6425_v43, %v6300_v22 }
 0x742   :  { %v8159_v49 = vadd.f32 %v13737_v7, %v6424_v36 }
 0x743   :  { %v6636_v23 = vpop.f32.mrb[148].mxu0  ;;  %v8162_v34 = vadd.f32 %v13739_v46, %v6426_v40 }
 0x744   :  { %v8160_v61 = vadd.f32 %v8159_v49, %v6636_v23  ;;  %v6638_v8 = vpop.f32.mrb[149].mxu0 }
 0x745   :  { %v8163_v0 = vadd.f32 %v8162_v34, %v6638_v8 }
 0x746   :  { %v6925_v35 = vmax.f32 %v8160_v61, 0.0 }
 0x747   :  { %v6926_v5 = vmax.f32 %v8163_v0, 0.0 }
 0x749   :  { %7064 = vmatprep.mubr.f32.mxu1 %v6926_v5 }
 0x74a   :  { %7065 = vmatmul.mubr.f32.vlgmr.msra.gmra.mrb[4].mxu1 %v6925_v35 }
 0x778   :  { %v6920_v60 = vpop.f32.mrb[2].mxu1 }
 0x779   :  { %v8164_v48 = vadd.f32 %v6920_v60, %v6304_v20  ;;  %v6922_v32 = vpop.f32.mrb[3].mxu1 }
 0x77a   :  { %v8165_v7 = vadd.f32 %v6922_v32, %v6308_v27 }
 0x77b   :  { %v6927_v12 = vmax.f32 %v8164_v48, 0.0 }
 0x77c   :  { %v6928_v11 = vmax.f32 %v8165_v7, 0.0 }
 0x77e   :  { %7134 = vmatprep.mubr.f32.mxu0 %v6928_v11 }
 0x77f   :  { %7135 = vmatmul.mubr.f32.vlgmr.msra.gmra.mrb[150].mxu0 %v6927_v12 }
 0x81d   :  { %v7395_v46 = vpop.f32.mrb[4].mxu1 }
 0x81e   :  { %v7396_v45 = vpop.f32.mrb[5].mxu1 }
 0x81f   :  { %v7397_v41 = vadd.f32 %v7396_v45, %v7395_v46 }
 0x821   :  { %v7067_v57 = vadd.f32 %v7397_v41, %v7275_v44 }
 0x852   :  { %v7430_v63 = vpop.f32.mrb[150].mxu0 }
 0x853   :  { %v7431_v47 = vpop.f32.mrb[151].mxu0 }
 0x854   :  { %v7432_v18 = vadd.f32 %v7431_v47, %v7430_v63 }
 0x856   :  { %v7137_v54 = vadd.f32 %v7432_v18, %v7067_v57 }
 0x858   :  { %7141 = vst.msk [vmem:[#allocation6] sm:$0x3] %vm7140_vm4, %v7137_v54 }
 0x859   :  { %8214 = shalt.err (!%p8211_p4)
}
 0x85a   :  { %s8215_s6 = scalar_lea.hbm %s13910_s7, 32 }
 0x85b   :  { %p8216_p5 = scmp.ne.s32.totalorder %s13910_s7, %s8215_s6  ;;  %p8219_p6 = scmp.lt.u32.totalorder %s8215_s6, %s13910_s7 }
 0x85d   :  { %p8221_p7 = pnand %p8219_p6, %p8216_p5 }
 0x85f   :  { %8224 = shalt.err (!%p8221_p7)
}
 0x860   :  { %7151 = dma.vmem_to_hbm [thread:$0]  %s7149_s11, 32, %s13910_s7, [#allocation7]  }
 0x861   :  { %8225 = dma.done.wait [#allocation7], 32  }
 0x862   :  { %8226 = vsyncadd [#allocation7], 4294967264 }
 0x863   :  { %7155 = vsyncpa [#allocation7], 1 }

</bundles_post_ra>
